<compile_context>
chip_gen: v5e
topology: v5e:2x2
jax: 0.10.0
libtpu: 0.0.40
codegen_flags: <defaults>
</compile_context>

<pallas_src>
import numpy as np
import jax
import jax.numpy as jnp
from jax import lax
from jax.experimental import pallas as pl
from jax.experimental.pallas import tpu as pltpu

F32 = jnp.float32
BF16 = jnp.bfloat16
LANE = 128
BN_EPS = 1e-5


def _lane_pad(n):
    return max(LANE, (n + LANE - 1) // LANE * LANE)


# ----------------------------------------------------------------------------
# Parameters (pre-padded to lane multiples, matmul weights stored in bf16)
# ----------------------------------------------------------------------------
def _pad_w(w, rows, cols, dtype=BF16):
    out = np.zeros((rows, cols), np.float32)
    out[: w.shape[0], : w.shape[1]] = np.asarray(w, np.float32)
    return jnp.asarray(out, dtype)


def _pad_b(b, cols, dtype=F32):
    out = np.zeros((1, cols), np.float32)
    out[0, : b.shape[0]] = np.asarray(b, np.float32)
    return jnp.asarray(out, dtype)


def _init_linear(key, fan_in, fan_out):
    k1, k2 = jax.random.split(key)
    w = jax.random.normal(k1, (fan_in, fan_out), F32) / np.sqrt(float(fan_in))
    b = 0.01 * jax.random.normal(k2, (fan_out,), F32)
    return np.asarray(w), np.asarray(b)


def make_params(key, feat_dim, emb_dim, hid_dim, dense_dim, hidden=128):
    ks = jax.random.split(key, 9)
    FPp, Ep = _lane_pad(feat_dim), _lane_pad(emb_dim)
    Hp, Dp = _lane_pad(hid_dim), _lane_pad(dense_dim)
    Hc = hidden  # ConvolutionalLayer hidden_dim = 128 (fixed in the module)

    p = {}
    w, b = _init_linear(ks[0], feat_dim, emb_dim)
    p["emb_w"], p["emb_b"] = _pad_w(w, FPp, Ep), _pad_b(b, Ep)

    def conv(k, cin, cin_p, cout, cout_p, merge_halves):
        k1, k2 = jax.random.split(k)
        w1, b1 = _init_linear(k1, 2 * cin, Hc)
        w2, b2 = _init_linear(k2, Hc, cout)
        d = {
            "b1": _pad_b(b1, Hc),
            "gamma": _pad_b(np.ones((Hc,), np.float32), Hc),
            "beta": _pad_b(np.zeros((Hc,), np.float32), Hc),
            "w2": _pad_w(w2, Hc, cout_p),
            "b2": _pad_b(b2, cout_p),
        }
        if merge_halves:
            # conv1: singleton source domains -> both transfer1 halves are
            # identical, so lin1 collapses to a single matrix (w1a + w1b).
            d["w1"] = _pad_w(w1[:cin] + w1[cin:], cin_p, Hc)
        else:
            d["w1a"] = _pad_w(w1[:cin], cin_p, Hc)
            d["w1b"] = _pad_w(w1[cin:], cin_p, Hc)
        return d

    p["conv"] = [
        conv(ks[1], emb_dim, Ep, hid_dim, Hp, True),
        conv(ks[2], hid_dim, Hp, hid_dim, Hp, False),
        conv(ks[3], hid_dim, Hp, hid_dim, Hp, False),
        conv(ks[4], hid_dim, Hp, dense_dim, Dp, False),
    ]
    p["bn_gamma"] = _pad_b(np.ones((dense_dim,), np.float32), Dp)
    p["bn_beta"] = _pad_b(np.zeros((dense_dim,), np.float32), Dp)
    for i, name in ((5, "lin1"), (6, "lin2"), (7, "lin3")):
        w, b = _init_linear(ks[i], dense_dim, dense_dim)
        p[f"{name}_w"] = _pad_w(w, Dp, Dp)
        p[f"{name}_b"] = _pad_b(b, Dp)
    return p


# ----------------------------------------------------------------------------
# Graph-derived constants (precomputed once with numpy)
# ----------------------------------------------------------------------------
def k_hop_masks(adj, max_k):
    """G.nhoods(k): vertices within graph distance <= k (incl. self)."""
    n = adj.shape[0]
    adj_i = adj.astype(np.int32) | np.eye(n, dtype=np.int32)
    masks = {}
    reach = np.eye(n, dtype=np.int32)
    for k in range(1, max_k + 1):
        reach = ((reach @ adj_i) > 0).astype(np.int32)
        masks[k] = reach.astype(np.float32)
    return masks


def build_structural(S, T):
    """0/1 operators on the flat (p*A + a, c) layout implementing transfer1.

    Y_id[(p,a)] = T[p,a] * sum_q X[(q,a)]
    Y_bc[(p,a)] = T[p,a] * sum_q S[q,a] * sum_a' T[p,a'] * X[(q,a')]
    """
    P, A = T.shape
    Q = S.shape[0]
    eyeA = np.eye(A, dtype=np.float32)
    g_id = (T[:, :, None, None] * eyeA[None, :, None, :]
            * np.ones((1, 1, Q, 1), np.float32)).reshape(P * A, Q * A)
    g_bc = (T[:, :, None, None] * S.T[None, :, :, None]
            * T[:, None, None, :]).reshape(P * A, Q * A)
    return g_id, g_bc


def make_consts(adj, dense_dim, feat_dim=11):
    n = adj.shape[0]
    pa = n * n
    nh = k_hop_masks(adj, 4)
    masks, gs, inv_n = [], [], []
    for k in range(1, 5):
        T = nh[k]
        masks.append(jnp.asarray(T.reshape(pa, 1), F32))
        inv_n.append(float(1.0 / max(float(T.sum()), 1.0)))  # compile-time 1/n
        if k >= 2:
            # stacked [id ; bc] operator (0/1 entries: exact in bf16)
            g_id, g_bc = build_structural(nh[k - 1], T)
            gs.append(jnp.asarray(np.vstack([g_id, g_bc]), BF16))
    return {"N": n, "PA": pa, "FP": _lane_pad(feat_dim), "dense_dim": dense_dim,
            "mask": masks, "gs": gs, "inv_n": tuple(inv_n)}


# ----------------------------------------------------------------------------
# Single fused Pallas kernel (whole forward, batched over molecules)
# ----------------------------------------------------------------------------
def build_forward(consts, params, batch, graphs_per_block):
    N, PA, FP = consts["N"], consts["PA"], consts["FP"]
    GPB = graphs_per_block
    assert batch % GPB == 0, "batch must be divisible by graphs_per_block"
    grid = (batch // GPB,)
    NB = GPB * N          # node rows per block
    RB = GPB * PA         # (domain, atom) rows per block
    inv_n = consts["inv_n"]
    masks, gss = consts["mask"], consts["gs"]
    p = params
    c1, c2, c3, c4 = p["conv"]

    Ep = p["emb_w"].shape[1]
    Hc = c1["w2"].shape[0]
    Hp = c1["w2"].shape[1]
    Dp = c4["w2"].shape[1]

    # ---- in-kernel helpers -------------------------------------------------
    def masked_bn(h2d, m_ref, gamma_ref, beta_ref, invn):
        """Per-molecule BatchNorm over valid ptensor rows (batch statistics)."""
        hc = h2d.shape[-1]
        h = h2d.reshape(GPB, PA, hc)
        mb = m_ref[...].reshape(1, PA, 1)
        mean = jnp.sum(h * mb, axis=1, keepdims=True) * invn
        d = h - mean
        var = jnp.sum(d * d * mb, axis=1, keepdims=True) * invn
        out = d * lax.rsqrt(var + BN_EPS) * gamma_ref[...] + beta_ref[...]
        return out.reshape(GPB * PA, hc)

    def conv_transfer(x3, gs_ref):
        """transfer1 for GPB molecules with the stacked [id ; bc] operator."""
        xb = x3.astype(BF16)                       # [GPB, PA, C]
        gs = gs_ref[...]                           # [2*PA, PA] bf16
        ids, bcs = [], []
        for g in range(GPB):                       # static unroll (GPB small)
            yg = jnp.dot(gs, xb[g], preferred_element_type=F32)   # [2*PA, C]
            ids.append(yg[:PA])
            bcs.append(yg[PA:])
        return jnp.concatenate(ids, axis=0), jnp.concatenate(bcs, axis=0)

    def conv_layer(x3, gs_ref, m_ref, w1a_ref, w1b_ref, b1_ref, g_ref, be_ref,
                   w2_ref, b2_ref, invn):
        y_id, y_bc = conv_transfer(x3, gs_ref)
        h = jnp.dot(y_id.astype(BF16), w1a_ref[...], preferred_element_type=F32)
        h = h + jnp.dot(y_bc.astype(BF16), w1b_ref[...], preferred_element_type=F32)
        h = jnp.maximum(h + b1_ref[...], 0.0)                     # [RB, Hc]
        h = masked_bn(h, m_ref, g_ref, be_ref, invn)
        # dropout -> identity (inference); lin2 + re-mask (keeps the
        # "invalid (p,a) rows are exactly zero" invariant for the next transfer)
        out = jnp.dot(h.astype(BF16), w2_ref[...], preferred_element_type=F32)
        out = out + b2_ref[...]
        return out.reshape(GPB, PA, -1) * m_ref[...].reshape(1, PA, 1)

    # ---- the fused kernel ----------------------------------------------------
    def kernel(x_ref,
               m1_ref, m2_ref, m3_ref, m4_ref,
               gs2_ref, gs3_ref, gs4_ref,
               ew_ref, eb_ref,
               c1w1_ref, c1b1_ref, c1g_ref, c1be_ref, c1w2_ref, c1b2_ref,
               c2w1a_ref, c2w1b_ref, c2b1_ref, c2g_ref, c2be_ref, c2w2_ref, c2b2_ref,
               c3w1a_ref, c3w1b_ref, c3b1_ref, c3g_ref, c3be_ref, c3w2_ref, c3b2_ref,
               c4w1a_ref, c4w1b_ref, c4b1_ref, c4g_ref, c4be_ref, c4w2_ref, c4b2_ref,
               bng_ref, bnbe_ref, l1w_ref, l1b_ref, l2w_ref, l2b_ref, l3w_ref, l3b_ref,
               o_ref):
        # -- embedding: ptensors0 -> linmaps1 -> Linear(11, E), row-wise --
        emb = jnp.dot(x_ref[...].astype(BF16), ew_ref[...],
                      preferred_element_type=F32) + eb_ref[...]       # [NB, Ep]

        # -- conv1: singleton source domains make both transfer halves equal to
        #    mask1 * tile_over_domains(emb); lin1 collapses to (w1a + w1b). --
        z = jnp.dot(emb.astype(BF16), c1w1_ref[...],
                    preferred_element_type=F32)                        # [NB, Hc]
        z_rows = []
        for g in range(GPB):                     # tile each molecule's z over p
            zg = z[g * N:(g + 1) * N, :]
            z_rows.extend([zg] * N)
        z_t = jnp.concatenate(z_rows, axis=0).reshape(GPB, PA, Hc)
        m1_3 = m1_ref[...].reshape(1, PA, 1)
        h = jnp.maximum(z_t * m1_3 + c1b1_ref[...], 0.0).reshape(RB, Hc)
        h = masked_bn(h, m1_ref, c1g_ref, c1be_ref, inv_n[0])
        # dropout -> identity; lin2 + re-mask
        x1 = jnp.dot(h.astype(BF16), c1w2_ref[...], preferred_element_type=F32)
        x1 = (x1 + c1b2_ref[...]).reshape(GPB, PA, Hp) * m1_3

        # -- conv2..4: stacked structural operator + fused lin1/bn/lin2 --
        x2 = conv_layer(x1, gs2_ref, m2_ref, c2w1a_ref, c2w1b_ref, c2b1_ref,
                        c2g_ref, c2be_ref, c2w2_ref, c2b2_ref, inv_n[1])
        x3 = conv_layer(x2, gs3_ref, m3_ref, c3w1a_ref, c3w1b_ref, c3b1_ref,
                        c3g_ref, c3be_ref, c3w2_ref, c3b2_ref, inv_n[2])
        x4 = conv_layer(x3, gs4_ref, m4_ref, c4w1a_ref, c4w1b_ref, c4b1_ref,
                        c4g_ref, c4be_ref, c4w2_ref, c4b2_ref, inv_n[3])

        # -- tail: batchnorm -> lin1.relu -> lin2.relu -> lin3 -> linmaps0 --
        h = masked_bn(x4.reshape(RB, Dp), m4_ref, bng_ref, bnbe_ref, inv_n[3])
        h = jnp.maximum(jnp.dot(h.astype(BF16), l1w_ref[...],
                                preferred_element_type=F32) + l1b_ref[...], 0.0)
        # dropout -> identity
        h = jnp.maximum(jnp.dot(h.astype(BF16), l2w_ref[...],
                                preferred_element_type=F32) + l2b_ref[...], 0.0)
        # dropout -> identity
        h = jnp.dot(h.astype(BF16), l3w_ref[...],
                    preferred_element_type=F32) + l3b_ref[...]
        # mask invalid (p,a) rows once, then linmaps0: per-domain sum over atoms
        h = h.reshape(GPB, PA, Dp) * m4_ref[...].reshape(1, PA, 1)
        o_ref[...] = jnp.sum(h.reshape(GPB * N, N, Dp), axis=1)       # [NB, Dp]

    # ---- VMEM-resident weight / operator operands (constant index maps) ----
    const_arrays = [
        masks[0], masks[1], masks[2], masks[3],
        gss[0], gss[1], gss[2],
        p["emb_w"], p["emb_b"],
        c1["w1"], c1["b1"], c1["gamma"], c1["beta"], c1["w2"], c1["b2"],
    ]
    for c in (c2, c3, c4):
        const_arrays += [c["w1a"], c["w1b"], c["b1"], c["gamma"], c["beta"],
                         c["w2"], c["b2"]]
    const_arrays += [p["bn_gamma"], p["bn_beta"],
                     p["lin1_w"], p["lin1_b"], p["lin2_w"], p["lin2_b"],
                     p["lin3_w"], p["lin3_b"]]

    x_spec = pl.BlockSpec((NB, FP), lambda b: (b, 0))
    const_specs = [pl.BlockSpec(a.shape, lambda b: (0, 0)) for a in const_arrays]
    out_spec = pl.BlockSpec((NB, Dp), lambda b: (b, 0))

    # advisory cost estimate for the XLA scheduler
    flops_block = 2 * (
        NB * FP * Ep + NB * Ep * Hc                 # embedding + conv1 lin1
        + 3 * GPB * (2 * PA) * PA * Hp              # conv2-4 transfers
        + 3 * 2 * RB * Hp * Hc                      # conv2-4 lin1 halves
        + 3 * RB * Hc * Hp + RB * Hc * Dp           # conv1-3 lin2 + conv4 lin2
        + 3 * RB * Dp * Dp)                         # tail lin1-3
    bytes_block = (sum(int(a.size) * a.dtype.itemsize for a in const_arrays)
                   + NB * FP * 4 + NB * Dp * 4)
    cost = pl.CostEstimate(flops=int(flops_block * grid[0]),
                           transcendentals=int(5 * GPB * Dp * grid[0]),
                           bytes_accessed=int(bytes_block * grid[0]))

    fused = pl.pallas_call(
        kernel,
        out_shape=jax.ShapeDtypeStruct((batch * N, Dp), F32),
        grid=grid,
        in_specs=[x_spec] + const_specs,
        out_specs=out_spec,
        compiler_params=pltpu.CompilerParams(
            dimension_semantics=("parallel",)),
        cost_estimate=cost,
    )

    dense_dim = consts["dense_dim"]

    def forward(x_nodes):
        # x_nodes: [batch, N, feat] node features (one graph topology shared)
        feat = x_nodes.shape[-1]
        xb = jnp.zeros((batch * N, FP), F32)
        xb = xb.at[:, :feat].set(x_nodes.reshape(batch * N, feat).astype(F32))
        out = fused(xb, *const_arrays)
        return out[:, :dense_dim].reshape(batch, N, dense_dim)

    return forward


# ----------------------------------------------------------------------------
if __name__ == "__main__":
    N_NODES = 8
    FEAT_DIM = 11
    EMB_DIM, HID_DIM, DENSE_DIM = 64, 64, 128   # small, structure-faithful dims
    BATCH, GPB = 8, 4                           # 8 molecules, 4 per grid block

    key = jax.random.PRNGKey(0)
    k_x, k_p = jax.random.split(key)

    # ring-graph adjacency shared by every molecule in the batch
    adj = np.zeros((N_NODES, N_NODES), np.int32)
    for i in range(N_NODES):
        j = (i + 1) % N_NODES
        adj[i, j] = adj[j, i] = 1

    # node features [B, N, 11]; the torch signature's `batch` vector is unused
    x = jax.random.normal(k_x, (BATCH, N_NODES, FEAT_DIM), F32)
    batch_vec = jnp.zeros((BATCH * N_NODES,), jnp.int32)  # noqa: F841

    consts = make_consts(adj, DENSE_DIM, FEAT_DIM)
    params = make_params(k_p, FEAT_DIM, EMB_DIM, HID_DIM, DENSE_DIM)
    forward = build_forward(consts, params, BATCH, GPB)

    out = jax.block_until_ready(jax.jit(forward)(x))
    assert out.shape == (BATCH, N_NODES, DENSE_DIM)
    assert bool(jnp.all(jnp.isfinite(out)))
    print("KERNEL_OK")
</pallas_src>

<mosaic_0001>
module attributes {stable_mosaic.version = 11 : i64} {
  func.func @kernel(%arg0: i32, %arg1: memref<32x128xf32, #tpu.memory_space<vmem>>, %arg2: memref<64x1xf32, #tpu.memory_space<vmem>>, %arg3: memref<64x1xf32, #tpu.memory_space<vmem>>, %arg4: memref<64x1xf32, #tpu.memory_space<vmem>>, %arg5: memref<64x1xf32, #tpu.memory_space<vmem>>, %arg6: memref<128x64xbf16, #tpu.memory_space<vmem>>, %arg7: memref<128x64xbf16, #tpu.memory_space<vmem>>, %arg8: memref<128x64xbf16, #tpu.memory_space<vmem>>, %arg9: memref<128x128xbf16, #tpu.memory_space<vmem>>, %arg10: memref<1x128xf32, #tpu.memory_space<vmem>>, %arg11: memref<128x128xbf16, #tpu.memory_space<vmem>>, %arg12: memref<1x128xf32, #tpu.memory_space<vmem>>, %arg13: memref<1x128xf32, #tpu.memory_space<vmem>>, %arg14: memref<1x128xf32, #tpu.memory_space<vmem>>, %arg15: memref<128x128xbf16, #tpu.memory_space<vmem>>, %arg16: memref<1x128xf32, #tpu.memory_space<vmem>>, %arg17: memref<128x128xbf16, #tpu.memory_space<vmem>>, %arg18: memref<128x128xbf16, #tpu.memory_space<vmem>>, %arg19: memref<1x128xf32, #tpu.memory_space<vmem>>, %arg20: memref<1x128xf32, #tpu.memory_space<vmem>>, %arg21: memref<1x128xf32, #tpu.memory_space<vmem>>, %arg22: memref<128x128xbf16, #tpu.memory_space<vmem>>, %arg23: memref<1x128xf32, #tpu.memory_space<vmem>>, %arg24: memref<128x128xbf16, #tpu.memory_space<vmem>>, %arg25: memref<128x128xbf16, #tpu.memory_space<vmem>>, %arg26: memref<1x128xf32, #tpu.memory_space<vmem>>, %arg27: memref<1x128xf32, #tpu.memory_space<vmem>>, %arg28: memref<1x128xf32, #tpu.memory_space<vmem>>, %arg29: memref<128x128xbf16, #tpu.memory_space<vmem>>, %arg30: memref<1x128xf32, #tpu.memory_space<vmem>>, %arg31: memref<128x128xbf16, #tpu.memory_space<vmem>>, %arg32: memref<128x128xbf16, #tpu.memory_space<vmem>>, %arg33: memref<1x128xf32, #tpu.memory_space<vmem>>, %arg34: memref<1x128xf32, #tpu.memory_space<vmem>>, %arg35: memref<1x128xf32, #tpu.memory_space<vmem>>, %arg36: memref<128x128xbf16, #tpu.memory_space<vmem>>, %arg37: memref<1x128xf32, #tpu.memory_space<vmem>>, %arg38: memref<1x128xf32, #tpu.memory_space<vmem>>, %arg39: memref<1x128xf32, #tpu.memory_space<vmem>>, %arg40: memref<128x128xbf16, #tpu.memory_space<vmem>>, %arg41: memref<1x128xf32, #tpu.memory_space<vmem>>, %arg42: memref<128x128xbf16, #tpu.memory_space<vmem>>, %arg43: memref<1x128xf32, #tpu.memory_space<vmem>>, %arg44: memref<128x128xbf16, #tpu.memory_space<vmem>>, %arg45: memref<1x128xf32, #tpu.memory_space<vmem>>, %arg46: memref<32x128xf32, #tpu.memory_space<vmem>>) attributes {dimension_semantics = [#tpu.dimension_semantics<parallel>], iteration_bounds = array<i64: 2>, scalar_prefetch = 0 : i64, scratch_operands = 0 : i64, tpu.core_type = #tpu.core_type<tc>, window_params = [{transform_indices = @transform_0, window_bounds = array<i64: 32, 128>}, {pipeline_mode = #tpu.pipeline_mode<synchronous>, transform_indices = @transform_1, window_bounds = array<i64: 64, 1>}, {pipeline_mode = #tpu.pipeline_mode<synchronous>, transform_indices = @transform_2, window_bounds = array<i64: 64, 1>}, {pipeline_mode = #tpu.pipeline_mode<synchronous>, transform_indices = @transform_3, window_bounds = array<i64: 64, 1>}, {pipeline_mode = #tpu.pipeline_mode<synchronous>, transform_indices = @transform_4, window_bounds = array<i64: 64, 1>}, {pipeline_mode = #tpu.pipeline_mode<synchronous>, transform_indices = @transform_5, window_bounds = array<i64: 128, 64>}, {pipeline_mode = #tpu.pipeline_mode<synchronous>, transform_indices = @transform_6, window_bounds = array<i64: 128, 64>}, {pipeline_mode = #tpu.pipeline_mode<synchronous>, transform_indices = @transform_7, window_bounds = array<i64: 128, 64>}, {pipeline_mode = #tpu.pipeline_mode<synchronous>, transform_indices = @transform_8, window_bounds = array<i64: 128, 128>}, {pipeline_mode = #tpu.pipeline_mode<synchronous>, transform_indices = @transform_9, window_bounds = array<i64: 1, 128>}, {pipeline_mode = #tpu.pipeline_mode<synchronous>, transform_indices = @transform_10, window_bounds = array<i64: 128, 128>}, {pipeline_mode = #tpu.pipeline_mode<synchronous>, transform_indices = @transform_11, window_bounds = array<i64: 1, 128>}, {pipeline_mode = #tpu.pipeline_mode<synchronous>, transform_indices = @transform_12, window_bounds = array<i64: 1, 128>}, {pipeline_mode = #tpu.pipeline_mode<synchronous>, transform_indices = @transform_13, window_bounds = array<i64: 1, 128>}, {pipeline_mode = #tpu.pipeline_mode<synchronous>, transform_indices = @transform_14, window_bounds = array<i64: 128, 128>}, {pipeline_mode = #tpu.pipeline_mode<synchronous>, transform_indices = @transform_15, window_bounds = array<i64: 1, 128>}, {pipeline_mode = #tpu.pipeline_mode<synchronous>, transform_indices = @transform_16, window_bounds = array<i64: 128, 128>}, {pipeline_mode = #tpu.pipeline_mode<synchronous>, transform_indices = @transform_17, window_bounds = array<i64: 128, 128>}, {pipeline_mode = #tpu.pipeline_mode<synchronous>, transform_indices = @transform_18, window_bounds = array<i64: 1, 128>}, {pipeline_mode = #tpu.pipeline_mode<synchronous>, transform_indices = @transform_19, window_bounds = array<i64: 1, 128>}, {pipeline_mode = #tpu.pipeline_mode<synchronous>, transform_indices = @transform_20, window_bounds = array<i64: 1, 128>}, {pipeline_mode = #tpu.pipeline_mode<synchronous>, transform_indices = @transform_21, window_bounds = array<i64: 128, 128>}, {pipeline_mode = #tpu.pipeline_mode<synchronous>, transform_indices = @transform_22, window_bounds = array<i64: 1, 128>}, {pipeline_mode = #tpu.pipeline_mode<synchronous>, transform_indices = @transform_23, window_bounds = array<i64: 128, 128>}, {pipeline_mode = #tpu.pipeline_mode<synchronous>, transform_indices = @transform_24, window_bounds = array<i64: 128, 128>}, {pipeline_mode = #tpu.pipeline_mode<synchronous>, transform_indices = @transform_25, window_bounds = array<i64: 1, 128>}, {pipeline_mode = #tpu.pipeline_mode<synchronous>, transform_indices = @transform_26, window_bounds = array<i64: 1, 128>}, {pipeline_mode = #tpu.pipeline_mode<synchronous>, transform_indices = @transform_27, window_bounds = array<i64: 1, 128>}, {pipeline_mode = #tpu.pipeline_mode<synchronous>, transform_indices = @transform_28, window_bounds = array<i64: 128, 128>}, {pipeline_mode = #tpu.pipeline_mode<synchronous>, transform_indices = @transform_29, window_bounds = array<i64: 1, 128>}, {pipeline_mode = #tpu.pipeline_mode<synchronous>, transform_indices = @transform_30, window_bounds = array<i64: 128, 128>}, {pipeline_mode = #tpu.pipeline_mode<synchronous>, transform_indices = @transform_31, window_bounds = array<i64: 128, 128>}, {pipeline_mode = #tpu.pipeline_mode<synchronous>, transform_indices = @transform_32, window_bounds = array<i64: 1, 128>}, {pipeline_mode = #tpu.pipeline_mode<synchronous>, transform_indices = @transform_33, window_bounds = array<i64: 1, 128>}, {pipeline_mode = #tpu.pipeline_mode<synchronous>, transform_indices = @transform_34, window_bounds = array<i64: 1, 128>}, {pipeline_mode = #tpu.pipeline_mode<synchronous>, transform_indices = @transform_35, window_bounds = array<i64: 128, 128>}, {pipeline_mode = #tpu.pipeline_mode<synchronous>, transform_indices = @transform_36, window_bounds = array<i64: 1, 128>}, {pipeline_mode = #tpu.pipeline_mode<synchronous>, transform_indices = @transform_37, window_bounds = array<i64: 1, 128>}, {pipeline_mode = #tpu.pipeline_mode<synchronous>, transform_indices = @transform_38, window_bounds = array<i64: 1, 128>}, {pipeline_mode = #tpu.pipeline_mode<synchronous>, transform_indices = @transform_39, window_bounds = array<i64: 128, 128>}, {pipeline_mode = #tpu.pipeline_mode<synchronous>, transform_indices = @transform_40, window_bounds = array<i64: 1, 128>}, {pipeline_mode = #tpu.pipeline_mode<synchronous>, transform_indices = @transform_41, window_bounds = array<i64: 128, 128>}, {pipeline_mode = #tpu.pipeline_mode<synchronous>, transform_indices = @transform_42, window_bounds = array<i64: 1, 128>}, {pipeline_mode = #tpu.pipeline_mode<synchronous>, transform_indices = @transform_43, window_bounds = array<i64: 128, 128>}, {pipeline_mode = #tpu.pipeline_mode<synchronous>, transform_indices = @transform_44, window_bounds = array<i64: 1, 128>}, {transform_indices = @transform_45, window_bounds = array<i64: 32, 128>}]} {
    %c0 = arith.constant 0 : index
    %c0_0 = arith.constant 0 : index
    %0 = vector.load %arg1[%c0, %c0_0] : memref<32x128xf32, #tpu.memory_space<vmem>>, vector<32x128xf32>
    %1 = arith.truncf %0 : vector<32x128xf32> to vector<32x128xbf16>
    %c0_1 = arith.constant 0 : index
    %c0_2 = arith.constant 0 : index
    %2 = vector.load %arg9[%c0_1, %c0_2] : memref<128x128xbf16, #tpu.memory_space<vmem>>, vector<128x128xbf16>
    %cst = arith.constant dense<0.000000e+00> : vector<32x128xf32>
    %3 = tpu.matmul %1, %2, %cst {dimension_numbers = #tpu.dot_dimension_numbers<[1], [0], [0], [1], [0, 0, 1, 1], [], []>} : vector<32x128xbf16>, vector<128x128xbf16>, vector<32x128xf32> -> vector<32x128xf32>
    %c0_3 = arith.constant 0 : index
    %c0_4 = arith.constant 0 : index
    %4 = vector.load %arg10[%c0_3, %c0_4] : memref<1x128xf32, #tpu.memory_space<vmem>>, vector<1x128xf32>
    %5 = vector.broadcast %4 : vector<1x128xf32> to vector<32x128xf32>
    %6 = arith.addf %3, %5 : vector<32x128xf32>
    %7 = arith.truncf %6 : vector<32x128xf32> to vector<32x128xbf16>
    %c0_5 = arith.constant 0 : index
    %c0_6 = arith.constant 0 : index
    %8 = vector.load %arg11[%c0_5, %c0_6] : memref<128x128xbf16, #tpu.memory_space<vmem>>, vector<128x128xbf16>
    %cst_7 = arith.constant dense<0.000000e+00> : vector<32x128xf32>
    %9 = tpu.matmul %7, %8, %cst_7 {dimension_numbers = #tpu.dot_dimension_numbers<[1], [0], [0], [1], [0, 0, 1, 1], [], []>} : vector<32x128xbf16>, vector<128x128xbf16>, vector<32x128xf32> -> vector<32x128xf32>
    %10 = vector.extract_strided_slice %9 {offsets = [0, 0], sizes = [8, 128], strides = [1, 1]} : vector<32x128xf32> to vector<8x128xf32>
    %11 = vector.extract_strided_slice %9 {offsets = [8, 0], sizes = [8, 128], strides = [1, 1]} : vector<32x128xf32> to vector<8x128xf32>
    %12 = vector.extract_strided_slice %9 {offsets = [16, 0], sizes = [8, 128], strides = [1, 1]} : vector<32x128xf32> to vector<8x128xf32>
    %13 = vector.extract_strided_slice %9 {offsets = [24, 0], sizes = [8, 128], strides = [1, 1]} : vector<32x128xf32> to vector<8x128xf32>
    %14 = tpu.concatenate %10, %10, %10, %10, %10, %10, %10, %10, %11, %11, %11, %11, %11, %11, %11, %11 in 0 : vector<8x128xf32>, vector<8x128xf32>, vector<8x128xf32>, vector<8x128xf32>, vector<8x128xf32>, vector<8x128xf32>, vector<8x128xf32>, vector<8x128xf32>, vector<8x128xf32>, vector<8x128xf32>, vector<8x128xf32>, vector<8x128xf32>, vector<8x128xf32>, vector<8x128xf32>, vector<8x128xf32>, vector<8x128xf32> -> vector<128x128xf32>
    %15 = tpu.concatenate %12, %12, %12, %12, %12, %12, %12, %12, %13, %13, %13, %13, %13, %13, %13, %13 in 0 : vector<8x128xf32>, vector<8x128xf32>, vector<8x128xf32>, vector<8x128xf32>, vector<8x128xf32>, vector<8x128xf32>, vector<8x128xf32>, vector<8x128xf32>, vector<8x128xf32>, vector<8x128xf32>, vector<8x128xf32>, vector<8x128xf32>, vector<8x128xf32>, vector<8x128xf32>, vector<8x128xf32>, vector<8x128xf32> -> vector<128x128xf32>
    %16 = tpu.concatenate %14, %15 in 0 : vector<128x128xf32>, vector<128x128xf32> -> vector<256x128xf32>
    %17 = vector.shape_cast %16 : vector<256x128xf32> to vector<4x64x128xf32>
    %c0_8 = arith.constant 0 : index
    %c0_9 = arith.constant 0 : index
    %18 = vector.load %arg2[%c0_8, %c0_9] : memref<64x1xf32, #tpu.memory_space<vmem>>, vector<64x1xf32>
    %19 = vector.shape_cast %18 : vector<64x1xf32> to vector<1x64x1xf32>
    %20 = vector.broadcast %19 : vector<1x64x1xf32> to vector<4x64x128xf32>
    %21 = arith.mulf %17, %20 : vector<4x64x128xf32>
    %c0_10 = arith.constant 0 : index
    %c0_11 = arith.constant 0 : index
    %22 = vector.load %arg12[%c0_10, %c0_11] : memref<1x128xf32, #tpu.memory_space<vmem>>, vector<1x128xf32>
    %23 = vector.shape_cast %22 : vector<1x128xf32> to vector<1x1x128xf32>
    %24 = vector.broadcast %23 : vector<1x1x128xf32> to vector<4x64x128xf32>
    %25 = arith.addf %21, %24 : vector<4x64x128xf32>
    %cst_12 = arith.constant 0.000000e+00 : f32
    %26 = vector.broadcast %cst_12 : f32 to vector<4x64x128xf32>
    %27 = arith.maximumf %25, %26 : vector<4x64x128xf32>
    %28 = vector.shape_cast %27 : vector<4x64x128xf32> to vector<256x128xf32>
    %29 = vector.shape_cast %28 : vector<256x128xf32> to vector<4x64x128xf32>
    %c0_13 = arith.constant 0 : index
    %c0_14 = arith.constant 0 : index
    %30 = vector.load %arg2[%c0_13, %c0_14] : memref<64x1xf32, #tpu.memory_space<vmem>>, vector<64x1xf32>
    %31 = vector.shape_cast %30 : vector<64x1xf32> to vector<1x64x1xf32>
    %32 = vector.broadcast %31 : vector<1x64x1xf32> to vector<4x64x128xf32>
    %33 = arith.mulf %29, %32 : vector<4x64x128xf32>
    %cst_15 = arith.constant dense<0.000000e+00> : vector<4x128xf32>
    %34 = vector.multi_reduction <add>, %33, %cst_15 [1] : vector<4x64x128xf32> to vector<4x128xf32>
    %35 = vector.shape_cast %34 : vector<4x128xf32> to vector<4x1x128xf32>
    %cst_16 = arith.constant 0.0416666679 : f32
    %36 = vector.broadcast %cst_16 : f32 to vector<4x1x128xf32>
    %37 = arith.mulf %35, %36 : vector<4x1x128xf32>
    %38 = vector.broadcast %37 : vector<4x1x128xf32> to vector<4x64x128xf32>
    %39 = arith.subf %29, %38 : vector<4x64x128xf32>
    %40 = arith.mulf %39, %39 : vector<4x64x128xf32>
    %41 = vector.broadcast %31 : vector<1x64x1xf32> to vector<4x64x128xf32>
    %42 = arith.mulf %40, %41 : vector<4x64x128xf32>
    %cst_17 = arith.constant dense<0.000000e+00> : vector<4x128xf32>
    %43 = vector.multi_reduction <add>, %42, %cst_17 [1] : vector<4x64x128xf32> to vector<4x128xf32>
    %44 = vector.shape_cast %43 : vector<4x128xf32> to vector<4x1x128xf32>
    %cst_18 = arith.constant 0.0416666679 : f32
    %45 = vector.broadcast %cst_18 : f32 to vector<4x1x128xf32>
    %46 = arith.mulf %44, %45 : vector<4x1x128xf32>
    %cst_19 = arith.constant 9.99999974E-6 : f32
    %47 = vector.broadcast %cst_19 : f32 to vector<4x1x128xf32>
    %48 = arith.addf %46, %47 : vector<4x1x128xf32>
    %49 = math.rsqrt %48 : vector<4x1x128xf32>
    %50 = vector.broadcast %49 : vector<4x1x128xf32> to vector<4x64x128xf32>
    %51 = arith.mulf %39, %50 : vector<4x64x128xf32>
    %c0_20 = arith.constant 0 : index
    %c0_21 = arith.constant 0 : index
    %52 = vector.load %arg13[%c0_20, %c0_21] : memref<1x128xf32, #tpu.memory_space<vmem>>, vector<1x128xf32>
    %53 = vector.shape_cast %52 : vector<1x128xf32> to vector<1x1x128xf32>
    %54 = vector.broadcast %53 : vector<1x1x128xf32> to vector<4x64x128xf32>
    %55 = arith.mulf %51, %54 : vector<4x64x128xf32>
    %c0_22 = arith.constant 0 : index
    %c0_23 = arith.constant 0 : index
    %56 = vector.load %arg14[%c0_22, %c0_23] : memref<1x128xf32, #tpu.memory_space<vmem>>, vector<1x128xf32>
    %57 = vector.shape_cast %56 : vector<1x128xf32> to vector<1x1x128xf32>
    %58 = vector.broadcast %57 : vector<1x1x128xf32> to vector<4x64x128xf32>
    %59 = arith.addf %55, %58 : vector<4x64x128xf32>
    %60 = vector.shape_cast %59 : vector<4x64x128xf32> to vector<256x128xf32>
    %61 = arith.truncf %60 : vector<256x128xf32> to vector<256x128xbf16>
    %c0_24 = arith.constant 0 : index
    %c0_25 = arith.constant 0 : index
    %62 = vector.load %arg15[%c0_24, %c0_25] : memref<128x128xbf16, #tpu.memory_space<vmem>>, vector<128x128xbf16>
    %cst_26 = arith.constant dense<0.000000e+00> : vector<256x128xf32>
    %63 = tpu.matmul %61, %62, %cst_26 {dimension_numbers = #tpu.dot_dimension_numbers<[1], [0], [0], [1], [0, 0, 1, 1], [], []>} : vector<256x128xbf16>, vector<128x128xbf16>, vector<256x128xf32> -> vector<256x128xf32>
    %c0_27 = arith.constant 0 : index
    %c0_28 = arith.constant 0 : index
    %64 = vector.load %arg16[%c0_27, %c0_28] : memref<1x128xf32, #tpu.memory_space<vmem>>, vector<1x128xf32>
    %65 = vector.broadcast %64 : vector<1x128xf32> to vector<256x128xf32>
    %66 = arith.addf %63, %65 : vector<256x128xf32>
    %67 = vector.shape_cast %66 : vector<256x128xf32> to vector<4x64x128xf32>
    %68 = vector.broadcast %19 : vector<1x64x1xf32> to vector<4x64x128xf32>
    %69 = arith.mulf %67, %68 : vector<4x64x128xf32>
    %70 = arith.truncf %69 : vector<4x64x128xf32> to vector<4x64x128xbf16>
    %c0_29 = arith.constant 0 : index
    %c0_30 = arith.constant 0 : index
    %71 = vector.load %arg6[%c0_29, %c0_30] : memref<128x64xbf16, #tpu.memory_space<vmem>>, vector<128x64xbf16>
    %72 = vector.extract_strided_slice %70 {offsets = [0, 0, 0], sizes = [1, 64, 128], strides = [1, 1, 1]} : vector<4x64x128xbf16> to vector<1x64x128xbf16>
    %73 = vector.shape_cast %72 : vector<1x64x128xbf16> to vector<64x128xbf16>
    %cst_31 = arith.constant dense<0.000000e+00> : vector<128x128xf32>
    %74 = tpu.matmul %71, %73, %cst_31 {dimension_numbers = #tpu.dot_dimension_numbers<[1], [0], [0], [1], [0, 0, 1, 1], [], []>} : vector<128x64xbf16>, vector<64x128xbf16>, vector<128x128xf32> -> vector<128x128xf32>
    %75 = vector.extract_strided_slice %74 {offsets = [0, 0], sizes = [64, 128], strides = [1, 1]} : vector<128x128xf32> to vector<64x128xf32>
    %76 = vector.extract_strided_slice %74 {offsets = [64, 0], sizes = [64, 128], strides = [1, 1]} : vector<128x128xf32> to vector<64x128xf32>
    %77 = vector.extract_strided_slice %70 {offsets = [1, 0, 0], sizes = [1, 64, 128], strides = [1, 1, 1]} : vector<4x64x128xbf16> to vector<1x64x128xbf16>
    %78 = vector.shape_cast %77 : vector<1x64x128xbf16> to vector<64x128xbf16>
    %cst_32 = arith.constant dense<0.000000e+00> : vector<128x128xf32>
    %79 = tpu.matmul %71, %78, %cst_32 {dimension_numbers = #tpu.dot_dimension_numbers<[1], [0], [0], [1], [0, 0, 1, 1], [], []>} : vector<128x64xbf16>, vector<64x128xbf16>, vector<128x128xf32> -> vector<128x128xf32>
    %80 = vector.extract_strided_slice %79 {offsets = [0, 0], sizes = [64, 128], strides = [1, 1]} : vector<128x128xf32> to vector<64x128xf32>
    %81 = vector.extract_strided_slice %79 {offsets = [64, 0], sizes = [64, 128], strides = [1, 1]} : vector<128x128xf32> to vector<64x128xf32>
    %82 = vector.extract_strided_slice %70 {offsets = [2, 0, 0], sizes = [1, 64, 128], strides = [1, 1, 1]} : vector<4x64x128xbf16> to vector<1x64x128xbf16>
    %83 = vector.shape_cast %82 : vector<1x64x128xbf16> to vector<64x128xbf16>
    %cst_33 = arith.constant dense<0.000000e+00> : vector<128x128xf32>
    %84 = tpu.matmul %71, %83, %cst_33 {dimension_numbers = #tpu.dot_dimension_numbers<[1], [0], [0], [1], [0, 0, 1, 1], [], []>} : vector<128x64xbf16>, vector<64x128xbf16>, vector<128x128xf32> -> vector<128x128xf32>
    %85 = vector.extract_strided_slice %84 {offsets = [0, 0], sizes = [64, 128], strides = [1, 1]} : vector<128x128xf32> to vector<64x128xf32>
    %86 = vector.extract_strided_slice %84 {offsets = [64, 0], sizes = [64, 128], strides = [1, 1]} : vector<128x128xf32> to vector<64x128xf32>
    %87 = vector.extract_strided_slice %70 {offsets = [3, 0, 0], sizes = [1, 64, 128], strides = [1, 1, 1]} : vector<4x64x128xbf16> to vector<1x64x128xbf16>
    %88 = vector.shape_cast %87 : vector<1x64x128xbf16> to vector<64x128xbf16>
    %cst_34 = arith.constant dense<0.000000e+00> : vector<128x128xf32>
    %89 = tpu.matmul %71, %88, %cst_34 {dimension_numbers = #tpu.dot_dimension_numbers<[1], [0], [0], [1], [0, 0, 1, 1], [], []>} : vector<128x64xbf16>, vector<64x128xbf16>, vector<128x128xf32> -> vector<128x128xf32>
    %90 = vector.extract_strided_slice %89 {offsets = [0, 0], sizes = [64, 128], strides = [1, 1]} : vector<128x128xf32> to vector<64x128xf32>
    %91 = vector.extract_strided_slice %89 {offsets = [64, 0], sizes = [64, 128], strides = [1, 1]} : vector<128x128xf32> to vector<64x128xf32>
    %92 = tpu.concatenate %75, %80, %85, %90 in 0 : vector<64x128xf32>, vector<64x128xf32>, vector<64x128xf32>, vector<64x128xf32> -> vector<256x128xf32>
    %93 = tpu.concatenate %76, %81, %86, %91 in 0 : vector<64x128xf32>, vector<64x128xf32>, vector<64x128xf32>, vector<64x128xf32> -> vector<256x128xf32>
    %94 = arith.truncf %92 : vector<256x128xf32> to vector<256x128xbf16>
    %c0_35 = arith.constant 0 : index
    %c0_36 = arith.constant 0 : index
    %95 = vector.load %arg17[%c0_35, %c0_36] : memref<128x128xbf16, #tpu.memory_space<vmem>>, vector<128x128xbf16>
    %cst_37 = arith.constant dense<0.000000e+00> : vector<256x128xf32>
    %96 = tpu.matmul %94, %95, %cst_37 {dimension_numbers = #tpu.dot_dimension_numbers<[1], [0], [0], [1], [0, 0, 1, 1], [], []>} : vector<256x128xbf16>, vector<128x128xbf16>, vector<256x128xf32> -> vector<256x128xf32>
    %97 = arith.truncf %93 : vector<256x128xf32> to vector<256x128xbf16>
    %c0_38 = arith.constant 0 : index
    %c0_39 = arith.constant 0 : index
    %98 = vector.load %arg18[%c0_38, %c0_39] : memref<128x128xbf16, #tpu.memory_space<vmem>>, vector<128x128xbf16>
    %cst_40 = arith.constant dense<0.000000e+00> : vector<256x128xf32>
    %99 = tpu.matmul %97, %98, %cst_40 {dimension_numbers = #tpu.dot_dimension_numbers<[1], [0], [0], [1], [0, 0, 1, 1], [], []>} : vector<256x128xbf16>, vector<128x128xbf16>, vector<256x128xf32> -> vector<256x128xf32>
    %100 = arith.addf %96, %99 : vector<256x128xf32>
    %c0_41 = arith.constant 0 : index
    %c0_42 = arith.constant 0 : index
    %101 = vector.load %arg19[%c0_41, %c0_42] : memref<1x128xf32, #tpu.memory_space<vmem>>, vector<1x128xf32>
    %102 = vector.broadcast %101 : vector<1x128xf32> to vector<256x128xf32>
    %103 = arith.addf %100, %102 : vector<256x128xf32>
    %cst_43 = arith.constant 0.000000e+00 : f32
    %104 = vector.broadcast %cst_43 : f32 to vector<256x128xf32>
    %105 = arith.maximumf %103, %104 : vector<256x128xf32>
    %106 = vector.shape_cast %105 : vector<256x128xf32> to vector<4x64x128xf32>
    %c0_44 = arith.constant 0 : index
    %c0_45 = arith.constant 0 : index
    %107 = vector.load %arg3[%c0_44, %c0_45] : memref<64x1xf32, #tpu.memory_space<vmem>>, vector<64x1xf32>
    %108 = vector.shape_cast %107 : vector<64x1xf32> to vector<1x64x1xf32>
    %109 = vector.broadcast %108 : vector<1x64x1xf32> to vector<4x64x128xf32>
    %110 = arith.mulf %106, %109 : vector<4x64x128xf32>
    %cst_46 = arith.constant dense<0.000000e+00> : vector<4x128xf32>
    %111 = vector.multi_reduction <add>, %110, %cst_46 [1] : vector<4x64x128xf32> to vector<4x128xf32>
    %112 = vector.shape_cast %111 : vector<4x128xf32> to vector<4x1x128xf32>
    %cst_47 = arith.constant 2.500000e-02 : f32
    %113 = vector.broadcast %cst_47 : f32 to vector<4x1x128xf32>
    %114 = arith.mulf %112, %113 : vector<4x1x128xf32>
    %115 = vector.broadcast %114 : vector<4x1x128xf32> to vector<4x64x128xf32>
    %116 = arith.subf %106, %115 : vector<4x64x128xf32>
    %117 = arith.mulf %116, %116 : vector<4x64x128xf32>
    %118 = vector.broadcast %108 : vector<1x64x1xf32> to vector<4x64x128xf32>
    %119 = arith.mulf %117, %118 : vector<4x64x128xf32>
    %cst_48 = arith.constant dense<0.000000e+00> : vector<4x128xf32>
    %120 = vector.multi_reduction <add>, %119, %cst_48 [1] : vector<4x64x128xf32> to vector<4x128xf32>
    %121 = vector.shape_cast %120 : vector<4x128xf32> to vector<4x1x128xf32>
    %cst_49 = arith.constant 2.500000e-02 : f32
    %122 = vector.broadcast %cst_49 : f32 to vector<4x1x128xf32>
    %123 = arith.mulf %121, %122 : vector<4x1x128xf32>
    %cst_50 = arith.constant 9.99999974E-6 : f32
    %124 = vector.broadcast %cst_50 : f32 to vector<4x1x128xf32>
    %125 = arith.addf %123, %124 : vector<4x1x128xf32>
    %126 = math.rsqrt %125 : vector<4x1x128xf32>
    %127 = vector.broadcast %126 : vector<4x1x128xf32> to vector<4x64x128xf32>
    %128 = arith.mulf %116, %127 : vector<4x64x128xf32>
    %c0_51 = arith.constant 0 : index
    %c0_52 = arith.constant 0 : index
    %129 = vector.load %arg20[%c0_51, %c0_52] : memref<1x128xf32, #tpu.memory_space<vmem>>, vector<1x128xf32>
    %130 = vector.shape_cast %129 : vector<1x128xf32> to vector<1x1x128xf32>
    %131 = vector.broadcast %130 : vector<1x1x128xf32> to vector<4x64x128xf32>
    %132 = arith.mulf %128, %131 : vector<4x64x128xf32>
    %c0_53 = arith.constant 0 : index
    %c0_54 = arith.constant 0 : index
    %133 = vector.load %arg21[%c0_53, %c0_54] : memref<1x128xf32, #tpu.memory_space<vmem>>, vector<1x128xf32>
    %134 = vector.shape_cast %133 : vector<1x128xf32> to vector<1x1x128xf32>
    %135 = vector.broadcast %134 : vector<1x1x128xf32> to vector<4x64x128xf32>
    %136 = arith.addf %132, %135 : vector<4x64x128xf32>
    %137 = vector.shape_cast %136 : vector<4x64x128xf32> to vector<256x128xf32>
    %138 = arith.truncf %137 : vector<256x128xf32> to vector<256x128xbf16>
    %c0_55 = arith.constant 0 : index
    %c0_56 = arith.constant 0 : index
    %139 = vector.load %arg22[%c0_55, %c0_56] : memref<128x128xbf16, #tpu.memory_space<vmem>>, vector<128x128xbf16>
    %cst_57 = arith.constant dense<0.000000e+00> : vector<256x128xf32>
    %140 = tpu.matmul %138, %139, %cst_57 {dimension_numbers = #tpu.dot_dimension_numbers<[1], [0], [0], [1], [0, 0, 1, 1], [], []>} : vector<256x128xbf16>, vector<128x128xbf16>, vector<256x128xf32> -> vector<256x128xf32>
    %c0_58 = arith.constant 0 : index
    %c0_59 = arith.constant 0 : index
    %141 = vector.load %arg23[%c0_58, %c0_59] : memref<1x128xf32, #tpu.memory_space<vmem>>, vector<1x128xf32>
    %142 = vector.broadcast %141 : vector<1x128xf32> to vector<256x128xf32>
    %143 = arith.addf %140, %142 : vector<256x128xf32>
    %144 = vector.shape_cast %143 : vector<256x128xf32> to vector<4x64x128xf32>
    %c0_60 = arith.constant 0 : index
    %c0_61 = arith.constant 0 : index
    %145 = vector.load %arg3[%c0_60, %c0_61] : memref<64x1xf32, #tpu.memory_space<vmem>>, vector<64x1xf32>
    %146 = vector.shape_cast %145 : vector<64x1xf32> to vector<1x64x1xf32>
    %147 = vector.broadcast %146 : vector<1x64x1xf32> to vector<4x64x128xf32>
    %148 = arith.mulf %144, %147 : vector<4x64x128xf32>
    %149 = arith.truncf %148 : vector<4x64x128xf32> to vector<4x64x128xbf16>
    %c0_62 = arith.constant 0 : index
    %c0_63 = arith.constant 0 : index
    %150 = vector.load %arg7[%c0_62, %c0_63] : memref<128x64xbf16, #tpu.memory_space<vmem>>, vector<128x64xbf16>
    %151 = vector.extract_strided_slice %149 {offsets = [0, 0, 0], sizes = [1, 64, 128], strides = [1, 1, 1]} : vector<4x64x128xbf16> to vector<1x64x128xbf16>
    %152 = vector.shape_cast %151 : vector<1x64x128xbf16> to vector<64x128xbf16>
    %cst_64 = arith.constant dense<0.000000e+00> : vector<128x128xf32>
    %153 = tpu.matmul %150, %152, %cst_64 {dimension_numbers = #tpu.dot_dimension_numbers<[1], [0], [0], [1], [0, 0, 1, 1], [], []>} : vector<128x64xbf16>, vector<64x128xbf16>, vector<128x128xf32> -> vector<128x128xf32>
    %154 = vector.extract_strided_slice %153 {offsets = [0, 0], sizes = [64, 128], strides = [1, 1]} : vector<128x128xf32> to vector<64x128xf32>
    %155 = vector.extract_strided_slice %153 {offsets = [64, 0], sizes = [64, 128], strides = [1, 1]} : vector<128x128xf32> to vector<64x128xf32>
    %156 = vector.extract_strided_slice %149 {offsets = [1, 0, 0], sizes = [1, 64, 128], strides = [1, 1, 1]} : vector<4x64x128xbf16> to vector<1x64x128xbf16>
    %157 = vector.shape_cast %156 : vector<1x64x128xbf16> to vector<64x128xbf16>
    %cst_65 = arith.constant dense<0.000000e+00> : vector<128x128xf32>
    %158 = tpu.matmul %150, %157, %cst_65 {dimension_numbers = #tpu.dot_dimension_numbers<[1], [0], [0], [1], [0, 0, 1, 1], [], []>} : vector<128x64xbf16>, vector<64x128xbf16>, vector<128x128xf32> -> vector<128x128xf32>
    %159 = vector.extract_strided_slice %158 {offsets = [0, 0], sizes = [64, 128], strides = [1, 1]} : vector<128x128xf32> to vector<64x128xf32>
    %160 = vector.extract_strided_slice %158 {offsets = [64, 0], sizes = [64, 128], strides = [1, 1]} : vector<128x128xf32> to vector<64x128xf32>
    %161 = vector.extract_strided_slice %149 {offsets = [2, 0, 0], sizes = [1, 64, 128], strides = [1, 1, 1]} : vector<4x64x128xbf16> to vector<1x64x128xbf16>
    %162 = vector.shape_cast %161 : vector<1x64x128xbf16> to vector<64x128xbf16>
    %cst_66 = arith.constant dense<0.000000e+00> : vector<128x128xf32>
    %163 = tpu.matmul %150, %162, %cst_66 {dimension_numbers = #tpu.dot_dimension_numbers<[1], [0], [0], [1], [0, 0, 1, 1], [], []>} : vector<128x64xbf16>, vector<64x128xbf16>, vector<128x128xf32> -> vector<128x128xf32>
    %164 = vector.extract_strided_slice %163 {offsets = [0, 0], sizes = [64, 128], strides = [1, 1]} : vector<128x128xf32> to vector<64x128xf32>
    %165 = vector.extract_strided_slice %163 {offsets = [64, 0], sizes = [64, 128], strides = [1, 1]} : vector<128x128xf32> to vector<64x128xf32>
    %166 = vector.extract_strided_slice %149 {offsets = [3, 0, 0], sizes = [1, 64, 128], strides = [1, 1, 1]} : vector<4x64x128xbf16> to vector<1x64x128xbf16>
    %167 = vector.shape_cast %166 : vector<1x64x128xbf16> to vector<64x128xbf16>
    %cst_67 = arith.constant dense<0.000000e+00> : vector<128x128xf32>
    %168 = tpu.matmul %150, %167, %cst_67 {dimension_numbers = #tpu.dot_dimension_numbers<[1], [0], [0], [1], [0, 0, 1, 1], [], []>} : vector<128x64xbf16>, vector<64x128xbf16>, vector<128x128xf32> -> vector<128x128xf32>
    %169 = vector.extract_strided_slice %168 {offsets = [0, 0], sizes = [64, 128], strides = [1, 1]} : vector<128x128xf32> to vector<64x128xf32>
    %170 = vector.extract_strided_slice %168 {offsets = [64, 0], sizes = [64, 128], strides = [1, 1]} : vector<128x128xf32> to vector<64x128xf32>
    %171 = tpu.concatenate %154, %159, %164, %169 in 0 : vector<64x128xf32>, vector<64x128xf32>, vector<64x128xf32>, vector<64x128xf32> -> vector<256x128xf32>
    %172 = tpu.concatenate %155, %160, %165, %170 in 0 : vector<64x128xf32>, vector<64x128xf32>, vector<64x128xf32>, vector<64x128xf32> -> vector<256x128xf32>
    %173 = arith.truncf %171 : vector<256x128xf32> to vector<256x128xbf16>
    %c0_68 = arith.constant 0 : index
    %c0_69 = arith.constant 0 : index
    %174 = vector.load %arg24[%c0_68, %c0_69] : memref<128x128xbf16, #tpu.memory_space<vmem>>, vector<128x128xbf16>
    %cst_70 = arith.constant dense<0.000000e+00> : vector<256x128xf32>
    %175 = tpu.matmul %173, %174, %cst_70 {dimension_numbers = #tpu.dot_dimension_numbers<[1], [0], [0], [1], [0, 0, 1, 1], [], []>} : vector<256x128xbf16>, vector<128x128xbf16>, vector<256x128xf32> -> vector<256x128xf32>
    %176 = arith.truncf %172 : vector<256x128xf32> to vector<256x128xbf16>
    %c0_71 = arith.constant 0 : index
    %c0_72 = arith.constant 0 : index
    %177 = vector.load %arg25[%c0_71, %c0_72] : memref<128x128xbf16, #tpu.memory_space<vmem>>, vector<128x128xbf16>
    %cst_73 = arith.constant dense<0.000000e+00> : vector<256x128xf32>
    %178 = tpu.matmul %176, %177, %cst_73 {dimension_numbers = #tpu.dot_dimension_numbers<[1], [0], [0], [1], [0, 0, 1, 1], [], []>} : vector<256x128xbf16>, vector<128x128xbf16>, vector<256x128xf32> -> vector<256x128xf32>
    %179 = arith.addf %175, %178 : vector<256x128xf32>
    %c0_74 = arith.constant 0 : index
    %c0_75 = arith.constant 0 : index
    %180 = vector.load %arg26[%c0_74, %c0_75] : memref<1x128xf32, #tpu.memory_space<vmem>>, vector<1x128xf32>
    %181 = vector.broadcast %180 : vector<1x128xf32> to vector<256x128xf32>
    %182 = arith.addf %179, %181 : vector<256x128xf32>
    %cst_76 = arith.constant 0.000000e+00 : f32
    %183 = vector.broadcast %cst_76 : f32 to vector<256x128xf32>
    %184 = arith.maximumf %182, %183 : vector<256x128xf32>
    %185 = vector.shape_cast %184 : vector<256x128xf32> to vector<4x64x128xf32>
    %c0_77 = arith.constant 0 : index
    %c0_78 = arith.constant 0 : index
    %186 = vector.load %arg4[%c0_77, %c0_78] : memref<64x1xf32, #tpu.memory_space<vmem>>, vector<64x1xf32>
    %187 = vector.shape_cast %186 : vector<64x1xf32> to vector<1x64x1xf32>
    %188 = vector.broadcast %187 : vector<1x64x1xf32> to vector<4x64x128xf32>
    %189 = arith.mulf %185, %188 : vector<4x64x128xf32>
    %cst_79 = arith.constant dense<0.000000e+00> : vector<4x128xf32>
    %190 = vector.multi_reduction <add>, %189, %cst_79 [1] : vector<4x64x128xf32> to vector<4x128xf32>
    %191 = vector.shape_cast %190 : vector<4x128xf32> to vector<4x1x128xf32>
    %cst_80 = arith.constant 0.0178571437 : f32
    %192 = vector.broadcast %cst_80 : f32 to vector<4x1x128xf32>
    %193 = arith.mulf %191, %192 : vector<4x1x128xf32>
    %194 = vector.broadcast %193 : vector<4x1x128xf32> to vector<4x64x128xf32>
    %195 = arith.subf %185, %194 : vector<4x64x128xf32>
    %196 = arith.mulf %195, %195 : vector<4x64x128xf32>
    %197 = vector.broadcast %187 : vector<1x64x1xf32> to vector<4x64x128xf32>
    %198 = arith.mulf %196, %197 : vector<4x64x128xf32>
    %cst_81 = arith.constant dense<0.000000e+00> : vector<4x128xf32>
    %199 = vector.multi_reduction <add>, %198, %cst_81 [1] : vector<4x64x128xf32> to vector<4x128xf32>
    %200 = vector.shape_cast %199 : vector<4x128xf32> to vector<4x1x128xf32>
    %cst_82 = arith.constant 0.0178571437 : f32
    %201 = vector.broadcast %cst_82 : f32 to vector<4x1x128xf32>
    %202 = arith.mulf %200, %201 : vector<4x1x128xf32>
    %cst_83 = arith.constant 9.99999974E-6 : f32
    %203 = vector.broadcast %cst_83 : f32 to vector<4x1x128xf32>
    %204 = arith.addf %202, %203 : vector<4x1x128xf32>
    %205 = math.rsqrt %204 : vector<4x1x128xf32>
    %206 = vector.broadcast %205 : vector<4x1x128xf32> to vector<4x64x128xf32>
    %207 = arith.mulf %195, %206 : vector<4x64x128xf32>
    %c0_84 = arith.constant 0 : index
    %c0_85 = arith.constant 0 : index
    %208 = vector.load %arg27[%c0_84, %c0_85] : memref<1x128xf32, #tpu.memory_space<vmem>>, vector<1x128xf32>
    %209 = vector.shape_cast %208 : vector<1x128xf32> to vector<1x1x128xf32>
    %210 = vector.broadcast %209 : vector<1x1x128xf32> to vector<4x64x128xf32>
    %211 = arith.mulf %207, %210 : vector<4x64x128xf32>
    %c0_86 = arith.constant 0 : index
    %c0_87 = arith.constant 0 : index
    %212 = vector.load %arg28[%c0_86, %c0_87] : memref<1x128xf32, #tpu.memory_space<vmem>>, vector<1x128xf32>
    %213 = vector.shape_cast %212 : vector<1x128xf32> to vector<1x1x128xf32>
    %214 = vector.broadcast %213 : vector<1x1x128xf32> to vector<4x64x128xf32>
    %215 = arith.addf %211, %214 : vector<4x64x128xf32>
    %216 = vector.shape_cast %215 : vector<4x64x128xf32> to vector<256x128xf32>
    %217 = arith.truncf %216 : vector<256x128xf32> to vector<256x128xbf16>
    %c0_88 = arith.constant 0 : index
    %c0_89 = arith.constant 0 : index
    %218 = vector.load %arg29[%c0_88, %c0_89] : memref<128x128xbf16, #tpu.memory_space<vmem>>, vector<128x128xbf16>
    %cst_90 = arith.constant dense<0.000000e+00> : vector<256x128xf32>
    %219 = tpu.matmul %217, %218, %cst_90 {dimension_numbers = #tpu.dot_dimension_numbers<[1], [0], [0], [1], [0, 0, 1, 1], [], []>} : vector<256x128xbf16>, vector<128x128xbf16>, vector<256x128xf32> -> vector<256x128xf32>
    %c0_91 = arith.constant 0 : index
    %c0_92 = arith.constant 0 : index
    %220 = vector.load %arg30[%c0_91, %c0_92] : memref<1x128xf32, #tpu.memory_space<vmem>>, vector<1x128xf32>
    %221 = vector.broadcast %220 : vector<1x128xf32> to vector<256x128xf32>
    %222 = arith.addf %219, %221 : vector<256x128xf32>
    %223 = vector.shape_cast %222 : vector<256x128xf32> to vector<4x64x128xf32>
    %c0_93 = arith.constant 0 : index
    %c0_94 = arith.constant 0 : index
    %224 = vector.load %arg4[%c0_93, %c0_94] : memref<64x1xf32, #tpu.memory_space<vmem>>, vector<64x1xf32>
    %225 = vector.shape_cast %224 : vector<64x1xf32> to vector<1x64x1xf32>
    %226 = vector.broadcast %225 : vector<1x64x1xf32> to vector<4x64x128xf32>
    %227 = arith.mulf %223, %226 : vector<4x64x128xf32>
    %228 = arith.truncf %227 : vector<4x64x128xf32> to vector<4x64x128xbf16>
    %c0_95 = arith.constant 0 : index
    %c0_96 = arith.constant 0 : index
    %229 = vector.load %arg8[%c0_95, %c0_96] : memref<128x64xbf16, #tpu.memory_space<vmem>>, vector<128x64xbf16>
    %230 = vector.extract_strided_slice %228 {offsets = [0, 0, 0], sizes = [1, 64, 128], strides = [1, 1, 1]} : vector<4x64x128xbf16> to vector<1x64x128xbf16>
    %231 = vector.shape_cast %230 : vector<1x64x128xbf16> to vector<64x128xbf16>
    %cst_97 = arith.constant dense<0.000000e+00> : vector<128x128xf32>
    %232 = tpu.matmul %229, %231, %cst_97 {dimension_numbers = #tpu.dot_dimension_numbers<[1], [0], [0], [1], [0, 0, 1, 1], [], []>} : vector<128x64xbf16>, vector<64x128xbf16>, vector<128x128xf32> -> vector<128x128xf32>
    %233 = vector.extract_strided_slice %232 {offsets = [0, 0], sizes = [64, 128], strides = [1, 1]} : vector<128x128xf32> to vector<64x128xf32>
    %234 = vector.extract_strided_slice %232 {offsets = [64, 0], sizes = [64, 128], strides = [1, 1]} : vector<128x128xf32> to vector<64x128xf32>
    %235 = vector.extract_strided_slice %228 {offsets = [1, 0, 0], sizes = [1, 64, 128], strides = [1, 1, 1]} : vector<4x64x128xbf16> to vector<1x64x128xbf16>
    %236 = vector.shape_cast %235 : vector<1x64x128xbf16> to vector<64x128xbf16>
    %cst_98 = arith.constant dense<0.000000e+00> : vector<128x128xf32>
    %237 = tpu.matmul %229, %236, %cst_98 {dimension_numbers = #tpu.dot_dimension_numbers<[1], [0], [0], [1], [0, 0, 1, 1], [], []>} : vector<128x64xbf16>, vector<64x128xbf16>, vector<128x128xf32> -> vector<128x128xf32>
    %238 = vector.extract_strided_slice %237 {offsets = [0, 0], sizes = [64, 128], strides = [1, 1]} : vector<128x128xf32> to vector<64x128xf32>
    %239 = vector.extract_strided_slice %237 {offsets = [64, 0], sizes = [64, 128], strides = [1, 1]} : vector<128x128xf32> to vector<64x128xf32>
    %240 = vector.extract_strided_slice %228 {offsets = [2, 0, 0], sizes = [1, 64, 128], strides = [1, 1, 1]} : vector<4x64x128xbf16> to vector<1x64x128xbf16>
    %241 = vector.shape_cast %240 : vector<1x64x128xbf16> to vector<64x128xbf16>
    %cst_99 = arith.constant dense<0.000000e+00> : vector<128x128xf32>
    %242 = tpu.matmul %229, %241, %cst_99 {dimension_numbers = #tpu.dot_dimension_numbers<[1], [0], [0], [1], [0, 0, 1, 1], [], []>} : vector<128x64xbf16>, vector<64x128xbf16>, vector<128x128xf32> -> vector<128x128xf32>
    %243 = vector.extract_strided_slice %242 {offsets = [0, 0], sizes = [64, 128], strides = [1, 1]} : vector<128x128xf32> to vector<64x128xf32>
    %244 = vector.extract_strided_slice %242 {offsets = [64, 0], sizes = [64, 128], strides = [1, 1]} : vector<128x128xf32> to vector<64x128xf32>
    %245 = vector.extract_strided_slice %228 {offsets = [3, 0, 0], sizes = [1, 64, 128], strides = [1, 1, 1]} : vector<4x64x128xbf16> to vector<1x64x128xbf16>
    %246 = vector.shape_cast %245 : vector<1x64x128xbf16> to vector<64x128xbf16>
    %cst_100 = arith.constant dense<0.000000e+00> : vector<128x128xf32>
    %247 = tpu.matmul %229, %246, %cst_100 {dimension_numbers = #tpu.dot_dimension_numbers<[1], [0], [0], [1], [0, 0, 1, 1], [], []>} : vector<128x64xbf16>, vector<64x128xbf16>, vector<128x128xf32> -> vector<128x128xf32>
    %248 = vector.extract_strided_slice %247 {offsets = [0, 0], sizes = [64, 128], strides = [1, 1]} : vector<128x128xf32> to vector<64x128xf32>
    %249 = vector.extract_strided_slice %247 {offsets = [64, 0], sizes = [64, 128], strides = [1, 1]} : vector<128x128xf32> to vector<64x128xf32>
    %250 = tpu.concatenate %233, %238, %243, %248 in 0 : vector<64x128xf32>, vector<64x128xf32>, vector<64x128xf32>, vector<64x128xf32> -> vector<256x128xf32>
    %251 = tpu.concatenate %234, %239, %244, %249 in 0 : vector<64x128xf32>, vector<64x128xf32>, vector<64x128xf32>, vector<64x128xf32> -> vector<256x128xf32>
    %252 = arith.truncf %250 : vector<256x128xf32> to vector<256x128xbf16>
    %c0_101 = arith.constant 0 : index
    %c0_102 = arith.constant 0 : index
    %253 = vector.load %arg31[%c0_101, %c0_102] : memref<128x128xbf16, #tpu.memory_space<vmem>>, vector<128x128xbf16>
    %cst_103 = arith.constant dense<0.000000e+00> : vector<256x128xf32>
    %254 = tpu.matmul %252, %253, %cst_103 {dimension_numbers = #tpu.dot_dimension_numbers<[1], [0], [0], [1], [0, 0, 1, 1], [], []>} : vector<256x128xbf16>, vector<128x128xbf16>, vector<256x128xf32> -> vector<256x128xf32>
    %255 = arith.truncf %251 : vector<256x128xf32> to vector<256x128xbf16>
    %c0_104 = arith.constant 0 : index
    %c0_105 = arith.constant 0 : index
    %256 = vector.load %arg32[%c0_104, %c0_105] : memref<128x128xbf16, #tpu.memory_space<vmem>>, vector<128x128xbf16>
    %cst_106 = arith.constant dense<0.000000e+00> : vector<256x128xf32>
    %257 = tpu.matmul %255, %256, %cst_106 {dimension_numbers = #tpu.dot_dimension_numbers<[1], [0], [0], [1], [0, 0, 1, 1], [], []>} : vector<256x128xbf16>, vector<128x128xbf16>, vector<256x128xf32> -> vector<256x128xf32>
    %258 = arith.addf %254, %257 : vector<256x128xf32>
    %c0_107 = arith.constant 0 : index
    %c0_108 = arith.constant 0 : index
    %259 = vector.load %arg33[%c0_107, %c0_108] : memref<1x128xf32, #tpu.memory_space<vmem>>, vector<1x128xf32>
    %260 = vector.broadcast %259 : vector<1x128xf32> to vector<256x128xf32>
    %261 = arith.addf %258, %260 : vector<256x128xf32>
    %cst_109 = arith.constant 0.000000e+00 : f32
    %262 = vector.broadcast %cst_109 : f32 to vector<256x128xf32>
    %263 = arith.maximumf %261, %262 : vector<256x128xf32>
    %264 = vector.shape_cast %263 : vector<256x128xf32> to vector<4x64x128xf32>
    %c0_110 = arith.constant 0 : index
    %c0_111 = arith.constant 0 : index
    %265 = vector.load %arg5[%c0_110, %c0_111] : memref<64x1xf32, #tpu.memory_space<vmem>>, vector<64x1xf32>
    %266 = vector.shape_cast %265 : vector<64x1xf32> to vector<1x64x1xf32>
    %267 = vector.broadcast %266 : vector<1x64x1xf32> to vector<4x64x128xf32>
    %268 = arith.mulf %264, %267 : vector<4x64x128xf32>
    %cst_112 = arith.constant dense<0.000000e+00> : vector<4x128xf32>
    %269 = vector.multi_reduction <add>, %268, %cst_112 [1] : vector<4x64x128xf32> to vector<4x128xf32>
    %270 = vector.shape_cast %269 : vector<4x128xf32> to vector<4x1x128xf32>
    %cst_113 = arith.constant 1.562500e-02 : f32
    %271 = vector.broadcast %cst_113 : f32 to vector<4x1x128xf32>
    %272 = arith.mulf %270, %271 : vector<4x1x128xf32>
    %273 = vector.broadcast %272 : vector<4x1x128xf32> to vector<4x64x128xf32>
    %274 = arith.subf %264, %273 : vector<4x64x128xf32>
    %275 = arith.mulf %274, %274 : vector<4x64x128xf32>
    %276 = vector.broadcast %266 : vector<1x64x1xf32> to vector<4x64x128xf32>
    %277 = arith.mulf %275, %276 : vector<4x64x128xf32>
    %cst_114 = arith.constant dense<0.000000e+00> : vector<4x128xf32>
    %278 = vector.multi_reduction <add>, %277, %cst_114 [1] : vector<4x64x128xf32> to vector<4x128xf32>
    %279 = vector.shape_cast %278 : vector<4x128xf32> to vector<4x1x128xf32>
    %cst_115 = arith.constant 1.562500e-02 : f32
    %280 = vector.broadcast %cst_115 : f32 to vector<4x1x128xf32>
    %281 = arith.mulf %279, %280 : vector<4x1x128xf32>
    %cst_116 = arith.constant 9.99999974E-6 : f32
    %282 = vector.broadcast %cst_116 : f32 to vector<4x1x128xf32>
    %283 = arith.addf %281, %282 : vector<4x1x128xf32>
    %284 = math.rsqrt %283 : vector<4x1x128xf32>
    %285 = vector.broadcast %284 : vector<4x1x128xf32> to vector<4x64x128xf32>
    %286 = arith.mulf %274, %285 : vector<4x64x128xf32>
    %c0_117 = arith.constant 0 : index
    %c0_118 = arith.constant 0 : index
    %287 = vector.load %arg34[%c0_117, %c0_118] : memref<1x128xf32, #tpu.memory_space<vmem>>, vector<1x128xf32>
    %288 = vector.shape_cast %287 : vector<1x128xf32> to vector<1x1x128xf32>
    %289 = vector.broadcast %288 : vector<1x1x128xf32> to vector<4x64x128xf32>
    %290 = arith.mulf %286, %289 : vector<4x64x128xf32>
    %c0_119 = arith.constant 0 : index
    %c0_120 = arith.constant 0 : index
    %291 = vector.load %arg35[%c0_119, %c0_120] : memref<1x128xf32, #tpu.memory_space<vmem>>, vector<1x128xf32>
    %292 = vector.shape_cast %291 : vector<1x128xf32> to vector<1x1x128xf32>
    %293 = vector.broadcast %292 : vector<1x1x128xf32> to vector<4x64x128xf32>
    %294 = arith.addf %290, %293 : vector<4x64x128xf32>
    %295 = vector.shape_cast %294 : vector<4x64x128xf32> to vector<256x128xf32>
    %296 = arith.truncf %295 : vector<256x128xf32> to vector<256x128xbf16>
    %c0_121 = arith.constant 0 : index
    %c0_122 = arith.constant 0 : index
    %297 = vector.load %arg36[%c0_121, %c0_122] : memref<128x128xbf16, #tpu.memory_space<vmem>>, vector<128x128xbf16>
    %cst_123 = arith.constant dense<0.000000e+00> : vector<256x128xf32>
    %298 = tpu.matmul %296, %297, %cst_123 {dimension_numbers = #tpu.dot_dimension_numbers<[1], [0], [0], [1], [0, 0, 1, 1], [], []>} : vector<256x128xbf16>, vector<128x128xbf16>, vector<256x128xf32> -> vector<256x128xf32>
    %c0_124 = arith.constant 0 : index
    %c0_125 = arith.constant 0 : index
    %299 = vector.load %arg37[%c0_124, %c0_125] : memref<1x128xf32, #tpu.memory_space<vmem>>, vector<1x128xf32>
    %300 = vector.broadcast %299 : vector<1x128xf32> to vector<256x128xf32>
    %301 = arith.addf %298, %300 : vector<256x128xf32>
    %302 = vector.shape_cast %301 : vector<256x128xf32> to vector<4x64x128xf32>
    %c0_126 = arith.constant 0 : index
    %c0_127 = arith.constant 0 : index
    %303 = vector.load %arg5[%c0_126, %c0_127] : memref<64x1xf32, #tpu.memory_space<vmem>>, vector<64x1xf32>
    %304 = vector.shape_cast %303 : vector<64x1xf32> to vector<1x64x1xf32>
    %305 = vector.broadcast %304 : vector<1x64x1xf32> to vector<4x64x128xf32>
    %306 = arith.mulf %302, %305 : vector<4x64x128xf32>
    %307 = vector.shape_cast %306 : vector<4x64x128xf32> to vector<256x128xf32>
    %308 = vector.shape_cast %307 : vector<256x128xf32> to vector<4x64x128xf32>
    %c0_128 = arith.constant 0 : index
    %c0_129 = arith.constant 0 : index
    %309 = vector.load %arg5[%c0_128, %c0_129] : memref<64x1xf32, #tpu.memory_space<vmem>>, vector<64x1xf32>
    %310 = vector.shape_cast %309 : vector<64x1xf32> to vector<1x64x1xf32>
    %311 = vector.broadcast %310 : vector<1x64x1xf32> to vector<4x64x128xf32>
    %312 = arith.mulf %308, %311 : vector<4x64x128xf32>
    %cst_130 = arith.constant dense<0.000000e+00> : vector<4x128xf32>
    %313 = vector.multi_reduction <add>, %312, %cst_130 [1] : vector<4x64x128xf32> to vector<4x128xf32>
    %314 = vector.shape_cast %313 : vector<4x128xf32> to vector<4x1x128xf32>
    %cst_131 = arith.constant 1.562500e-02 : f32
    %315 = vector.broadcast %cst_131 : f32 to vector<4x1x128xf32>
    %316 = arith.mulf %314, %315 : vector<4x1x128xf32>
    %317 = vector.broadcast %316 : vector<4x1x128xf32> to vector<4x64x128xf32>
    %318 = arith.subf %308, %317 : vector<4x64x128xf32>
    %319 = arith.mulf %318, %318 : vector<4x64x128xf32>
    %320 = vector.broadcast %310 : vector<1x64x1xf32> to vector<4x64x128xf32>
    %321 = arith.mulf %319, %320 : vector<4x64x128xf32>
    %cst_132 = arith.constant dense<0.000000e+00> : vector<4x128xf32>
    %322 = vector.multi_reduction <add>, %321, %cst_132 [1] : vector<4x64x128xf32> to vector<4x128xf32>
    %323 = vector.shape_cast %322 : vector<4x128xf32> to vector<4x1x128xf32>
    %cst_133 = arith.constant 1.562500e-02 : f32
    %324 = vector.broadcast %cst_133 : f32 to vector<4x1x128xf32>
    %325 = arith.mulf %323, %324 : vector<4x1x128xf32>
    %cst_134 = arith.constant 9.99999974E-6 : f32
    %326 = vector.broadcast %cst_134 : f32 to vector<4x1x128xf32>
    %327 = arith.addf %325, %326 : vector<4x1x128xf32>
    %328 = math.rsqrt %327 : vector<4x1x128xf32>
    %329 = vector.broadcast %328 : vector<4x1x128xf32> to vector<4x64x128xf32>
    %330 = arith.mulf %318, %329 : vector<4x64x128xf32>
    %c0_135 = arith.constant 0 : index
    %c0_136 = arith.constant 0 : index
    %331 = vector.load %arg38[%c0_135, %c0_136] : memref<1x128xf32, #tpu.memory_space<vmem>>, vector<1x128xf32>
    %332 = vector.shape_cast %331 : vector<1x128xf32> to vector<1x1x128xf32>
    %333 = vector.broadcast %332 : vector<1x1x128xf32> to vector<4x64x128xf32>
    %334 = arith.mulf %330, %333 : vector<4x64x128xf32>
    %c0_137 = arith.constant 0 : index
    %c0_138 = arith.constant 0 : index
    %335 = vector.load %arg39[%c0_137, %c0_138] : memref<1x128xf32, #tpu.memory_space<vmem>>, vector<1x128xf32>
    %336 = vector.shape_cast %335 : vector<1x128xf32> to vector<1x1x128xf32>
    %337 = vector.broadcast %336 : vector<1x1x128xf32> to vector<4x64x128xf32>
    %338 = arith.addf %334, %337 : vector<4x64x128xf32>
    %339 = vector.shape_cast %338 : vector<4x64x128xf32> to vector<256x128xf32>
    %340 = arith.truncf %339 : vector<256x128xf32> to vector<256x128xbf16>
    %c0_139 = arith.constant 0 : index
    %c0_140 = arith.constant 0 : index
    %341 = vector.load %arg40[%c0_139, %c0_140] : memref<128x128xbf16, #tpu.memory_space<vmem>>, vector<128x128xbf16>
    %cst_141 = arith.constant dense<0.000000e+00> : vector<256x128xf32>
    %342 = tpu.matmul %340, %341, %cst_141 {dimension_numbers = #tpu.dot_dimension_numbers<[1], [0], [0], [1], [0, 0, 1, 1], [], []>} : vector<256x128xbf16>, vector<128x128xbf16>, vector<256x128xf32> -> vector<256x128xf32>
    %c0_142 = arith.constant 0 : index
    %c0_143 = arith.constant 0 : index
    %343 = vector.load %arg41[%c0_142, %c0_143] : memref<1x128xf32, #tpu.memory_space<vmem>>, vector<1x128xf32>
    %344 = vector.broadcast %343 : vector<1x128xf32> to vector<256x128xf32>
    %345 = arith.addf %342, %344 : vector<256x128xf32>
    %cst_144 = arith.constant 0.000000e+00 : f32
    %346 = vector.broadcast %cst_144 : f32 to vector<256x128xf32>
    %347 = arith.maximumf %345, %346 : vector<256x128xf32>
    %348 = arith.truncf %347 : vector<256x128xf32> to vector<256x128xbf16>
    %c0_145 = arith.constant 0 : index
    %c0_146 = arith.constant 0 : index
    %349 = vector.load %arg42[%c0_145, %c0_146] : memref<128x128xbf16, #tpu.memory_space<vmem>>, vector<128x128xbf16>
    %cst_147 = arith.constant dense<0.000000e+00> : vector<256x128xf32>
    %350 = tpu.matmul %348, %349, %cst_147 {dimension_numbers = #tpu.dot_dimension_numbers<[1], [0], [0], [1], [0, 0, 1, 1], [], []>} : vector<256x128xbf16>, vector<128x128xbf16>, vector<256x128xf32> -> vector<256x128xf32>
    %c0_148 = arith.constant 0 : index
    %c0_149 = arith.constant 0 : index
    %351 = vector.load %arg43[%c0_148, %c0_149] : memref<1x128xf32, #tpu.memory_space<vmem>>, vector<1x128xf32>
    %352 = vector.broadcast %351 : vector<1x128xf32> to vector<256x128xf32>
    %353 = arith.addf %350, %352 : vector<256x128xf32>
    %cst_150 = arith.constant 0.000000e+00 : f32
    %354 = vector.broadcast %cst_150 : f32 to vector<256x128xf32>
    %355 = arith.maximumf %353, %354 : vector<256x128xf32>
    %356 = arith.truncf %355 : vector<256x128xf32> to vector<256x128xbf16>
    %c0_151 = arith.constant 0 : index
    %c0_152 = arith.constant 0 : index
    %357 = vector.load %arg44[%c0_151, %c0_152] : memref<128x128xbf16, #tpu.memory_space<vmem>>, vector<128x128xbf16>
    %cst_153 = arith.constant dense<0.000000e+00> : vector<256x128xf32>
    %358 = tpu.matmul %356, %357, %cst_153 {dimension_numbers = #tpu.dot_dimension_numbers<[1], [0], [0], [1], [0, 0, 1, 1], [], []>} : vector<256x128xbf16>, vector<128x128xbf16>, vector<256x128xf32> -> vector<256x128xf32>
    %c0_154 = arith.constant 0 : index
    %c0_155 = arith.constant 0 : index
    %359 = vector.load %arg45[%c0_154, %c0_155] : memref<1x128xf32, #tpu.memory_space<vmem>>, vector<1x128xf32>
    %360 = vector.broadcast %359 : vector<1x128xf32> to vector<256x128xf32>
    %361 = arith.addf %358, %360 : vector<256x128xf32>
    %362 = vector.shape_cast %361 : vector<256x128xf32> to vector<4x64x128xf32>
    %c0_156 = arith.constant 0 : index
    %c0_157 = arith.constant 0 : index
    %363 = vector.load %arg5[%c0_156, %c0_157] : memref<64x1xf32, #tpu.memory_space<vmem>>, vector<64x1xf32>
    %364 = vector.shape_cast %363 : vector<64x1xf32> to vector<1x64x1xf32>
    %365 = vector.broadcast %364 : vector<1x64x1xf32> to vector<4x64x128xf32>
    %366 = arith.mulf %362, %365 : vector<4x64x128xf32>
    %367 = vector.shape_cast %366 : vector<4x64x128xf32> to vector<32x8x128xf32>
    %cst_158 = arith.constant dense<0.000000e+00> : vector<32x128xf32>
    %368 = vector.multi_reduction <add>, %367, %cst_158 [1] : vector<32x8x128xf32> to vector<32x128xf32>
    %c0_159 = arith.constant 0 : index
    %c0_160 = arith.constant 0 : index
    %369 = vector.load %arg46[%c0_159, %c0_160] : memref<32x128xf32, #tpu.memory_space<vmem>>, vector<32x128xf32>
    tpu.vector_store %arg46[%c0_159, %c0_160], %368 {strides = array<i32>} : memref<32x128xf32, #tpu.memory_space<vmem>>, vector<32x128xf32>,
    return
  }
  func.func @transform_0(%arg0: i32) -> (i32, i32) {
    %c0_i32 = arith.constant 0 : i32
    %c0_i32_0 = arith.constant 0 : i32
    return %arg0, %c0_i32 : i32, i32
  }
  func.func @transform_1(%arg0: i32) -> (i32, i32) {
    %c0_i32 = arith.constant 0 : i32
    %c0_i32_0 = arith.constant 0 : i32
    %c0_i32_1 = arith.constant 0 : i32
    return %c0_i32, %c0_i32_0 : i32, i32
  }
  func.func @transform_2(%arg0: i32) -> (i32, i32) {
    %c0_i32 = arith.constant 0 : i32
    %c0_i32_0 = arith.constant 0 : i32
    %c0_i32_1 = arith.constant 0 : i32
    return %c0_i32, %c0_i32_0 : i32, i32
  }
  func.func @transform_3(%arg0: i32) -> (i32, i32) {
    %c0_i32 = arith.constant 0 : i32
    %c0_i32_0 = arith.constant 0 : i32
    %c0_i32_1 = arith.constant 0 : i32
    return %c0_i32, %c0_i32_0 : i32, i32
  }
  func.func @transform_4(%arg0: i32) -> (i32, i32) {
    %c0_i32 = arith.constant 0 : i32
    %c0_i32_0 = arith.constant 0 : i32
    %c0_i32_1 = arith.constant 0 : i32
    return %c0_i32, %c0_i32_0 : i32, i32
  }
  func.func @transform_5(%arg0: i32) -> (i32, i32) {
    %c0_i32 = arith.constant 0 : i32
    %c0_i32_0 = arith.constant 0 : i32
    %c0_i32_1 = arith.constant 0 : i32
    return %c0_i32, %c0_i32_0 : i32, i32
  }
  func.func @transform_6(%arg0: i32) -> (i32, i32) {
    %c0_i32 = arith.constant 0 : i32
    %c0_i32_0 = arith.constant 0 : i32
    %c0_i32_1 = arith.constant 0 : i32
    return %c0_i32, %c0_i32_0 : i32, i32
  }
  func.func @transform_7(%arg0: i32) -> (i32, i32) {
    %c0_i32 = arith.constant 0 : i32
    %c0_i32_0 = arith.constant 0 : i32
    %c0_i32_1 = arith.constant 0 : i32
    return %c0_i32, %c0_i32_0 : i32, i32
  }
  func.func @transform_8(%arg0: i32) -> (i32, i32) {
    %c0_i32 = arith.constant 0 : i32
    %c0_i32_0 = arith.constant 0 : i32
    %c0_i32_1 = arith.constant 0 : i32
    return %c0_i32, %c0_i32_0 : i32, i32
  }
  func.func @transform_9(%arg0: i32) -> (i32, i32) {
    %c0_i32 = arith.constant 0 : i32
    %c0_i32_0 = arith.constant 0 : i32
    %c0_i32_1 = arith.constant 0 : i32
    return %c0_i32, %c0_i32_0 : i32, i32
  }
  func.func @transform_10(%arg0: i32) -> (i32, i32) {
    %c0_i32 = arith.constant 0 : i32
    %c0_i32_0 = arith.constant 0 : i32
    %c0_i32_1 = arith.constant 0 : i32
    return %c0_i32, %c0_i32_0 : i32, i32
  }
  func.func @transform_11(%arg0: i32) -> (i32, i32) {
    %c0_i32 = arith.constant 0 : i32
    %c0_i32_0 = arith.constant 0 : i32
    %c0_i32_1 = arith.constant 0 : i32
    return %c0_i32, %c0_i32_0 : i32, i32
  }
  func.func @transform_12(%arg0: i32) -> (i32, i32) {
    %c0_i32 = arith.constant 0 : i32
    %c0_i32_0 = arith.constant 0 : i32
    %c0_i32_1 = arith.constant 0 : i32
    return %c0_i32, %c0_i32_0 : i32, i32
  }
  func.func @transform_13(%arg0: i32) -> (i32, i32) {
    %c0_i32 = arith.constant 0 : i32
    %c0_i32_0 = arith.constant 0 : i32
    %c0_i32_1 = arith.constant 0 : i32
    return %c0_i32, %c0_i32_0 : i32, i32
  }
  func.func @transform_14(%arg0: i32) -> (i32, i32) {
    %c0_i32 = arith.constant 0 : i32
    %c0_i32_0 = arith.constant 0 : i32
    %c0_i32_1 = arith.constant 0 : i32
    return %c0_i32, %c0_i32_0 : i32, i32
  }
  func.func @transform_15(%arg0: i32) -> (i32, i32) {
    %c0_i32 = arith.constant 0 : i32
    %c0_i32_0 = arith.constant 0 : i32
    %c0_i32_1 = arith.constant 0 : i32
    return %c0_i32, %c0_i32_0 : i32, i32
  }
  func.func @transform_16(%arg0: i32) -> (i32, i32) {
    %c0_i32 = arith.constant 0 : i32
    %c0_i32_0 = arith.constant 0 : i32
    %c0_i32_1 = arith.constant 0 : i32
    return %c0_i32, %c0_i32_0 : i32, i32
  }
  func.func @transform_17(%arg0: i32) -> (i32, i32) {
    %c0_i32 = arith.constant 0 : i32
    %c0_i32_0 = arith.constant 0 : i32
    %c0_i32_1 = arith.constant 0 : i32
    return %c0_i32, %c0_i32_0 : i32, i32
  }
  func.func @transform_18(%arg0: i32) -> (i32, i32) {
    %c0_i32 = arith.constant 0 : i32
    %c0_i32_0 = arith.constant 0 : i32
    %c0_i32_1 = arith.constant 0 : i32
    return %c0_i32, %c0_i32_0 : i32, i32
  }
  func.func @transform_19(%arg0: i32) -> (i32, i32) {
    %c0_i32 = arith.constant 0 : i32
    %c0_i32_0 = arith.constant 0 : i32
    %c0_i32_1 = arith.constant 0 : i32
    return %c0_i32, %c0_i32_0 : i32, i32
  }
  func.func @transform_20(%arg0: i32) -> (i32, i32) {
    %c0_i32 = arith.constant 0 : i32
    %c0_i32_0 = arith.constant 0 : i32
    %c0_i32_1 = arith.constant 0 : i32
    return %c0_i32, %c0_i32_0 : i32, i32
  }
  func.func @transform_21(%arg0: i32) -> (i32, i32) {
    %c0_i32 = arith.constant 0 : i32
    %c0_i32_0 = arith.constant 0 : i32
    %c0_i32_1 = arith.constant 0 : i32
    return %c0_i32, %c0_i32_0 : i32, i32
  }
  func.func @transform_22(%arg0: i32) -> (i32, i32) {
    %c0_i32 = arith.constant 0 : i32
    %c0_i32_0 = arith.constant 0 : i32
    %c0_i32_1 = arith.constant 0 : i32
    return %c0_i32, %c0_i32_0 : i32, i32
  }
  func.func @transform_23(%arg0: i32) -> (i32, i32) {
    %c0_i32 = arith.constant 0 : i32
    %c0_i32_0 = arith.constant 0 : i32
    %c0_i32_1 = arith.constant 0 : i32
    return %c0_i32, %c0_i32_0 : i32, i32
  }
  func.func @transform_24(%arg0: i32) -> (i32, i32) {
    %c0_i32 = arith.constant 0 : i32
    %c0_i32_0 = arith.constant 0 : i32
    %c0_i32_1 = arith.constant 0 : i32
    return %c0_i32, %c0_i32_0 : i32, i32
  }
  func.func @transform_25(%arg0: i32) -> (i32, i32) {
    %c0_i32 = arith.constant 0 : i32
    %c0_i32_0 = arith.constant 0 : i32
    %c0_i32_1 = arith.constant 0 : i32
    return %c0_i32, %c0_i32_0 : i32, i32
  }
  func.func @transform_26(%arg0: i32) -> (i32, i32) {
    %c0_i32 = arith.constant 0 : i32
    %c0_i32_0 = arith.constant 0 : i32
    %c0_i32_1 = arith.constant 0 : i32
    return %c0_i32, %c0_i32_0 : i32, i32
  }
  func.func @transform_27(%arg0: i32) -> (i32, i32) {
    %c0_i32 = arith.constant 0 : i32
    %c0_i32_0 = arith.constant 0 : i32
    %c0_i32_1 = arith.constant 0 : i32
    return %c0_i32, %c0_i32_0 : i32, i32
  }
  func.func @transform_28(%arg0: i32) -> (i32, i32) {
    %c0_i32 = arith.constant 0 : i32
    %c0_i32_0 = arith.constant 0 : i32
    %c0_i32_1 = arith.constant 0 : i32
    return %c0_i32, %c0_i32_0 : i32, i32
  }
  func.func @transform_29(%arg0: i32) -> (i32, i32) {
    %c0_i32 = arith.constant 0 : i32
    %c0_i32_0 = arith.constant 0 : i32
    %c0_i32_1 = arith.constant 0 : i32
    return %c0_i32, %c0_i32_0 : i32, i32
  }
  func.func @transform_30(%arg0: i32) -> (i32, i32) {
    %c0_i32 = arith.constant 0 : i32
    %c0_i32_0 = arith.constant 0 : i32
    %c0_i32_1 = arith.constant 0 : i32
    return %c0_i32, %c0_i32_0 : i32, i32
  }
  func.func @transform_31(%arg0: i32) -> (i32, i32) {
    %c0_i32 = arith.constant 0 : i32
    %c0_i32_0 = arith.constant 0 : i32
    %c0_i32_1 = arith.constant 0 : i32
    return %c0_i32, %c0_i32_0 : i32, i32
  }
  func.func @transform_32(%arg0: i32) -> (i32, i32) {
    %c0_i32 = arith.constant 0 : i32
    %c0_i32_0 = arith.constant 0 : i32
    %c0_i32_1 = arith.constant 0 : i32
    return %c0_i32, %c0_i32_0 : i32, i32
  }
  func.func @transform_33(%arg0: i32) -> (i32, i32) {
    %c0_i32 = arith.constant 0 : i32
    %c0_i32_0 = arith.constant 0 : i32
    %c0_i32_1 = arith.constant 0 : i32
    return %c0_i32, %c0_i32_0 : i32, i32
  }
  func.func @transform_34(%arg0: i32) -> (i32, i32) {
    %c0_i32 = arith.constant 0 : i32
    %c0_i32_0 = arith.constant 0 : i32
    %c0_i32_1 = arith.constant 0 : i32
    return %c0_i32, %c0_i32_0 : i32, i32
  }
  func.func @transform_35(%arg0: i32) -> (i32, i32) {
    %c0_i32 = arith.constant 0 : i32
    %c0_i32_0 = arith.constant 0 : i32
    %c0_i32_1 = arith.constant 0 : i32
    return %c0_i32, %c0_i32_0 : i32, i32
  }
  func.func @transform_36(%arg0: i32) -> (i32, i32) {
    %c0_i32 = arith.constant 0 : i32
    %c0_i32_0 = arith.constant 0 : i32
    %c0_i32_1 = arith.constant 0 : i32
    return %c0_i32, %c0_i32_0 : i32, i32
  }
  func.func @transform_37(%arg0: i32) -> (i32, i32) {
    %c0_i32 = arith.constant 0 : i32
    %c0_i32_0 = arith.constant 0 : i32
    %c0_i32_1 = arith.constant 0 : i32
    return %c0_i32, %c0_i32_0 : i32, i32
  }
  func.func @transform_38(%arg0: i32) -> (i32, i32) {
    %c0_i32 = arith.constant 0 : i32
    %c0_i32_0 = arith.constant 0 : i32
    %c0_i32_1 = arith.constant 0 : i32
    return %c0_i32, %c0_i32_0 : i32, i32
  }
  func.func @transform_39(%arg0: i32) -> (i32, i32) {
    %c0_i32 = arith.constant 0 : i32
    %c0_i32_0 = arith.constant 0 : i32
    %c0_i32_1 = arith.constant 0 : i32
    return %c0_i32, %c0_i32_0 : i32, i32
  }
  func.func @transform_40(%arg0: i32) -> (i32, i32) {
    %c0_i32 = arith.constant 0 : i32
    %c0_i32_0 = arith.constant 0 : i32
    %c0_i32_1 = arith.constant 0 : i32
    return %c0_i32, %c0_i32_0 : i32, i32
  }
  func.func @transform_41(%arg0: i32) -> (i32, i32) {
    %c0_i32 = arith.constant 0 : i32
    %c0_i32_0 = arith.constant 0 : i32
    %c0_i32_1 = arith.constant 0 : i32
    return %c0_i32, %c0_i32_0 : i32, i32
  }
  func.func @transform_42(%arg0: i32) -> (i32, i32) {
    %c0_i32 = arith.constant 0 : i32
    %c0_i32_0 = arith.constant 0 : i32
    %c0_i32_1 = arith.constant 0 : i32
    return %c0_i32, %c0_i32_0 : i32, i32
  }
  func.func @transform_43(%arg0: i32) -> (i32, i32) {
    %c0_i32 = arith.constant 0 : i32
    %c0_i32_0 = arith.constant 0 : i32
    %c0_i32_1 = arith.constant 0 : i32
    return %c0_i32, %c0_i32_0 : i32, i32
  }
  func.func @transform_44(%arg0: i32) -> (i32, i32) {
    %c0_i32 = arith.constant 0 : i32
    %c0_i32_0 = arith.constant 0 : i32
    %c0_i32_1 = arith.constant 0 : i32
    return %c0_i32, %c0_i32_0 : i32, i32
  }
  func.func @transform_45(%arg0: i32) -> (i32, i32) {
    %c0_i32 = arith.constant 0 : i32
    %c0_i32_0 = arith.constant 0 : i32
    return %arg0, %c0_i32 : i32, i32
  }
}

</mosaic_0001>

<bundles_post_ra>
// kernel: forward.1
= control target key start
LH: loop header
LB: loop body
LE: loop exit
PB: predicated region body
PF: predicated region fallthrough
CT: control target
= control target key end

     0   :  { %s10205_s6 = smov 1   ;;  %s10206_s10 = smov 2   ;;  %s14717_s0 = inlined_call_operand.smem [shape: u32[46], index: -1, kind: input, shape index: {}] }
   0x1   :  { %s10281_s5 = sld [smem:[%s14717_s0]]   ;;  %s10207_s14 = smov 3  }
   0x2   :  { %s10286_s9 = sld [smem:[%s14717_s0 + %s10205_s6]]   ;;  %s10208_s18 = smov 4  }
   0x3   :  { %s10291_s13 = sld [smem:[%s14717_s0 + %s10206_s10]]   ;;  %s10209_s22 = smov 5  }
   0x4   :  { %s10296_s17 = sld [smem:[%s14717_s0 + %s10207_s14]]   ;;  %s10210_s26 = smov 6  }
   0x5   :  { %s10301_s21 = sld [smem:[%s14717_s0 + %s10208_s18]]   ;;  %s10211_s30 = smov 7  }
   0x6   :  { %s10306_s25 = sld [smem:[%s14717_s0 + %s10209_s22]]   ;;  %s10212_s4 = smov 8  }
   0x7   :  { %14774 = sst [smem:[#allocation39_spill]] %s10281_s5  ;;  %s10213_s10 = smov 9  }
   0x8   :  { %14775 = sst [smem:[#allocation40_spill]] %s10286_s9  ;;  %s10214_s15 = smov 10  }
   0x9   :  { %14776 = sst [smem:[#allocation41_spill]] %s10291_s13  ;;  %s10215_s20 = smov 11  }
   0xa   :  { %s10311_s29 = sld [smem:[%s14717_s0 + %s10210_s26]]   ;;  %s10216_s26 = smov 12  }
   0xb   :  { %14777 = sst [smem:[#allocation42_spill]] %s10301_s21  ;;  %s10217_s1 = smov 13  }
   0xc   :  { %s10316_s3 = sld [smem:[%s14717_s0 + %s10211_s30]]   ;;  %s10218_s7 = smov 14  }
   0xd   :  { %s10321_s8 = sld [smem:[%s14717_s0 + %s10212_s4]]   ;;  %s10220_s22 = smov 16  }
   0xe   :  { %s10326_s14 = sld [smem:[%s14717_s0 + %s10213_s10]]   ;;  %s10221_s28 = smov 17  }
   0xf   :  { %s10331_s19 = sld [smem:[%s14717_s0 + %s10214_s15]]   ;;  %s10219_s15 = smov 15  }
  0x10   :  { %s10336_s24 = sld [smem:[%s14717_s0 + %s10215_s20]]  }
  0x11   :  { %s10341_s30 = sld [smem:[%s14717_s0 + %s10216_s26]]  }
  0x12   :  { %14778 = sst [smem:[#allocation43_spill]] %s10316_s3 }
  0x13   :  { %14779 = sst [smem:[#allocation44_spill]] %s10321_s8 }
  0x14   :  { %14780 = sst [smem:[#allocation45_spill]] %s10326_s14 }
  0x15   :  { %s10346_s6 = sld [smem:[%s14717_s0 + %s10217_s1]]  }
  0x16   :  { %14781 = sst [smem:[#allocation46_spill]] %s10336_s24 }
  0x17   :  { %14782 = sst [smem:[#allocation47_spill]] %s10341_s30 }
  0x18   :  { %s10351_s12 = sld [smem:[%s14717_s0 + %s10218_s7]]   ;;  %s10222_s7 = smov 18  }
  0x19   :  { %s10356_s20 = sld [smem:[%s14717_s0 + %s10219_s15]]   ;;  %s10223_s15 = smov 19  }
  0x1a   :  { %s10361_s27 = sld [smem:[%s14717_s0 + %s10220_s22]]   ;;  %s10224_s22 = smov 20  }
  0x1b   :  { %14783 = sst [smem:[#allocation48_spill]] %s10346_s6 }
  0x1c   :  { %s10366_s4 = sld [smem:[%s14717_s0 + %s10221_s28]]   ;;  %s10225_s28 = smov 21  }
  0x1d   :  { %s10371_s6 = sld [smem:[%s14717_s0 + %s10222_s7]]   ;;  %s10226_s7 = smov 22  }
  0x1e   :  { %s10381_s30 = sld [smem:[%s14717_s0 + %s10224_s22]]   ;;  %s10228_s22 = smov 24  }
  0x1f   :  { %14784 = sst [smem:[#allocation49_spill]] %s10356_s20 }
  0x20   :  { %s10376_s20 = sld [smem:[%s14717_s0 + %s10223_s15]]   ;;  %s10227_s15 = smov 23  }
  0x21   :  { %s10386_s24 = sld [smem:[%s14717_s0 + %s10225_s28]]   ;;  %s10229_s28 = smov 25  }
  0x22   :  { %14785 = sst [smem:[#allocation50_spill]] %s10366_s4 }
  0x23   :  { %14786 = sst [smem:[#allocation51_spill]] %s10371_s6 }
  0x24   :  { %14788 = sst [smem:[#allocation53_spill]] %s10381_s30 }
  0x25   :  { %s10391_s6 = sld [smem:[%s14717_s0 + %s10226_s7]]   ;;  %s10230_s7 = smov 26  }
  0x26   :  { %14787 = sst [smem:[#allocation52_spill]] %s10376_s20 }
  0x27   :  { %s10396_s20 = sld [smem:[%s14717_s0 + %s10227_s15]]   ;;  %s10231_s15 = smov 27  }
  0x28   :  { %s10401_s30 = sld [smem:[%s14717_s0 + %s10228_s22]]   ;;  %s10232_s22 = smov 28  }
  0x29   :  { %s10406_s14 = sld [smem:[%s14717_s0 + %s10229_s28]]   ;;  %s10233_s28 = smov 29  }
  0x2a   :  { %s10416_s21 = sld [smem:[%s14717_s0 + %s10231_s15]]   ;;  %s10235_s15 = smov 31  }
  0x2b   :  { %14789 = sst [smem:[#allocation54_spill]] %s10391_s6 }
  0x2c   :  { %s10411_s6 = sld [smem:[%s14717_s0 + %s10230_s7]]   ;;  %s10234_s7 = smov 30  }
  0x2d   :  { %s10421_s5 = sld [smem:[%s14717_s0 + %s10232_s22]]   ;;  %s10236_s22 = smov 32  }
  0x2f   :  { %14790 = sst [smem:[#allocation55_spill]] %s10406_s14 }
  0x30   :  { %14792 = sst [smem:[#allocation57_spill]] %s10416_s21 }
  0x31   :  { %s10426_s14 = sld [smem:[%s14717_s0 + %s10233_s28]]   ;;  %s10237_s28 = smov 33  }
  0x32   :  { %14791 = sst [smem:[#allocation56_spill]] %s10411_s6 }
  0x33   :  { %14793 = sst [smem:[#allocation58_spill]] %s10421_s5 }
  0x34   :  { %s10431_s6 = sld [smem:[%s14717_s0 + %s10234_s7]]   ;;  %s10238_s7 = smov 34  }
  0x35   :  { %s10436_s21 = sld [smem:[%s14717_s0 + %s10235_s15]]   ;;  %s10239_s15 = smov 35  }
  0x36   :  { %s10441_s5 = sld [smem:[%s14717_s0 + %s10236_s22]]   ;;  %s10240_s22 = smov 36  }
  0x37   :  { %14794 = sst [smem:[#allocation59_spill]] %s10426_s14 }
  0x38   :  { %s10446_s14 = sld [smem:[%s14717_s0 + %s10237_s28]]   ;;  %s10241_s28 = smov 37  }
  0x3a   :  { %14795 = sst [smem:[#allocation60_spill]] %s10431_s6 }
  0x3b   :  { %14796 = sst [smem:[#allocation61_spill]] %s10436_s21 }
  0x3c   :  { %14797 = sst [smem:[#allocation62_spill]] %s10441_s5 }
  0x3d   :  { %s10451_s6 = sld [smem:[%s14717_s0 + %s10238_s7]]   ;;  %s10242_s7 = smov 38  }
  0x3e   :  { %14798 = sst [smem:[#allocation63_spill]] %s10446_s14 }
  0x3f   :  { %s10456_s21 = sld [smem:[%s14717_s0 + %s10239_s15]]   ;;  %s10243_s15 = smov 39  }
  0x40   :  { %s10461_s5 = sld [smem:[%s14717_s0 + %s10240_s22]]   ;;  %s10244_s22 = smov 40  }
  0x41   :  { %s10466_s14 = sld [smem:[%s14717_s0 + %s10241_s28]]   ;;  %s10245_s28 = smov 41  }
  0x43   :  { %14799 = sst [smem:[#allocation64_spill]] %s10451_s6 }
  0x44   :  { %s10471_s6 = sld [smem:[%s14717_s0 + %s10242_s7]]   ;;  %s10246_s7 = smov 42  }
  0x45   :  { %14800 = sst [smem:[#allocation65_spill]] %s10456_s21 }
  0x46   :  { %14801 = sst [smem:[#allocation66_spill]] %s10461_s5 }
  0x47   :  { %14802 = sst [smem:[#allocation67_spill]] %s10466_s14 }
  0x48   :  { %s10476_s21 = sld [smem:[%s14717_s0 + %s10243_s15]]   ;;  %s10247_s15 = smov 43  }
  0x49   :  { %s10481_s5 = sld [smem:[%s14717_s0 + %s10244_s22]]   ;;  %s10248_s22 = smov 44  }
  0x4a   :  { %14803 = sst [smem:[#allocation68_spill]] %s10471_s6 }
  0x4b   :  { %s10486_s14 = sld [smem:[%s14717_s0 + %s10245_s28]]   ;;  %s10249_s28 = smov 45  }
  0x4c   :  { %s10491_s6 = sld [smem:[%s14717_s0 + %s10246_s7]]  }
  0x4e   :  { %14804 = sst [smem:[#allocation69_spill]] %s10476_s21 }
  0x4f   :  { %14805 = sst [smem:[#allocation70_spill]] %s10481_s5 }
  0x50   :  { %s10496_s21 = sld [smem:[%s14717_s0 + %s10247_s15]]  }
  0x51   :  { %14806 = sst [smem:[#allocation71_spill]] %s10486_s14 }
  0x52   :  { %14807 = sst [smem:[#allocation72_spill]] %s10491_s6 }
  0x53   :  { %s10501_s5 = sld [smem:[%s14717_s0 + %s10248_s22]]  }
  0x54   :  { %s10506_s14 = sld [smem:[%s14717_s0 + %s10249_s28]]  }
  0x59   :  { %14808 = sst [smem:[#allocation73_spill]] %s10501_s5 }
  0x5a   :  { %14809 = sst [smem:[#allocation74_spill]] %s10506_s14 }
  0x5b   :  { %96 = vsyncpa [#allocation3], 0 }
  0x5c   :  { %97 = vsyncpa [#allocation6], 0 }
  0x5d   :  { %98 = vsyncpa [#allocation9], 0 }
  0x5e   :  { %99 = vsyncpa [#allocation12], 0 }
  0x5f   :  { %100 = vsyncpa [#allocation15], 0 }
  0x60   :  { %101 = vsyncpa [#allocation18], 0 }
  0x61   :  { %102 = vsyncpa [#allocation21], 0 }
  0x62   :  { %103 = vsyncpa [#allocation24], 0 }
  0x63   :  { %104 = vsyncpa [#allocation27], 0 }
  0x64   :  { %105 = vsyncpa [#allocation4], 0 }
  0x65   :  { %107 = vsyncpa [#allocation4 + $0x1], 0  ;;  %s10508_s7 = smov 0   ;;  %s10510_s10 = smov 0  }
  0x66   :  { %s10512_s11 = smov 0   ;;  %s10514_s15 = smov 0  }
  0x67 LB: > { %s14810_s9 = sld [smem:[#allocation40_spill]]  ;;  %s10529_s0 = sadd.s32 4294967295, %s10203_s15   ;;  %s10191_s7 = sphi %s10508_s7, %s14905_s7   ;;  %s10203_s15 = sphi %s10514_s15, %s14904_s15   ;;  %s10199_s11 = sphi %s10512_s11, %s14907_s11   ;;  %s10195_s10 = sphi %s10510_s10, %s14906_s10  }
  0x68   : > { %s14811_s8 = sld [smem:[#allocation44_spill]]  ;;  %s8439_s16 = sadd.s32 4294967294, %s10203_s15  }
  0x69   : > { %s14812_s4 = sld [smem:[#allocation50_spill]]  ;;  %s10533_s18 = sadd.s32 1, %s10203_s15  }
  0x6a   : > { %s14813_s3 = sld [smem:[#allocation43_spill]]  ;;  %s1070_s22 = sadd.s32 1, %s10199_s11 }
  0x6b   : > { %s14814_s13 = sld [smem:[#allocation41_spill]]  ;;  %s1067_s23 = ssub.s32 %s10203_s15, %s10533_s18 }
  0x6c   : > { %14815 = sst [smem:[#allocation75_spill]] %s10191_s7  ;;  %p1080_p0 = scmp.ne.s32.totalorder %s10199_s11, %s10195_s10 }
  0x6d   : > { %14816 = sst [smem:[#allocation76_spill]] %s10195_s10  ;;  %p1068_p1 = scmp.eq.s32.totalorder %s1067_s23, 0 }
  0x6e   : > { %14817 = sst [smem:[#allocation77_spill]] %s10199_s11  ;;  %p1081_p2 = scmp.eq.s32.totalorder %s10529_s0, 1 }
  0x6f   : > { %14818 = sst [smem:[#allocation78_spill]] %s10203_s15  ;;  %p1086_p3 = scmp.ne.s32.totalorder %s10195_s10, %s10191_s7 }
  0x70   : > { %14819 = sst [smem:[#allocation79_spill]] %s10533_s18  ;;  %p1087_p4 = scmp.eq.s32.totalorder %s8439_s16, 1 }
  0x71   : > { %s10544_s26 = scalar_select %p1068_p1, %s10199_s11, %s1070_s22  }
  0x72   : > { %p10546_p5 = por %p1081_p2, %p1080_p0  ;;  %p10550_p6 = por %p1087_p4, %p1086_p3 }
  0x73   : > { %14820 = sst [smem:[#allocation80_spill]] %s10544_s26  ;;  %p8440_p7 = scmp.ge.s32.totalorder %s10203_s15, 1 }
  0x74   : > { %s14821_s28 = scalar_select %p10546_p5, 1, 0 }
  0x75   : > { %s14823_s1 = scalar_select %p10550_p6, 1, 0 }
  0x76   : > { %14822 = sst [smem:[#allocation81_spill]] %s14821_s28  ;;  %p1094_p8 = scmp.lt.s32.totalorder %s10203_s15, 3 }
  0x77   : > { %14824 = sst [smem:[#allocation82_spill]] %s14823_s1  ;;  %p9427_p9 = scmp.eq.s32.totalorder %s10529_s0, 0 }
  0x78   : > { %p10557_p10 = pnand %p8440_p7, %p1094_p8  ;;  %s1119_s23 = sshll.u32 %s14814_s13, 4  ;;  %s1120_s23 = int_to_ptr.hbm [resolvable:$true] %s1119_s23 }
  0x79   : > { %s1150_s16 = sshll.u32 %s10306_s25, 4  ;;  %s10250_s26 = smov [#allocation5]   ;;  %s10571_s16 = int_to_ptr.hbm [resolvable:$true] %s1150_s16 }
  0x7a   : > { %p9374_p11 = pneg %p10557_p10  ;;  %s1121_s11 = sshll.u32 %s10250_s26, 4  ;;  %s1122_s11 = int_to_ptr.vmem [resolvable:$true] %s1121_s11 }
  0x7b   : > { %s9625_s18 = sshra.s32 %s1120_s23, 4  ;;  %s9632_s15 = scalar_lea.hbm %s14814_s13, 64  ;;  %s9626_s18 = int_to_ptr.hbm [resolvable:$true] %s9625_s18 }
  0x7c   : > { %p10567_p12 = pnand %p9427_p9, %p9374_p11  ;;  %s9627_s1 = scalar_lea.hbm %s9626_s18, 64 }
  0x7d   : > { %p9628_p13 = scmp.ne.s32.totalorder %s9626_s18, %s9627_s1  ;;  %p9633_p3 = scmp.lt.s32.totalorder %s9626_s18, %s14814_s13 }
  0x7e   : > { %p10575_p0 = pneg %p10567_p12  ;;  %p9634_p4 = scmp.lt.s32.totalorder %s9632_s15, %s9627_s1 }
  0x80   : > { %p9630_p1 = pnand %p10575_p0, %p9628_p13  ;;  %p9635_p7 = por %p9634_p4, %p9633_p3 }
  0x82   : > { %p9631_p2 = pneg %p9630_p1 }
  0x84   : > { %p9636_p8 = pnand %p9635_p7, %p9631_p2 }
  0x86   : > { %9639 = shalt.err (!%p9636_p8)
}
  0x87   : > { %s14737_s26 = smov 128   ;;  %s14739_s28 = smov 8  }
  0x88   : > { %9380 = dma.hbm_to_vmem [thread:$0]  (!%p10567_p12), %s1120_s23, 1024, %s1122_s11, [#allocation6], %s14737_s26, %s14737_s26, %s14739_s28  }
  0x89   : > { %s10253_s14 = smov [#allocation8]   ;;  %s9655_s18 = sshra.s32 %s10571_s16, 4  ;;  %s9656_s18 = int_to_ptr.hbm [resolvable:$true] %s9655_s18 }
  0x8a   : > { %s1152_s10 = sshll.u32 %s10253_s14, 4  ;;  %s9657_s15 = scalar_lea.hbm %s9656_s18, 64  ;;  %s1153_s10 = int_to_ptr.vmem [resolvable:$true] %s1152_s10 }
  0x8b   : > { %p9658_p11 = scmp.ne.s32.totalorder %s9656_s18, %s9657_s15  ;;  %s9662_s1 = scalar_lea.hbm %s10306_s25, 64 }
  0x8c   : > { %p9663_p2 = scmp.lt.s32.totalorder %s9656_s18, %s10306_s25  ;;  %p9664_p3 = scmp.lt.s32.totalorder %s9662_s1, %s9657_s15 }
  0x8d   : > { %p9660_p13 = pnand %p9658_p11, %p10575_p0 }
  0x8e   : > { %p9665_p4 = por %p9664_p3, %p9663_p2 }
  0x8f   : > { %p9661_p1 = pneg %p9660_p13 }
  0x91   : > { %p9666_p7 = pnand %p9665_p4, %p9661_p1 }
  0x93   : > { %9669 = shalt.err (!%p9666_p7)
}
  0x94   : > { %s14741_s13 = smov 64   ;;  %s14743_s14 = smov 4  }
  0x95   : > { %9386 = dma.hbm_to_vmem [thread:$0]  (!%p10567_p12), %s10571_s16, 1024, %s1153_s10, [#allocation9], %s14741_s13, %s14741_s13, %s14743_s14  }
  0x96   : > { %s1178_s11 = sshll.u32 %s14813_s3, 4  ;;  %s10256_s23 = smov [#allocation11]   ;;  %s1179_s11 = int_to_ptr.hbm [resolvable:$true] %s1178_s11 }
  0x97   : > { %s1180_s18 = sshll.u32 %s10256_s23, 4  ;;  %s1209_s15 = sshll.u32 %s10331_s19, 4  ;;  %s1181_s18 = int_to_ptr.vmem [resolvable:$true] %s1180_s18  ;;  %s1210_s15 = int_to_ptr.hbm [resolvable:$true] %s1209_s15 }
  0x98   : > { %s9685_s1 = sshra.s32 %s1179_s11, 4  ;;  %s9692_s28 = scalar_lea.hbm %s14813_s3, 64  ;;  %s9686_s1 = int_to_ptr.hbm [resolvable:$true] %s9685_s1 }
  0x99   : > { %s9687_s26 = scalar_lea.hbm %s9686_s1, 64  ;;  %p9693_p1 = scmp.lt.s32.totalorder %s9686_s1, %s14813_s3 }
  0x9a   : > { %p9688_p8 = scmp.ne.s32.totalorder %s9686_s1, %s9687_s26  ;;  %p9694_p2 = scmp.lt.s32.totalorder %s9692_s28, %s9687_s26 }
  0x9c   : > { %p9690_p11 = pnand %p9688_p8, %p10575_p0  ;;  %p9695_p3 = por %p9694_p2, %p9693_p1 }
  0x9e   : > { %p9691_p13 = pneg %p9690_p11 }
  0xa0   : > { %p9696_p4 = pnand %p9695_p3, %p9691_p13 }
  0xa2   : > { %9699 = shalt.err (!%p9696_p4)
}
  0xa3   : > { %9392 = dma.hbm_to_vmem [thread:$0]  (!%p10567_p12), %s1179_s11, 1024, %s1181_s18, [#allocation12], %s14741_s13, %s14741_s13, %s14743_s14  }
  0xa4   : > { %s10257_s10 = smov [#allocation14]   ;;  %s1249_s23 = sshll.u32 %s10361_s27, 4  ;;  %s10611_s23 = int_to_ptr.hbm [resolvable:$true] %s1249_s23 }
  0xa5   : > { %s1211_s16 = sshll.u32 %s10257_s10, 4  ;;  %s9715_s28 = sshra.s32 %s1210_s15, 4  ;;  %s1212_s16 = int_to_ptr.vmem [resolvable:$true] %s1211_s16  ;;  %s9716_s28 = int_to_ptr.hbm [resolvable:$true] %s9715_s28 }
  0xa6   : > { %s9717_s26 = scalar_lea.hbm %s9716_s28, 64  ;;  %s9722_s1 = scalar_lea.hbm %s10331_s19, 64 }
  0xa7   : > { %p9718_p7 = scmp.ne.s32.totalorder %s9716_s28, %s9717_s26  ;;  %p9723_p13 = scmp.lt.s32.totalorder %s9716_s28, %s10331_s19 }
  0xa8   : > { %p9724_p1 = scmp.lt.s32.totalorder %s9722_s1, %s9717_s26 }
  0xa9   : > { %p9720_p8 = pnand %p9718_p7, %p10575_p0 }
  0xaa   : > { %p9725_p2 = por %p9724_p1, %p9723_p13 }
  0xab   : > { %p9721_p11 = pneg %p9720_p8 }
  0xad   : > { %p9726_p3 = pnand %p9725_p2, %p9721_p11 }
  0xaf   : > { %9729 = shalt.err (!%p9726_p3)
}
  0xb0   : > { %9398 = dma.hbm_to_vmem [thread:$0]  (!%p10567_p12), %s1210_s15, 1024, %s1212_s16, [#allocation15], %s14741_s13, %s14741_s13, %s14743_s14  }
  0xb1   : > { %s1286_s11 = sshll.u32 %s10386_s24, 4  ;;  %s10258_s18 = smov [#allocation17]   ;;  %s10623_s11 = int_to_ptr.hbm [resolvable:$true] %s1286_s11 }
  0xb2   : > { %s1251_s10 = sshll.u32 %s10258_s18, 4  ;;  %s9745_s28 = sshra.s32 %s10611_s23, 4  ;;  %s1252_s10 = int_to_ptr.vmem [resolvable:$true] %s1251_s10  ;;  %s9746_s28 = int_to_ptr.hbm [resolvable:$true] %s9745_s28 }
  0xb3   : > { %s9747_s26 = scalar_lea.hbm %s9746_s28, 64  ;;  %s9752_s1 = scalar_lea.hbm %s10361_s27, 64 }
  0xb4   : > { %p9748_p4 = scmp.ne.s32.totalorder %s9746_s28, %s9747_s26  ;;  %p9753_p11 = scmp.lt.s32.totalorder %s9746_s28, %s10361_s27 }
  0xb5   : > { %p9754_p13 = scmp.lt.s32.totalorder %s9752_s1, %s9747_s26 }
  0xb6   : > { %p9750_p7 = pnand %p9748_p4, %p10575_p0 }
  0xb7   : > { %p9755_p1 = por %p9754_p13, %p9753_p11 }
  0xb8   : > { %p9751_p8 = pneg %p9750_p7 }
  0xba   : > { %p9756_p2 = pnand %p9755_p1, %p9751_p8 }
  0xbc   : > { %9759 = shalt.err (!%p9756_p2)
}
  0xbd   : > { %9404 = dma.hbm_to_vmem [thread:$0]  (!%p10567_p12), %s10611_s23, 1024, %s1252_s10, [#allocation18], %s14741_s13, %s14741_s13, %s14743_s14  }
  0xbe   : > { %s10259_s15 = smov [#allocation20]   ;;  %s1317_s18 = sshll.u32 %s10401_s30, 4  ;;  %s10637_s18 = int_to_ptr.hbm [resolvable:$true] %s1317_s18 }
  0xbf   : > { %s1288_s16 = sshll.u32 %s10259_s15, 4  ;;  %s9775_s28 = sshra.s32 %s10623_s11, 4  ;;  %s1289_s16 = int_to_ptr.vmem [resolvable:$true] %s1288_s16  ;;  %s9776_s28 = int_to_ptr.hbm [resolvable:$true] %s9775_s28 }
  0xc0   : > { %s9777_s26 = scalar_lea.hbm %s9776_s28, 64  ;;  %s9782_s1 = scalar_lea.hbm %s10386_s24, 64 }
  0xc1   : > { %p9778_p3 = scmp.ne.s32.totalorder %s9776_s28, %s9777_s26  ;;  %p9783_p8 = scmp.lt.s32.totalorder %s9776_s28, %s10386_s24 }
  0xc2   : > { %p9784_p11 = scmp.lt.s32.totalorder %s9782_s1, %s9777_s26 }
  0xc3   : > { %p9780_p4 = pnand %p9778_p3, %p10575_p0 }
  0xc4   : > { %p9785_p13 = por %p9784_p11, %p9783_p8 }
  0xc5   : > { %p9781_p7 = pneg %p9780_p4 }
  0xc7   : > { %p9786_p1 = pnand %p9785_p13, %p9781_p7 }
  0xc9   : > { %9789 = shalt.err (!%p9786_p1)
}
  0xca   : > { %9410 = dma.hbm_to_vmem [thread:$0]  (!%p10567_p12), %s10623_s11, 1024, %s1289_s16, [#allocation21], %s14741_s13, %s14741_s13, %s14743_s14  }
  0xcb   : > { %s1105_s23 = sshll.u32 %s14810_s9, 4  ;;  %s10260_s10 = smov [#allocation23]   ;;  %s10651_s23 = int_to_ptr.hbm [resolvable:$true] %s1105_s23 }
  0xcc   : > { %s1319_s15 = sshll.u32 %s10260_s10, 4  ;;  %s9805_s28 = sshra.s32 %s10637_s18, 4  ;;  %s1320_s15 = int_to_ptr.vmem [resolvable:$true] %s1319_s15  ;;  %s9806_s28 = int_to_ptr.hbm [resolvable:$true] %s9805_s28 }
  0xcd   : > { %s9807_s26 = scalar_lea.hbm %s9806_s28, 64  ;;  %s9812_s1 = scalar_lea.hbm %s10401_s30, 64 }
  0xce   : > { %p9808_p2 = scmp.ne.s32.totalorder %s9806_s28, %s9807_s26  ;;  %p9813_p7 = scmp.lt.s32.totalorder %s9806_s28, %s10401_s30 }
  0xcf   : > { %p9814_p8 = scmp.lt.s32.totalorder %s9812_s1, %s9807_s26 }
  0xd0   : > { %p9810_p3 = pnand %p9808_p2, %p10575_p0 }
  0xd1   : > { %p9815_p11 = por %p9814_p8, %p9813_p7 }
  0xd2   : > { %p9811_p4 = pneg %p9810_p3 }
  0xd4   : > { %p9816_p13 = pnand %p9815_p11, %p9811_p4 }
  0xd6   : > { %9819 = shalt.err (!%p9816_p13)
}
  0xd7   : > { %9416 = dma.hbm_to_vmem [thread:$0]  (!%p10567_p12), %s10637_s18, 1024, %s1320_s15, [#allocation24], %s14741_s13, %s14741_s13, %s14743_s14  }
  0xd8   : > { %s10261_s11 = smov [#allocation2]   ;;  %s1133_s10 = sshll.u32 %s10296_s17, 4  ;;  %s10665_s10 = int_to_ptr.hbm [resolvable:$true] %s1133_s10 }
  0xd9   : > { %s1107_s16 = sshll.u32 %s10261_s11, 4  ;;  %s9835_s28 = sshra.s32 %s10651_s23, 4  ;;  %s1108_s16 = int_to_ptr.vmem [resolvable:$true] %s1107_s16  ;;  %s9836_s28 = int_to_ptr.hbm [resolvable:$true] %s9835_s28 }
  0xda   : > { %s9837_s26 = scalar_lea.hbm %s9836_s28, 64  ;;  %s9842_s1 = scalar_lea.hbm %s14810_s9, 64 }
  0xdb   : > { %p9838_p1 = scmp.ne.s32.totalorder %s9836_s28, %s9837_s26  ;;  %p9843_p4 = scmp.lt.s32.totalorder %s9836_s28, %s14810_s9 }
  0xdc   : > { %p9844_p7 = scmp.lt.s32.totalorder %s9842_s1, %s9837_s26 }
  0xdd   : > { %p9840_p2 = pnand %p9838_p1, %p10575_p0 }
  0xde   : > { %p9845_p8 = por %p9844_p7, %p9843_p4 }
  0xdf   : > { %p9841_p3 = pneg %p9840_p2 }
  0xe1   : > { %p9846_p11 = pnand %p9845_p8, %p9841_p3 }
  0xe3   : > { %9849 = shalt.err (!%p9846_p11)
}
  0xe4   : > { %s14828_s18 = smov 8   ;;  %s14829_s15 = smov 128  }
  0xe5   : > { %9377 = dma.hbm_to_vmem [thread:$0]  (!%p10567_p12), %s10651_s23, 1024, %s1108_s16, [#allocation3], %s14829_s15, %s14829_s15, %s14828_s18  }
  0xe6   : > { %s1164_s11 = sshll.u32 %s10311_s29, 4  ;;  %s10262_s13 = smov [#allocation7]   ;;  %s10679_s11 = int_to_ptr.hbm [resolvable:$true] %s1164_s11 }
  0xe7   : > { %s1135_s14 = sshll.u32 %s10262_s13, 4  ;;  %s9865_s28 = sshra.s32 %s10665_s10, 4  ;;  %s1136_s14 = int_to_ptr.vmem [resolvable:$true] %s1135_s14  ;;  %s9866_s28 = int_to_ptr.hbm [resolvable:$true] %s9865_s28 }
  0xe8   : > { %s9867_s26 = scalar_lea.hbm %s9866_s28, 64  ;;  %s9872_s1 = scalar_lea.hbm %s10296_s17, 64 }
  0xe9   : > { %p9868_p13 = scmp.ne.s32.totalorder %s9866_s28, %s9867_s26  ;;  %p9873_p3 = scmp.lt.s32.totalorder %s9866_s28, %s10296_s17 }
  0xea   : > { %p9874_p4 = scmp.lt.s32.totalorder %s9872_s1, %s9867_s26 }
  0xeb   : > { %p9870_p1 = pnand %p9868_p13, %p10575_p0 }
  0xec   : > { %p9875_p7 = por %p9874_p4, %p9873_p3 }
  0xed   : > { %p9871_p2 = pneg %p9870_p1 }
  0xef   : > { %p9876_p8 = pnand %p9875_p7, %p9871_p2 }
  0xf1   : > { %9879 = shalt.err (!%p9876_p8)
}
  0xf2   : > { %9383 = dma.hbm_to_vmem [thread:$0]  (!%p10567_p12), %s10665_s10, 1024, %s1136_s14, [#allocation6], %s14829_s15, %s14829_s15, %s14828_s18  }
  0xf3   : > { %s10263_s13 = smov [#allocation10]   ;;  %s1192_s16 = sshll.u32 %s14811_s8, 4  ;;  %s10693_s16 = int_to_ptr.hbm [resolvable:$true] %s1192_s16 }
  0xf4   : > { %s1166_s23 = sshll.u32 %s10263_s13, 4  ;;  %s9895_s28 = sshra.s32 %s10679_s11, 4  ;;  %s1167_s23 = int_to_ptr.vmem [resolvable:$true] %s1166_s23  ;;  %s9896_s28 = int_to_ptr.hbm [resolvable:$true] %s9895_s28 }
  0xf5   : > { %s9897_s26 = scalar_lea.hbm %s9896_s28, 64  ;;  %s9902_s1 = scalar_lea.hbm %s10311_s29, 64 }
  0xf6   : > { %p9898_p11 = scmp.ne.s32.totalorder %s9896_s28, %s9897_s26  ;;  %p9903_p2 = scmp.lt.s32.totalorder %s9896_s28, %s10311_s29 }
  0xf7   : > { %p9904_p3 = scmp.lt.s32.totalorder %s9902_s1, %s9897_s26 }
  0xf8   : > { %p9900_p13 = pnand %p9898_p11, %p10575_p0 }
  0xf9   : > { %p9905_p4 = por %p9904_p3, %p9903_p2 }
  0xfa   : > { %p9901_p1 = pneg %p9900_p13 }
  0xfc   : > { %p9906_p7 = pnand %p9905_p4, %p9901_p1 }
  0xfe   : > { %9909 = shalt.err (!%p9906_p7)
}
  0xff   : > { %s14830_s14 = smov 4   ;;  %s14831_s10 = smov 64  }
 0x100   : > { %9389 = dma.hbm_to_vmem [thread:$0]  (!%p10567_p12), %s10679_s11, 1024, %s1167_s23, [#allocation9], %s14831_s10, %s14831_s10, %s14830_s14  }
 0x101   : > { %s1232_s18 = sshll.u32 %s10351_s12, 4  ;;  %s10264_s15 = smov [#allocation13]   ;;  %s10707_s18 = int_to_ptr.hbm [resolvable:$true] %s1232_s18 }
 0x102   : > { %s1194_s13 = sshll.u32 %s10264_s15, 4  ;;  %s9925_s28 = sshra.s32 %s10693_s16, 4  ;;  %s1195_s13 = int_to_ptr.vmem [resolvable:$true] %s1194_s13  ;;  %s9926_s28 = int_to_ptr.hbm [resolvable:$true] %s9925_s28 }
 0x103   : > { %s9927_s26 = scalar_lea.hbm %s9926_s28, 64  ;;  %s9932_s1 = scalar_lea.hbm %s14811_s8, 64 }
 0x104   : > { %p9928_p8 = scmp.ne.s32.totalorder %s9926_s28, %s9927_s26  ;;  %p9933_p1 = scmp.lt.s32.totalorder %s9926_s28, %s14811_s8 }
 0x105   : > { %p9934_p2 = scmp.lt.s32.totalorder %s9932_s1, %s9927_s26 }
 0x106   : > { %p9930_p11 = pnand %p9928_p8, %p10575_p0 }
 0x107   : > { %p9935_p3 = por %p9934_p2, %p9933_p1 }
 0x108   : > { %p9931_p13 = pneg %p9930_p11 }
 0x10a   : > { %p9936_p4 = pnand %p9935_p3, %p9931_p13 }
 0x10c   : > { %9939 = shalt.err (!%p9936_p4)
}
 0x10d   : > { %9395 = dma.hbm_to_vmem [thread:$0]  (!%p10567_p12), %s10693_s16, 1024, %s1195_s13, [#allocation12], %s14831_s10, %s14831_s10, %s14830_s14  }
 0x10e   : > { %s10265_s11 = smov [#allocation16]   ;;  %s1263_s15 = sshll.u32 %s14812_s4, 4  ;;  %s10721_s15 = int_to_ptr.hbm [resolvable:$true] %s1263_s15 }
 0x10f   : > { %s1234_s23 = sshll.u32 %s10265_s11, 4  ;;  %s9955_s28 = sshra.s32 %s10707_s18, 4  ;;  %s1235_s23 = int_to_ptr.vmem [resolvable:$true] %s1234_s23  ;;  %s9956_s28 = int_to_ptr.hbm [resolvable:$true] %s9955_s28 }
 0x110   : > { %s9957_s26 = scalar_lea.hbm %s9956_s28, 64  ;;  %s9962_s1 = scalar_lea.hbm %s10351_s12, 64 }
 0x111   : > { %p9958_p7 = scmp.ne.s32.totalorder %s9956_s28, %s9957_s26  ;;  %p9963_p13 = scmp.lt.s32.totalorder %s9956_s28, %s10351_s12 }
 0x112   : > { %p9964_p1 = scmp.lt.s32.totalorder %s9962_s1, %s9957_s26 }
 0x113   : > { %p9960_p8 = pnand %p9958_p7, %p10575_p0 }
 0x114   : > { %p9965_p2 = por %p9964_p1, %p9963_p13 }
 0x115   : > { %p9961_p11 = pneg %p9960_p8 }
 0x117   : > { %p9966_p3 = pnand %p9965_p2, %p9961_p11 }
 0x119   : > { %9969 = shalt.err (!%p9966_p3)
}
 0x11a   : > { %9401 = dma.hbm_to_vmem [thread:$0]  (!%p10567_p12), %s10707_s18, 1024, %s1235_s23, [#allocation15], %s14831_s10, %s14831_s10, %s14830_s14  }
 0x11b   : > { %s1303_s16 = sshll.u32 %s10396_s20, 4  ;;  %s10266_s13 = smov [#allocation19]   ;;  %s10735_s16 = int_to_ptr.hbm [resolvable:$true] %s1303_s16 }
 0x11c   : > { %s1265_s11 = sshll.u32 %s10266_s13, 4  ;;  %s9985_s28 = sshra.s32 %s10721_s15, 4  ;;  %s1266_s11 = int_to_ptr.vmem [resolvable:$true] %s1265_s11  ;;  %s9986_s28 = int_to_ptr.hbm [resolvable:$true] %s9985_s28 }
 0x11d   : > { %s9987_s26 = scalar_lea.hbm %s9986_s28, 64  ;;  %s9992_s1 = scalar_lea.hbm %s14812_s4, 64 }
 0x11e   : > { %p9988_p4 = scmp.ne.s32.totalorder %s9986_s28, %s9987_s26  ;;  %p9993_p11 = scmp.lt.s32.totalorder %s9986_s28, %s14812_s4 }
 0x11f   : > { %p9994_p13 = scmp.lt.s32.totalorder %s9992_s1, %s9987_s26 }
 0x120   : > { %p9990_p7 = pnand %p9988_p4, %p10575_p0 }
 0x121   : > { %p9995_p1 = por %p9994_p13, %p9993_p11 }
 0x122   : > { %p9991_p8 = pneg %p9990_p7 }
 0x124   : > { %p9996_p2 = pnand %p9995_p1, %p9991_p8 }
 0x126   : > { %9999 = shalt.err (!%p9996_p2)
}
 0x127   : > { %s14832_s18 = sld [smem:[#allocation58_spill]]  ;;  %s10267_s23 = smov [#allocation22]  }
 0x128   : > { %9407 = dma.hbm_to_vmem [thread:$0]  (!%p10567_p12), %s10721_s15, 1024, %s1266_s11, [#allocation18], %s14831_s10, %s14831_s10, %s14830_s14  }
 0x129   : > { %s1305_s13 = sshll.u32 %s10267_s23, 4  ;;  %s10015_s28 = sshra.s32 %s10735_s16, 4  ;;  %s1306_s13 = int_to_ptr.vmem [resolvable:$true] %s1305_s13  ;;  %s10016_s28 = int_to_ptr.hbm [resolvable:$true] %s10015_s28 }
 0x12a   : > { %s10017_s26 = scalar_lea.hbm %s10016_s28, 64  ;;  %s10022_s1 = scalar_lea.hbm %s10396_s20, 64 }
 0x12b   : > { %p10018_p3 = scmp.ne.s32.totalorder %s10016_s28, %s10017_s26  ;;  %p10023_p8 = scmp.lt.s32.totalorder %s10016_s28, %s10396_s20 }
 0x12c   : > { %p10024_p11 = scmp.lt.s32.totalorder %s10022_s1, %s10017_s26 }
 0x12d   : > { %s1340_s3 = sshll.u32 %s14832_s18, 4  ;;  %p10020_p4 = pnand %p10018_p3, %p10575_p0  ;;  %s10749_s3 = int_to_ptr.hbm [resolvable:$true] %s1340_s3 }
 0x12e   : > { %p10025_p13 = por %p10024_p11, %p10023_p8 }
 0x12f   : > { %p10021_p7 = pneg %p10020_p4 }
 0x131   : > { %p10026_p1 = pnand %p10025_p13, %p10021_p7 }
 0x133   : > { %10029 = shalt.err (!%p10026_p1)
}
 0x134   : > { %s14833_s15 = sld [smem:[#allocation60_spill]]  ;;  %s10268_s4 = smov [#allocation25]  }
 0x135   : > { %9413 = dma.hbm_to_vmem [thread:$0]  (!%p10567_p12), %s10735_s16, 1024, %s1306_s13, [#allocation21], %s14831_s10, %s14831_s10, %s14830_s14  }
 0x136   : > { %s1342_s8 = sshll.u32 %s10268_s4, 4  ;;  %s10045_s28 = sshra.s32 %s10749_s3, 4  ;;  %s1343_s8 = int_to_ptr.vmem [resolvable:$true] %s1342_s8  ;;  %s10046_s28 = int_to_ptr.hbm [resolvable:$true] %s10045_s28 }
 0x137   : > { %s10047_s26 = scalar_lea.hbm %s10046_s28, 64  ;;  %s10052_s1 = scalar_lea.hbm %s14832_s18, 64 }
 0x138   : > { %p10048_p2 = scmp.ne.s32.totalorder %s10046_s28, %s10047_s26  ;;  %p10053_p7 = scmp.lt.s32.totalorder %s10046_s28, %s14832_s18 }
 0x139   : > { %p10054_p8 = scmp.lt.s32.totalorder %s10052_s1, %s10047_s26 }
 0x13a   : > { %s14834_s23 = smov %s14833_s15  ;;  %s1357_s11 = sshll.u32 %s14833_s15, 4  ;;  %s10763_s11 = int_to_ptr.hbm [resolvable:$true] %s1357_s11 }
 0x13b   : > { %p10050_p3 = pnand %p10048_p2, %p10575_p0  ;;  %p10055_p11 = por %p10054_p8, %p10053_p7 }
 0x13d   : > { %p10051_p4 = pneg %p10050_p3 }
 0x13f   : > { %p10056_p13 = pnand %p10055_p11, %p10051_p4 }
 0x141   : > { %10059 = shalt.err (!%p10056_p13)
}
 0x142   : > { %9419 = dma.hbm_to_vmem [thread:$0]  (!%p10567_p12), %s10749_s3, 1024, %s1343_s8, [#allocation24], %s14831_s10, %s14831_s10, %s14830_s14  }
 0x143   : > { %s10269_s4 = smov [#allocation26]   ;;  %s10075_s13 = sshra.s32 %s10763_s11, 4  ;;  %s10076_s13 = int_to_ptr.hbm [resolvable:$true] %s10075_s13 }
 0x144   : > { %s1359_s16 = sshll.u32 %s10269_s4, 4  ;;  %s10077_s15 = scalar_lea.hbm %s10076_s13, 64  ;;  %s1360_s16 = int_to_ptr.vmem [resolvable:$true] %s1359_s16 }
 0x145   : > { %p10078_p1 = scmp.ne.s32.totalorder %s10076_s13, %s10077_s15  ;;  %s10082_s28 = scalar_lea.hbm %s14834_s23, 64 }
 0x146   : > { %p10083_p4 = scmp.lt.s32.totalorder %s10076_s13, %s14834_s23  ;;  %p10084_p7 = scmp.lt.s32.totalorder %s10082_s28, %s10077_s15 }
 0x147   : > { %p10080_p2 = pnand %p10078_p1, %p10575_p0 }
 0x148   : > { %p10085_p8 = por %p10084_p7, %p10083_p4 }
 0x149   : > { %p10081_p3 = pneg %p10080_p2 }
 0x14b   : > { %p10086_p11 = pnand %p10085_p8, %p10081_p3 }
 0x14d   : > { %10089 = shalt.err (!%p10086_p11)
}
 0x14e   : > { %9422 = dma.hbm_to_vmem [thread:$0]  (!%p10567_p12), %s10763_s11, 1024, %s1360_s16, [#allocation27], %s14831_s10, %s14831_s10, %s14830_s14  }
 0x14f   : > { %1426 = sbr.rel (%p10557_p10) target bundleno = 3878 (0xf26), region = 200 }
 0x154   : > { %10150 = dma.done.wait (%p9427_p9), [#allocation3], 1024  }
 0x155   : > { %10152 = vsyncadd (%p9427_p9), [#allocation3], 4294966272 }
 0x156   : > { %10154 = dma.done.wait (%p9427_p9), [#allocation6], 2048  }
 0x157   : > { %10156 = vsyncadd (%p9427_p9), [#allocation6], 4294965248 }
 0x158   : > { %10158 = dma.done.wait (%p9427_p9), [#allocation9], 2048  }
 0x159   : > { %10160 = vsyncadd (%p9427_p9), [#allocation9], 4294965248 }
 0x15a   : > { %10162 = dma.done.wait (%p9427_p9), [#allocation12], 2048  }
 0x15b   : > { %10164 = vsyncadd (%p9427_p9), [#allocation12], 4294965248 }
 0x15c   : > { %10166 = dma.done.wait (%p9427_p9), [#allocation15], 2048  }
 0x15d   : > { %10168 = vsyncadd (%p9427_p9), [#allocation15], 4294965248 }
 0x15e   : > { %10170 = dma.done.wait (%p9427_p9), [#allocation18], 2048  }
 0x15f   : > { %10172 = vsyncadd (%p9427_p9), [#allocation18], 4294965248 }
 0x160   : > { %10174 = dma.done.wait (%p9427_p9), [#allocation21], 2048  }
 0x161   : > { %10176 = vsyncadd (%p9427_p9), [#allocation21], 4294965248 }
 0x162   : > { %10178 = dma.done.wait (%p9427_p9), [#allocation24], 2048  }
 0x163   : > { %10180 = vsyncadd (%p9427_p9), [#allocation24], 4294965248 }
 0x164   : > { %10182 = dma.done.wait (%p9427_p9), [#allocation27], 1024  }
 0x165   : > { %10184 = vsyncadd (%p9427_p9), [#allocation27], 4294966272  ;;  %v9162_v0 = vld [vmem:[#allocation13 + $0x38] sm:$0xff]  ;;  %v9161_v1 = vld [vmem:[#allocation13 + $0x30] sm:$0xff]  ;;  %s8476_s3 = sshll.u32 %s10529_s0, 2  ;;  %s14835_s8 = sld [smem:[#allocation39_spill]] }
 0x166   : > { %1692 = vmatpush.bf16.msra.mxu0 %v9162_v0  ;;  %v9160_v2 = vld [vmem:[#allocation13 + $0x28] sm:$0xff]  ;;  %v9159_v3 = vld [vmem:[#allocation13 + $0x20] sm:$0xff]  ;;  %p1611_p10 = scmp.lt.s32.totalorder %s8476_s3, 7  ;;  %v9158_v4 = vld [vmem:[#allocation13 + $0x18] sm:$0xff]  ;;  %v10270_v8 = vmov 0   ;;  %s14836_s22 = sld [smem:[#allocation42_spill]] }
 0x167   : > { %v1796_v5 = vld [vmem:[#allocation2] sm:$0xff]  ;;  %v1798_v6 = vld [vmem:[#allocation2 + $0x10] sm:$0xff]  ;;  %9560 = vset.pattern.permute.xlu0 %v10270_v8  ;;  %9561 = vset.pattern.permute.xlu1 %v10270_v8  ;;  %v9156_v10 = vld [vmem:[#allocation13 + $0x8] sm:$0xff]  ;;  %s14837_s14 = sld [smem:[#allocation45_spill]]  ;;  %vm2649_vm12 = vcmask 523264  }
 0x168   : > { %s14909_s3 = smov (!%p1611_p10, %s8476_s3), 7  ;;  %v9157_v7 = vld [vmem:[#allocation13 + $0x10] sm:$0xff]  ;;  %1806 = vperm.xlu0 %9560, %v1796_v5   ;;  %1816 = vperm.xlu1 %9561, %v1798_v6   ;;  %v1800_v9 = vld [vmem:[#allocation2 + $0x20] sm:$0xff]  ;;  %v1797_v11 = vld [vmem:[#allocation2 + $0x8] sm:$0xff]  ;;  %s14838_s10 = sld [smem:[#allocation46_spill]] }
 0x169   : > { %s8477_s7 = sshll.u32 %s14909_s3, 3  ;;  %9562 = vset.pattern.permute.xlu2 %v10270_v8  ;;  %v1799_v12 = vld [vmem:[#allocation2 + $0x18] sm:$0xff]  ;;  %v9155_v13 = vld [vmem:[#allocation13] sm:$0xff]  ;;  %v1801_v17 = vld [vmem:[#allocation2 + $0x28] sm:$0xff]  ;;  %s14863_s11 = sld [smem:[#allocation47_spill]] }
 0x16a   : > { %1693 = vmatpush.bf16.msra.mxu0 %v9161_v1  ;;  %1826 = vperm.xlu2 %9562, %v1800_v9   ;;  %v9170_v16 = vld [vmem:[#allocation14 + $0x38] sm:$0xff]  ;;  %v1802_v19 = vld [vmem:[#allocation2 + $0x30] sm:$0xff]  ;;  %v3348_v22 = vld [vmem:[#allocation5] sm:$0xff]  ;;  %s14866_s26 = sld [smem:[#allocation48_spill]] }
 0x16b   : > { %s1614_s2 = scalar_lea.vmem %s14835_s8, %s8477_s7  ;;  %1777 = vmatpush.bf16.msra.mxu1 %v9170_v16  ;;  %v1803_v20 = vld [vmem:[#allocation2 + $0x38] sm:$0xff]  ;;  %v9169_v21 = vld [vmem:[#allocation14 + $0x30] sm:$0xff]  ;;  %v9168_v23 = vld [vmem:[#allocation14 + $0x28] sm:$0xff]  ;;  %s14874_s1 = sld [smem:[#allocation49_spill]] }
 0x16c   : > { %v1618_v14 = vld [vmem:[%s1614_s2] sm:$0xff]  ;;  %v1619_v15 = vld [vmem:[%s1614_s2 + $0x8] sm:$0xff]  ;;  %v3350_v25 = vld [vmem:[#allocation5 + $0x10] sm:$0xff]  ;;  %s14875_s4 = sld [smem:[#allocation51_spill]] }
 0x16d   : > { %v1622_v18 = vpack.c.bf16 %v1619_v15, %v1618_v14  ;;  %v3349_v24 = vld [vmem:[#allocation5 + $0x8] sm:$0xff]  ;;  %v1620_v26 = vld [vmem:[%s1614_s2 + $0x10] sm:$0xff]  ;;  %v1621_v27 = vld [vmem:[%s1614_s2 + $0x18] sm:$0xff]  ;;  %s14876_s16 = sld [smem:[#allocation52_spill]] }
 0x16e   : > { %1694 = vmatpush.bf16.msra.mxu0 %v9160_v2  ;;  %v9167_v28 = vld [vmem:[#allocation14 + $0x20] sm:$0xff]  ;;  %v3351_v29 = vld [vmem:[#allocation5 + $0x18] sm:$0xff]  ;;  %v1623_v30 = vpack.c.bf16 %v1621_v27, %v1620_v26  ;;  %v3353_v33 = vld [vmem:[#allocation5 + $0x28] sm:$0xff]  ;;  %s14877_s13 = sld [smem:[#allocation53_spill]] }
 0x16f   : > { %1778 = vmatpush.bf16.msra.mxu1 %v9169_v21  ;;  %v9166_v31 = vld [vmem:[#allocation14 + $0x18] sm:$0xff]  ;;  %v3352_v32 = vld [vmem:[#allocation5 + $0x20] sm:$0xff]  ;;  %v4801_v36 = vld [vmem:[#allocation7 + $0x10] sm:$0xff]  ;;  %s14878_s15 = sld [smem:[#allocation54_spill]] }
 0x170   : > { %1811 = vperm.xlu0 %9560, %v1797_v11   ;;  %1821 = vperm.xlu1 %9561, %v1799_v12   ;;  %v3355_v34 = vld [vmem:[#allocation5 + $0x38] sm:$0xff]  ;;  %v4799_v35 = vld [vmem:[#allocation7] sm:$0xff]  ;;  %v4804_v38 = vld [vmem:[#allocation7 + $0x28] sm:$0xff]  ;;  %s14879_s28 = sld [smem:[#allocation55_spill]] }
 0x171   : > { %v4802_v37 = vld [vmem:[#allocation7 + $0x18] sm:$0xff]  ;;  %v4805_v39 = vld [vmem:[#allocation7 + $0x30] sm:$0xff]  ;;  %v6250_v40 = vld [vmem:[%s14836_s22] sm:$0xff]  ;;  %s14880_s3 = sld [smem:[#allocation56_spill]] }
 0x172   : > { %1695 = vmatpush.bf16.msra.mxu0 %v9159_v3  ;;  %1831 = vperm.xlu2 %9562, %v1801_v17   ;;  %v9165_v41 = vld [vmem:[#allocation14 + $0x10] sm:$0xff]  ;;  %v6251_v42 = vld [vmem:[%s14836_s22 + $0x8] sm:$0xff]  ;;  %v6253_v45 = vld [vmem:[%s14836_s22 + $0x18] sm:$0xff]  ;;  %s14881_s8 = sld [smem:[#allocation57_spill]] }
 0x173   : > { %1779 = vmatpush.bf16.msra.mxu1 %v9168_v23  ;;  %v3354_v43 = vld [vmem:[#allocation5 + $0x30] sm:$0xff]  ;;  %v9164_v44 = vld [vmem:[#allocation14 + $0x8] sm:$0xff]  ;;  %v9163_v46 = vld [vmem:[#allocation14] sm:$0xff]  ;;  %s14882_s7 = sld [smem:[#allocation59_spill]] }
 0x174   : > { %v6254_v47 = vld [vmem:[%s14836_s22 + $0x20] sm:$0xff]  ;;  %v4800_v48 = vld [vmem:[#allocation7 + $0x8] sm:$0xff]  ;;  %v6256_v49 = vld [vmem:[%s14836_s22 + $0x30] sm:$0xff]  ;;  %s14883_s2 = sld [smem:[#allocation61_spill]] }
 0x175   : > { %v6257_v50 = vld [vmem:[%s14836_s22 + $0x38] sm:$0xff]  ;;  %v4803_v51 = vld [vmem:[#allocation7 + $0x20] sm:$0xff]  ;;  %v6252_v54 = vld [vmem:[%s14836_s22 + $0x10] sm:$0xff]  ;;  %s14895_s6 = sld [smem:[#allocation72_spill]] }
 0x176   : > { %1696 = vmatpush.bf16.msra.mxu0 %v9158_v4  ;;  %v4806_v52 = vld [vmem:[#allocation7 + $0x38] sm:$0xff]  ;;  %v9563_v55 = vld [vmem:[%s14837_s14] ss:$0 sm:$0xff]  ;;  %v6255_v60 = vld [vmem:[%s14836_s22 + $0x28] sm:$0xff]  ;;  %s14884_s14 = sld [smem:[#allocation62_spill]] }
 0x177   : > { %1780 = vmatpush.bf16.msra.mxu1 %v9167_v28  ;;  %v9178_v9 = vld [vmem:[#allocation16 + $0x38] sm:$0xff]  ;;  %v9177_v14 = vld [vmem:[#allocation16 + $0x30] sm:$0xff]  ;;  %v9176_v26 = vld [vmem:[#allocation16 + $0x28] sm:$0xff]  ;;  %s14896_s5 = sld [smem:[#allocation73_spill]] }
 0x178   : > { %1836 = vperm.xlu0 %9560, %v1802_v19   ;;  %1841 = vperm.xlu1 %9561, %v1803_v20  }
 0x179   : > { %2416 = vmatpush.bf16.msra.mxu2 %v9178_v9 }
 0x17a   : > { %1697 = vmatpush.bf16.msra.mxu0 %v9157_v7  ;;  %3358 = vperm.xlu2 %9562, %v3348_v22   ;;  %v10847_v7 = vld [vmem:[%s14838_s10] ss:$0 sm:$0xff]  ;;  %s14885_s10 = sld [smem:[#allocation65_spill]] }
 0x17b   : > { %1781 = vmatpush.bf16.msra.mxu1 %v9166_v31 }
 0x17d   : > { %2417 = vmatpush.bf16.msra.mxu2 %v9177_v14 }
 0x17e   : > { %1698 = vmatpush.bf16.msra.mxu0 %v9156_v10 }
 0x17f   : > { %1782 = vmatpush.bf16.msra.mxu1 %v9165_v41 }
 0x180   : > { %3363 = vperm.xlu0 %9560, %v3349_v24   ;;  %3368 = vperm.xlu1 %9561, %v3350_v25  }
 0x181   : > { %2418 = vmatpush.bf16.msra.mxu2 %v9176_v26 }
 0x182   : > { %1699 = vmatpush.bf16.msra.mxu0 %v9155_v13  ;;  %3373 = vperm.xlu2 %9562, %v3351_v29  }
 0x183   : > { %1783 = vmatpush.bf16.msra.mxu1 %v9164_v44 }
 0x185   : > { %1700 = vmatmul.bf16.vlgmr.msra.gmra.mxu0 %v1622_v18 }
 0x187   : > { %1784 = vmatpush.bf16.msra.mxu1 %v9163_v46 }
 0x188   : > { %3378 = vperm.xlu0 %9560, %v3352_v32   ;;  %3383 = vperm.xlu1 %9561, %v3353_v33  }
 0x18a   : > { %3388 = vperm.xlu2 %9562, %v3354_v43  }
 0x190   : > { %3393 = vperm.xlu0 %9560, %v3355_v34   ;;  %4809 = vperm.xlu1 %9561, %v4799_v35  }
 0x192   : > { %4814 = vperm.xlu2 %9562, %v4800_v48  }
 0x195   : > { %1705 = vmatmul.bf16.gmra.mxu0 %v1623_v30 }
 0x198   : > { %4819 = vperm.xlu0 %9560, %v4801_v36   ;;  %4824 = vperm.xlu1 %9561, %v4802_v37  }
 0x19a   : > { %4829 = vperm.xlu2 %9562, %v4803_v51  }
 0x1a0   : > { %4834 = vperm.xlu0 %9560, %v4804_v38   ;;  %4839 = vperm.xlu1 %9561, %v4805_v39   ;;  %v9175_v38 = vld [vmem:[#allocation16 + $0x20] sm:$0xff] }
 0x1a1   : > { %2419 = vmatpush.bf16.msra.mxu2 %v9175_v38 }
 0x1a2   : > { %4844 = vperm.xlu2 %9562, %v4806_v52  }
 0x1a8   : > { %6260 = vperm.xlu0 %9560, %v6250_v40   ;;  %6265 = vperm.xlu1 %9561, %v6251_v42  }
 0x1aa   : > { %6270 = vperm.xlu2 %9562, %v6252_v54   ;;  %v9174_v54 = vld [vmem:[#allocation16 + $0x18] sm:$0xff] }
 0x1ab   : > { %2420 = vmatpush.bf16.msra.mxu2 %v9174_v54 }
 0x1b0   : > { %6275 = vperm.xlu0 %9560, %v6253_v45   ;;  %6280 = vperm.xlu1 %9561, %v6254_v47  }
 0x1b2   : > { %6285 = vperm.xlu2 %9562, %v6255_v60  }
 0x1b8   : > { %6290 = vperm.xlu0 %9560, %v6256_v49   ;;  %6295 = vperm.xlu1 %9561, %v6257_v50  }
 0x1c4   : > { %v10840_v4 = vpop.permute.xlu2 %1826 }
 0x1cc   : > { %v10852_v13 = vpop.permute.xlu2 %1831 }
 0x1da   : > { %v10836_v2 = vpop.permute.xlu0 %1806  ;;  %v10838_v3 = vpop.permute.xlu1 %1816 }
 0x1e2   : > { %v10842_v5 = vpop.permute.xlu0 %1811  ;;  %v10844_v6 = vpop.permute.xlu1 %1821 }
 0x1ea   : > { %v10863_v20 = vpop.permute.xlu0 %1836  ;;  %v10875_v25 = vpop.permute.xlu1 %1841 }
 0x202   : > { %v1701_v53 = vpop.f32.mrf.mxu0 }
 0x203   : > { %v1702_v57 = vadd.f32 %v9563_v55, %v1701_v53 }
 0x20a   : > { %v1703_v56 = vpop.f32.mrf.mxu0 }
 0x20b   : > { %v1704_v58 = vadd.f32 %v9563_v55, %v1703_v56 }
 0x20d   : > { %v1711_v59 = vpack.c.bf16 %v1704_v58, %v1702_v57 }
 0x20f   : > { %1785 = vmatmul.bf16.vlgmr.msra.gmra.mxu1 %v1711_v59 }
 0x212   : > { %v1706_v61 = vpop.f32.mrf.mxu0 }
 0x213   : > { %v1707_v62 = vadd.f32 %v9563_v55, %v1706_v61 }
 0x21a   : > { %v1708_v63 = vpop.f32.mrf.mxu0 }
 0x21b   : > { %v1709_v0 = vadd.f32 %v9563_v55, %v1708_v63 }
 0x21d   : > { %v1712_v1 = vpack.c.bf16 %v1709_v0, %v1707_v62 }
 0x21f   : > { %1790 = vmatmul.bf16.gmra.mxu1 %v1712_v1 }
 0x28c   : > { %v1786_v8 = vpop.f32.mrf.mxu1 }
 0x28d   : > { %v1846_v10 = vmul.f32 %v10838_v3, %v1786_v8  ;;  %v1847_v11 = vmul.f32 %v10844_v6, %v1786_v8  ;;  %v1848_v12 = vmul.f32 %v10840_v4, %v1786_v8  ;;  %v1844_v15 = vmul.f32 %v10836_v2, %v1786_v8 }
 0x28e   : > { %v1845_v16 = vmul.f32 %v10842_v5, %v1786_v8  ;;  %v1849_v17 = vmul.f32 %v10852_v13, %v1786_v8  ;;  %v1850_v23 = vmul.f32 %v10863_v20, %v1786_v8  ;;  %v1851_v30 = vmul.f32 %v10875_v25, %v1786_v8 }
 0x28f   : > { %v10858_v18 = vadd.f32 %v10847_v7, %v1846_v10  ;;  %v10861_v19 = vadd.f32 %v10847_v7, %v1847_v11  ;;  %v10866_v21 = vadd.f32 %v10847_v7, %v1844_v15  ;;  %v10873_v24 = vadd.f32 %v10847_v7, %v1848_v12  ;;  %v9173_v11 = vld [vmem:[#allocation16 + $0x10] sm:$0xff] }
 0x290   : > { %v10869_v22 = vadd.f32 %v10847_v7, %v1845_v16  ;;  %v10882_v31 = vadd.f32 %v10847_v7, %v1849_v17  ;;  %v10892_v36 = vadd.f32 %v10847_v7, %v1850_v23  ;;  %v10901_v43 = vadd.f32 %v10847_v7, %v1851_v30  ;;  %2421 = vmatpush.bf16.msra.mxu2 %v9173_v11 }
 0x291   : > { %v1912_v27 = vmax.f32 %v10866_v21, 0.0  ;;  %v1914_v29 = vmax.f32 %v10858_v18, 0.0  ;;  %v1915_v32 = vmax.f32 %v10861_v19, 0.0  ;;  %v1916_v37 = vmax.f32 %v10873_v24, 0.0 }
 0x292   : > { %v1913_v28 = vmax.f32 %v10869_v22, 0.0  ;;  %v1917_v44 = vmax.f32 %v10882_v31, 0.0  ;;  %v14761_v52 = vmax.f32 %v10892_v36, 0.0  ;;  %v14759_v57 = vmax.f32 %v10901_v43, 0.0 }
 0x293   : > { %v1944_v34 = vmul.f32 %v1912_v27, %v10836_v2  ;;  %v1946_v39 = vmul.f32 %v1914_v29, %v10838_v3  ;;  %v1947_v45 = vmul.f32 %v1915_v32, %v10844_v6  ;;  %v1948_v55 = vmul.f32 %v1916_v37, %v10840_v4 }
 0x294   : > { %v1788_v33 = vpop.f32.mrf.mxu1  ;;  %v1945_v35 = vmul.f32 %v1913_v28, %v10842_v5  ;;  %v1949_v58 = vmul.f32 %v1917_v44, %v10852_v13  ;;  %v1950_v9 = vmul.f32 %v14761_v52, %v10863_v20  ;;  %v1951_v15 = vmul.f32 %v14759_v57, %v10875_v25 }
 0x295   : > { %v1852_v41 = vmul.f32 %v10836_v2, %v1788_v33  ;;  %v1853_v42 = vmul.f32 %v10842_v5, %v1788_v33  ;;  %v1854_v47 = vmul.f32 %v10838_v3, %v1788_v33  ;;  %v1857_v50 = vmul.f32 %v10852_v13, %v1788_v33 }
 0x296   : > { %v1976_v40 = vadd.f32 %v1945_v35, %v1944_v34  ;;  %v1858_v51 = vmul.f32 %v10863_v20, %v1788_v33  ;;  %v1855_v53 = vmul.f32 %v10844_v6, %v1788_v33  ;;  %v1856_v61 = vmul.f32 %v10840_v4, %v1788_v33 }
 0x297   : > { %v10909_v48 = vadd.f32 %v10847_v7, %v1852_v41  ;;  %v10912_v49 = vadd.f32 %v10847_v7, %v1853_v42  ;;  %v1859_v62 = vmul.f32 %v10875_v25, %v1788_v33  ;;  %v10930_v0 = vadd.f32 %v10847_v7, %v1854_v47  ;;  %v9172_v42 = vld [vmem:[#allocation16 + $0x8] sm:$0xff] }
 0x298   : > { %v1977_v46 = vadd.f32 %v1976_v40, %v1946_v39  ;;  %v10933_v1 = vadd.f32 %v10847_v7, %v1857_v50  ;;  %v10936_v8 = vadd.f32 %v10847_v7, %v1858_v51  ;;  %v10942_v14 = vadd.f32 %v10847_v7, %v1855_v53  ;;  %2422 = vmatpush.bf16.msra.mxu2 %v9172_v42 }
 0x299   : > { %v14756_v59 = vmax.f32 %v10909_v48, 0.0  ;;  %v14753_v60 = vmax.f32 %v10912_v49, 0.0  ;;  %v10954_v23 = vadd.f32 %v10847_v7, %v1859_v62  ;;  %v10957_v30 = vadd.f32 %v10847_v7, %v1856_v61 }
 0x29a   : > { %v1978_v56 = vadd.f32 %v1977_v46, %v1947_v45  ;;  %v14752_v33 = vmax.f32 %v10930_v0, 0.0  ;;  %v14749_v34 = vmax.f32 %v10933_v1, 0.0  ;;  %v14758_v35 = vmax.f32 %v10936_v8, 0.0 }
 0x29b   : > { %v1952_v16 = vmul.f32 %v14756_v59, %v10836_v2  ;;  %v1953_v17 = vmul.f32 %v14753_v60, %v10842_v5  ;;  %v14750_v46 = vmax.f32 %v10942_v14, 0.0  ;;  %v14748_v54 = vmax.f32 %v10954_v23, 0.0 }
 0x29c   : > { %v1979_v63 = vadd.f32 %v1978_v56, %v1948_v55  ;;  %v1791_v10 = vpop.f32.mrf.mxu1  ;;  %v14751_v56 = vmax.f32 %v10957_v30, 0.0  ;;  %v14842_v31 = vmax.f32 %v10892_v36, 0.0 }
 0x29d   : > { %v1862_v38 = vmul.f32 %v10838_v3, %v1791_v10  ;;  %v1865_v39 = vmul.f32 %v10852_v13, %v1791_v10  ;;  %v1863_v40 = vmul.f32 %v10844_v6, %v1791_v10  ;;  %v1866_v41 = vmul.f32 %v10863_v20, %v1791_v10 }
 0x29e   : > { %v1980_v12 = vadd.f32 %v1979_v63, %v1949_v58  ;;  %v1867_v47 = vmul.f32 %v10875_v25, %v1791_v10  ;;  %v1989_v50 = vadd.f32 %v1953_v17, %v1952_v16  ;;  %v1860_v51 = vmul.f32 %v10836_v2, %v1791_v10 }
 0x29f   : > { %v1861_v53 = vmul.f32 %v10842_v5, %v1791_v10  ;;  %v1954_v58 = vmul.f32 %v14752_v33, %v10838_v3  ;;  %v1864_v61 = vmul.f32 %v10840_v4, %v1791_v10  ;;  %v10977_v62 = vadd.f32 %v10847_v7, %v1862_v38 }
 0x2a0   : > { %v1981_v26 = vadd.f32 %v1980_v12, %v1950_v9  ;;  %v10980_v63 = vadd.f32 %v10847_v7, %v1865_v39  ;;  %v1957_v9 = vmul.f32 %v14749_v34, %v10852_v13  ;;  %v10986_v11 = vadd.f32 %v10847_v7, %v1866_v41  ;;  %v9171_v12 = vld [vmem:[#allocation16] sm:$0xff] }
 0x2a1   : > { %v1955_v10 = vmul.f32 %v14750_v46, %v10844_v6  ;;  %v1990_v16 = vadd.f32 %v1989_v50, %v1954_v58  ;;  %v10992_v17 = vadd.f32 %v10847_v7, %v1863_v40  ;;  %v10998_v38 = vadd.f32 %v10847_v7, %v1860_v51  ;;  %2423 = vmatpush.bf16.msra.mxu2 %v9171_v12 }
 0x2a2   : > { %v1982_v45 = vadd.f32 %v1981_v26, %v1951_v15  ;;  %v10995_v26 = vadd.f32 %v10847_v7, %v1867_v47  ;;  %v11001_v39 = vadd.f32 %v10847_v7, %v1861_v53  ;;  %v1959_v41 = vmul.f32 %v14748_v54, %v10875_v25 }
 0x2a3   : > { %v1991_v40 = vadd.f32 %v1990_v16, %v1955_v10  ;;  %v11010_v50 = vadd.f32 %v10847_v7, %v1864_v61  ;;  %v14755_v51 = vmax.f32 %v10998_v38, 0.0  ;;  %v14760_v58 = vmax.f32 %v10980_v63, 0.0 }
 0x2a4   : > { %v1983_v55 = vrot.slane %v1982_v45, 4  ;;  %v11012_v47 = vpop.f32.mrf.mxu1  ;;  %v14754_v53 = vmax.f32 %v11001_v39, 0.0  ;;  %v14762_v54 = vmax.f32 %v10986_v11, 0.0  ;;  %v14764_v10 = vmax.f32 %v10992_v17, 0.0 }
 0x2a5   : > { %v14763_v61 = vmax.f32 %v10995_v26, 0.0  ;;  %v1960_v16 = vmul.f32 %v14755_v51, %v10836_v2  ;;  %v1872_v33 = vmul.f32 %v10840_v4, %v11012_v47  ;;  %v1958_v12 = vmul.f32 %v14758_v35, %v10863_v20 }
 0x2a6   : > { %v1984_v15 = vadd.f32 %v1983_v55, %v1982_v45  ;;  %v1956_v45 = vmul.f32 %v14751_v56, %v10840_v4  ;;  %v14757_v55 = vmax.f32 %v10977_v62, 0.0  ;;  %v1961_v56 = vmul.f32 %v14754_v53, %v10842_v5 }
 0x2a7   : > { %v1869_v53 = vmul.f32 %v10842_v5, %v11012_v47  ;;  %v14765_v51 = vmax.f32 %v11010_v50, 0.0  ;;  %v1965_v59 = vmul.f32 %v14760_v58, %v10852_v13  ;;  %v1871_v57 = vmul.f32 %v10844_v6, %v11012_v47 }
 0x2a8   : > { %v1985_v42 = vrot.slane %v1984_v15, 2  ;;  %v1992_v46 = vadd.f32 %v1991_v40, %v1956_v45  ;;  %v2002_v45 = vadd.f32 %v1961_v56, %v1960_v16  ;;  %v1868_v40 = vmul.f32 %v10836_v2, %v11012_v47 }
 0x2a9   : > { %v11049_v56 = vmul.f32 %v14763_v61, %v10875_v25  ;;  %v1870_v16 = vmul.f32 %v10838_v3, %v11012_v47  ;;  %v1873_v58 = vmul.f32 %v10852_v13, %v11012_v47 }
 0x2aa   : > { %v1986_v34 = vadd.f32 %v1985_v42, %v1984_v15  ;;  %v1993_v15 = vadd.f32 %v1992_v46, %v1957_v9  ;;  %v1962_v42 = vmul.f32 %v14757_v55, %v10838_v3  ;;  %v1966_v46 = vmul.f32 %v14762_v54, %v10863_v20 }
 0x2ab   : > { %v11058_v54 = vadd.f32 %v10847_v7, %v1868_v40  ;;  %v11102_v24 = vadd.f32 %v10847_v7, %v1873_v58  ;;  %v1964_v58 = vmul.f32 %v14765_v51, %v10840_v4  ;;  %v14843_v51 = vmax.f32 %v10901_v43, 0.0 }
 0x2ac   : > { %v1987_v60 = vrot.slane %v1986_v34, 1  ;;  %v1994_v55 = vadd.f32 %v1993_v15, %v1958_v12  ;;  %v2003_v35 = vadd.f32 %v2002_v45, %v1962_v42  ;;  %v1963_v12 = vmul.f32 %v14764_v10, %v10844_v6 }
 0x2ad   : > { %v11069_v15 = vadd.f32 %v10847_v7, %v1869_v53 }
 0x2ae   : > { %v1988_v9 = vadd.f32 %v1987_v60, %v1986_v34  ;;  %v1874_v60 = vmul.f32 %v10863_v20, %v11012_v47  ;;  %v11063_v34 = vadd.f32 %v10847_v7, %v1872_v33  ;;  %v2004_v21 = vadd.f32 %v2003_v35, %v1963_v12 }
 0x2b0   : > { %v2028_v52 = vmul.f32 0.041666668, %v1988_v9  ;;  %v1995_v9 = vadd.f32 %v1994_v55, %v1959_v41 }
 0x2b2   : > { %v11073_v42 = vsub.f32 %v1912_v27, %v2028_v52  ;;  %v11077_v45 = vsub.f32 %v1913_v28, %v2028_v52  ;;  %v11081_v40 = vsub.f32 %v1914_v29, %v2028_v52  ;;  %v11085_v33 = vsub.f32 %v1915_v32, %v2028_v52 }
 0x2b3   : > { %v11089_v53 = vsub.f32 %v1916_v37, %v2028_v52  ;;  %v11092_v27 = vadd.f32 %v10847_v7, %v1870_v16  ;;  %v14766_v28 = vmax.f32 %v11058_v54, 0.0  ;;  %v11106_v29 = vsub.f32 %v1917_v44, %v2028_v52 }
 0x2b4   : > { %14839 = vst [vmem:[#allocation83_spill] sm:$0xff] %v11085_v33  ;;  %v2064_v22 = vmul.f32 %v11073_v42, %v11073_v42  ;;  %v2065_v18 = vmul.f32 %v11077_v45, %v11077_v45  ;;  %v2066_v19 = vmul.f32 %v11081_v40, %v11081_v40  ;;  %v11109_v32 = vadd.f32 %v10847_v7, %v1871_v57 }
 0x2b5   : > { %14840 = vst [vmem:[#allocation84_spill] sm:$0xff] %v11089_v53  ;;  %v2067_v35 = vmul.f32 %v11085_v33, %v11085_v33  ;;  %v11121_v44 = vsub.f32 %v14842_v31, %v2028_v52  ;;  %v2068_v57 = vmul.f32 %v11089_v53, %v11089_v53  ;;  %v1996_v10 = vrot.slane %v1995_v9, 4 }
 0x2b6   : > { %14841 = vst [vmem:[#allocation85_spill] sm:$0xff] %v11106_v29  ;;  %v2096_v41 = vmul.f32 %v2064_v22, %v10836_v2  ;;  %v2097_v55 = vmul.f32 %v2065_v18, %v10842_v5  ;;  %v2098_v16 = vmul.f32 %v2066_v19, %v10838_v3  ;;  %v2005_v22 = vadd.f32 %v2004_v21, %v1964_v58 }
 0x2b7   : > { %v1968_v18 = vmul.f32 %v14766_v28, %v10836_v2  ;;  %v11132_v37 = vsub.f32 %v14843_v51, %v2028_v52  ;;  %v2069_v36 = vmul.f32 %v11106_v29, %v11106_v29  ;;  %v14844_v19 = vmax.f32 %v11069_v15, 0.0 }
 0x2b8   : > { %v2128_v61 = vadd.f32 %v2097_v55, %v2096_v41  ;;  %v2099_v41 = vmul.f32 %v2067_v35, %v10844_v6  ;;  %v1997_v55 = vadd.f32 %v1996_v10, %v1995_v9  ;;  %v2006_v58 = vadd.f32 %v2005_v22, %v1965_v59 }
 0x2b9   : > { %v1969_v12 = vmul.f32 %v14844_v19, %v10842_v5  ;;  %v1940_v28 = vmax.f32 %v11063_v34, 0.0  ;;  %v2070_v43 = vmul.f32 %v11121_v44, %v11121_v44  ;;  %v14845_v52 = vmax.f32 %v11092_v27, 0.0 }
 0x2ba   : > { %v2129_v21 = vadd.f32 %v2128_v61, %v2098_v16  ;;  %v2100_v31 = vmul.f32 %v2068_v57, %v10840_v4  ;;  %v1998_v33 = vrot.slane %v1997_v55, 2  ;;  %v2007_v19 = vadd.f32 %v2006_v58, %v1966_v46 }
 0x2bb   : > { %v1970_v51 = vmul.f32 %v14845_v52, %v10838_v3  ;;  %v2015_v29 = vadd.f32 %v1969_v12, %v1968_v18  ;;  %v1875_v61 = vmul.f32 %v10875_v25, %v11012_v47  ;;  %v2071_v59 = vmul.f32 %v11132_v37, %v11132_v37 }
 0x2bc   : > { %v2130_v53 = vadd.f32 %v2129_v21, %v2099_v41  ;;  %v14846_v10 = vmax.f32 %v11109_v32, 0.0  ;;  %v2101_v16 = vmul.f32 %v2069_v36, %v10852_v13  ;;  %v1999_v12 = vadd.f32 %v1998_v33, %v1997_v55 }
 0x2bd   : > { %v2016_v35 = vadd.f32 %v2015_v29, %v1970_v51  ;;  %v2008_v57 = vadd.f32 %v2007_v19, %v11049_v56  ;;  %v11158_v18 = vadd.f32 %v10847_v7, %v1874_v60  ;;  %v1941_v46 = vmax.f32 %v11102_v24, 0.0 }
 0x2be   : > { %v1971_v9 = vmul.f32 %v14846_v10, %v10844_v6  ;;  %v2131_v22 = vadd.f32 %v2130_v53, %v2100_v31  ;;  %v1972_v47 = vmul.f32 %v1940_v28, %v10840_v4  ;;  %v2102_v21 = vmul.f32 %v2070_v43, %v10863_v20 }
 0x2bf   : > { %v2000_v29 = vrot.slane %v1999_v12, 1  ;;  %v2009_v52 = vrot.slane %v2008_v57, 4  ;;  %v2103_v33 = vmul.f32 %v2071_v59, %v10875_v25  ;;  %v11167_v60 = vadd.f32 %v10847_v7, %v1875_v61 }
 0x2c0   : > { %v2017_v41 = vadd.f32 %v2016_v35, %v1971_v9  ;;  %v2132_v58 = vadd.f32 %v2131_v22, %v2101_v16  ;;  %v14771_v31 = vmax.f32 %v11158_v18, 0.0  ;;  %v1973_v55 = vmul.f32 %v1941_v46, %v10852_v13 }
 0x2c1   : > { %v2001_v56 = vadd.f32 %v2000_v29, %v1999_v12  ;;  %v2010_v43 = vadd.f32 %v2009_v52, %v2008_v57  ;;  %v14847_v35 = vmax.f32 %v10909_v48, 0.0  ;;  %v14848_v59 = vmax.f32 %v10912_v49, 0.0 }
 0x2c2   : > { %v2018_v36 = vadd.f32 %v2017_v41, %v1972_v47  ;;  %v2133_v53 = vadd.f32 %v2132_v58, %v2102_v21  ;;  %v14849_v7 = vmax.f32 %v10930_v0, 0.0  ;;  %v14770_v12 = vmax.f32 %v11167_v60, 0.0 }
 0x2c3   : > { %v2029_v19 = vmul.f32 0.041666668, %v2001_v56  ;;  %v1974_v57 = vmul.f32 %v14771_v31, %v10863_v20  ;;  %v14850_v47 = vmax.f32 %v10942_v14, 0.0  ;;  %v14851_v21 = vmax.f32 %v10957_v30, 0.0 }
 0x2c4   : > { %v2134_v51 = vadd.f32 %v2133_v53, %v2103_v33  ;;  %v2019_v10 = vadd.f32 %v2018_v36, %v1973_v55  ;;  %v2011_v52 = vrot.slane %v2010_v43, 2  ;;  %v14852_v14 = vmax.f32 %v10933_v1, 0.0 }
 0x2c5   : > { %v11175_v16 = vsub.f32 %v14847_v35, %v2029_v19  ;;  %v11179_v22 = vsub.f32 %v14848_v59, %v2029_v19  ;;  %v11183_v61 = vsub.f32 %v14849_v7, %v2029_v19  ;;  %v11191_v41 = vsub.f32 %v14850_v47, %v2029_v19 }
 0x2c6   : > { %v2135_v9 = vrot.slane %v2134_v51, 4  ;;  %v11195_v49 = vsub.f32 %v14851_v21, %v2029_v19  ;;  %v2020_v36 = vadd.f32 %v2019_v10, %v1974_v57  ;;  %v11205_v53 = vsub.f32 %v14852_v14, %v2029_v19 }
 0x2c7   : > { %v2072_v0 = vmul.f32 %v11175_v16, %v11175_v16  ;;  %v2073_v58 = vmul.f32 %v11179_v22, %v11179_v22  ;;  %v2074_v29 = vmul.f32 %v11183_v61, %v11183_v61  ;;  %v1975_v56 = vmul.f32 %v14770_v12, %v10875_v25 }
 0x2c8   : > { %v2136_v48 = vadd.f32 %v2135_v9, %v2134_v51  ;;  %v2075_v55 = vmul.f32 %v11191_v41, %v11191_v41  ;;  %v14853_v35 = vmax.f32 %v10936_v8, 0.0  ;;  %v2076_v1 = vmul.f32 %v11195_v49, %v11195_v49 }
 0x2c9   : > { %v2104_v30 = vmul.f32 %v2072_v0, %v10836_v2  ;;  %v2105_v51 = vmul.f32 %v2073_v58, %v10842_v5  ;;  %v2106_v59 = vmul.f32 %v2074_v29, %v10838_v3  ;;  %v2012_v57 = vadd.f32 %v2011_v52, %v2010_v43 }
 0x2ca   : > { %v2137_v33 = vrot.slane %v2136_v48, 2  ;;  %v11216_v10 = vsub.f32 %v14853_v35, %v2029_v19  ;;  %v2021_v47 = vadd.f32 %v2020_v36, %v1975_v56  ;;  %v14854_v0 = vmax.f32 %v10954_v23, 0.0 }
 0x2cb   : > { %v2141_v7 = vadd.f32 %v2105_v51, %v2104_v30  ;;  %v2107_v8 = vmul.f32 %v2075_v55, %v10844_v6  ;;  %v2108_v43 = vmul.f32 %v2076_v1, %v10840_v4  ;;  %v14856_v1 = vmax.f32 %v11001_v39, 0.0 }
 0x2cc   : > { %v2138_v9 = vadd.f32 %v2137_v33, %v2136_v48  ;;  %v11223_v14 = vsub.f32 %v14854_v0, %v2029_v19  ;;  %v2077_v48 = vmul.f32 %v11205_v53, %v11205_v53  ;;  %v2013_v33 = vrot.slane %v2012_v57, 1 }
 0x2cd   : > { %v2142_v58 = vadd.f32 %v2141_v7, %v2106_v59  ;;  %v2022_v35 = vrot.slane %v2021_v47, 4  ;;  %v2078_v29 = vmul.f32 %v11216_v10, %v11216_v10 }
 0x2ce   : > { %v2139_v21 = vrot.slane %v2138_v9, 1  ;;  %v2014_v36 = vadd.f32 %v2013_v33, %v2012_v57  ;;  %v2079_v23 = vmul.f32 %v11223_v14, %v11223_v14  ;;  %v2109_v19 = vmul.f32 %v2077_v48, %v10852_v13 }
 0x2cf   : > { %v2143_v52 = vadd.f32 %v2142_v58, %v2107_v8  ;;  %v2023_v55 = vadd.f32 %v2022_v35, %v2021_v47  ;;  %v2110_v7 = vmul.f32 %v2078_v29, %v10863_v20  ;;  %v14858_v48 = vmax.f32 %v10992_v17, 0.0 }
 0x2d0   : > { %v2140_v12 = vadd.f32 %v2139_v21, %v2138_v9  ;;  %v2030_v51 = vmul.f32 0.041666668, %v2014_v36  ;;  %v14855_v21 = vmax.f32 %v10998_v38, 0.0  ;;  %v2111_v58 = vmul.f32 %v2079_v23, %v10875_v25 }
 0x2d1   : > { %v2144_v56 = vadd.f32 %v2143_v52, %v2108_v43  ;;  %v2024_v35 = vrot.slane %v2023_v55, 2  ;;  %v14859_v38 = vmax.f32 %v11010_v50, 0.0  ;;  %v14860_v52 = vmax.f32 %v10980_v63, 0.0 }
 0x2d2   : > { %v2180_v30 = vmul.f32 0.041666668, %v2140_v12  ;;  %v11237_v0 = vsub.f32 %v14855_v21, %v2030_v51  ;;  %v11241_v57 = vsub.f32 %v14856_v1, %v2030_v51  ;;  %v14857_v12 = vmax.f32 %v10977_v62, 0.0 }
 0x2d3   : > { %v2145_v9 = vadd.f32 %v2144_v56, %v2109_v19  ;;  %v11249_v47 = vsub.f32 %v14858_v48, %v2030_v51  ;;  %v11254_v29 = vsub.f32 %v14859_v38, %v2030_v51  ;;  %v11264_v36 = vsub.f32 %v14860_v52, %v2030_v51 }
 0x2d4   : > { %v2184_v59 = vadd.f32 1e-05, %v2180_v30  ;;  %v11245_v8 = vsub.f32 %v14857_v12, %v2030_v51  ;;  %v2080_v39 = vmul.f32 %v11237_v0, %v11237_v0  ;;  %v2081_v62 = vmul.f32 %v11241_v57, %v11241_v57 }
 0x2d5   : > { %v2146_v33 = vadd.f32 %v2145_v9, %v2110_v7  ;;  %v2083_v30 = vmul.f32 %v11249_v47, %v11249_v47  ;;  %v14861_v56 = vmax.f32 %v10986_v11, 0.0  ;;  %v2084_v21 = vmul.f32 %v11254_v29, %v11254_v29 }
 0x2d6   : > { %9585 = vrsqrt.f32 %v2184_v59  ;;  %v2082_v43 = vmul.f32 %v11245_v8, %v11245_v8  ;;  %v2112_v50 = vmul.f32 %v2080_v39, %v10836_v2  ;;  %v2113_v23 = vmul.f32 %v2081_v62, %v10842_v5 }
 0x2d7   : > { %v2147_v17 = vadd.f32 %v2146_v33, %v2111_v58  ;;  %v11272_v7 = vsub.f32 %v14861_v56, %v2030_v51  ;;  %v2025_v12 = vadd.f32 %v2024_v35, %v2023_v55  ;;  %v14862_v33 = vmax.f32 %v10995_v26, 0.0 }
 0x2d8   : > { %v2114_v63 = vmul.f32 %v2082_v43, %v10838_v3  ;;  %v2154_v1 = vadd.f32 %v2113_v23, %v2112_v50  ;;  %v2085_v39 = vmul.f32 %v11264_v36, %v11264_v36  ;;  %v2115_v11 = vmul.f32 %v2083_v30, %v10844_v6 }
 0x2d9   : > { %v2148_v19 = vrot.slane %v2147_v17, 4  ;;  %v11279_v38 = vsub.f32 %v14862_v33, %v2030_v51  ;;  %v2026_v52 = vrot.slane %v2025_v12, 1  ;;  %v2086_v43 = vmul.f32 %v11272_v7, %v11272_v7 }
 0x2da   : > { %v2155_v62 = vadd.f32 %v2154_v1, %v2114_v63  ;;  %v2116_v55 = vmul.f32 %v2084_v21, %v10840_v4  ;;  %v2117_v23 = vmul.f32 %v2085_v39, %v10852_v13  ;;  %v14864_v21 = vmax.f32 %v11058_v54, 0.0 }
 0x2db   : > { %v2149_v58 = vadd.f32 %v2148_v19, %v2147_v17  ;;  %v2027_v17 = vadd.f32 %v2026_v52, %v2025_v12  ;;  %v2087_v51 = vmul.f32 %v11279_v38, %v11279_v38  ;;  %vm2194_vm1 = vweird.f32 %v2184_v59 }
 0x2dc   : > { %v9586_v9 = vpop.eup %9585  ;;  %v2156_v35 = vadd.f32 %v2155_v62, %v2115_v11  ;;  %v11304_v62 = vld [vmem:[%s14863_s11] ss:$0 sm:$0xff]  ;;  %v14867_v54 = vmax.f32 %v11092_v27, 0.0  ;;  %s14887_s11 = sld [smem:[#allocation63_spill]] }
 0x2dd   : > { %v2189_v48 = vmul.f32 %v9586_v9, %v2184_v59  ;;  %v2150_v31 = vrot.slane %v2149_v58, 2  ;;  %v11290_v19 = vmul.f32 0.041666668, %v2027_v17  ;;  %vm2195_vm0 = vweird.f32 %v9586_v9  ;;  %v11324_v27 = vld [vmem:[%s14866_s26] ss:$0 sm:$0xff]  ;;  %s14886_s26 = smov %s14885_s10 }
 0x2de   : > { %v2157_v30 = vadd.f32 %v2156_v35, %v2116_v55  ;;  %vm2196_vm2 = vmor %vm2194_vm1, %vm2195_vm0  ;;  %v2119_v52 = vmul.f32 %v2087_v51, %v10875_v25 }
 0x2df   : > { %v2190_v56 = vmul.f32 %v9586_v9, %v2189_v48  ;;  %v2151_v26 = vadd.f32 %v2150_v31, %v2149_v58  ;;  %v2118_v48 = vmul.f32 %v2086_v43, %v10863_v20  ;;  %v11296_v12 = vsub.f32 %v14864_v21, %v11290_v19 }
 0x2e0   : > { %v2158_v33 = vadd.f32 %v2157_v30, %v2117_v23  ;;  %v14865_v31 = vmax.f32 %v11069_v15, 0.0  ;;  %v11310_v43 = vsub.f32 %v14867_v54, %v11290_v19  ;;  %v14868_v15 = vmax.f32 %v11109_v32, 0.0  ;;  %v14869_v30 = vld [vmem:[#allocation83_spill] sm:$0xff] }
 0x2e1   : > { %v2191_v50 = vmul.f32 0.5, %v2190_v56  ;;  %v2152_v1 = vrot.slane %v2151_v26, 1  ;;  %v2088_v59 = vmul.f32 %v11296_v12, %v11296_v12 }
 0x2e2   : > { %v11301_v58 = vsub.f32 %v14865_v31, %v11290_v19  ;;  %v2159_v56 = vadd.f32 %v2158_v33, %v2118_v48  ;;  %v11315_v55 = vsub.f32 %v14868_v15, %v11290_v19 }
 0x2e3   : > { %v2192_v63 = vsub.f32 1.5, %v2191_v50  ;;  %v2153_v11 = vadd.f32 %v2152_v1, %v2151_v26 }
 0x2e4   : > { %v2089_v50 = vmul.f32 %v11301_v58, %v11301_v58 }
 0x2e5   : > { %v2193_v39 = vmul.f32 %v9586_v9, %v2192_v63  ;;  %v2181_v17 = vmul.f32 0.041666668, %v2153_v11  ;;  %v14870_v63 = vld [vmem:[#allocation84_spill] sm:$0xff] }
 0x2e7   : > { %v2197_v35 = vsel %vm2196_vm2, %v9586_v9, %v2193_v39  ;;  %v14871_v9 = vld [vmem:[#allocation85_spill] sm:$0xff] }
 0x2e8   : > { %v2228_v26 = vmul.f32 %v2197_v35, %v11073_v42  ;;  %v2229_v51 = vmul.f32 %v2197_v35, %v11077_v45  ;;  %v2230_v23 = vmul.f32 %v2197_v35, %v11081_v40  ;;  %v2231_v32 = vmul.f32 %v2197_v35, %v14869_v30 }
 0x2e9   : > { %v2232_v1 = vmul.f32 %v2197_v35, %v14870_v63  ;;  %v2233_v48 = vmul.f32 %v2197_v35, %v14871_v9  ;;  %v2234_v33 = vmul.f32 %v2197_v35, %v11121_v44  ;;  %v2235_v21 = vmul.f32 %v2197_v35, %v11132_v37 }
 0x2ea   : > { %v2264_v31 = vmul.f32 %v11304_v62, %v2228_v26  ;;  %v2265_v42 = vmul.f32 %v11304_v62, %v2229_v51  ;;  %v2266_v45 = vmul.f32 %v11304_v62, %v2230_v23  ;;  %v2267_v39 = vmul.f32 %v11304_v62, %v2231_v32 }
 0x2eb   : > { %v2268_v40 = vmul.f32 %v11304_v62, %v2232_v1  ;;  %v2269_v11 = vmul.f32 %v11304_v62, %v2233_v48  ;;  %v2270_v54 = vmul.f32 %v11304_v62, %v2234_v33  ;;  %v2271_v15 = vmul.f32 %v11304_v62, %v2235_v21 }
 0x2ec   : > { %v2300_v44 = vadd.f32 %v11324_v27, %v2264_v31  ;;  %v2301_v37 = vadd.f32 %v11324_v27, %v2265_v42  ;;  %v2302_v35 = vadd.f32 %v11324_v27, %v2266_v45  ;;  %v2303_v26 = vadd.f32 %v11324_v27, %v2267_v39 }
 0x2ed   : > { %v11345_v51 = vadd.f32 %v11324_v27, %v2268_v40  ;;  %v11348_v23 = vadd.f32 %v11324_v27, %v2269_v11  ;;  %v11351_v30 = vadd.f32 %v11324_v27, %v2270_v54  ;;  %v11354_v32 = vadd.f32 %v11324_v27, %v2271_v15 }
 0x2ee   : > { %v2332_v63 = vpack.c.bf16 %v2301_v37, %v2300_v44  ;;  %v2333_v1 = vpack.c.bf16 %v2303_v26, %v2302_v35  ;;  %v2185_v9 = vadd.f32 1e-05, %v2181_v17  ;;  %v2160_v48 = vadd.f32 %v2159_v56, %v2119_v52 }
 0x2ef   : > { %v2334_v33 = vpack.c.bf16 %v11348_v23, %v11345_v51  ;;  %v2335_v21 = vpack.c.bf16 %v11354_v32, %v11351_v30  ;;  %v11363_v42 = vsub.f32 %v1940_v28, %v11290_v19  ;;  %v2090_v45 = vmul.f32 %v11310_v43, %v11310_v43 }
 0x2f0   : > { %2424 = vmatmul.bf16.vlgmr.msra.gmra.mxu2 %v2332_v63  ;;  %9587 = vrsqrt.f32 %v2185_v9  ;;  %v2161_v31 = vrot.slane %v2160_v48, 4  ;;  %v2120_v17 = vmul.f32 %v2088_v59, %v10836_v2  ;;  %v11371_v56 = vsub.f32 %v1941_v46, %v11290_v19 }
 0x2f1   : > { %v2091_v39 = vmul.f32 %v11315_v55, %v11315_v55  ;;  %v2121_v40 = vmul.f32 %v2089_v50, %v10842_v5  ;;  %v2092_v34 = vmul.f32 %v11363_v42, %v11363_v42  ;;  %v2122_v28 = vmul.f32 %v2090_v45, %v10838_v3 }
 0x2f2   : > { %v2162_v52 = vadd.f32 %v2161_v31, %v2160_v48  ;;  %v14872_v59 = vmax.f32 %v11158_v18, 0.0  ;;  %v2093_v44 = vmul.f32 %v11371_v56, %v11371_v56  ;;  %v14873_v45 = vmax.f32 %v11167_v60, 0.0 }
 0x2f3   : > { %v2167_v54 = vadd.f32 %v2121_v40, %v2120_v17  ;;  %v2123_v37 = vmul.f32 %v2091_v39, %v10844_v6  ;;  %v2124_v63 = vmul.f32 %v2092_v34, %v10840_v4  ;;  %vm2204_vm4 = vweird.f32 %v2185_v9 }
 0x2f4   : > { %v2163_v11 = vrot.slane %v2162_v52, 2  ;;  %v11382_v15 = vsub.f32 %v14872_v59, %v11290_v19  ;;  %v11391_v18 = vsub.f32 %v14873_v45, %v11290_v19  ;;  %v2125_v40 = vmul.f32 %v2093_v44, %v10852_v13 }
 0x2f5   : > { %v2168_v50 = vadd.f32 %v2167_v54, %v2122_v28 }
 0x2f6   : > { %v9588_v24 = vpop.eup %9587  ;;  %v2164_v46 = vadd.f32 %v2163_v11, %v2162_v52  ;;  %v2094_v52 = vmul.f32 %v11382_v15, %v11382_v15 }
 0x2f7   : > { %v2199_v35 = vmul.f32 %v9588_v24, %v2185_v9  ;;  %v2169_v48 = vadd.f32 %v2168_v50, %v2123_v37  ;;  %vm2205_vm3 = vweird.f32 %v9588_v24  ;;  %v2095_v37 = vmul.f32 %v11391_v18, %v11391_v18 }
 0x2f8   : > { %v2165_v26 = vrot.slane %v2164_v46, 1  ;;  %v2126_v60 = vmul.f32 %v2094_v52, %v10863_v20  ;;  %vm2206_vm5 = vmor %vm2204_vm4, %vm2205_vm3 }
 0x2f9   : > { %v2200_v31 = vmul.f32 %v9588_v24, %v2199_v35  ;;  %v2170_v11 = vadd.f32 %v2169_v48, %v2124_v63 }
 0x2fa   : > { %v2166_v17 = vadd.f32 %v2165_v26, %v2164_v46  ;;  %v2127_v26 = vmul.f32 %v2095_v37, %v10875_v25 }
 0x2fb   : > { %v2201_v39 = vmul.f32 0.5, %v2200_v31  ;;  %v2171_v54 = vadd.f32 %v2170_v11, %v2125_v40 }
 0x2fc   : > { %v2182_v28 = vmul.f32 0.041666668, %v2166_v17 }
 0x2fd   : > { %v2202_v59 = vsub.f32 1.5, %v2201_v39  ;;  %v2172_v46 = vadd.f32 %v2171_v54, %v2126_v60 }
 0x2fe   : > { %v2186_v34 = vadd.f32 1e-05, %v2182_v28 }
 0x2ff   : > { %v2203_v19 = vmul.f32 %v9588_v24, %v2202_v59  ;;  %v2173_v31 = vadd.f32 %v2172_v46, %v2127_v26 }
 0x300   : > { %2429 = vmatmul.bf16.gmra.mxu2 %v2333_v1  ;;  %9589 = vrsqrt.f32 %v2186_v34  ;;  %vm2214_vm7 = vweird.f32 %v2186_v34 }
 0x301   : > { %v11399_v50 = vsel %vm2206_vm5, %v9588_v24, %v2203_v19  ;;  %v2174_v60 = vrot.slane %v2173_v31, 4 }
 0x302   : > { %v2238_v44 = vmul.f32 %v11399_v50, %v11183_v61  ;;  %v2239_v35 = vmul.f32 %v11399_v50, %v11191_v41  ;;  %v2240_v63 = vmul.f32 %v11399_v50, %v11195_v49  ;;  %v2241_v9 = vmul.f32 %v11399_v50, %v11205_v53 }
 0x303   : > { %v2242_v1 = vmul.f32 %v11399_v50, %v11216_v10  ;;  %v2243_v24 = vmul.f32 %v11399_v50, %v11223_v14  ;;  %v2175_v46 = vadd.f32 %v2174_v60, %v2173_v31 }
 0x304   : > { %v2274_v48 = vmul.f32 %v11304_v62, %v2238_v44  ;;  %v2275_v61 = vmul.f32 %v11304_v62, %v2239_v35  ;;  %v2276_v41 = vmul.f32 %v11304_v62, %v2240_v63  ;;  %v2277_v45 = vmul.f32 %v11304_v62, %v2241_v9 }
 0x305   : > { %v2278_v49 = vmul.f32 %v11304_v62, %v2242_v1  ;;  %v2279_v17 = vmul.f32 %v11304_v62, %v2243_v24  ;;  %v2176_v35 = vrot.slane %v2175_v46, 2 }
 0x306   : > { %v9590_v53 = vpop.eup %9589  ;;  %v11421_v52 = vadd.f32 %v11324_v27, %v2274_v48  ;;  %v11424_v10 = vadd.f32 %v11324_v27, %v2275_v61  ;;  %v11427_v14 = vadd.f32 %v11324_v27, %v2276_v41  ;;  %v11430_v40 = vadd.f32 %v11324_v27, %v2277_v45 }
 0x307   : > { %v11433_v11 = vadd.f32 %v11324_v27, %v2278_v49  ;;  %v11436_v39 = vadd.f32 %v11324_v27, %v2279_v17  ;;  %v2209_v54 = vmul.f32 %v9590_v53, %v2186_v34  ;;  %vm2215_vm6 = vweird.f32 %v9590_v53 }
 0x308   : > { %v2337_v28 = vpack.c.bf16 %v11424_v10, %v11421_v52  ;;  %v2338_v59 = vpack.c.bf16 %v11430_v40, %v11427_v14  ;;  %vm2216_vm8 = vmor %vm2214_vm7, %vm2215_vm6  ;;  %v2177_v9 = vadd.f32 %v2176_v35, %v2175_v46 }
 0x309   : > { %v2339_v37 = vpack.c.bf16 %v11436_v39, %v11433_v11  ;;  %v2210_v19 = vmul.f32 %v9590_v53, %v2209_v54 }
 0x30b   : > { %v2211_v44 = vmul.f32 0.5, %v2210_v19 }
 0x30d   : > { %v2212_v26 = vsub.f32 1.5, %v2211_v44 }
 0x30f   : > { %v2213_v63 = vmul.f32 %v9590_v53, %v2212_v26  ;;  %v2236_v26 = vmul.f32 %v11399_v50, %v11175_v16 }
 0x310   : > { %2434 = vmatmul.bf16.gmra.mxu2 %v2334_v33  ;;  %v2178_v33 = vrot.slane %v2177_v9, 1 }
 0x311   : > { %v2217_v1 = vsel %vm2216_vm8, %v9590_v53, %v2213_v63  ;;  %v2237_v63 = vmul.f32 %v11399_v50, %v11179_v22 }
 0x312   : > { %v2246_v24 = vmul.f32 %v2217_v1, %v11245_v8  ;;  %v2247_v48 = vmul.f32 %v2217_v1, %v11249_v47  ;;  %v2248_v61 = vmul.f32 %v2217_v1, %v11254_v29  ;;  %v2249_v31 = vmul.f32 %v2217_v1, %v11264_v36 }
 0x313   : > { %v2250_v41 = vmul.f32 %v2217_v1, %v11272_v7  ;;  %v2251_v45 = vmul.f32 %v2217_v1, %v11279_v38  ;;  %v2179_v60 = vadd.f32 %v2178_v33, %v2177_v9  ;;  %v2273_v9 = vmul.f32 %v11304_v62, %v2237_v63 }
 0x314   : > { %v2282_v51 = vmul.f32 %v11304_v62, %v2246_v24  ;;  %v2283_v23 = vmul.f32 %v11304_v62, %v2247_v48  ;;  %v2284_v34 = vmul.f32 %v11304_v62, %v2248_v61  ;;  %v2285_v49 = vmul.f32 %v11304_v62, %v2249_v31 }
 0x315   : > { %v2286_v8 = vmul.f32 %v11304_v62, %v2250_v41  ;;  %v2287_v47 = vmul.f32 %v11304_v62, %v2251_v45  ;;  %v2183_v44 = vmul.f32 0.041666668, %v2179_v60  ;;  %v2272_v48 = vmul.f32 %v11304_v62, %v2236_v26 }
 0x316   : > { %v2318_v29 = vadd.f32 %v11324_v27, %v2282_v51  ;;  %v2319_v36 = vadd.f32 %v11324_v27, %v2283_v23  ;;  %v2320_v7 = vadd.f32 %v11324_v27, %v2284_v34  ;;  %v2321_v38 = vadd.f32 %v11324_v27, %v2285_v49 }
 0x317   : > { %v2322_v17 = vadd.f32 %v11324_v27, %v2286_v8  ;;  %v2323_v53 = vadd.f32 %v11324_v27, %v2287_v47  ;;  %v2187_v35 = vadd.f32 1e-05, %v2183_v44  ;;  %v2308_v41 = vadd.f32 %v11324_v27, %v2272_v48 }
 0x318   : > { %v2341_v54 = vpack.c.bf16 %v2319_v36, %v2318_v29  ;;  %v2342_v19 = vpack.c.bf16 %v2321_v38, %v2320_v7  ;;  %v2309_v45 = vadd.f32 %v11324_v27, %v2273_v9 }
 0x319   : > { %v2343_v46 = vpack.c.bf16 %v2323_v53, %v2322_v17  ;;  %9591 = vrsqrt.f32 %v2187_v35  ;;  %vm2224_vm10 = vweird.f32 %v2187_v35 }
 0x31a   : > { %v2336_v32 = vpack.c.bf16 %v2309_v45, %v2308_v41 }
 0x31f   : > { %v9592_v24 = vpop.eup %9591 }
 0x320   : > { %2439 = vmatmul.bf16.gmra.mxu2 %v2335_v21  ;;  %v2219_v61 = vmul.f32 %v9592_v24, %v2187_v35  ;;  %vm2225_vm9 = vweird.f32 %v9592_v24 }
 0x321   : > { %vm2226_vm11 = vmor %vm2224_vm10, %vm2225_vm9 }
 0x322   : > { %v2220_v31 = vmul.f32 %v9592_v24, %v2219_v61 }
 0x324   : > { %v2221_v51 = vmul.f32 0.5, %v2220_v31 }
 0x326   : > { %v2222_v30 = vsub.f32 1.5, %v2221_v51 }
 0x328   : > { %v2223_v21 = vmul.f32 %v9592_v24, %v2222_v30 }
 0x32a   : > { %v11476_v16 = vsel %vm2226_vm11, %v9592_v24, %v2223_v21 }
 0x32b   : > { %v2254_v22 = vmul.f32 %v11476_v16, %v11310_v43  ;;  %v2255_v50 = vmul.f32 %v11476_v16, %v11315_v55  ;;  %v2244_v43 = vmul.f32 %v2217_v1, %v11237_v0  ;;  %v2245_v55 = vmul.f32 %v2217_v1, %v11241_v57  ;;  %v11512_v1 = vld [vmem:[%s14874_s1] ss:$0 sm:$0xff]  ;;  %s14888_s1 = sld [smem:[#allocation64_spill]] }
 0x32c   : > { %v2252_v57 = vmul.f32 %v11476_v16, %v11296_v12 }
 0x32d   : > { %v2290_v23 = vmul.f32 %v11304_v62, %v2254_v22  ;;  %v2291_v33 = vmul.f32 %v11304_v62, %v2255_v50  ;;  %v2280_v47 = vmul.f32 %v11304_v62, %v2244_v43  ;;  %v2281_v29 = vmul.f32 %v11304_v62, %v2245_v55 }
 0x32e   : > { %v2288_v7 = vmul.f32 %v11304_v62, %v2252_v57 }
 0x32f   : > { %v11485_v34 = vadd.f32 %v11324_v27, %v2290_v23  ;;  %v11488_v49 = vadd.f32 %v11324_v27, %v2291_v33  ;;  %v2316_v36 = vadd.f32 %v11324_v27, %v2280_v47  ;;  %v2317_v52 = vadd.f32 %v11324_v27, %v2281_v29 }
 0x330   : > { %2444 = vmatmul.bf16.gmra.mxu2 %v2336_v32 }
 0x331   : > { %v2345_v8 = vpack.c.bf16 %v11488_v49, %v11485_v34  ;;  %v2340_v10 = vpack.c.bf16 %v2317_v52, %v2316_v36 }
 0x340   : > { %2449 = vmatmul.bf16.gmra.mxu2 %v2337_v28 }
 0x350   : > { %2454 = vmatmul.bf16.gmra.mxu2 %v2338_v59  ;;  %v2253_v59 = vmul.f32 %v11476_v16, %v11301_v58 }
 0x352   : > { %v2289_v38 = vmul.f32 %v11304_v62, %v2253_v59 }
 0x354   : > { %v2325_v60 = vadd.f32 %v11324_v27, %v2289_v38  ;;  %v2257_v38 = vmul.f32 %v11476_v16, %v11371_v56  ;;  %v2259_v56 = vmul.f32 %v11476_v16, %v11391_v18 }
 0x356   : > { %v2293_v34 = vmul.f32 %v11304_v62, %v2257_v38 }
 0x360   : > { %2459 = vmatmul.bf16.gmra.mxu2 %v2339_v37 }
 0x370   : > { %2464 = vmatmul.bf16.gmra.mxu2 %v2340_v10 }
 0x373   : > { %v2425_v14 = vpop.f32.mrf.mxu2 }
 0x374   : > { %v2426_v51 = vadd.f32 %v11512_v1, %v2425_v14 }
 0x376   : > { %v2505_v47 = vmul.f32 %v2426_v51, %v10836_v2 }
 0x37b   : > { %v2427_v40 = vpop.f32.mrf.mxu2 }
 0x37c   : > { %v2428_v61 = vadd.f32 %v11512_v1, %v2427_v40  ;;  %v2537_v40 = vpack.c.bf16 %v2505_v47, %v2505_v47 }
 0x37e   : > { %v2506_v23 = vmul.f32 %v2428_v61, %v10842_v5  ;;  %v2633_v57 = vunpack.c.l.b16 %v2537_v40 }
 0x380   : > { %2469 = vmatmul.bf16.gmra.mxu2 %v2341_v54  ;;  %v2324_v54 = vadd.f32 %v11324_v27, %v2288_v7  ;;  %v2538_v14 = vpack.c.bf16 %v2506_v23, %v2506_v23  ;;  %v2256_v7 = vmul.f32 %v11476_v16, %v11363_v42  ;;  %v2258_v42 = vmul.f32 %v11476_v16, %v11382_v15 }
 0x382   : > { %v2344_v26 = vpack.c.bf16 %v2325_v60, %v2324_v54 }
 0x383   : > { %v2430_v11 = vpop.f32.mrf.mxu2 }
 0x384   : > { %v2431_v63 = vadd.f32 %v11512_v1, %v2430_v11 }
 0x386   : > { %v2507_v30 = vmul.f32 %v2431_v63, %v10838_v3 }
 0x388   : > { %v2539_v29 = vpack.c.bf16 %v2507_v30, %v2507_v30 }
 0x38a   : > { %v2635_v11 = vunpack.c.l.b16 %v2539_v29 }
 0x38b   : > { %v2432_v39 = vpop.f32.mrf.mxu2 }
 0x390   : > { %2474 = vmatmul.bf16.gmra.mxu2 %v2342_v19 }
 0x393   : > { %v2435_v0 = vpop.f32.mrf.mxu2 }
 0x394   : > { %v2436_v12 = vadd.f32 %v11512_v1, %v2435_v0 }
 0x396   : > { %v2509_v24 = vmul.f32 %v2436_v12, %v10840_v4  ;;  %v11551_v12 = vld [vmem:[#allocation8 + $0x8] sm:$0xff] }
 0x398   : > { %v2541_v32 = vpack.c.bf16 %v2509_v24, %v2509_v24  ;;  %v11563_v24 = vld [vmem:[#allocation8 + $0x10] sm:$0xff] }
 0x39a   : > { %v2637_v36 = vunpack.c.l.b16 %v2541_v32 }
 0x39b   : > { %v2437_v28 = vpop.f32.mrf.mxu2 }
 0x39c   : > { %v2438_v53 = vadd.f32 %v11512_v1, %v2437_v28  ;;  %v2634_v28 = vunpack.c.l.b16 %v2538_v14 }
 0x39e   : > { %v2510_v44 = vmul.f32 %v2438_v53, %v10852_v13  ;;  %v2641_v59 = vpack.c.b16 %v2634_v28, %v2633_v57  ;;  %v2292_v53 = vmul.f32 %v11304_v62, %v2256_v7 }
 0x3a0   : > { %2479 = vmatmul.bf16.gmra.mxu2 %v2343_v46  ;;  %v2433_v46 = vadd.f32 %v11512_v1, %v2432_v39  ;;  %v2542_v45 = vpack.c.bf16 %v2510_v44, %v2510_v44  ;;  %v2328_v49 = vadd.f32 %v11324_v27, %v2292_v53 }
 0x3a2   : > { %v2508_v31 = vmul.f32 %v2433_v46, %v10844_v6  ;;  %v2638_v43 = vunpack.c.l.b16 %v2542_v45  ;;  %v2295_v46 = vmul.f32 %v11304_v62, %v2259_v56  ;;  %v11594_v56 = vld [vmem:[#allocation8 + $0x28] sm:$0xff] }
 0x3a3   : > { %v2440_v37 = vpop.f32.mrf.mxu2 }
 0x3a4   : > { %v2441_v17 = vadd.f32 %v11512_v1, %v2440_v37  ;;  %v2540_v55 = vpack.c.bf16 %v2508_v31, %v2508_v31  ;;  %v2643_v52 = vpack.c.b16 %v2638_v43, %v2637_v36  ;;  %v11539_v37 = vld [vmem:[#allocation8] sm:$0xff]  ;;  %v11581_v43 = vld [vmem:[#allocation8 + $0x18] sm:$0xff] }
 0x3a6   : > { %v2511_v19 = vmul.f32 %v2441_v17, %v10863_v20  ;;  %v2636_v10 = vunpack.c.l.b16 %v2540_v55 }
 0x3a8   : > { %v2543_v9 = vpack.c.bf16 %v2511_v19, %v2511_v19  ;;  %v2642_v0 = vpack.c.b16 %v2636_v10, %v2635_v11 }
 0x3aa   : > { %v2639_v21 = vunpack.c.l.b16 %v2543_v9 }
 0x3ab   : > { %v2442_v58 = vpop.f32.mrf.mxu2 }
 0x3ac   : > { %v2443_v35 = vadd.f32 %v11512_v1, %v2442_v58  ;;  %v2294_v58 = vmul.f32 %v11304_v62, %v2258_v42 }
 0x3ae   : > { %v2512_v48 = vmul.f32 %v2443_v35, %v10875_v25  ;;  %v2330_v44 = vadd.f32 %v11324_v27, %v2294_v58  ;;  %v2331_v35 = vadd.f32 %v11324_v27, %v2295_v46  ;;  %v11600_v46 = vld [vmem:[#allocation8 + $0x30] sm:$0xff] }
 0x3b0   : > { %2484 = vmatmul.bf16.gmra.mxu2 %v2344_v26  ;;  %v2544_v41 = vpack.c.bf16 %v2512_v48, %v2512_v48  ;;  %v2347_v63 = vpack.c.bf16 %v2331_v35, %v2330_v44 }
 0x3b2   : > { %v2640_v22 = vunpack.c.l.b16 %v2544_v41 }
 0x3b3   : > { %v11532_v50 = vpop.f32.mrf.mxu2 }
 0x3b4   : > { %v2644_v33 = vpack.c.b16 %v2640_v22, %v2639_v21 }
 0x3b6   : > { %2678 = vmatpush.bf16.msra.mxu3 %v2644_v33  ;;  %v2446_v33 = vadd.f32 %v11512_v1, %v11532_v50 }
 0x3ba   : > { %2679 = vmatpush.bf16.msra.mxu3 %v2643_v52 }
 0x3bb   : > { %v2447_v39 = vpop.f32.mrf.mxu2 }
 0x3bc   : > { %v2448_v32 = vadd.f32 %v11512_v1, %v2447_v39  ;;  %v2513_v39 = vmul.f32 %v2446_v33, %v10836_v2 }
 0x3be   : > { %2680 = vmatpush.bf16.msra.mxu3 %v2642_v0  ;;  %v2514_v10 = vmul.f32 %v2448_v32, %v10842_v5  ;;  %v2545_v7 = vpack.c.bf16 %v2513_v39, %v2513_v39 }
 0x3c0   : > { %2489 = vmatmul.bf16.gmra.mxu2 %v2345_v8  ;;  %v2329_v8 = vadd.f32 %v11324_v27, %v2293_v34 }
 0x3c2   : > { %2681 = vmatpush.bf16.msra.mxu3 %v2641_v59  ;;  %v2346_v60 = vpack.c.bf16 %v2329_v8, %v2328_v49  ;;  %v2546_v59 = vpack.c.bf16 %v2514_v10, %v2514_v10  ;;  %v2731_v49 = vunpack.c.l.b16 %v2545_v7 }
 0x3c3   : > { %v2450_v17 = vpop.f32.mrf.mxu2 }
 0x3c4   : > { %v2451_v41 = vadd.f32 %v11512_v1, %v2450_v17  ;;  %v2732_v34 = vunpack.c.l.b16 %v2546_v59 }
 0x3c5   : > { %8606 = vmatmul.msk.bf16.vlgmr.msra.gmra.mxu3 %vm2649_vm12, %v11539_v37 }
 0x3c6   : > { %v2515_v55 = vmul.f32 %v2451_v41, %v10838_v3  ;;  %v2739_v8 = vpack.c.b16 %v2732_v34, %v2731_v49 }
 0x3c8   : > { %v2547_v0 = vpack.c.bf16 %v2515_v55, %v2515_v55 }
 0x3ca   : > { %v2733_v38 = vunpack.c.l.b16 %v2547_v0 }
 0x3cb   : > { %v2452_v54 = vpop.f32.mrf.mxu2 }
 0x3cc   : > { %v2453_v27 = vadd.f32 %v11512_v1, %v2452_v54  ;;  %v11588_v54 = vld [vmem:[#allocation8 + $0x20] sm:$0xff] }
 0x3ce   : > { %v2516_v21 = vmul.f32 %v2453_v27, %v10844_v6 }
 0x3d0   : > { %2494 = vmatmul.bf16.gmra.mxu2 %v2346_v60  ;;  %v2548_v11 = vpack.c.bf16 %v2516_v21, %v2516_v21  ;;  %v11617_v21 = vld [vmem:[#allocation8 + $0x38] sm:$0xff] }
 0x3d2   : > { %v2734_v57 = vunpack.c.l.b16 %v2548_v11 }
 0x3d3   : > { %v2455_v19 = vpop.f32.mrf.mxu2 }
 0x3d4   : > { %v2456_v48 = vadd.f32 %v11512_v1, %v2455_v19  ;;  %v2740_v53 = vpack.c.b16 %v2734_v57, %v2733_v38 }
 0x3d5   : > { %8607 = vmatmul.msk.bf16.gmra.mxu3 %vm2649_vm12, %v11551_v12 }
 0x3d6   : > { %v2517_v45 = vmul.f32 %v2456_v48, %v10840_v4 }
 0x3d8   : > { %v2549_v47 = vpack.c.bf16 %v2517_v45, %v2517_v45 }
 0x3da   : > { %v2735_v50 = vunpack.c.l.b16 %v2549_v47 }
 0x3db   : > { %v2457_v26 = vpop.f32.mrf.mxu2 }
 0x3dc   : > { %v2458_v16 = vadd.f32 %v11512_v1, %v2457_v26 }
 0x3de   : > { %v2518_v61 = vmul.f32 %v2458_v16, %v10852_v13 }
 0x3e0   : > { %2499 = vmatmul.bf16.gmra.mxu2 %v2347_v63  ;;  %v2550_v23 = vpack.c.bf16 %v2518_v61, %v2518_v61 }
 0x3e2   : > { %v2736_v40 = vunpack.c.l.b16 %v2550_v23 }
 0x3e3   : > { %v2460_v15 = vpop.f32.mrf.mxu2 }
 0x3e4   : > { %v2461_v18 = vadd.f32 %v11512_v1, %v2460_v15  ;;  %v2741_v28 = vpack.c.b16 %v2736_v40, %v2735_v50 }
 0x3e5   : > { %8608 = vmatmul.msk.bf16.gmra.mxu3 %vm2649_vm12, %v11563_v24 }
 0x3e6   : > { %v2519_v62 = vmul.f32 %v2461_v18, %v10863_v20 }
 0x3e8   : > { %v2551_v51 = vpack.c.bf16 %v2519_v62, %v2519_v62 }
 0x3ea   : > { %v2737_v29 = vunpack.c.l.b16 %v2551_v51 }
 0x3eb   : > { %v2462_v9 = vpop.f32.mrf.mxu2 }
 0x3ec   : > { %v2463_v31 = vadd.f32 %v11512_v1, %v2462_v9 }
 0x3ee   : > { %v2520_v30 = vmul.f32 %v2463_v31, %v10875_v25 }
 0x3f0   : > { %v2552_v22 = vpack.c.bf16 %v2520_v30, %v2520_v30 }
 0x3f2   : > { %v2738_v36 = vunpack.c.l.b16 %v2552_v22 }
 0x3f3   : > { %v2465_v52 = vpop.f32.mrf.mxu2 }
 0x3f4   : > { %v2742_v14 = vpack.c.b16 %v2738_v36, %v2737_v29  ;;  %v2466_v32 = vadd.f32 %v11512_v1, %v2465_v52 }
 0x3f5   : > { %8609 = vmatmul.msk.bf16.gmra.mxu3 %vm2649_vm12, %v11581_v43 }
 0x3f6   : > { %2751 = vmatpush.bf16.msrb.mxu0 %v2742_v14  ;;  %9300 = vmatpush.bf16.msrb.mxu3 %v2742_v14  ;;  %v2521_v40 = vmul.f32 %v2466_v32, %v10836_v2 }
 0x3fa   : > { %2752 = vmatpush.bf16.msrb.mxu0 %v2741_v28  ;;  %9301 = vmatpush.bf16.msrb.mxu3 %v2741_v28  ;;  %v2553_v28 = vpack.c.bf16 %v2521_v40, %v2521_v40 }
 0x3fb   : > { %v2467_v17 = vpop.f32.mrf.mxu2 }
 0x3fc   : > { %v2468_v41 = vadd.f32 %v11512_v1, %v2467_v17  ;;  %v2804_v17 = vunpack.c.l.b16 %v2553_v28 }
 0x3fe   : > { %2753 = vmatpush.bf16.msrb.mxu0 %v2740_v53  ;;  %9302 = vmatpush.bf16.msrb.mxu3 %v2740_v53  ;;  %v2522_v29 = vmul.f32 %v2468_v41, %v10842_v5  ;;  %v9194_v53 = vld [vmem:[#allocation17 + $0x38] sm:$0xff] }
 0x3ff   : > { %v9198_v41 = vld [vmem:[#allocation19 + $0x18] sm:$0xff] }
 0x400   : > { %v2554_v50 = vpack.c.bf16 %v2522_v29, %v2522_v29 }
 0x402   : > { %2754 = vmatpush.bf16.msrb.mxu0 %v2739_v8  ;;  %9303 = vmatpush.bf16.msrb.mxu3 %v2739_v8  ;;  %v2805_v38 = vunpack.c.l.b16 %v2554_v50  ;;  %v9193_v8 = vld [vmem:[#allocation17 + $0x30] sm:$0xff] }
 0x403   : > { %v2470_v60 = vpop.f32.mrf.mxu2 }
 0x404   : > { %v2471_v9 = vadd.f32 %v11512_v1, %v2470_v60  ;;  %v2812_v34 = vpack.c.b16 %v2805_v38, %v2804_v17  ;;  %v9192_v60 = vld [vmem:[#allocation17 + $0x28] sm:$0xff] }
 0x405   : > { %8610 = vmatmul.msk.bf16.gmra.mxu3 %vm2649_vm12, %v11588_v54  ;;  %8614 = vmatmul.msk.bf16.vlgmr.msrb.gmra.mxu0 %vm2649_vm12, %v11539_v37 }
 0x406   : > { %v2523_v22 = vmul.f32 %v2471_v9, %v10838_v3 }
 0x408   : > { %v2555_v52 = vpack.c.bf16 %v2523_v22, %v2523_v22  ;;  %v9197_v22 = vld [vmem:[#allocation19 + $0x10] sm:$0xff] }
 0x40a   : > { %v2806_v57 = vunpack.c.l.b16 %v2555_v52 }
 0x40b   : > { %v2472_v42 = vpop.f32.mrf.mxu2 }
 0x40c   : > { %v2473_v16 = vadd.f32 %v11512_v1, %v2472_v42 }
 0x40e   : > { %v2524_v45 = vmul.f32 %v2473_v16, %v10844_v6 }
 0x410   : > { %v2556_v14 = vpack.c.bf16 %v2524_v45, %v2524_v45 }
 0x412   : > { %v2807_v0 = vunpack.c.l.b16 %v2556_v14 }
 0x413   : > { %v2475_v19 = vpop.f32.mrf.mxu2 }
 0x414   : > { %v2476_v63 = vadd.f32 %v11512_v1, %v2475_v19  ;;  %v2813_v7 = vpack.c.b16 %v2807_v0, %v2806_v57 }
 0x415   : > { %8611 = vmatmul.msk.bf16.gmra.mxu3 %vm2649_vm12, %v11594_v56  ;;  %8615 = vmatmul.msk.bf16.gmra.mxu0 %vm2649_vm12, %v11551_v12 }
 0x416   : > { %v2525_v27 = vmul.f32 %v2476_v63, %v10840_v4  ;;  %v9189_v63 = vld [vmem:[#allocation17 + $0x10] sm:$0xff] }
 0x418   : > { %v2557_v23 = vpack.c.bf16 %v2525_v27, %v2525_v27  ;;  %v9187_v27 = vld [vmem:[#allocation17] sm:$0xff] }
 0x41a   : > { %v2808_v11 = vunpack.c.l.b16 %v2557_v23 }
 0x41b   : > { %v2477_v58 = vpop.f32.mrf.mxu2 }
 0x41c   : > { %v2478_v26 = vadd.f32 %v11512_v1, %v2477_v58  ;;  %v9191_v58 = vld [vmem:[#allocation17 + $0x20] sm:$0xff] }
 0x41e   : > { %v2526_v48 = vmul.f32 %v2478_v26, %v10852_v13 }
 0x420   : > { %v2558_v30 = vpack.c.bf16 %v2526_v48, %v2526_v48  ;;  %v9201_v48 = vld [vmem:[#allocation19 + $0x30] sm:$0xff] }
 0x422   : > { %v2809_v10 = vunpack.c.l.b16 %v2558_v30 }
 0x423   : > { %v2480_v44 = vpop.f32.mrf.mxu2 }
 0x424   : > { %v2481_v35 = vadd.f32 %v11512_v1, %v2480_v44  ;;  %v2814_v39 = vpack.c.b16 %v2809_v10, %v2808_v11  ;;  %v9190_v44 = vld [vmem:[#allocation17 + $0x18] sm:$0xff] }
 0x425   : > { %8612 = vmatmul.msk.bf16.gmra.mxu3 %vm2649_vm12, %v11600_v46 }
 0x426   : > { %v2527_v15 = vmul.f32 %v2481_v35, %v10863_v20 }
 0x428   : > { %v2559_v61 = vpack.c.bf16 %v2527_v15, %v2527_v15  ;;  %v9202_v15 = vld [vmem:[#allocation19 + $0x38] sm:$0xff] }
 0x429   : > { %3054 = vmatpush.bf16.msra.mxu0 %v9202_v15 }
 0x42a   : > { %v2810_v33 = vunpack.c.l.b16 %v2559_v61 }
 0x42b   : > { %v2482_v18 = vpop.f32.mrf.mxu2 }
 0x42c   : > { %v2483_v62 = vadd.f32 %v11512_v1, %v2482_v18  ;;  %v9188_v18 = vld [vmem:[#allocation17 + $0x8] sm:$0xff] }
 0x42d   : > { %3055 = vmatpush.bf16.msra.mxu0 %v9201_v48 }
 0x42e   : > { %v2528_v31 = vmul.f32 %v2483_v62, %v10875_v25  ;;  %v9200_v62 = vld [vmem:[#allocation19 + $0x28] sm:$0xff] }
 0x430   : > { %v2560_v51 = vpack.c.bf16 %v2528_v31, %v2528_v31  ;;  %v9199_v31 = vld [vmem:[#allocation19 + $0x20] sm:$0xff] }
 0x431   : > { %3056 = vmatpush.bf16.msra.mxu0 %v9200_v62 }
 0x432   : > { %v2811_v55 = vunpack.c.l.b16 %v2560_v51 }
 0x433   : > { %v11620_v47 = vpop.f32.mrf.mxu2 }
 0x434   : > { %v2815_v36 = vpack.c.b16 %v2811_v55, %v2810_v33  ;;  %v9196_v55 = vld [vmem:[#allocation19 + $0x8] sm:$0xff] }
 0x435   : > { %8613 = vmatmul.msk.bf16.gmra.mxu3 %vm2649_vm12, %v11617_v21  ;;  %3057 = vmatpush.bf16.msra.mxu0 %v9199_v31 }
 0x436   : > { %2824 = vmatpush.bf16.msrb.mxu1 %v2815_v36  ;;  %9304 = vmatpush.bf16.msrb.mxu2 %v2815_v36 }
 0x439   : > { %3058 = vmatpush.bf16.msra.mxu0 %v9198_v41 }
 0x43a   : > { %2825 = vmatpush.bf16.msrb.mxu1 %v2814_v39  ;;  %9305 = vmatpush.bf16.msrb.mxu2 %v2814_v39 }
 0x43b   : > { %v11626_v59 = vpop.f32.mrf.mxu2 }
 0x43d   : > { %3059 = vmatpush.bf16.msra.mxu0 %v9197_v22 }
 0x43e   : > { %2826 = vmatpush.bf16.msrb.mxu1 %v2813_v7  ;;  %9306 = vmatpush.bf16.msrb.mxu2 %v2813_v7  ;;  %v9195_v7 = vld [vmem:[#allocation19] sm:$0xff] }
 0x441   : > { %3060 = vmatpush.bf16.msra.mxu0 %v9196_v55 }
 0x442   : > { %2827 = vmatpush.bf16.msrb.mxu1 %v2812_v34  ;;  %9307 = vmatpush.bf16.msrb.mxu2 %v2812_v34 }
 0x443   : > { %v2490_v49 = vpop.f32.mrf.mxu2 }
 0x444   : > { %v2491_v40 = vadd.f32 %v11512_v1, %v2490_v49 }
 0x445   : > { %8616 = vmatmul.msk.bf16.vlgmr.msrb.gmra.mxu3 %vm2649_vm12, %v11563_v24  ;;  %8622 = vmatmul.msk.bf16.vlgmr.msrb.gmra.mxu1 %vm2649_vm12, %v11539_v37 }
 0x446   : > { %3191 = vmatpush.bf16.msra.mxu1 %v9194_v53  ;;  %8625 = vmatmul.msk.bf16.vlgmr.msrb.gmra.mxu2 %vm2649_vm12, %v11581_v43  ;;  %v2531_v38 = vmul.f32 %v2491_v40, %v10838_v3 }
 0x447   : > { %3061 = vmatpush.bf16.msra.mxu0 %v9195_v7 }
 0x448   : > { %v11634_v42 = vpop.f32.mrf.mxu3 }
 0x44a   : > { %3192 = vmatpush.bf16.msra.mxu1 %v9193_v8 }
 0x44b   : > { %v2492_v19 = vpop.f32.mrf.mxu2 }
 0x44c   : > { %v2493_v36 = vadd.f32 %v11512_v1, %v2492_v19 }
 0x44e   : > { %3193 = vmatpush.bf16.msra.mxu1 %v9192_v60  ;;  %v2532_v0 = vmul.f32 %v2493_v36, %v10844_v6 }
 0x450   : > { %v11636_v35 = vpop.f32.mrf.mxu3  ;;  %v2564_v34 = vpack.c.bf16 %v2532_v0, %v2532_v0 }
 0x452   : > { %3194 = vmatpush.bf16.msra.mxu1 %v9191_v58  ;;  %v2880_v60 = vunpack.c.l.b16 %v2564_v34 }
 0x453   : > { %v2495_v26 = vpop.f32.mrf.mxu2 }
 0x454   : > { %v2496_v23 = vadd.f32 %v11512_v1, %v2495_v26 }
 0x455   : > { %8617 = vmatmul.msk.bf16.gmra.mxu3 %vm2649_vm12, %v11581_v43  ;;  %8623 = vmatmul.msk.bf16.gmra.mxu1 %vm2649_vm12, %v11551_v12 }
 0x456   : > { %3195 = vmatpush.bf16.msra.mxu1 %v9190_v44  ;;  %8626 = vmatmul.msk.bf16.gmra.mxu2 %vm2649_vm12, %v11588_v54  ;;  %v2533_v52 = vmul.f32 %v2496_v23, %v10840_v4 }
 0x458   : > { %v11644_v16 = vpop.f32.mrf.mxu3  ;;  %v2565_v17 = vpack.c.bf16 %v2533_v52, %v2533_v52 }
 0x45a   : > { %3196 = vmatpush.bf16.msra.mxu1 %v9189_v63  ;;  %v2881_v3 = vunpack.c.l.b16 %v2565_v17 }
 0x45b   : > { %v2497_v9 = vpop.f32.mrf.mxu2 }
 0x45c   : > { %v2498_v30 = vadd.f32 %v11512_v1, %v2497_v9 }
 0x45e   : > { %3197 = vmatpush.bf16.msra.mxu1 %v9188_v18  ;;  %v2534_v10 = vmul.f32 %v2498_v30, %v10852_v13  ;;  %v2486_v13 = vadd.f32 %v11512_v1, %v11620_v47  ;;  %v2563_v47 = vpack.c.bf16 %v2531_v38, %v2531_v38 }
 0x460   : > { %v11646_v61 = vpop.f32.mrf.mxu3  ;;  %v2566_v50 = vpack.c.bf16 %v2534_v10, %v2534_v10  ;;  %v2879_v58 = vunpack.c.l.b16 %v2563_v47 }
 0x462   : > { %3198 = vmatpush.bf16.msra.mxu1 %v9187_v27  ;;  %v2882_v6 = vunpack.c.l.b16 %v2566_v50 }
 0x463   : > { %v2500_v45 = vpop.f32.mrf.mxu2 }
 0x464   : > { %v2501_v51 = vadd.f32 %v11512_v1, %v2500_v45  ;;  %v2887_v19 = vpack.c.b16 %v2882_v6, %v2881_v3 }
 0x465   : > { %8618 = vmatmul.msk.bf16.gmra.mxu3 %vm2649_vm12, %v11588_v54  ;;  %8624 = vmatmul.msk.bf16.gmra.mxu1 %vm2649_vm12, %v11563_v24 }
 0x466   : > { %8627 = vmatmul.msk.bf16.gmra.mxu2 %vm2649_vm12, %v11594_v56  ;;  %v2535_v33 = vmul.f32 %v2501_v51, %v10863_v20  ;;  %v2488_v20 = vadd.f32 %v11512_v1, %v11626_v59 }
 0x468   : > { %v11656_v32 = vpop.f32.mrf.mxu3  ;;  %v2567_v11 = vpack.c.bf16 %v2535_v33, %v2535_v33  ;;  %v2530_v59 = vmul.f32 %v2488_v20, %v10842_v5 }
 0x46a   : > { %v2883_v4 = vunpack.c.l.b16 %v2567_v11  ;;  %v2562_v8 = vpack.c.bf16 %v2530_v59, %v2530_v59 }
 0x46b   : > { %v2502_v29 = vpop.f32.mrf.mxu2 }
 0x46c   : > { %v2503_v14 = vadd.f32 %v11512_v1, %v2502_v29  ;;  %v2529_v1 = vmul.f32 %v2486_v13, %v10836_v2  ;;  %v2878_v44 = vunpack.c.l.b16 %v2562_v8  ;;  %v2943_v2 = vpack.c.bf16 %v11646_v61, %v11644_v16 }
 0x46e   : > { %v2536_v39 = vmul.f32 %v2503_v14, %v10875_v25  ;;  %v2942_v25 = vpack.c.bf16 %v11636_v35, %v11634_v42  ;;  %v2561_v5 = vpack.c.bf16 %v2529_v1, %v2529_v1  ;;  %v2886_v35 = vpack.c.b16 %v2880_v60, %v2879_v58 }
 0x470   : > { %v2568_v28 = vpack.c.bf16 %v2536_v39, %v2536_v39  ;;  %v2695_v57 = vpop.f32.mrf.mxu3  ;;  %v2877_v26 = vunpack.c.l.b16 %v2561_v5 }
 0x471   : > { %v2944_v9 = vpack.c.bf16 %v2695_v57, %v11656_v32 }
 0x472   : > { %v2884_v53 = vunpack.c.l.b16 %v2568_v28  ;;  %v2885_v15 = vpack.c.b16 %v2878_v44, %v2877_v26 }
 0x474   : > { %v2888_v49 = vpack.c.b16 %v2884_v53, %v2883_v4 }
 0x475   : > { %8619 = vmatmul.msk.bf16.gmra.mxu3 %vm2649_vm12, %v11594_v56  ;;  %3199 = vmatmul.bf16.vlgmr.msra.gmra.mxu1 %v2942_v25 }
 0x476   : > { %2897 = vmatpush.bf16.msra.mxu3 %v2888_v49  ;;  %8628 = vmatmul.msk.bf16.gmra.mxu2 %vm2649_vm12, %v11600_v46 }
 0x478   : > { %v2698_v42 = vpop.f32.mrf.mxu3 }
 0x47a   : > { %2898 = vmatpush.bf16.msra.mxu3 %v2887_v19 }
 0x47e   : > { %2899 = vmatpush.bf16.msra.mxu3 %v2886_v35 }
 0x480   : > { %v2700_v63 = vpop.f32.mrf.mxu3 }
 0x481   : > { %v2945_v41 = vpack.c.bf16 %v2700_v63, %v2698_v42 }
 0x482   : > { %2900 = vmatpush.bf16.msra.mxu3 %v2885_v15  ;;  %v2756_v16 = vpop.f32.mrf.mxu0 }
 0x485   : > { %8620 = vmatmul.msk.bf16.gmra.mxu3 %vm2649_vm12, %v11600_v46  ;;  %3204 = vmatmul.bf16.gmra.mxu1 %v2943_v2 }
 0x486   : > { %8629 = vmatmul.msk.bf16.gmra.mxu2 %vm2649_vm12, %v11617_v21 }
 0x488   : > { %v2703_v18 = vpop.f32.mrf.mxu3 }
 0x48a   : > { %v2758_v51 = vpop.f32.mrf.mxu0 }
 0x48b   : > { %v2946_v23 = vpack.c.bf16 %v2758_v51, %v2756_v16  ;;  %v11708_v16 = vld [vmem:[%s14875_s4] ss:$0 sm:$0xff]  ;;  %s14889_s4 = sld [smem:[#allocation66_spill]] }
 0x490   : > { %v2705_v48 = vpop.f32.mrf.mxu3 }
 0x491   : > { %v2974_v62 = vpack.c.bf16 %v2705_v48, %v2703_v18 }
 0x492   : > { %v2761_v32 = vpop.f32.mrf.mxu0 }
 0x493   : > { %3062 = vmatmul.bf16.vlgmr.msra.gmra.mxu0 %v2974_v62 }
 0x495   : > { %8621 = vmatmul.msk.bf16.gmra.mxu3 %vm2649_vm12, %v11617_v21  ;;  %3209 = vmatmul.bf16.gmra.mxu1 %v2944_v9 }
 0x498   : > { %v2708_v27 = vpop.f32.mrf.mxu3 }
 0x49a   : > { %v2763_v55 = vpop.f32.mrf.mxu0 }
 0x49b   : > { %v2947_v10 = vpack.c.bf16 %v2763_v55, %v2761_v32 }
 0x4a0   : > { %v2710_v31 = vpop.f32.mrf.mxu3 }
 0x4a1   : > { %v2975_v61 = vpack.c.bf16 %v2710_v31, %v2708_v27  ;;  %v11705_v31 = vpop.permute.xlu2 %3358 }
 0x4a3   : > { %3067 = vmatmul.bf16.gmra.mxu0 %v2975_v61 }
 0x4a5   : > { %8630 = vmatmul.msk.bf16.vlgmr.msra.gmra.mxu3 %vm2649_vm12, %v11539_v37  ;;  %3214 = vmatmul.bf16.gmra.mxu1 %v2945_v41 }
 0x4a8   : > { %v2713_v45 = vpop.f32.mrf.mxu3 }
 0x4b0   : > { %v2715_v30 = vpop.f32.mrf.mxu3 }
 0x4b1   : > { %v2976_v22 = vpack.c.bf16 %v2715_v30, %v2713_v45 }
 0x4b3   : > { %3072 = vmatmul.bf16.gmra.mxu0 %v2976_v22 }
 0x4b5   : > { %8631 = vmatmul.msk.bf16.gmra.mxu3 %vm2649_vm12, %v11551_v12  ;;  %3219 = vmatmul.bf16.gmra.mxu1 %v2946_v23  ;;  %v11713_v23 = vpop.permute.xlu0 %3363 }
 0x4b8   : > { %v2718_v33 = vpop.f32.mrf.mxu3 }
 0x4c0   : > { %v2720_v29 = vpop.f32.mrf.mxu3 }
 0x4c1   : > { %v2977_v36 = vpack.c.bf16 %v2720_v29, %v2718_v33 }
 0x4c2   : > { %v2829_v14 = vpop.f32.mrf.mxu1 }
 0x4c3   : > { %3077 = vmatmul.bf16.gmra.mxu0 %v2977_v36 }
 0x4c5   : > { %8632 = vmatmul.msk.bf16.gmra.mxu3 %vm2649_vm12, %v11563_v24  ;;  %3224 = vmatmul.bf16.gmra.mxu1 %v2947_v10  ;;  %v11718_v10 = vpop.permute.xlu1 %3368 }
 0x4c8   : > { %v2766_v37 = vpop.f32.mrf.mxu3 }
 0x4c9   : > { %v2844_v59 = vpop.f32.mrf.mxu2 }
 0x4ca   : > { %v2831_v40 = vpop.f32.mrf.mxu1 }
 0x4cb   : > { %v2950_v7 = vpack.c.bf16 %v2831_v40, %v2829_v14 }
 0x4d0   : > { %v2768_v52 = vpop.f32.mrf.mxu3 }
 0x4d1   : > { %v2948_v11 = vpack.c.bf16 %v2768_v52, %v2766_v37  ;;  %v11721_v52 = vpop.permute.xlu2 %3373 }
 0x4d2   : > { %v2834_v39 = vpop.f32.mrf.mxu1 }
 0x4d5   : > { %8633 = vmatmul.msk.bf16.gmra.mxu3 %vm2649_vm12, %v11581_v43  ;;  %3229 = vmatmul.bf16.gmra.mxu1 %v2948_v11 }
 0x4d8   : > { %v2771_v12 = vpop.f32.mrf.mxu3 }
 0x4da   : > { %v2836_v50 = vpop.f32.mrf.mxu1 }
 0x4db   : > { %v2951_v25 = vpack.c.bf16 %v2836_v50, %v2834_v39 }
 0x4e0   : > { %v2773_v20 = vpop.f32.mrf.mxu3 }
 0x4e1   : > { %v2949_v0 = vpack.c.bf16 %v2773_v20, %v2771_v12 }
 0x4e2   : > { %v2839_v24 = vpop.f32.mrf.mxu1 }
 0x4e5   : > { %8634 = vmatmul.msk.bf16.gmra.mxu3 %vm2649_vm12, %v11588_v54  ;;  %3234 = vmatmul.bf16.gmra.mxu1 %v2949_v0 }
 0x4e8   : > { %v2776_v28 = vpop.f32.mrf.mxu3 }
 0x4ea   : > { %v2841_v43 = vpop.f32.mrf.mxu1 }
 0x4eb   : > { %v2952_v47 = vpack.c.bf16 %v2841_v43, %v2839_v24 }
 0x4f0   : > { %v2778_v57 = vpop.f32.mrf.mxu3 }
 0x4f1   : > { %v2978_v13 = vpack.c.bf16 %v2778_v57, %v2776_v28 }
 0x4f2   : > { %v3200_v4 = vpop.f32.mrf.mxu1 }
 0x4f3   : > { %3082 = vmatmul.bf16.gmra.mxu0 %v2978_v13 }
 0x4f5   : > { %8635 = vmatmul.msk.bf16.gmra.mxu3 %vm2649_vm12, %v11594_v56  ;;  %3239 = vmatmul.bf16.gmra.mxu1 %v2950_v7  ;;  %v2846_v56 = vpop.f32.mrf.mxu2 }
 0x4f6   : > { %v2953_v58 = vpack.c.bf16 %v2846_v56, %v2844_v59 }
 0x4f8   : > { %v2781_v38 = vpop.f32.mrf.mxu3 }
 0x4fa   : > { %v3202_v34 = vpop.f32.mrf.mxu1 }
 0x4fd   : > { %v2849_v42 = vpop.f32.mrf.mxu2 }
 0x500   : > { %v2783_v17 = vpop.f32.mrf.mxu3 }
 0x501   : > { %v2979_v53 = vpack.c.bf16 %v2783_v17, %v2781_v38 }
 0x502   : > { %v3205_v3 = vpop.f32.mrf.mxu1 }
 0x503   : > { %3087 = vmatmul.bf16.gmra.mxu0 %v2979_v53  ;;  %v11729_v53 = vpop.permute.xlu0 %3378 }
 0x505   : > { %8636 = vmatmul.msk.bf16.gmra.mxu3 %vm2649_vm12, %v11600_v46  ;;  %3244 = vmatmul.bf16.gmra.mxu1 %v2951_v25  ;;  %v2851_v35 = vpop.f32.mrf.mxu2 }
 0x506   : > { %v2982_v2 = vpack.c.bf16 %v2851_v35, %v2849_v42  ;;  %v11736_v42 = vpop.permute.xlu2 %3388 }
 0x508   : > { %v2786_v54 = vpop.f32.mrf.mxu3 }
 0x50a   : > { %v3207_v19 = vpop.f32.mrf.mxu1 }
 0x50b   : > { %v11740_v35 = vpop.permute.xlu0 %3393 }
 0x50d   : > { %v2854_v62 = vpop.f32.mrf.mxu2 }
 0x510   : > { %v2788_v6 = vpop.f32.mrf.mxu3  ;;  %v3063_v49 = vpop.f32.mrf.mxu0 }
 0x511   : > { %v2980_v1 = vpack.c.bf16 %v2788_v6, %v2786_v54  ;;  %v3201_v61 = vadd.f32 %v3200_v4, %v3063_v49 }
 0x512   : > { %v3210_v15 = vpop.f32.mrf.mxu1 }
 0x513   : > { %3092 = vmatmul.bf16.gmra.mxu0 %v2980_v1  ;;  %v3284_v32 = vadd.f32 %v11708_v16, %v3201_v61 }
 0x515   : > { %8637 = vmatmul.msk.bf16.gmra.mxu3 %vm2649_vm12, %v11617_v21  ;;  %3249 = vmatmul.bf16.gmra.mxu1 %v2952_v47  ;;  %v2856_v36 = vpop.f32.mrf.mxu2  ;;  %v3316_v11 = vmax.f32 %v3284_v32, 0.0 }
 0x516   : > { %v2983_v20 = vpack.c.bf16 %v2856_v36, %v2854_v62 }
 0x517   : > { %v3396_v43 = vmul.f32 %v11705_v31, %v3316_v11 }
 0x518   : > { %v2791_v8 = vpop.f32.mrf.mxu3  ;;  %v3065_v60 = vpop.f32.mrf.mxu0 }
 0x519   : > { %v3203_v9 = vadd.f32 %v3202_v34, %v3065_v60  ;;  %v11732_v34 = vpop.permute.xlu1 %3383 }
 0x51a   : > { %v3212_v27 = vpop.f32.mrf.mxu1 }
 0x51b   : > { %v11711_v45 = vadd.f32 %v11708_v16, %v3203_v9 }
 0x51d   : > { %v3317_v29 = vmax.f32 %v11711_v45, 0.0 }
 0x51f   : > { %v3397_v0 = vmul.f32 %v11713_v23, %v3317_v29 }
 0x520   : > { %v2793_v46 = vpop.f32.mrf.mxu3  ;;  %v3068_v5 = vpop.f32.mrf.mxu0 }
 0x521   : > { %v2981_v44 = vpack.c.bf16 %v2793_v46, %v2791_v8  ;;  %v3206_v41 = vadd.f32 %v3205_v3, %v3068_v5  ;;  %v3428_v25 = vadd.f32 %v3397_v0, %v3396_v43 }
 0x522   : > { %v3215_v40 = vpop.f32.mrf.mxu1 }
 0x523   : > { %3097 = vmatmul.bf16.gmra.mxu0 %v2981_v44  ;;  %v3286_v33 = vadd.f32 %v11708_v16, %v3206_v41 }
 0x525   : > { %3254 = vmatmul.bf16.gmra.mxu1 %v2953_v58  ;;  %v3318_v12 = vmax.f32 %v3286_v33, 0.0 }
 0x527   : > { %v3398_v38 = vmul.f32 %v11718_v10, %v3318_v12 }
 0x528   : > { %v2902_v26 = vpop.f32.mrf.mxu3  ;;  %v3070_v63 = vpop.f32.mrf.mxu0 }
 0x529   : > { %v3208_v22 = vadd.f32 %v3207_v19, %v3070_v63  ;;  %v3429_v6 = vadd.f32 %v3428_v25, %v3398_v38 }
 0x52a   : > { %v3217_v47 = vpop.f32.mrf.mxu1 }
 0x52b   : > { %v3287_v14 = vadd.f32 %v11708_v16, %v3208_v22 }
 0x52d   : > { %v3319_v24 = vmax.f32 %v3287_v14, 0.0 }
 0x52f   : > { %v3399_v54 = vmul.f32 %v11721_v52, %v3319_v24 }
 0x530   : > { %v2904_v18 = vpop.f32.mrf.mxu3  ;;  %v3073_v48 = vpop.f32.mrf.mxu0 }
 0x531   : > { %v2954_v21 = vpack.c.bf16 %v2904_v18, %v2902_v26  ;;  %v3211_v55 = vadd.f32 %v3210_v15, %v3073_v48  ;;  %v3430_v3 = vadd.f32 %v3429_v6, %v3399_v54 }
 0x533   : > { %3102 = vmatmul.bf16.gmra.mxu0 %v2982_v2  ;;  %v3288_v39 = vadd.f32 %v11708_v16, %v3211_v55 }
 0x535   : > { %3259 = vmatmul.bf16.gmra.mxu1 %v2954_v21  ;;  %v3320_v17 = vmax.f32 %v3288_v39, 0.0  ;;  %v2859_v21 = vpop.f32.mrf.mxu2 }
 0x537   : > { %v3400_v49 = vmul.f32 %v11729_v53, %v3320_v17 }
 0x538   : > { %v2907_v51 = vpop.f32.mrf.mxu3  ;;  %v3075_v30 = vpop.f32.mrf.mxu0 }
 0x539   : > { %v3213_v37 = vadd.f32 %v3212_v27, %v3075_v30  ;;  %v3431_v19 = vadd.f32 %v3430_v3, %v3400_v49  ;;  %v11743_v27 = vpop.f32.mrf.mxu1 }
 0x53b   : > { %v3289_v57 = vadd.f32 %v11708_v16, %v3213_v37 }
 0x53d   : > { %v3321_v59 = vmax.f32 %v3289_v57, 0.0  ;;  %v2861_v33 = vpop.f32.mrf.mxu2 }
 0x53e   : > { %v2984_v57 = vpack.c.bf16 %v2861_v33, %v2859_v21 }
 0x53f   : > { %v3401_v8 = vmul.f32 %v11732_v34, %v3321_v59 }
 0x540   : > { %v2909_v50 = vpop.f32.mrf.mxu3  ;;  %v3078_v28 = vpop.f32.mrf.mxu0 }
 0x541   : > { %v2955_v13 = vpack.c.bf16 %v2909_v50, %v2907_v51  ;;  %v3216_v7 = vadd.f32 %v3215_v40, %v3078_v28  ;;  %v3432_v58 = vadd.f32 %v3431_v19, %v3401_v8 }
 0x543   : > { %v3290_v4 = vadd.f32 %v11708_v16, %v3216_v7  ;;  %3107 = vmatmul.bf16.gmra.mxu0 %v2983_v20 }
 0x545   : > { %3264 = vmatmul.bf16.gmra.mxu1 %v2955_v13  ;;  %v3322_v1 = vmax.f32 %v3290_v4, 0.0 }
 0x547   : > { %v3402_v46 = vmul.f32 %v11736_v42, %v3322_v1 }
 0x548   : > { %v3080_v56 = vpop.f32.mrf.mxu0  ;;  %v2912_v62 = vpop.f32.mrf.mxu3 }
 0x549   : > { %v3218_v60 = vadd.f32 %v3217_v47, %v3080_v56  ;;  %v3433_v26 = vadd.f32 %v3432_v58, %v3402_v46 }
 0x54b   : > { %v3291_v5 = vadd.f32 %v11708_v16, %v3218_v60 }
 0x54d   : > { %v3323_v44 = vmax.f32 %v3291_v5, 0.0 }
 0x54f   : > { %v3403_v63 = vmul.f32 %v11740_v35, %v3323_v44 }
 0x550   : > { %v2914_v55 = vpop.f32.mrf.mxu3 }
 0x551   : > { %v3434_v15 = vadd.f32 %v3433_v26, %v3403_v63  ;;  %v2956_v63 = vpack.c.bf16 %v2914_v55, %v2912_v62  ;;  %v9207_v55 = vld [vmem:[#allocation20 + $0x20] sm:$0xff] }
 0x553   : > { %v3435_v2 = vrot.slane %v3434_v15, 4  ;;  %3112 = vmatmul.bf16.gmra.mxu0 %v2984_v57  ;;  %v9205_v57 = vld [vmem:[#allocation20 + $0x10] sm:$0xff] }
 0x555   : > { %v3436_v18 = vadd.f32 %v3435_v2, %v3434_v15  ;;  %v9210_v2 = vld [vmem:[#allocation20 + $0x38] sm:$0xff]  ;;  %3269 = vmatmul.bf16.gmra.mxu1 %v2956_v63 }
 0x556   : > { %3868 = vmatpush.bf16.msrb.mxu3 %v9210_v2 }
 0x557   : > { %v3437_v48 = vrot.slane %v3436_v18, 2 }
 0x558   : > { %v2917_v4 = vpop.f32.mrf.mxu3 }
 0x559   : > { %v3438_v9 = vadd.f32 %v3437_v48, %v3436_v18 }
 0x55b   : > { %v3439_v61 = vrot.slane %v3438_v9, 1 }
 0x55d   : > { %v3440_v41 = vadd.f32 %v3439_v61, %v3438_v9  ;;  %v9209_v9 = vld [vmem:[#allocation20 + $0x30] sm:$0xff] }
 0x55e   : > { %3869 = vmatpush.bf16.msrb.mxu3 %v9209_v9 }
 0x55f   : > { %v3480_v45 = vmul.f32 0.025, %v3440_v41 }
 0x560   : > { %v2919_v46 = vpop.f32.mrf.mxu3 }
 0x561   : > { %v11745_v51 = vsub.f32 %v3316_v11, %v3480_v45  ;;  %v11747_v30 = vsub.f32 %v3317_v29, %v3480_v45  ;;  %v11749_v22 = vsub.f32 %v3318_v12, %v3480_v45  ;;  %v11751_v32 = vsub.f32 %v3319_v24, %v3480_v45  ;;  %v11761_v11 = vpop.f32.mrf.mxu1 }
 0x562   : > { %v11753_v36 = vsub.f32 %v3320_v17, %v3480_v45  ;;  %v11763_v29 = vsub.f32 %v3321_v59, %v3480_v45  ;;  %v11769_v0 = vsub.f32 %v3322_v1, %v3480_v45  ;;  %v11774_v13 = vsub.f32 %v3323_v44, %v3480_v45  ;;  %v2864_v17 = vpop.f32.mrf.mxu2  ;;  %v9208_v45 = vld [vmem:[#allocation20 + $0x28] sm:$0xff] }
 0x563   : > { %v3516_v14 = vmul.f32 %v11745_v51, %v11745_v51  ;;  %v3517_v37 = vmul.f32 %v11747_v30, %v11747_v30  ;;  %v3518_v40 = vmul.f32 %v11749_v22, %v11749_v22  ;;  %v3519_v12 = vmul.f32 %v11751_v32, %v11751_v32  ;;  %3870 = vmatpush.bf16.msrb.mxu3 %v9208_v45 }
 0x564   : > { %v3520_v50 = vmul.f32 %v11753_v36, %v11753_v36  ;;  %v3521_v7 = vmul.f32 %v11763_v29, %v11763_v29  ;;  %v3522_v25 = vmul.f32 %v11769_v0, %v11769_v0  ;;  %v3523_v6 = vmul.f32 %v11774_v13, %v11774_v13 }
 0x565   : > { %v3548_v39 = vmul.f32 %v3516_v14, %v11705_v31  ;;  %v3549_v20 = vmul.f32 %v3517_v37, %v11713_v23  ;;  %v3550_v28 = vmul.f32 %v3518_v40, %v11718_v10  ;;  %v3551_v43 = vmul.f32 %v3519_v12, %v11721_v52 }
 0x566   : > { %v3552_v54 = vmul.f32 %v3520_v50, %v11729_v53  ;;  %v3553_v49 = vmul.f32 %v3521_v7, %v11732_v34  ;;  %v3554_v56 = vmul.f32 %v3522_v25, %v11736_v42  ;;  %v3555_v8 = vmul.f32 %v3523_v6, %v11740_v35  ;;  %v9206_v50 = vld [vmem:[#allocation20 + $0x18] sm:$0xff]  ;;  %v9204_v25 = vld [vmem:[#allocation20 + $0x8] sm:$0xff] }
 0x567   : > { %v3580_v24 = vadd.f32 %v3549_v20, %v3548_v39  ;;  %v2957_v39 = vpack.c.bf16 %v2919_v46, %v2917_v4  ;;  %3871 = vmatpush.bf16.msrb.mxu3 %v9207_v55 }
 0x568   : > { %v2922_v21 = vpop.f32.mrf.mxu3 }
 0x569   : > { %v3581_v38 = vadd.f32 %v3580_v24, %v3550_v28  ;;  %v11785_v47 = vpop.f32.mrf.mxu1  ;;  %3274 = vmatmul.bf16.gmra.mxu1 %v2957_v39 }
 0x56a   : > { %v2866_v19 = vpop.f32.mrf.mxu2 }
 0x56b   : > { %v3582_v59 = vadd.f32 %v3581_v38, %v3551_v43  ;;  %v2985_v44 = vpack.c.bf16 %v2866_v19, %v2864_v17  ;;  %3872 = vmatpush.bf16.msrb.mxu3 %v9206_v50 }
 0x56d   : > { %v3583_v1 = vadd.f32 %v3582_v59, %v3552_v54  ;;  %3117 = vmatmul.bf16.gmra.mxu0 %v2985_v44 }
 0x56f   : > { %v3584_v3 = vadd.f32 %v3583_v1, %v3553_v49  ;;  %3873 = vmatpush.bf16.msrb.mxu3 %v9205_v57  ;;  %v9203_v49 = vld [vmem:[#allocation20] sm:$0xff] }
 0x570   : > { %v11789_v15 = vpop.f32.mrf.mxu0  ;;  %v2924_v62 = vpop.f32.mrf.mxu3 }
 0x571   : > { %v3585_v60 = vadd.f32 %v3584_v3, %v3554_v56  ;;  %v11791_v18 = vpop.f32.mrf.mxu1  ;;  %v2986_v20 = vpack.c.bf16 %v2924_v62, %v2922_v21  ;;  %v11794_v3 = vld [vmem:[%s14876_s16] ss:$0 sm:$0xff]  ;;  %s14890_s16 = sld [smem:[#allocation69_spill]] }
 0x573   : > { %v3586_v5 = vadd.f32 %v3585_v60, %v3555_v8  ;;  %3874 = vmatpush.bf16.msrb.mxu3 %v9204_v25 }
 0x575   : > { %v3587_v58 = vrot.slane %v3586_v5, 4 }
 0x577   : > { %v3588_v26 = vadd.f32 %v3587_v58, %v3586_v5  ;;  %3875 = vmatpush.bf16.msrb.mxu3 %v9203_v49  ;;  %v11803_v58 = vld [vmem:[%s14877_s13] ss:$0 sm:$0xff]  ;;  %s14891_s13 = sld [smem:[#allocation67_spill]] }
 0x578   : > { %v3085_v14 = vpop.f32.mrf.mxu0  ;;  %v2927_v24 = vpop.f32.mrf.mxu3 }
 0x579   : > { %v3589_v48 = vrot.slane %v3588_v26, 2  ;;  %v3230_v40 = vpop.f32.mrf.mxu1  ;;  %v3223_v21 = vadd.f32 %v11761_v11, %v3085_v14 }
 0x57b   : > { %v3590_v61 = vadd.f32 %v3589_v48, %v3588_v26  ;;  %v11814_v45 = vadd.f32 %v11708_v16, %v3223_v21 }
 0x57d   : > { %v3591_v41 = vrot.slane %v3590_v61, 1  ;;  %3122 = vmatmul.bf16.gmra.mxu0 %v2986_v20 }
 0x57f   : > { %v3592_v33 = vadd.f32 %v3591_v41, %v3590_v61 }
 0x580   : > { %v3088_v28 = vpop.f32.mrf.mxu0  ;;  %v2929_v4 = vpop.f32.mrf.mxu3 }
 0x581   : > { %v3632_v37 = vmul.f32 0.025, %v3592_v33  ;;  %v3232_v38 = vpop.f32.mrf.mxu1  ;;  %v2987_v56 = vpack.c.bf16 %v2929_v4, %v2927_v24 }
 0x583   : > { %v3636_v12 = vadd.f32 1e-05, %v3632_v37 }
 0x585   : > { %9593 = vrsqrt.f32 %v3636_v12  ;;  %vm3646_vm14 = vweird.f32 %v3636_v12 }
 0x588   : > { %v3090_v54 = vpop.f32.mrf.mxu0  ;;  %v2932_v63 = vpop.f32.mrf.mxu3 }
 0x589   : > { %v3235_v60 = vpop.f32.mrf.mxu1  ;;  %v3228_v33 = vadd.f32 %v11791_v18, %v3090_v54 }
 0x58b   : > { %v9594_v7 = vpop.eup %9593 }
 0x58c   : > { %v3641_v43 = vmul.f32 %v9594_v7, %v3636_v12  ;;  %vm3647_vm13 = vweird.f32 %v9594_v7 }
 0x58d   : > { %vm3648_vm15 = vmor %vm3646_vm14, %vm3647_vm13  ;;  %3127 = vmatmul.bf16.gmra.mxu0 %v2987_v56 }
 0x58e   : > { %v3642_v17 = vmul.f32 %v9594_v7, %v3641_v43 }
 0x590   : > { %v3643_v59 = vmul.f32 0.5, %v3642_v17  ;;  %v3093_v19 = vpop.f32.mrf.mxu0  ;;  %v2934_v11 = vpop.f32.mrf.mxu3 }
 0x591   : > { %v3237_v41 = vpop.f32.mrf.mxu1  ;;  %v3231_v14 = vadd.f32 %v3230_v40, %v3093_v19  ;;  %v2988_v55 = vpack.c.bf16 %v2934_v11, %v2932_v63 }
 0x592   : > { %v3644_v6 = vsub.f32 1.5, %v3643_v59 }
 0x593   : > { %v11830_v18 = vadd.f32 %v11708_v16, %v3231_v14 }
 0x594   : > { %v3645_v1 = vmul.f32 %v9594_v7, %v3644_v6 }
 0x595   : > { %v3328_v25 = vmax.f32 %v11830_v18, 0.0 }
 0x596   : > { %v11796_v8 = vsel %vm3648_vm15, %v9594_v7, %v3645_v1 }
 0x597   : > { %v3680_v46 = vmul.f32 %v11796_v8, %v11745_v51  ;;  %v3681_v5 = vmul.f32 %v11796_v8, %v11747_v30  ;;  %v3221_v51 = vadd.f32 %v11743_v27, %v11789_v15  ;;  %v3226_v30 = vadd.f32 %v11785_v47, %v3088_v28 }
 0x598   : > { %v3095_v61 = vpop.f32.mrf.mxu0  ;;  %v3325_v27 = vmax.f32 %v11814_v45, 0.0  ;;  %v11825_v47 = vadd.f32 %v11708_v16, %v3228_v33  ;;  %v3682_v57 = vmul.f32 %v11796_v8, %v11749_v22  ;;  %v3683_v7 = vmul.f32 %v11796_v8, %v11751_v32  ;;  %v2937_v54 = vpop.f32.mrf.mxu3 }
 0x599   : > { %v3716_v44 = vmul.f32 %v11794_v3, %v3680_v46  ;;  %v3717_v26 = vmul.f32 %v11794_v3, %v3681_v5  ;;  %v11818_v37 = vadd.f32 %v11708_v16, %v3221_v51  ;;  %v11821_v62 = vadd.f32 %v11708_v16, %v3226_v30 }
 0x59a   : > { %v3233_v15 = vadd.f32 %v3232_v38, %v3095_v61  ;;  %v3405_v50 = vmul.f32 %v11713_v23, %v3325_v27  ;;  %v3327_v40 = vmax.f32 %v11825_v47, 0.0  ;;  %v11846_v38 = vpop.f32.mrf.mxu1  ;;  %v3718_v22 = vmul.f32 %v11794_v3, %v3682_v57 }
 0x59b   : > { %v3752_v2 = vadd.f32 %v11803_v58, %v3716_v44  ;;  %v3753_v48 = vadd.f32 %v11803_v58, %v3717_v26  ;;  %v3324_v12 = vmax.f32 %v11818_v37, 0.0  ;;  %v3326_v39 = vmax.f32 %v11821_v62, 0.0 }
 0x59c   : > { %v11837_v28 = vadd.f32 %v11708_v16, %v3233_v15  ;;  %v3719_v32 = vmul.f32 %v11794_v3, %v3683_v7  ;;  %v3407_v4 = vmul.f32 %v11721_v52, %v3327_v40  ;;  %v3754_v1 = vadd.f32 %v11803_v58, %v3718_v22 }
 0x59d   : > { %v3784_v9 = vpack.c.bf16 %v3753_v48, %v3752_v2  ;;  %3132 = vmatmul.bf16.gmra.mxu0 %v2988_v55  ;;  %v3404_v43 = vmul.f32 %v11705_v31, %v3324_v12  ;;  %v3406_v17 = vmul.f32 %v11718_v10, %v3326_v39  ;;  %v3408_v19 = vmul.f32 %v11729_v53, %v3328_v25 }
 0x59e   : > { %v3329_v49 = vmax.f32 %v11837_v28, 0.0  ;;  %v3755_v56 = vadd.f32 %v11803_v58, %v3719_v32  ;;  %v3684_v30 = vmul.f32 %v11796_v8, %v11753_v36  ;;  %v3685_v61 = vmul.f32 %v11796_v8, %v11763_v29 }
 0x59f   : > { %3876 = vmatmul.bf16.vlgmr.msrb.gmra.mxu3 %v3784_v9  ;;  %v3441_v6 = vadd.f32 %v3405_v50, %v3404_v43  ;;  %v3687_v22 = vmul.f32 %v11796_v8, %v11774_v13  ;;  %v3686_v32 = vmul.f32 %v11796_v8, %v11769_v0 }
 0x5a0   : > { %v3098_v20 = vpop.f32.mrf.mxu0  ;;  %v3785_v44 = vpack.c.bf16 %v3755_v56, %v3754_v1  ;;  %v3409_v63 = vmul.f32 %v11732_v34, %v3329_v49  ;;  %v2939_v21 = vpop.f32.mrf.mxu3  ;;  %v3720_v18 = vmul.f32 %v11794_v3, %v3684_v30 }
 0x5a1   : > { %v3236_v24 = vadd.f32 %v3235_v60, %v3098_v20  ;;  %v3442_v60 = vadd.f32 %v3441_v6, %v3406_v17  ;;  %v2989_v15 = vpack.c.bf16 %v2939_v21, %v2937_v54  ;;  %v3721_v20 = vmul.f32 %v11794_v3, %v3685_v61 }
 0x5a2   : > { %v11872_v33 = vpop.f32.mrf.mxu1  ;;  %v3756_v36 = vadd.f32 %v11803_v58, %v3720_v18  ;;  %v3722_v1 = vmul.f32 %v11794_v3, %v3686_v32  ;;  %v3723_v56 = vmul.f32 %v11794_v3, %v3687_v22 }
 0x5a3   : > { %v11853_v59 = vadd.f32 %v11708_v16, %v3236_v24  ;;  %v3443_v26 = vadd.f32 %v3442_v60, %v3407_v4  ;;  %v3757_v24 = vadd.f32 %v11803_v58, %v3721_v20 }
 0x5a4   : > { %v3758_v62 = vadd.f32 %v11803_v58, %v3722_v1 }
 0x5a5   : > { %v3330_v46 = vmax.f32 %v11853_v59, 0.0  ;;  %v3444_v48 = vadd.f32 %v3443_v26, %v3408_v19  ;;  %v3786_v43 = vpack.c.bf16 %v3757_v24, %v3756_v36 }
 0x5a7   : > { %v3410_v9 = vmul.f32 %v11736_v42, %v3330_v46  ;;  %v3445_v11 = vadd.f32 %v3444_v48, %v3409_v63 }
 0x5a8   : > { %v3100_v5 = vpop.f32.mrf.mxu0 }
 0x5a9   : > { %v3238_v2 = vadd.f32 %v3237_v41, %v3100_v5  ;;  %v3446_v55 = vadd.f32 %v3445_v11, %v3410_v9 }
 0x5aa   : > { %v11879_v57 = vpop.f32.mrf.mxu1 }
 0x5ab   : > { %v3299_v51 = vadd.f32 %v11708_v16, %v3238_v2 }
 0x5ad   : > { %v3331_v14 = vmax.f32 %v3299_v51, 0.0  ;;  %3137 = vmatmul.bf16.gmra.mxu0 %v2989_v15 }
 0x5af   : > { %3881 = vmatmul.bf16.gmra.mxu3 %v3785_v44  ;;  %v3411_v41 = vmul.f32 %v11740_v35, %v3331_v14 }
 0x5b0   : > { %v3103_v59 = vpop.f32.mrf.mxu0 }
 0x5b1   : > { %v3447_v50 = vadd.f32 %v3446_v55, %v3411_v41 }
 0x5b2   : > { %v3247_v60 = vpop.f32.mrf.mxu1 }
 0x5b3   : > { %v3448_v28 = vrot.slane %v3447_v50, 4 }
 0x5b5   : > { %v3449_v29 = vadd.f32 %v3448_v28, %v3447_v50 }
 0x5b7   : > { %v3450_v7 = vrot.slane %v3449_v29, 2 }
 0x5b9   : > { %v3451_v17 = vadd.f32 %v3450_v7, %v3449_v29 }
 0x5ba   : > { %v3250_v61 = vpop.f32.mrf.mxu1 }
 0x5bb   : > { %v3452_v54 = vrot.slane %v3451_v17, 1 }
 0x5bd   : > { %v3453_v6 = vadd.f32 %v3452_v54, %v3451_v17 }
 0x5bf   : > { %3886 = vmatmul.bf16.gmra.mxu3 %v3786_v43  ;;  %v3481_v4 = vmul.f32 0.025, %v3453_v6 }
 0x5c1   : > { %v11889_v19 = vsub.f32 %v3324_v12, %v3481_v4  ;;  %v11893_v5 = vsub.f32 %v3325_v27, %v3481_v4  ;;  %v11897_v13 = vsub.f32 %v3326_v39, %v3481_v4  ;;  %v11901_v0 = vsub.f32 %v3327_v40, %v3481_v4  ;;  %v3105_v27 = vpop.f32.mrf.mxu0 }
 0x5c2   : > { %v11903_v8 = vsub.f32 %v3328_v25, %v3481_v4  ;;  %v3759_v12 = vadd.f32 %v11803_v58, %v3723_v56  ;;  %v11913_v39 = vsub.f32 %v3329_v49, %v3481_v4  ;;  %v11919_v26 = vsub.f32 %v3330_v46, %v3481_v4  ;;  %v3252_v29 = vpop.f32.mrf.mxu1 }
 0x5c3   : > { %v3524_v44 = vmul.f32 %v11889_v19, %v11889_v19  ;;  %v3525_v37 = vmul.f32 %v11893_v5, %v11893_v5  ;;  %v3526_v45 = vmul.f32 %v11897_v13, %v11897_v13  ;;  %v3527_v47 = vmul.f32 %v11901_v0, %v11901_v0 }
 0x5c4   : > { %v3528_v63 = vmul.f32 %v11903_v8, %v11903_v8  ;;  %v3787_v21 = vpack.c.bf16 %v3759_v12, %v3758_v62  ;;  %v11924_v9 = vsub.f32 %v3331_v14, %v3481_v4  ;;  %v3529_v49 = vmul.f32 %v11913_v39, %v11913_v39 }
 0x5c5   : > { %v3556_v40 = vmul.f32 %v3524_v44, %v11705_v31  ;;  %v3557_v25 = vmul.f32 %v3525_v37, %v11713_v23  ;;  %v3558_v2 = vmul.f32 %v3526_v45, %v11718_v10  ;;  %v3559_v51 = vmul.f32 %v3527_v47, %v11721_v52 }
 0x5c6   : > { %v3530_v46 = vmul.f32 %v11919_v26, %v11919_v26  ;;  %v3560_v11 = vmul.f32 %v3528_v63, %v11729_v53  ;;  %v3531_v41 = vmul.f32 %v11924_v9, %v11924_v9  ;;  %v3561_v14 = vmul.f32 %v3529_v49, %v11732_v34 }
 0x5c7   : > { %v3593_v48 = vadd.f32 %v3557_v25, %v3556_v40  ;;  %v3243_v37 = vadd.f32 %v11872_v33, %v3105_v27  ;;  %v3241_v45 = vadd.f32 %v11846_v38, %v3103_v59 }
 0x5c8   : > { %v3562_v20 = vmul.f32 %v3530_v46, %v11736_v42  ;;  %v3563_v28 = vmul.f32 %v3531_v41, %v11740_v35 }
 0x5c9   : > { %v3594_v30 = vadd.f32 %v3593_v48, %v3558_v2  ;;  %v3108_v55 = vpop.f32.mrf.mxu0  ;;  %v11941_v40 = vadd.f32 %v11708_v16, %v3243_v37  ;;  %v11944_v63 = vadd.f32 %v11708_v16, %v3241_v45 }
 0x5ca   : > { %v3255_v6 = vpop.f32.mrf.mxu1  ;;  %v3246_v62 = vadd.f32 %v11879_v57, %v3108_v55 }
 0x5cb   : > { %v3595_v15 = vadd.f32 %v3594_v30, %v3559_v51  ;;  %v3333_v27 = vmax.f32 %v11941_v40, 0.0  ;;  %v3332_v59 = vmax.f32 %v11944_v63, 0.0 }
 0x5cc   : > { %v11947_v2 = vadd.f32 %v11708_v16, %v3246_v62 }
 0x5cd   : > { %v3596_v18 = vadd.f32 %v3595_v15, %v3560_v11  ;;  %v3412_v41 = vmul.f32 %v11705_v31, %v3332_v59 }
 0x5ce   : > { %v3334_v49 = vmax.f32 %v11947_v2, 0.0 }
 0x5cf   : > { %3891 = vmatmul.bf16.gmra.mxu3 %v3787_v21  ;;  %v3597_v50 = vadd.f32 %v3596_v18, %v3561_v14 }
 0x5d0   : > { %v3414_v14 = vmul.f32 %v11718_v10, %v3334_v49 }
 0x5d1   : > { %v3598_v36 = vadd.f32 %v3597_v50, %v3562_v20  ;;  %v3110_v43 = vpop.f32.mrf.mxu0 }
 0x5d2   : > { %v3257_v12 = vpop.f32.mrf.mxu1  ;;  %v3248_v25 = vadd.f32 %v3247_v60, %v3110_v43 }
 0x5d3   : > { %v3599_v24 = vadd.f32 %v3598_v36, %v3563_v28 }
 0x5d4   : > { %v11951_v38 = vadd.f32 %v11708_v16, %v3248_v25 }
 0x5d5   : > { %v3600_v7 = vrot.slane %v3599_v24, 4 }
 0x5d6   : > { %v3335_v46 = vmax.f32 %v11951_v38, 0.0 }
 0x5d7   : > { %v3601_v17 = vadd.f32 %v3600_v7, %v3599_v24 }
 0x5d8   : > { %v3415_v36 = vmul.f32 %v11721_v52, %v3335_v46 }
 0x5d9   : > { %v3602_v54 = vrot.slane %v3601_v17, 2  ;;  %v3113_v1 = vpop.f32.mrf.mxu0 }
 0x5da   : > { %v3251_v48 = vadd.f32 %v3250_v61, %v3113_v1  ;;  %v3413_v61 = vmul.f32 %v11713_v23, %v3333_v27  ;;  %v11965_v55 = vpop.f32.mrf.mxu1 }
 0x5db   : > { %v3603_v22 = vadd.f32 %v3602_v54, %v3601_v17 }
 0x5dc   : > { %v11956_v60 = vadd.f32 %v11708_v16, %v3251_v48  ;;  %v3454_v28 = vadd.f32 %v3413_v61, %v3412_v41 }
 0x5dd   : > { %v3604_v32 = vrot.slane %v3603_v22, 1 }
 0x5de   : > { %v3336_v18 = vmax.f32 %v11956_v60, 0.0 }
 0x5df   : > { %v3605_v4 = vadd.f32 %v3604_v32, %v3603_v22 }
 0x5e0   : > { %v3416_v7 = vmul.f32 %v11729_v53, %v3336_v18 }
 0x5e1   : > { %v3633_v56 = vmul.f32 0.025, %v3605_v4  ;;  %v3115_v47 = vpop.f32.mrf.mxu0 }
 0x5e2   : > { %v3253_v57 = vadd.f32 %v3252_v29, %v3115_v47  ;;  %v3455_v29 = vadd.f32 %v3454_v28, %v3414_v14  ;;  %v11994_v45 = vpop.f32.mrf.mxu1 }
 0x5e3   : > { %v3637_v44 = vadd.f32 1e-05, %v3633_v56 }
 0x5e4   : > { %v11963_v11 = vadd.f32 %v11708_v16, %v3253_v57  ;;  %v3456_v22 = vadd.f32 %v3455_v29, %v3415_v36 }
 0x5e5   : > { %9595 = vrsqrt.f32 %v3637_v44  ;;  %vm3656_vm1 = vweird.f32 %v3637_v44 }
 0x5e6   : > { %v3337_v24 = vmax.f32 %v11963_v11, 0.0  ;;  %v3457_v4 = vadd.f32 %v3456_v22, %v3416_v7 }
 0x5e8   : > { %v3417_v32 = vmul.f32 %v11732_v34, %v3337_v24 }
 0x5ea   : > { %v3118_v30 = vpop.f32.mrf.mxu0  ;;  %v3458_v62 = vadd.f32 %v3457_v4, %v3417_v32  ;;  %v12016_v28 = vpop.f32.mrf.mxu1 }
 0x5eb   : > { %v9596_v21 = vpop.eup %9595  ;;  %v3256_v15 = vadd.f32 %v3255_v6, %v3118_v30 }
 0x5ec   : > { %v3651_v33 = vmul.f32 %v9596_v21, %v3637_v44  ;;  %vm3657_vm0 = vweird.f32 %v9596_v21 }
 0x5ed   : > { %v11975_v20 = vadd.f32 %v11708_v16, %v3256_v15  ;;  %vm3658_vm2 = vmor %vm3656_vm1, %vm3657_vm0 }
 0x5ee   : > { %v3652_v51 = vmul.f32 %v9596_v21, %v3651_v33 }
 0x5ef   : > { %v3338_v43 = vmax.f32 %v11975_v20, 0.0 }
 0x5f0   : > { %v3653_v50 = vmul.f32 0.5, %v3652_v51 }
 0x5f1   : > { %v3418_v1 = vmul.f32 %v11736_v42, %v3338_v43 }
 0x5f2   : > { %v3654_v17 = vsub.f32 1.5, %v3653_v50  ;;  %v3120_v54 = vpop.f32.mrf.mxu0 }
 0x5f3   : > { %v3258_v6 = vadd.f32 %v3257_v12, %v3120_v54  ;;  %v3459_v25 = vadd.f32 %v3458_v62, %v3418_v1 }
 0x5f4   : > { %v3655_v37 = vmul.f32 %v9596_v21, %v3654_v17 }
 0x5f5   : > { %v11992_v56 = vadd.f32 %v11708_v16, %v3258_v6 }
 0x5f6   : > { %v11998_v48 = vsel %vm3658_vm2, %v9596_v21, %v3655_v37 }
 0x5f7   : > { %v3339_v47 = vmax.f32 %v11992_v56, 0.0  ;;  %v3688_v30 = vmul.f32 %v11998_v48, %v11889_v19  ;;  %v3689_v61 = vmul.f32 %v11998_v48, %v11893_v5  ;;  %v3690_v15 = vmul.f32 %v11998_v48, %v11897_v13 }
 0x5f8   : > { %v3691_v44 = vmul.f32 %v11998_v48, %v11901_v0  ;;  %v3692_v21 = vmul.f32 %v11998_v48, %v11903_v8  ;;  %v3693_v41 = vmul.f32 %v11998_v48, %v11913_v39 }
 0x5f9   : > { %v3419_v12 = vmul.f32 %v11740_v35, %v3339_v47  ;;  %v3724_v50 = vmul.f32 %v11794_v3, %v3688_v30  ;;  %v3725_v19 = vmul.f32 %v11794_v3, %v3689_v61  ;;  %v3726_v5 = vmul.f32 %v11794_v3, %v3690_v15 }
 0x5fa   : > { %v12000_v33 = vpop.f32.mrf.mxu0  ;;  %v3727_v13 = vmul.f32 %v11794_v3, %v3691_v44  ;;  %v3728_v36 = vmul.f32 %v11794_v3, %v3692_v21  ;;  %v3729_v0 = vmul.f32 %v11794_v3, %v3693_v41 }
 0x5fb   : > { %v3460_v57 = vadd.f32 %v3459_v25, %v3419_v12  ;;  %v3760_v8 = vadd.f32 %v11803_v58, %v3724_v50  ;;  %v3761_v39 = vadd.f32 %v11803_v58, %v3725_v19  ;;  %v3762_v17 = vadd.f32 %v11803_v58, %v3726_v5  ;;  %v3267_v12 = vpop.f32.mrf.mxu1 }
 0x5fc   : > { %v3763_v54 = vadd.f32 %v11803_v58, %v3727_v13  ;;  %v3764_v22 = vadd.f32 %v11803_v58, %v3728_v36  ;;  %v3765_v32 = vadd.f32 %v11803_v58, %v3729_v0 }
 0x5fd   : > { %v3461_v51 = vrot.slane %v3460_v57, 4  ;;  %v3788_v4 = vpack.c.bf16 %v3761_v39, %v3760_v8 }
 0x5fe   : > { %v3789_v1 = vpack.c.bf16 %v3763_v54, %v3762_v17  ;;  %v3790_v56 = vpack.c.bf16 %v3765_v32, %v3764_v22 }
 0x5ff   : > { %v3462_v14 = vadd.f32 %v3461_v51, %v3460_v57  ;;  %3896 = vmatmul.bf16.gmra.mxu3 %v3788_v4  ;;  %v3261_v4 = vadd.f32 %v11965_v55, %v12000_v33  ;;  %v3695_v55 = vmul.f32 %v11998_v48, %v11924_v9 }
 0x601   : > { %v3463_v29 = vrot.slane %v3462_v14, 2 }
 0x602   : > { %v3125_v7 = vpop.f32.mrf.mxu0 }
 0x603   : > { %v3464_v6 = vadd.f32 %v3463_v29, %v3462_v14  ;;  %v3270_v19 = vpop.f32.mrf.mxu1  ;;  %v3263_v32 = vadd.f32 %v11994_v45, %v3125_v7 }
 0x605   : > { %v3465_v37 = vrot.slane %v3464_v6, 1 }
 0x607   : > { %v3466_v62 = vadd.f32 %v3465_v37, %v3464_v6 }
 0x609   : > { %v3482_v25 = vmul.f32 0.025, %v3466_v62  ;;  %v12087_v62 = vadd.f32 %v11708_v16, %v3263_v32 }
 0x60a   : > { %v3128_v57 = vpop.f32.mrf.mxu0 }
 0x60b   : > { %v12030_v51 = vsub.f32 %v3332_v59, %v3482_v25  ;;  %v12034_v30 = vsub.f32 %v3333_v27, %v3482_v25  ;;  %v12038_v61 = vsub.f32 %v3334_v49, %v3482_v25  ;;  %v12042_v15 = vsub.f32 %v3335_v46, %v3482_v25  ;;  %v3272_v22 = vpop.f32.mrf.mxu1 }
 0x60c   : > { %v12046_v44 = vsub.f32 %v3336_v18, %v3482_v25  ;;  %v12056_v2 = vsub.f32 %v3337_v24, %v3482_v25  ;;  %v12064_v60 = vsub.f32 %v3338_v43, %v3482_v25  ;;  %v12069_v24 = vsub.f32 %v3339_v47, %v3482_v25 }
 0x60d   : > { %v3532_v63 = vmul.f32 %v12030_v51, %v12030_v51  ;;  %v3533_v40 = vmul.f32 %v12034_v30, %v12034_v30  ;;  %v3534_v27 = vmul.f32 %v12038_v61, %v12038_v61  ;;  %v3535_v38 = vmul.f32 %v12042_v15, %v12042_v15 }
 0x60e   : > { %v3536_v46 = vmul.f32 %v12046_v44, %v12046_v44  ;;  %v3537_v41 = vmul.f32 %v12056_v2, %v12056_v2  ;;  %v3538_v20 = vmul.f32 %v12064_v60, %v12064_v60  ;;  %v3539_v13 = vmul.f32 %v12069_v24, %v12069_v24 }
 0x60f   : > { %v3564_v59 = vmul.f32 %v3532_v63, %v11705_v31  ;;  %v3565_v49 = vmul.f32 %v3533_v40, %v11713_v23  ;;  %v3566_v18 = vmul.f32 %v3534_v27, %v11718_v10  ;;  %v3567_v14 = vmul.f32 %v3535_v38, %v11721_v52  ;;  %3901 = vmatmul.bf16.gmra.mxu3 %v3789_v1 }
 0x610   : > { %v3568_v43 = vmul.f32 %v3536_v46, %v11729_v53  ;;  %v3569_v47 = vmul.f32 %v3537_v41, %v11732_v34  ;;  %v3570_v0 = vmul.f32 %v3538_v20, %v11736_v42  ;;  %v3571_v39 = vmul.f32 %v3539_v13, %v11740_v35 }
 0x611   : > { %v3606_v21 = vadd.f32 %v3565_v49, %v3564_v59  ;;  %v3266_v37 = vadd.f32 %v12016_v28, %v3128_v57  ;;  %v12090_v27 = vadd.f32 %v11708_v16, %v3261_v4  ;;  %v3341_v28 = vmax.f32 %v12087_v62, 0.0 }
 0x612   : > { %v3130_v11 = vpop.f32.mrf.mxu0 }
 0x613   : > { %v3607_v50 = vadd.f32 %v3606_v21, %v3566_v18  ;;  %v3268_v40 = vadd.f32 %v3267_v12, %v3130_v11  ;;  %v12093_v59 = vadd.f32 %v11708_v16, %v3266_v37  ;;  %v3275_v33 = vpop.f32.mrf.mxu1  ;;  %v3694_v12 = vmul.f32 %v11998_v48, %v11919_v26 }
 0x614   : > { %v3340_v18 = vmax.f32 %v12090_v27, 0.0  ;;  %v3421_v11 = vmul.f32 %v11713_v23, %v3341_v28  ;;  %v3731_v48 = vmul.f32 %v11794_v3, %v3695_v55 }
 0x615   : > { %v3608_v5 = vadd.f32 %v3607_v50, %v3567_v14  ;;  %v12103_v49 = vadd.f32 %v11708_v16, %v3268_v40  ;;  %v3730_v26 = vmul.f32 %v11794_v3, %v3694_v12 }
 0x617   : > { %v3609_v36 = vadd.f32 %v3608_v5, %v3568_v43  ;;  %v3343_v50 = vmax.f32 %v12103_v49, 0.0  ;;  %v3420_v43 = vmul.f32 %v11705_v31, %v3340_v18 }
 0x619   : > { %v3610_v29 = vadd.f32 %v3609_v36, %v3569_v47 }
 0x61a   : > { %v3133_v8 = vpop.f32.mrf.mxu0 }
 0x61b   : > { %v3611_v17 = vadd.f32 %v3610_v29, %v3570_v0  ;;  %v3271_v45 = vadd.f32 %v3270_v19, %v3133_v8  ;;  %v3766_v0 = vadd.f32 %v11803_v58, %v3730_v26  ;;  %v3767_v29 = vadd.f32 %v11803_v58, %v3731_v48 }
 0x61c   : > { %v3467_v8 = vadd.f32 %v3421_v11, %v3420_v43 }
 0x61d   : > { %v3612_v54 = vadd.f32 %v3611_v17, %v3571_v39  ;;  %v12108_v9 = vadd.f32 %v11708_v16, %v3271_v45  ;;  %v3423_v39 = vmul.f32 %v11721_v52, %v3343_v50  ;;  %v3791_v40 = vpack.c.bf16 %v3767_v29, %v3766_v0 }
 0x61f   : > { %v3613_v6 = vrot.slane %v3612_v54, 4  ;;  %3906 = vmatmul.bf16.gmra.mxu3 %v3790_v56  ;;  %v3342_v56 = vmax.f32 %v12093_v59, 0.0  ;;  %v3344_v47 = vmax.f32 %v12108_v9, 0.0 }
 0x621   : > { %v3614_v1 = vadd.f32 %v3613_v6, %v3612_v54  ;;  %v3422_v13 = vmul.f32 %v11718_v10, %v3342_v56  ;;  %v3277_v54 = vpop.f32.mrf.mxu1  ;;  %v3424_v6 = vmul.f32 %v11729_v53, %v3344_v47 }
 0x622   : > { %v3135_v25 = vpop.f32.mrf.mxu0  ;;  %v12098_v7 = vpop.f32.mrf.mxu3 }
 0x623   : > { %v3615_v63 = vrot.slane %v3614_v1, 2  ;;  %v3273_v46 = vadd.f32 %v3272_v22, %v3135_v25  ;;  %v3468_v32 = vadd.f32 %v3467_v8, %v3422_v13 }
 0x625   : > { %v3616_v38 = vadd.f32 %v3615_v63, %v3614_v1  ;;  %v12117_v19 = vadd.f32 %v11708_v16, %v3273_v46  ;;  %v3469_v37 = vadd.f32 %v3468_v32, %v3423_v39 }
 0x627   : > { %v3617_v57 = vrot.slane %v3616_v38, 1  ;;  %v3345_v17 = vmax.f32 %v12117_v19, 0.0  ;;  %v3470_v45 = vadd.f32 %v3469_v37, %v3424_v6 }
 0x629   : > { %v3618_v21 = vadd.f32 %v3617_v57, %v3616_v38  ;;  %v3425_v25 = vmul.f32 %v11732_v34, %v3345_v17 }
 0x62a   : > { %v3138_v41 = vpop.f32.mrf.mxu0  ;;  %v12135_v22 = vpop.f32.mrf.mxu3 }
 0x62b   : > { %v3634_v14 = vmul.f32 0.025, %v3618_v21  ;;  %v3276_v20 = vadd.f32 %v3275_v33, %v3138_v41  ;;  %v3471_v57 = vadd.f32 %v3470_v45, %v3425_v25 }
 0x62d   : > { %v3638_v5 = vadd.f32 1e-05, %v3634_v14  ;;  %v12127_v36 = vadd.f32 %v11708_v16, %v3276_v20 }
 0x62f   : > { %9597 = vrsqrt.f32 %v3638_v5  ;;  %v3346_v4 = vmax.f32 %v12127_v36, 0.0  ;;  %3911 = vmatmul.bf16.gmra.mxu3 %v3791_v40  ;;  %vm3666_vm4 = vweird.f32 %v3638_v5 }
 0x631   : > { %v3426_v55 = vmul.f32 %v11736_v42, %v3346_v4 }
 0x632   : > { %v3140_v1 = vpop.f32.mrf.mxu0  ;;  %v12151_v11 = vpop.f32.mrf.mxu3 }
 0x633   : > { %v3278_v63 = vadd.f32 %v3277_v54, %v3140_v1  ;;  %v3472_v41 = vadd.f32 %v3471_v57, %v3426_v55 }
 0x635   : > { %v9598_v38 = vpop.eup %9597  ;;  %v12148_v33 = vadd.f32 %v11708_v16, %v3278_v63 }
 0x636   : > { %v3661_v12 = vmul.f32 %v9598_v38, %v3638_v5  ;;  %vm3667_vm3 = vweird.f32 %v9598_v38 }
 0x637   : > { %v3347_v46 = vmax.f32 %v12148_v33, 0.0  ;;  %vm3668_vm5 = vmor %vm3666_vm4, %vm3667_vm3 }
 0x638   : > { %v3662_v21 = vmul.f32 %v9598_v38, %v3661_v12 }
 0x639   : > { %v3427_v26 = vmul.f32 %v11740_v35, %v3347_v46 }
 0x63a   : > { %v3663_v48 = vmul.f32 0.5, %v3662_v21  ;;  %v12156_v29 = vpop.f32.mrf.mxu3 }
 0x63b   : > { %v3473_v14 = vadd.f32 %v3472_v41, %v3427_v26 }
 0x63c   : > { %v3664_v20 = vsub.f32 1.5, %v3663_v48 }
 0x63d   : > { %v3474_v43 = vrot.slane %v3473_v14, 4 }
 0x63e   : > { %v3665_v16 = vmul.f32 %v9598_v38, %v3664_v20 }
 0x63f   : > { %v3475_v13 = vadd.f32 %v3474_v43, %v3473_v14 }
 0x640   : > { %v3669_v0 = vsel %vm3668_vm5, %v9598_v38, %v3665_v16 }
 0x641   : > { %v3476_v8 = vrot.slane %v3475_v13, 2  ;;  %v3696_v39 = vmul.f32 %v3669_v0, %v12030_v51  ;;  %v3697_v54 = vmul.f32 %v3669_v0, %v12034_v30  ;;  %v3698_v32 = vmul.f32 %v3669_v0, %v12038_v61 }
 0x642   : > { %v3699_v6 = vmul.f32 %v3669_v0, %v12042_v15  ;;  %v3700_v1 = vmul.f32 %v3669_v0, %v12046_v44  ;;  %v3701_v5 = vmul.f32 %v3669_v0, %v12056_v2  ;;  %v3703_v30 = vmul.f32 %v3669_v0, %v12069_v24  ;;  %v3887_v24 = vpop.f32.mrf.mxu3 }
 0x643   : > { %v3477_v37 = vadd.f32 %v3476_v8, %v3475_v13  ;;  %v3732_v25 = vmul.f32 %v11794_v3, %v3696_v39  ;;  %v3733_v63 = vmul.f32 %v11794_v3, %v3697_v54  ;;  %v3734_v40 = vmul.f32 %v11794_v3, %v3698_v32 }
 0x644   : > { %v3735_v38 = vmul.f32 %v11794_v3, %v3699_v6  ;;  %v3736_v51 = vmul.f32 %v11794_v3, %v3700_v1  ;;  %v3737_v44 = vmul.f32 %v11794_v3, %v3701_v5  ;;  %v3702_v48 = vmul.f32 %v3669_v0, %v12064_v60 }
 0x645   : > { %v3478_v61 = vrot.slane %v3477_v37, 1  ;;  %v3768_v15 = vadd.f32 %v11803_v58, %v3732_v25  ;;  %v3769_v45 = vadd.f32 %v11803_v58, %v3733_v63  ;;  %v3770_v55 = vadd.f32 %v11803_v58, %v3734_v40 }
 0x646   : > { %v3771_v2 = vadd.f32 %v11803_v58, %v3735_v38  ;;  %v12176_v12 = vadd.f32 %v11803_v58, %v3736_v51  ;;  %v12179_v21 = vadd.f32 %v11803_v58, %v3737_v44  ;;  %v3739_v43 = vmul.f32 %v11794_v3, %v3703_v30  ;;  %v12249_v51 = vld [vmem:[%s14878_s15] ss:$0 sm:$0xff]  ;;  %s14892_s15 = sld [smem:[#allocation68_spill]] }
 0x647   : > { %v3479_v57 = vadd.f32 %v3478_v61, %v3477_v37  ;;  %v3792_v41 = vpack.c.bf16 %v3769_v45, %v3768_v15  ;;  %v3738_v0 = vmul.f32 %v11794_v3, %v3702_v48 }
 0x648   : > { %v3793_v26 = vpack.c.bf16 %v3771_v2, %v3770_v55  ;;  %v3794_v20 = vpack.c.bf16 %v12179_v21, %v12176_v12 }
 0x649   : > { %v3483_v14 = vmul.f32 0.025, %v3479_v57  ;;  %3916 = vmatmul.bf16.gmra.mxu3 %v3792_v41  ;;  %v12231_v32 = vadd.f32 %v11803_v58, %v3738_v0  ;;  %v3888_v41 = vadd.f32 %v12249_v51, %v3887_v24  ;;  %v3885_v0 = vadd.f32 %v12249_v51, %v12156_v29 }
 0x64b   : > { %v12187_v16 = vsub.f32 %v3340_v18, %v3483_v14  ;;  %v12191_v13 = vsub.f32 %v3341_v28, %v3483_v14  ;;  %v12195_v8 = vsub.f32 %v3342_v56, %v3483_v14  ;;  %v12199_v60 = vsub.f32 %v3343_v50, %v3483_v14 }
 0x64c   : > { %v12204_v39 = vsub.f32 %v3344_v47, %v3483_v14  ;;  %v12213_v28 = vadd.f32 %v11803_v58, %v3739_v43  ;;  %v12217_v49 = vsub.f32 %v3345_v17, %v3483_v14  ;;  %v12225_v50 = vsub.f32 %v3346_v4, %v3483_v14  ;;  %v3889_v47 = vpop.f32.mrf.mxu3 }
 0x64d   : > { %v3540_v27 = vmul.f32 %v12187_v16, %v12187_v16  ;;  %v3541_v62 = vmul.f32 %v12191_v13, %v12191_v13  ;;  %v3542_v59 = vmul.f32 %v12195_v8, %v12195_v8  ;;  %v3543_v18 = vmul.f32 %v12199_v60, %v12199_v60 }
 0x64e   : > { %v3544_v54 = vmul.f32 %v12204_v39, %v12204_v39  ;;  %v12235_v6 = vsub.f32 %v3347_v46, %v3483_v14  ;;  %v3545_v36 = vmul.f32 %v12217_v49, %v12217_v49  ;;  %v3795_v37 = vpack.c.bf16 %v12213_v28, %v12231_v32 }
 0x64f   : > { %v3572_v56 = vmul.f32 %v3540_v27, %v11705_v31  ;;  %v3573_v9 = vmul.f32 %v3541_v62, %v11713_v23  ;;  %v3574_v19 = vmul.f32 %v3542_v59, %v11718_v10  ;;  %v3575_v4 = vmul.f32 %v3543_v18, %v11721_v52 }
 0x650   : > { %v3546_v25 = vmul.f32 %v12225_v50, %v12225_v50  ;;  %v3576_v5 = vmul.f32 %v3544_v54, %v11729_v53  ;;  %v3547_v33 = vmul.f32 %v12235_v6, %v12235_v6  ;;  %v3577_v46 = vmul.f32 %v3545_v36, %v11732_v34 }
 0x651   : > { %v3619_v17 = vadd.f32 %v3573_v9, %v3572_v56  ;;  %v3890_v2 = vadd.f32 %v12249_v51, %v3889_v47  ;;  %v3883_v62 = vadd.f32 %v12249_v51, %v12151_v11  ;;  %v3961_v18 = vmul.f32 %v3888_v41, %v11729_v53 }
 0x652   : > { %v3578_v30 = vmul.f32 %v3546_v25, %v11736_v42  ;;  %v3579_v15 = vmul.f32 %v3547_v33, %v11740_v35  ;;  %v3880_v9 = vadd.f32 %v12249_v51, %v12135_v22  ;;  %v3960_v54 = vmul.f32 %v3885_v0, %v11721_v52 }
 0x653   : > { %v3620_v1 = vadd.f32 %v3619_v17, %v3574_v19  ;;  %v3878_v17 = vadd.f32 %v12249_v51, %v12098_v7  ;;  %v3959_v36 = vmul.f32 %v3883_v62, %v11718_v10 }
 0x654   : > { %v3892_v38 = vpop.f32.mrf.mxu3  ;;  %v3992_v33 = vpack.c.bf16 %v3960_v54, %v3960_v54 }
 0x655   : > { %v3621_v63 = vadd.f32 %v3620_v1, %v3575_v4  ;;  %v3893_v45 = vadd.f32 %v12249_v51, %v3892_v38  ;;  %v3993_v4 = vpack.c.bf16 %v3961_v18, %v3961_v18  ;;  %v3991_v7 = vpack.c.bf16 %v3959_v36, %v3959_v36 }
 0x657   : > { %v3622_v40 = vadd.f32 %v3621_v63, %v3576_v5  ;;  %v3963_v48 = vmul.f32 %v3893_v45, %v11736_v42  ;;  %v3958_v5 = vmul.f32 %v3880_v9, %v11713_v23 }
 0x659   : > { %v3623_v61 = vadd.f32 %v3622_v40, %v3577_v46  ;;  %3921 = vmatmul.bf16.gmra.mxu3 %v3793_v26  ;;  %v3962_v26 = vmul.f32 %v3890_v2, %v11732_v34  ;;  %v3995_v56 = vpack.c.bf16 %v3963_v48, %v3963_v48  ;;  %v3957_v40 = vmul.f32 %v3878_v17, %v11705_v31  ;;  %v12303_v17 = vld [vmem:[#allocation10 + $0x8] sm:$0xff] }
 0x65a   : > { %v4087_v2 = vunpack.c.l.b16 %v3991_v7  ;;  %v12315_v7 = vld [vmem:[#allocation10 + $0x18] sm:$0xff] }
 0x65b   : > { %v3624_v44 = vadd.f32 %v3623_v61, %v3578_v30  ;;  %v3994_v29 = vpack.c.bf16 %v3962_v26, %v3962_v26  ;;  %v4091_v1 = vunpack.c.l.b16 %v3995_v56  ;;  %v4089_v30 = vunpack.c.l.b16 %v3993_v4 }
 0x65c   : > { %v3894_v14 = vpop.f32.mrf.mxu3 }
 0x65d   : > { %v3625_v55 = vadd.f32 %v3624_v44, %v3579_v15  ;;  %v3895_v27 = vadd.f32 %v12249_v51, %v3894_v14  ;;  %v4090_v46 = vunpack.c.l.b16 %v3994_v29  ;;  %v3990_v15 = vpack.c.bf16 %v3958_v5, %v3958_v5  ;;  %v12276_v14 = vld [vmem:[#allocation10] sm:$0xff] }
 0x65e   : > { %v4088_v44 = vunpack.c.l.b16 %v3992_v33 }
 0x65f   : > { %v3626_v57 = vrot.slane %v3625_v55, 4  ;;  %v3964_v24 = vmul.f32 %v3895_v27, %v11740_v35  ;;  %v4095_v45 = vpack.c.b16 %v4090_v46, %v4089_v30 }
 0x660   : > { %v4094_v41 = vpack.c.b16 %v4088_v44, %v4087_v2 }
 0x661   : > { %v3627_v43 = vadd.f32 %v3626_v57, %v3625_v55  ;;  %v3996_v19 = vpack.c.bf16 %v3964_v24, %v3964_v24  ;;  %v3989_v55 = vpack.c.bf16 %v3957_v40, %v3957_v40  ;;  %v4086_v57 = vunpack.c.l.b16 %v3990_v15 }
 0x663   : > { %v3628_v59 = vrot.slane %v3627_v43, 2  ;;  %v4092_v25 = vunpack.c.l.b16 %v3996_v19  ;;  %v4085_v48 = vunpack.c.l.b16 %v3989_v55 }
 0x665   : > { %v3629_v47 = vadd.f32 %v3628_v59, %v3627_v43  ;;  %v4096_v22 = vpack.c.b16 %v4092_v25, %v4091_v1  ;;  %v4093_v21 = vpack.c.b16 %v4086_v57, %v4085_v48 }
 0x667   : > { %v3630_v11 = vrot.slane %v3629_v47, 1  ;;  %4129 = vmatpush.bf16.msra.mxu2 %v4096_v22  ;;  %v12311_v22 = vld [vmem:[#allocation10 + $0x10] sm:$0xff] }
 0x669   : > { %v3631_v63 = vadd.f32 %v3630_v11, %v3629_v47  ;;  %3926 = vmatmul.bf16.gmra.mxu3 %v3794_v20 }
 0x66b   : > { %v3635_v38 = vmul.f32 0.025, %v3631_v63  ;;  %4130 = vmatpush.bf16.msra.mxu2 %v4095_v45 }
 0x66d   : > { %v3639_v61 = vadd.f32 1e-05, %v3635_v38 }
 0x66f   : > { %9599 = vrsqrt.f32 %v3639_v61  ;;  %4131 = vmatpush.bf16.msra.mxu2 %v4094_v41  ;;  %vm3676_vm7 = vweird.f32 %v3639_v61 }
 0x673   : > { %4132 = vmatpush.bf16.msra.mxu2 %v4093_v21 }
 0x675   : > { %v9600_v12 = vpop.eup %9599 }
 0x676   : > { %v3671_v20 = vmul.f32 %v9600_v12, %v3639_v61  ;;  %8766 = vmatmul.msk.bf16.vlgmr.msra.gmra.mxu2 %vm2649_vm12, %v12276_v14  ;;  %vm3677_vm6 = vweird.f32 %v9600_v12  ;;  %v12319_v61 = vld [vmem:[#allocation10 + $0x20] sm:$0xff] }
 0x677   : > { %vm3678_vm8 = vmor %vm3676_vm7, %vm3677_vm6 }
 0x678   : > { %v3672_v43 = vmul.f32 %v9600_v12, %v3671_v20 }
 0x679   : > { %3931 = vmatmul.bf16.gmra.mxu3 %v3795_v37 }
 0x67a   : > { %v3673_v0 = vmul.f32 0.5, %v3672_v43 }
 0x67c   : > { %v3674_v26 = vsub.f32 1.5, %v3673_v0 }
 0x67e   : > { %v3675_v27 = vmul.f32 %v9600_v12, %v3674_v26 }
 0x680   : > { %v3679_v62 = vsel %vm3678_vm8, %v9600_v12, %v3675_v27 }
 0x681   : > { %v3711_v59 = vmul.f32 %v3679_v62, %v12235_v6  ;;  %v3704_v18 = vmul.f32 %v3679_v62, %v12187_v16  ;;  %v3705_v56 = vmul.f32 %v3679_v62, %v12191_v13  ;;  %v3706_v24 = vmul.f32 %v3679_v62, %v12195_v8 }
 0x682   : > { %v3707_v28 = vmul.f32 %v3679_v62, %v12199_v60  ;;  %v3708_v32 = vmul.f32 %v3679_v62, %v12204_v39  ;;  %v3709_v37 = vmul.f32 %v3679_v62, %v12217_v49  ;;  %v3710_v9 = vmul.f32 %v3679_v62, %v12225_v50 }
 0x683   : > { %v3740_v47 = vmul.f32 %v11794_v3, %v3704_v18  ;;  %v3741_v54 = vmul.f32 %v11794_v3, %v3705_v56  ;;  %v3742_v6 = vmul.f32 %v11794_v3, %v3706_v24  ;;  %v3747_v16 = vmul.f32 %v11794_v3, %v3711_v59  ;;  %v12336_v56 = vld [vmem:[#allocation10 + $0x28] sm:$0xff] }
 0x684   : > { %v3743_v13 = vmul.f32 %v11794_v3, %v3707_v28  ;;  %v3744_v8 = vmul.f32 %v11794_v3, %v3708_v32  ;;  %v3745_v60 = vmul.f32 %v11794_v3, %v3709_v37  ;;  %v3746_v39 = vmul.f32 %v11794_v3, %v3710_v9  ;;  %v3897_v3 = vpop.f32.mrf.mxu3 }
 0x685   : > { %v3776_v49 = vadd.f32 %v11803_v58, %v3740_v47  ;;  %v3777_v50 = vadd.f32 %v11803_v58, %v3741_v54  ;;  %v3778_v29 = vadd.f32 %v11803_v58, %v3742_v6  ;;  %v3783_v19 = vadd.f32 %v11803_v58, %v3747_v16 }
 0x686   : > { %v3779_v36 = vadd.f32 %v11803_v58, %v3743_v13  ;;  %v3780_v11 = vadd.f32 %v11803_v58, %v3744_v8  ;;  %v3781_v4 = vadd.f32 %v11803_v58, %v3745_v60  ;;  %v3782_v1 = vadd.f32 %v11803_v58, %v3746_v39  ;;  %8767 = vmatmul.msk.bf16.gmra.mxu2 %vm2649_vm12, %v12303_v17 }
 0x687   : > { %v3796_v25 = vpack.c.bf16 %v3777_v50, %v3776_v49  ;;  %v3898_v18 = vadd.f32 %v12249_v51, %v3897_v3  ;;  %v12343_v3 = vld [vmem:[#allocation10 + $0x30] sm:$0xff] }
 0x688   : > { %v3797_v5 = vpack.c.bf16 %v3779_v36, %v3778_v29  ;;  %v3798_v63 = vpack.c.bf16 %v3781_v4, %v3780_v11  ;;  %v3799_v33 = vpack.c.bf16 %v3783_v19, %v3782_v1 }
 0x689   : > { %3936 = vmatmul.bf16.gmra.mxu3 %v3796_v25  ;;  %v3965_v16 = vmul.f32 %v3898_v18, %v11705_v31 }
 0x68b   : > { %v3997_v29 = vpack.c.bf16 %v3965_v16, %v3965_v16 }
 0x68c   : > { %v3899_v46 = vpop.f32.mrf.mxu3 }
 0x68d   : > { %v3900_v26 = vadd.f32 %v12249_v51, %v3899_v46  ;;  %v4182_v4 = vunpack.c.l.b16 %v3997_v29 }
 0x68f   : > { %v3966_v9 = vmul.f32 %v3900_v26, %v11713_v23 }
 0x691   : > { %v3998_v60 = vpack.c.bf16 %v3966_v9, %v3966_v9 }
 0x693   : > { %v4183_v36 = vunpack.c.l.b16 %v3998_v60 }
 0x694   : > { %v3902_v40 = vpop.f32.mrf.mxu3 }
 0x695   : > { %v3903_v21 = vadd.f32 %v12249_v51, %v3902_v40  ;;  %v4190_v25 = vpack.c.b16 %v4183_v36, %v4182_v4 }
 0x696   : > { %8768 = vmatmul.msk.bf16.gmra.mxu2 %vm2649_vm12, %v12311_v22 }
 0x697   : > { %v3967_v24 = vmul.f32 %v3903_v21, %v11718_v10 }
 0x699   : > { %3941 = vmatmul.bf16.gmra.mxu3 %v3797_v5  ;;  %v3999_v13 = vpack.c.bf16 %v3967_v24, %v3967_v24 }
 0x69b   : > { %v4184_v19 = vunpack.c.l.b16 %v3999_v13 }
 0x69c   : > { %v3904_v38 = vpop.f32.mrf.mxu3 }
 0x69d   : > { %v3905_v41 = vadd.f32 %v12249_v51, %v3904_v38 }
 0x69f   : > { %v3968_v27 = vmul.f32 %v3905_v41, %v11721_v52 }
 0x6a1   : > { %v4000_v47 = vpack.c.bf16 %v3968_v27, %v3968_v27 }
 0x6a3   : > { %v4185_v39 = vunpack.c.l.b16 %v4000_v47 }
 0x6a4   : > { %v3907_v58 = vpop.f32.mrf.mxu3 }
 0x6a5   : > { %v3908_v55 = vadd.f32 %v12249_v51, %v3907_v58  ;;  %v4191_v11 = vpack.c.b16 %v4185_v39, %v4184_v19 }
 0x6a6   : > { %8769 = vmatmul.msk.bf16.gmra.mxu2 %vm2649_vm12, %v12315_v7 }
 0x6a7   : > { %v3969_v20 = vmul.f32 %v3908_v55, %v11729_v53 }
 0x6a9   : > { %3946 = vmatmul.bf16.gmra.mxu3 %v3798_v63  ;;  %v4001_v28 = vpack.c.bf16 %v3969_v20, %v3969_v20 }
 0x6ab   : > { %v4186_v8 = vunpack.c.l.b16 %v4001_v28 }
 0x6ac   : > { %v3909_v30 = vpop.f32.mrf.mxu3 }
 0x6ad   : > { %v3910_v45 = vadd.f32 %v12249_v51, %v3909_v30 }
 0x6af   : > { %v3970_v48 = vmul.f32 %v3910_v45, %v11732_v34 }
 0x6b1   : > { %v4002_v62 = vpack.c.bf16 %v3970_v48, %v3970_v48 }
 0x6b3   : > { %v4187_v54 = vunpack.c.l.b16 %v4002_v62 }
 0x6b4   : > { %v3912_v15 = vpop.f32.mrf.mxu3 }
 0x6b5   : > { %v3913_v44 = vadd.f32 %v12249_v51, %v3912_v15  ;;  %v4192_v50 = vpack.c.b16 %v4187_v54, %v4186_v8 }
 0x6b6   : > { %8770 = vmatmul.msk.bf16.gmra.mxu2 %vm2649_vm12, %v12319_v61 }
 0x6b7   : > { %v3971_v2 = vmul.f32 %v3913_v44, %v11736_v42 }
 0x6b9   : > { %3951 = vmatmul.bf16.gmra.mxu3 %v3799_v33  ;;  %v4003_v43 = vpack.c.bf16 %v3971_v2, %v3971_v2  ;;  %v12347_v33 = vld [vmem:[#allocation10 + $0x38] sm:$0xff] }
 0x6bb   : > { %v4188_v32 = vunpack.c.l.b16 %v4003_v43 }
 0x6bc   : > { %v3914_v57 = vpop.f32.mrf.mxu3 }
 0x6bd   : > { %v3915_v12 = vadd.f32 %v12249_v51, %v3914_v57 }
 0x6bf   : > { %v3972_v0 = vmul.f32 %v3915_v12, %v11740_v35 }
 0x6c1   : > { %v4004_v59 = vpack.c.bf16 %v3972_v0, %v3972_v0 }
 0x6c3   : > { %v4189_v37 = vunpack.c.l.b16 %v4004_v59 }
 0x6c5   : > { %v4193_v6 = vpack.c.b16 %v4189_v37, %v4188_v32 }
 0x6c6   : > { %8771 = vmatmul.msk.bf16.gmra.mxu2 %vm2649_vm12, %v12336_v56 }
 0x6c7   : > { %4202 = vmatpush.bf16.msrb.mxu2 %v4193_v6 }
 0x6cb   : > { %4203 = vmatpush.bf16.msrb.mxu2 %v4192_v50 }
 0x6cc   : > { %v3917_v49 = vpop.f32.mrf.mxu3 }
 0x6cd   : > { %v3918_v18 = vadd.f32 %v12249_v51, %v3917_v49 }
 0x6cf   : > { %4204 = vmatpush.bf16.msrb.mxu2 %v4191_v11  ;;  %v3973_v8 = vmul.f32 %v3918_v18, %v11705_v31  ;;  %v9234_v11 = vld [vmem:[#allocation23 + $0x38] sm:$0xff] }
 0x6d0   : > { %4505 = vmatpush.bf16.msra.mxu3 %v9234_v11  ;;  %v9226_v18 = vld [vmem:[#allocation22 + $0x38] sm:$0xff] }
 0x6d1   : > { %v4005_v19 = vpack.c.bf16 %v3973_v8, %v3973_v8 }
 0x6d3   : > { %4205 = vmatpush.bf16.msrb.mxu2 %v4190_v25 }
 0x6d4   : > { %v3919_v1 = vpop.f32.mrf.mxu3 }
 0x6d5   : > { %v3920_v26 = vadd.f32 %v12249_v51, %v3919_v1 }
 0x6d6   : > { %8772 = vmatmul.msk.bf16.gmra.mxu2 %vm2649_vm12, %v12343_v3 }
 0x6d7   : > { %v3974_v54 = vmul.f32 %v3920_v26, %v11713_v23  ;;  %v9227_v26 = vld [vmem:[#allocation23] sm:$0xff]  ;;  %4642 = vmatpush.bf16.msra.mxu2 %v9226_v18  ;;  %v9220_v18 = vld [vmem:[#allocation22 + $0x8] sm:$0xff] }
 0x6d9   : > { %v4006_v49 = vpack.c.bf16 %v3974_v54, %v3974_v54 }
 0x6db   : > { %v4256_v25 = vunpack.c.l.b16 %v4006_v49 }
 0x6dc   : > { %v3922_v5 = vpop.f32.mrf.mxu3 }
 0x6dd   : > { %v3923_v21 = vadd.f32 %v12249_v51, %v3922_v5 }
 0x6df   : > { %v3975_v24 = vmul.f32 %v3923_v21, %v11718_v10  ;;  %v9229_v21 = vld [vmem:[#allocation23 + $0x10] sm:$0xff] }
 0x6e1   : > { %v4007_v60 = vpack.c.bf16 %v3975_v24, %v3975_v24 }
 0x6e3   : > { %v4257_v36 = vunpack.c.l.b16 %v4007_v60 }
 0x6e4   : > { %v3924_v63 = vpop.f32.mrf.mxu3 }
 0x6e5   : > { %v3925_v57 = vadd.f32 %v12249_v51, %v3924_v63 }
 0x6e6   : > { %8773 = vmatmul.msk.bf16.gmra.mxu2 %vm2649_vm12, %v12347_v33 }
 0x6e7   : > { %v3976_v27 = vmul.f32 %v3925_v57, %v11721_v52 }
 0x6e9   : > { %v4008_v6 = vpack.c.bf16 %v3976_v27, %v3976_v27 }
 0x6eb   : > { %v4258_v50 = vunpack.c.l.b16 %v4008_v6  ;;  %v9224_v6 = vld [vmem:[#allocation22 + $0x28] sm:$0xff] }
 0x6ec   : > { %v3927_v46 = vpop.f32.mrf.mxu3 }
 0x6ed   : > { %v3928_v44 = vadd.f32 %v12249_v51, %v3927_v46  ;;  %v4264_v5 = vpack.c.b16 %v4258_v50, %v4257_v36  ;;  %v9233_v46 = vld [vmem:[#allocation23 + $0x30] sm:$0xff] }
 0x6ee   : > { %4506 = vmatpush.bf16.msra.mxu3 %v9233_v46 }
 0x6ef   : > { %v3977_v20 = vmul.f32 %v3928_v44, %v11729_v53 }
 0x6f1   : > { %v4009_v28 = vpack.c.bf16 %v3977_v20, %v3977_v20 }
 0x6f3   : > { %v4259_v39 = vunpack.c.l.b16 %v4009_v28 }
 0x6f4   : > { %v3929_v40 = vpop.f32.mrf.mxu3 }
 0x6f5   : > { %v3930_v15 = vadd.f32 %v12249_v51, %v3929_v40  ;;  %v4255_v40 = vunpack.c.l.b16 %v4005_v19  ;;  %v9223_v19 = vld [vmem:[#allocation22 + $0x20] sm:$0xff] }
 0x6f6   : > { %8774 = vmatmul.msk.bf16.vlgmr.msrb.gmra.mxu2 %vm2649_vm12, %v12276_v14 }
 0x6f7   : > { %v3978_v41 = vmul.f32 %v3930_v15, %v11732_v34 }
 0x6f9   : > { %v12353_v58 = vpop.f32.mrf.mxu2  ;;  %v4010_v62 = vpack.c.bf16 %v3978_v41, %v3978_v41 }
 0x6fb   : > { %v4260_v16 = vunpack.c.l.b16 %v4010_v62 }
 0x6fc   : > { %v3932_v38 = vpop.f32.mrf.mxu3 }
 0x6fd   : > { %v3933_v30 = vadd.f32 %v12249_v51, %v3932_v38  ;;  %v4265_v29 = vpack.c.b16 %v4260_v16, %v4259_v39  ;;  %v4263_v38 = vpack.c.b16 %v4256_v25, %v4255_v40 }
 0x6ff   : > { %v3979_v45 = vmul.f32 %v3933_v30, %v11736_v42  ;;  %v9232_v30 = vld [vmem:[#allocation23 + $0x28] sm:$0xff] }
 0x700   : > { %4507 = vmatpush.bf16.msra.mxu3 %v9232_v30  ;;  %v9222_v30 = vld [vmem:[#allocation22 + $0x18] sm:$0xff] }
 0x701   : > { %v12359_v2 = vpop.f32.mrf.mxu2  ;;  %v4011_v43 = vpack.c.bf16 %v3979_v45, %v3979_v45  ;;  %v9231_v45 = vld [vmem:[#allocation23 + $0x20] sm:$0xff] }
 0x702   : > { %v4393_v12 = vpack.c.bf16 %v12359_v2, %v12353_v58 }
 0x703   : > { %v4261_v32 = vunpack.c.l.b16 %v4011_v43 }
 0x704   : > { %v3934_v55 = vpop.f32.mrf.mxu3  ;;  %4508 = vmatpush.bf16.msra.mxu3 %v9231_v45 }
 0x705   : > { %v3935_v48 = vadd.f32 %v12249_v51, %v3934_v55  ;;  %v9230_v55 = vld [vmem:[#allocation23 + $0x18] sm:$0xff] }
 0x706   : > { %8775 = vmatmul.msk.bf16.gmra.mxu2 %vm2649_vm12, %v12303_v17 }
 0x707   : > { %v3980_v0 = vmul.f32 %v3935_v48, %v11740_v35 }
 0x708   : > { %4509 = vmatpush.bf16.msra.mxu3 %v9230_v55 }
 0x709   : > { %v4012_v59 = vpack.c.bf16 %v3980_v0, %v3980_v0  ;;  %v12377_v47 = vpop.f32.mrf.mxu2  ;;  %v9228_v0 = vld [vmem:[#allocation23 + $0x8] sm:$0xff] }
 0x70b   : > { %v4262_v37 = vunpack.c.l.b16 %v4012_v59 }
 0x70c   : > { %v12375_v9 = vpop.f32.mrf.mxu3  ;;  %4510 = vmatpush.bf16.msra.mxu3 %v9229_v21 }
 0x70d   : > { %v4266_v13 = vpack.c.b16 %v4262_v37, %v4261_v32  ;;  %v9225_v32 = vld [vmem:[#allocation22 + $0x30] sm:$0xff] }
 0x70e   : > { %4643 = vmatpush.bf16.msra.mxu2 %v9225_v32 }
 0x70f   : > { %4275 = vmatpush.bf16.msrb.mxu0 %v4266_v13 }
 0x710   : > { %4511 = vmatpush.bf16.msra.mxu3 %v9228_v0 }
 0x711   : > { %v12383_v1 = vpop.f32.mrf.mxu2 }
 0x712   : > { %v4394_v63 = vpack.c.bf16 %v12383_v1, %v12377_v47  ;;  %4644 = vmatpush.bf16.msra.mxu2 %v9224_v6  ;;  %v9219_v6 = vld [vmem:[#allocation22] sm:$0xff] }
 0x713   : > { %4276 = vmatpush.bf16.msrb.mxu0 %v4265_v29 }
 0x714   : > { %v12381_v4 = vpop.f32.mrf.mxu3  ;;  %4512 = vmatpush.bf16.msra.mxu3 %v9227_v26 }
 0x716   : > { %8776 = vmatmul.msk.bf16.gmra.mxu2 %vm2649_vm12, %v12311_v22 }
 0x717   : > { %4277 = vmatpush.bf16.msrb.mxu0 %v4264_v5  ;;  %4645 = vmatpush.bf16.msra.mxu2 %v9223_v19 }
 0x719   : > { %v12389_v44 = vpop.f32.mrf.mxu2 }
 0x71b   : > { %4278 = vmatpush.bf16.msrb.mxu0 %v4263_v38  ;;  %v3938_v38 = vadd.f32 %v12249_v51, %v12375_v9  ;;  %4646 = vmatpush.bf16.msra.mxu2 %v9222_v30 }
 0x71c   : > { %v3942_v15 = vpop.f32.mrf.mxu3 }
 0x71d   : > { %v3943_v36 = vadd.f32 %v12249_v51, %v3942_v15 }
 0x71e   : > { %8782 = vmatmul.msk.bf16.vlgmr.msrb.gmra.mxu0 %vm2649_vm12, %v12276_v14 }
 0x721   : > { %v12393_v41 = vpop.f32.mrf.mxu2 }
 0x722   : > { %v4395_v48 = vpack.c.bf16 %v12393_v41, %v12389_v44 }
 0x724   : > { %v3944_v57 = vpop.f32.mrf.mxu3 }
 0x725   : > { %v3945_v39 = vadd.f32 %v12249_v51, %v3944_v57 }
 0x726   : > { %8777 = vmatmul.msk.bf16.gmra.mxu2 %vm2649_vm12, %v12315_v7 }
 0x727   : > { %v3984_v46 = vmul.f32 %v3945_v39, %v11721_v52 }
 0x729   : > { %v12399_v43 = vpop.f32.mrf.mxu2  ;;  %v4016_v57 = vpack.c.bf16 %v3984_v46, %v3984_v46 }
 0x72b   : > { %v4331_v26 = vunpack.c.l.b16 %v4016_v57 }
 0x72c   : > { %v3947_v20 = vpop.f32.mrf.mxu3 }
 0x72d   : > { %v3948_v16 = vadd.f32 %v12249_v51, %v3947_v20  ;;  %v9221_v20 = vld [vmem:[#allocation22 + $0x10] sm:$0xff] }
 0x72e   : > { %8783 = vmatmul.msk.bf16.gmra.mxu0 %vm2649_vm12, %v12303_v17  ;;  %4647 = vmatpush.bf16.msra.mxu2 %v9221_v20 }
 0x72f   : > { %v3985_v11 = vmul.f32 %v3948_v16, %v11729_v53  ;;  %v3983_v53 = vmul.f32 %v3943_v36, %v11718_v10 }
 0x731   : > { %v12403_v62 = vpop.f32.mrf.mxu2  ;;  %v4017_v15 = vpack.c.bf16 %v3985_v11, %v3985_v11  ;;  %v4015_v9 = vpack.c.bf16 %v3983_v53, %v3983_v53 }
 0x732   : > { %v4396_v59 = vpack.c.bf16 %v12403_v62, %v12399_v43  ;;  %4648 = vmatpush.bf16.msra.mxu2 %v9220_v18 }
 0x733   : > { %v4332_v0 = vunpack.c.l.b16 %v4017_v15 }
 0x734   : > { %v3949_v27 = vpop.f32.mrf.mxu3 }
 0x735   : > { %v3950_v54 = vadd.f32 %v12249_v51, %v3949_v27 }
 0x736   : > { %8778 = vmatmul.msk.bf16.gmra.mxu2 %vm2649_vm12, %v12319_v61 }
 0x737   : > { %v3986_v49 = vmul.f32 %v3950_v54, %v11732_v34  ;;  %4649 = vmatpush.bf16.msra.mxu2 %v9219_v6 }
 0x739   : > { %v4154_v28 = vpop.f32.mrf.mxu2  ;;  %v4018_v40 = vpack.c.bf16 %v3986_v49, %v3986_v49 }
 0x73b   : > { %v4333_v52 = vunpack.c.l.b16 %v4018_v40 }
 0x73c   : > { %v3952_v24 = vpop.f32.mrf.mxu3 }
 0x73d   : > { %v3953_v37 = vadd.f32 %v12249_v51, %v3952_v24  ;;  %v4338_v27 = vpack.c.b16 %v4333_v52, %v4332_v0 }
 0x73e   : > { %8784 = vmatmul.msk.bf16.gmra.mxu0 %vm2649_vm12, %v12311_v22 }
 0x73f   : > { %v3987_v13 = vmul.f32 %v3953_v37, %v11736_v42  ;;  %v3940_v42 = vadd.f32 %v12249_v51, %v12381_v4 }
 0x741   : > { %v4156_v60 = vpop.f32.mrf.mxu2  ;;  %v4019_v25 = vpack.c.bf16 %v3987_v13, %v3987_v13  ;;  %v3982_v4 = vmul.f32 %v3940_v42, %v11713_v23  ;;  %v4330_v23 = vunpack.c.l.b16 %v4015_v9 }
 0x742   : > { %v4425_v29 = vpack.c.bf16 %v4156_v60, %v4154_v28 }
 0x743   : > { %v4014_v10 = vpack.c.bf16 %v3982_v4, %v3982_v4  ;;  %v4337_v37 = vpack.c.b16 %v4331_v26, %v4330_v23 }
 0x744   : > { %v3954_v8 = vpop.f32.mrf.mxu3  ;;  %4513 = vmatmul.bf16.vlgmr.msra.gmra.mxu3 %v4425_v29 }
 0x745   : > { %v3955_v50 = vadd.f32 %v12249_v51, %v3954_v8  ;;  %v3981_v51 = vmul.f32 %v3938_v38, %v11705_v31  ;;  %v4329_v32 = vunpack.c.l.b16 %v4014_v10 }
 0x746   : > { %8779 = vmatmul.msk.bf16.gmra.mxu2 %vm2649_vm12, %v12336_v56 }
 0x747   : > { %v3988_v5 = vmul.f32 %v3955_v50, %v11740_v35  ;;  %v4334_v35 = vunpack.c.l.b16 %v4019_v25  ;;  %v4013_v24 = vpack.c.bf16 %v3981_v51, %v3981_v51 }
 0x749   : > { %v4020_v34 = vpack.c.bf16 %v3988_v5, %v3988_v5  ;;  %v4159_v55 = vpop.f32.mrf.mxu2  ;;  %v4328_v16 = vunpack.c.l.b16 %v4013_v24 }
 0x74b   : > { %v4335_v45 = vunpack.c.l.b16 %v4020_v34  ;;  %v4336_v31 = vpack.c.b16 %v4329_v32, %v4328_v16 }
 0x74d   : > { %v4339_v21 = vpack.c.b16 %v4335_v45, %v4334_v35 }
 0x74e   : > { %8785 = vmatmul.msk.bf16.gmra.mxu0 %vm2649_vm12, %v12315_v7 }
 0x74f   : > { %4348 = vmatpush.bf16.msrb.mxu1 %v4339_v21 }
 0x751   : > { %v4161_v28 = vpop.f32.mrf.mxu2 }
 0x752   : > { %v4426_v54 = vpack.c.bf16 %v4161_v28, %v4159_v55 }
 0x753   : > { %4349 = vmatpush.bf16.msrb.mxu1 %v4338_v27 }
 0x754   : > { %4518 = vmatmul.bf16.gmra.mxu3 %v4426_v54 }
 0x756   : > { %8780 = vmatmul.msk.bf16.gmra.mxu2 %vm2649_vm12, %v12343_v3 }
 0x757   : > { %4350 = vmatpush.bf16.msrb.mxu1 %v4337_v37 }
 0x759   : > { %v4164_v13 = vpop.f32.mrf.mxu2 }
 0x75b   : > { %4351 = vmatpush.bf16.msrb.mxu1 %v4336_v31 }
 0x75e   : > { %8786 = vmatmul.msk.bf16.gmra.mxu0 %vm2649_vm12, %v12319_v61  ;;  %8790 = vmatmul.msk.bf16.vlgmr.msrb.gmra.mxu1 %vm2649_vm12, %v12276_v14 }
 0x761   : > { %v4166_v8 = vpop.f32.mrf.mxu2 }
 0x762   : > { %v4427_v60 = vpack.c.bf16 %v4166_v8, %v4164_v13 }
 0x764   : > { %4523 = vmatmul.bf16.gmra.mxu3 %v4427_v60 }
 0x766   : > { %8781 = vmatmul.msk.bf16.gmra.mxu2 %vm2649_vm12, %v12347_v33 }
 0x769   : > { %v4169_v39 = vpop.f32.mrf.mxu2 }
 0x76e   : > { %8787 = vmatmul.msk.bf16.gmra.mxu0 %vm2649_vm12, %v12336_v56  ;;  %8791 = vmatmul.msk.bf16.gmra.mxu1 %vm2649_vm12, %v12303_v17 }
 0x771   : > { %v4171_v49 = vpop.f32.mrf.mxu2 }
 0x772   : > { %v4428_v50 = vpack.c.bf16 %v4171_v49, %v4169_v39  ;;  %v12489_v39 = vpop.permute.xlu1 %4809 }
 0x774   : > { %4528 = vmatmul.bf16.gmra.mxu3 %v4428_v50  ;;  %v12492_v50 = vld [vmem:[%s14879_s28] ss:$0 sm:$0xff]  ;;  %s14893_s28 = sld [smem:[#allocation71_spill]] }
 0x776   : > { %4650 = vmatmul.bf16.vlgmr.msra.gmra.mxu2 %v4393_v12 }
 0x779   : > { %v4207_v14 = vpop.f32.mrf.mxu2 }
 0x77e   : > { %8788 = vmatmul.msk.bf16.gmra.mxu0 %vm2649_vm12, %v12343_v3  ;;  %8792 = vmatmul.msk.bf16.gmra.mxu1 %vm2649_vm12, %v12311_v22 }
 0x781   : > { %v4209_v29 = vpop.f32.mrf.mxu2 }
 0x782   : > { %v4397_v19 = vpack.c.bf16 %v4209_v29, %v4207_v14 }
 0x786   : > { %4655 = vmatmul.bf16.gmra.mxu2 %v4394_v63 }
 0x789   : > { %v4212_v17 = vpop.f32.mrf.mxu2 }
 0x78e   : > { %8789 = vmatmul.msk.bf16.gmra.mxu0 %vm2649_vm12, %v12347_v33  ;;  %8793 = vmatmul.msk.bf16.gmra.mxu1 %vm2649_vm12, %v12315_v7 }
 0x791   : > { %v4214_v58 = vpop.f32.mrf.mxu2 }
 0x792   : > { %v4398_v11 = vpack.c.bf16 %v4214_v58, %v4212_v17  ;;  %v12494_v58 = vpop.permute.xlu2 %4814 }
 0x796   : > { %4660 = vmatmul.bf16.gmra.mxu2 %v4395_v48 }
 0x799   : > { %v4217_v12 = vpop.f32.mrf.mxu2 }
 0x79b   : > { %v4280_v2 = vpop.f32.mrf.mxu0 }
 0x79e   : > { %8794 = vmatmul.msk.bf16.gmra.mxu1 %vm2649_vm12, %v12319_v61 }
 0x7a1   : > { %v4219_v47 = vpop.f32.mrf.mxu2 }
 0x7a2   : > { %v4399_v5 = vpack.c.bf16 %v4219_v47, %v4217_v12 }
 0x7a3   : > { %v4282_v22 = vpop.f32.mrf.mxu0 }
 0x7a4   : > { %v4401_v4 = vpack.c.bf16 %v4282_v22, %v4280_v2 }
 0x7a6   : > { %4665 = vmatmul.bf16.gmra.mxu2 %v4396_v59 }
 0x7a9   : > { %v4222_v1 = vpop.f32.mrf.mxu2 }
 0x7ab   : > { %v4285_v63 = vpop.f32.mrf.mxu0 }
 0x7ae   : > { %8795 = vmatmul.msk.bf16.gmra.mxu1 %vm2649_vm12, %v12336_v56 }
 0x7b1   : > { %v4224_v7 = vpop.f32.mrf.mxu2 }
 0x7b2   : > { %v4400_v34 = vpack.c.bf16 %v4224_v7, %v4222_v1 }
 0x7b3   : > { %v4287_v44 = vpop.f32.mrf.mxu0 }
 0x7b4   : > { %v4402_v10 = vpack.c.bf16 %v4287_v44, %v4285_v63  ;;  %v12509_v44 = vpop.permute.xlu0 %4819 }
 0x7b6   : > { %4670 = vmatmul.bf16.gmra.mxu2 %v4397_v19 }
 0x7b9   : > { %v4227_v41 = vpop.f32.mrf.mxu2 }
 0x7bb   : > { %v4290_v61 = vpop.f32.mrf.mxu0 }
 0x7be   : > { %8796 = vmatmul.msk.bf16.gmra.mxu1 %vm2649_vm12, %v12343_v3 }
 0x7c1   : > { %v4229_v48 = vpop.f32.mrf.mxu2 }
 0x7c2   : > { %v4429_v36 = vpack.c.bf16 %v4229_v48, %v4227_v41 }
 0x7c3   : > { %v4292_v43 = vpop.f32.mrf.mxu0 }
 0x7c4   : > { %4533 = vmatmul.bf16.gmra.mxu3 %v4429_v36  ;;  %v4403_v6 = vpack.c.bf16 %v4292_v43, %v4290_v61 }
 0x7c6   : > { %4675 = vmatmul.bf16.gmra.mxu2 %v4398_v11 }
 0x7c9   : > { %v4232_v62 = vpop.f32.mrf.mxu2 }
 0x7cb   : > { %v12473_v25 = vpop.f32.mrf.mxu0 }
 0x7ce   : > { %8797 = vmatmul.msk.bf16.gmra.mxu1 %vm2649_vm12, %v12347_v33  ;;  %v4514_v33 = vpop.f32.mrf.mxu3 }
 0x7d1   : > { %v4234_v56 = vpop.f32.mrf.mxu2 }
 0x7d2   : > { %v4430_v59 = vpack.c.bf16 %v4234_v56, %v4232_v62  ;;  %v12520_v56 = vpop.permute.xlu1 %4824 }
 0x7d3   : > { %v12475_v3 = vpop.f32.mrf.mxu0 }
 0x7d4   : > { %4538 = vmatmul.bf16.gmra.mxu3 %v4430_v59  ;;  %v4404_v1 = vpack.c.bf16 %v12475_v3, %v12473_v25 }
 0x7d6   : > { %4680 = vmatmul.bf16.gmra.mxu2 %v4399_v5  ;;  %v4516_v57 = vpop.f32.mrf.mxu3 }
 0x7d9   : > { %v4237_v42 = vpop.f32.mrf.mxu2 }
 0x7db   : > { %v4300_v38 = vpop.f32.mrf.mxu0  ;;  %v12477_v30 = vpop.f32.mrf.mxu1 }
 0x7de   : > { %v4519_v51 = vpop.f32.mrf.mxu3 }
 0x7e1   : > { %v4239_v46 = vpop.f32.mrf.mxu2 }
 0x7e2   : > { %v4431_v40 = vpack.c.bf16 %v4239_v46, %v4237_v42  ;;  %v12527_v46 = vpop.permute.xlu2 %4829 }
 0x7e3   : > { %v4302_v15 = vpop.f32.mrf.mxu0  ;;  %v12479_v45 = vpop.f32.mrf.mxu1 }
 0x7e4   : > { %4543 = vmatmul.bf16.gmra.mxu3 %v4431_v40  ;;  %v4433_v9 = vpack.c.bf16 %v4302_v15, %v4300_v38 }
 0x7e6   : > { %4685 = vmatmul.bf16.gmra.mxu2 %v4400_v34  ;;  %v4521_v18 = vpop.f32.mrf.mxu3 }
 0x7e9   : > { %v4242_v53 = vpop.f32.mrf.mxu2 }
 0x7eb   : > { %v4305_v21 = vpop.f32.mrf.mxu0  ;;  %v12481_v20 = vpop.f32.mrf.mxu1 }
 0x7ee   : > { %v4524_v54 = vpop.f32.mrf.mxu3 }
 0x7f1   : > { %v4244_v35 = vpop.f32.mrf.mxu2 }
 0x7f2   : > { %v4432_v55 = vpack.c.bf16 %v4244_v35, %v4242_v53 }
 0x7f3   : > { %v4307_v26 = vpop.f32.mrf.mxu0  ;;  %v12483_v27 = vpop.f32.mrf.mxu1 }
 0x7f4   : > { %4548 = vmatmul.bf16.gmra.mxu3 %v4432_v55  ;;  %v4434_v32 = vpack.c.bf16 %v4307_v26, %v4305_v21 }
 0x7f6   : > { %4690 = vmatmul.bf16.gmra.mxu2 %v4401_v4  ;;  %v4526_v8 = vpop.f32.mrf.mxu3 }
 0x7f9   : > { %v4651_v52 = vpop.f32.mrf.mxu2 }
 0x7fa   : > { %v4652_v49 = vadd.f32 %v4651_v52, %v4514_v33 }
 0x7fb   : > { %v4310_v23 = vpop.f32.mrf.mxu0  ;;  %v12485_v28 = vpop.f32.mrf.mxu1 }
 0x7fc   : > { %v12504_v63 = vadd.f32 %v12492_v50, %v4652_v49 }
 0x7fe   : > { %v4529_v36 = vpop.f32.mrf.mxu3  ;;  %v4767_v11 = vmax.f32 %v12504_v63, 0.0 }
 0x800   : > { %v4847_v40 = vmul.f32 %v12489_v39, %v4767_v11 }
 0x801   : > { %v4653_v0 = vpop.f32.mrf.mxu2 }
 0x802   : > { %v4654_v60 = vadd.f32 %v4653_v0, %v4516_v57  ;;  %v12536_v57 = vpop.permute.xlu0 %4834 }
 0x803   : > { %v4312_v16 = vpop.f32.mrf.mxu0  ;;  %v12487_v31 = vpop.f32.mrf.mxu1 }
 0x804   : > { %4553 = vmatmul.bf16.gmra.mxu3 %v4433_v9  ;;  %v4435_v29 = vpack.c.bf16 %v4312_v16, %v4310_v23  ;;  %v12497_v2 = vadd.f32 %v12492_v50, %v4654_v60  ;;  %v12540_v23 = vpop.permute.xlu1 %4839 }
 0x806   : > { %4695 = vmatmul.bf16.gmra.mxu2 %v4402_v10  ;;  %v4768_v41 = vmax.f32 %v12497_v2, 0.0  ;;  %v4531_v0 = vpop.f32.mrf.mxu3 }
 0x808   : > { %v4848_v25 = vmul.f32 %v12494_v58, %v4768_v41 }
 0x809   : > { %v4656_v24 = vpop.f32.mrf.mxu2 }
 0x80a   : > { %v4657_v14 = vadd.f32 %v4656_v24, %v4519_v51  ;;  %v4879_v35 = vadd.f32 %v4848_v25, %v4847_v40 }
 0x80b   : > { %v4315_v22 = vpop.f32.mrf.mxu0  ;;  %v12499_v47 = vpop.f32.mrf.mxu1 }
 0x80c   : > { %v12507_v7 = vadd.f32 %v12492_v50, %v4657_v14 }
 0x80e   : > { %v4769_v43 = vmax.f32 %v12507_v7, 0.0 }
 0x810   : > { %v4849_v34 = vmul.f32 %v12509_v44, %v4769_v43 }
 0x811   : > { %v4658_v37 = vpop.f32.mrf.mxu2 }
 0x812   : > { %v4659_v12 = vadd.f32 %v4658_v37, %v4521_v18  ;;  %v4880_v52 = vadd.f32 %v4879_v35, %v4849_v34 }
 0x813   : > { %v4317_v33 = vpop.f32.mrf.mxu0  ;;  %v12533_v15 = vpop.f32.mrf.mxu1 }
 0x814   : > { %4558 = vmatmul.bf16.gmra.mxu3 %v4434_v32  ;;  %v12513_v61 = vadd.f32 %v12492_v50, %v4659_v12  ;;  %v4436_v51 = vpack.c.bf16 %v4317_v33, %v4315_v22  ;;  %v4405_v32 = vpack.c.bf16 %v12479_v45, %v12477_v30 }
 0x816   : > { %4700 = vmatmul.bf16.gmra.mxu2 %v4403_v6  ;;  %v4770_v5 = vmax.f32 %v12513_v61, 0.0 }
 0x818   : > { %v4850_v55 = vmul.f32 %v12520_v56, %v4770_v5 }
 0x819   : > { %v4661_v13 = vpop.f32.mrf.mxu2 }
 0x81a   : > { %v4662_v19 = vadd.f32 %v4661_v13, %v4524_v54  ;;  %v4881_v26 = vadd.f32 %v4880_v52, %v4850_v55 }
 0x81b   : > { %v4373_v60 = vpop.f32.mrf.mxu1 }
 0x81c   : > { %v12518_v62 = vadd.f32 %v12492_v50, %v4662_v19  ;;  %v4406_v19 = vpack.c.bf16 %v12483_v27, %v12481_v20 }
 0x81e   : > { %v4771_v38 = vmax.f32 %v12518_v62, 0.0 }
 0x820   : > { %v4851_v21 = vmul.f32 %v12527_v46, %v4771_v38 }
 0x821   : > { %v4663_v17 = vpop.f32.mrf.mxu2 }
 0x822   : > { %v4664_v48 = vadd.f32 %v4663_v17, %v4526_v8  ;;  %v4882_v37 = vadd.f32 %v4881_v26, %v4851_v21  ;;  %v12546_v8 = vpop.permute.xlu2 %4844 }
 0x823   : > { %v4375_v22 = vpop.f32.mrf.mxu1 }
 0x824   : > { %4563 = vmatmul.bf16.gmra.mxu3 %v4435_v29  ;;  %v4740_v42 = vadd.f32 %v12492_v50, %v4664_v48  ;;  %v4437_v7 = vpack.c.bf16 %v4375_v22, %v4373_v60 }
 0x826   : > { %4705 = vmatmul.bf16.gmra.mxu2 %v4404_v1  ;;  %v4772_v4 = vmax.f32 %v4740_v42, 0.0 }
 0x828   : > { %v4852_v18 = vmul.f32 %v12536_v57, %v4772_v4 }
 0x829   : > { %v4666_v59 = vpop.f32.mrf.mxu2 }
 0x82a   : > { %v4667_v3 = vadd.f32 %v4666_v59, %v4529_v36  ;;  %v4883_v16 = vadd.f32 %v4882_v37, %v4852_v18 }
 0x82b   : > { %v4378_v59 = vpop.f32.mrf.mxu1 }
 0x82c   : > { %v4741_v53 = vadd.f32 %v12492_v50, %v4667_v3 }
 0x82e   : > { %v4773_v9 = vmax.f32 %v4741_v53, 0.0 }
 0x830   : > { %v4853_v54 = vmul.f32 %v12540_v23, %v4773_v9 }
 0x831   : > { %v4668_v10 = vpop.f32.mrf.mxu2 }
 0x832   : > { %v4669_v24 = vadd.f32 %v4668_v10, %v4531_v0  ;;  %v4884_v49 = vadd.f32 %v4883_v16, %v4853_v54 }
 0x834   : > { %v4742_v6 = vadd.f32 %v12492_v50, %v4669_v24  ;;  %4568 = vmatmul.bf16.gmra.mxu3 %v4436_v51 }
 0x836   : > { %v4774_v13 = vmax.f32 %v4742_v6, 0.0  ;;  %4710 = vmatmul.bf16.gmra.mxu2 %v4405_v32 }
 0x838   : > { %v4854_v14 = vmul.f32 %v12546_v8, %v4774_v13 }
 0x839   : > { %v12549_v29 = vpop.f32.mrf.mxu2 }
 0x83a   : > { %v4885_v17 = vadd.f32 %v4884_v49, %v4854_v14 }
 0x83c   : > { %v4886_v12 = vrot.slane %v4885_v17, 4 }
 0x83e   : > { %v4887_v30 = vadd.f32 %v4886_v12, %v4885_v17 }
 0x840   : > { %v4888_v45 = vrot.slane %v4887_v30, 2 }
 0x841   : > { %v12551_v1 = vpop.f32.mrf.mxu2 }
 0x842   : > { %v4889_v63 = vadd.f32 %v4888_v45, %v4887_v30 }
 0x844   : > { %v4890_v61 = vrot.slane %v4889_v63, 1  ;;  %4573 = vmatmul.bf16.gmra.mxu3 %v4437_v7 }
 0x846   : > { %v4891_v48 = vadd.f32 %v4890_v61, %v4889_v63  ;;  %4715 = vmatmul.bf16.gmra.mxu2 %v4406_v19  ;;  %v9242_v63 = vld [vmem:[#allocation25 + $0x38] sm:$0xff] }
 0x847   : > { %v12555_v36 = vpop.f32.mrf.mxu3  ;;  %5319 = vmatpush.bf16.msra.mxu0 %v9242_v63 }
 0x848   : > { %v4931_v62 = vmul.f32 0.017857144, %v4891_v48 }
 0x849   : > { %v12557_v25 = vpop.f32.mrf.mxu2 }
 0x84a   : > { %v12559_v42 = vsub.f32 %v4767_v11, %v4931_v62  ;;  %v12563_v3 = vsub.f32 %v4768_v41, %v4931_v62  ;;  %v12565_v40 = vsub.f32 %v4769_v43, %v4931_v62  ;;  %v12567_v34 = vsub.f32 %v4770_v5, %v4931_v62 }
 0x84b   : > { %v12569_v20 = vsub.f32 %v4771_v38, %v4931_v62  ;;  %v12577_v33 = vsub.f32 %v4772_v4, %v4931_v62  ;;  %v12583_v38 = vsub.f32 %v4773_v9, %v4931_v62  ;;  %v12588_v21 = vsub.f32 %v4774_v13, %v4931_v62  ;;  %v4380_v4 = vpop.f32.mrf.mxu1  ;;  %v9241_v62 = vld [vmem:[#allocation25 + $0x30] sm:$0xff] }
 0x84c   : > { %v4967_v27 = vmul.f32 %v12559_v42, %v12559_v42  ;;  %v4968_v53 = vmul.f32 %v12563_v3, %v12563_v3  ;;  %v4969_v11 = vmul.f32 %v12565_v40, %v12565_v40  ;;  %v4970_v2 = vmul.f32 %v12567_v34, %v12567_v34  ;;  %5320 = vmatpush.bf16.msra.mxu0 %v9241_v62 }
 0x84d   : > { %v4971_v35 = vmul.f32 %v12569_v20, %v12569_v20  ;;  %v4972_v0 = vmul.f32 %v12577_v33, %v12577_v33  ;;  %v4438_v18 = vpack.c.bf16 %v4380_v4, %v4378_v59  ;;  %v4407_v9 = vpack.c.bf16 %v12487_v31, %v12485_v28 }
 0x84e   : > { %v4999_v41 = vmul.f32 %v4967_v27, %v12489_v39  ;;  %v5000_v43 = vmul.f32 %v4968_v53, %v12494_v58  ;;  %v5001_v55 = vmul.f32 %v4969_v11, %v12509_v44  ;;  %v5002_v10 = vmul.f32 %v4970_v2, %v12520_v56  ;;  %v9240_v2 = vld [vmem:[#allocation25 + $0x28] sm:$0xff] }
 0x84f   : > { %v4536_v5 = vpop.f32.mrf.mxu3  ;;  %v4973_v24 = vmul.f32 %v12583_v38, %v12583_v38  ;;  %v5003_v32 = vmul.f32 %v4971_v35, %v12527_v46  ;;  %v4974_v54 = vmul.f32 %v12588_v21, %v12588_v21  ;;  %v5004_v6 = vmul.f32 %v4972_v0, %v12536_v57 }
 0x850   : > { %v5031_v52 = vadd.f32 %v5000_v43, %v4999_v41  ;;  %v4408_v59 = vpack.c.bf16 %v12533_v15, %v12499_v47  ;;  %v4674_v11 = vadd.f32 %v12551_v1, %v4536_v5  ;;  %v4672_v35 = vadd.f32 %v12549_v29, %v12555_v36  ;;  %5321 = vmatpush.bf16.msra.mxu0 %v9240_v2 }
 0x851   : > { %v4678_v51 = vpop.f32.mrf.mxu2  ;;  %v5005_v60 = vmul.f32 %v4973_v24, %v12540_v23  ;;  %v5006_v31 = vmul.f32 %v4974_v54, %v12546_v8 }
 0x852   : > { %v5032_v26 = vadd.f32 %v5031_v52, %v5001_v55  ;;  %v12610_v47 = vadd.f32 %v12492_v50, %v4674_v11  ;;  %v12613_v5 = vadd.f32 %v12492_v50, %v4672_v35 }
 0x853   : > { %v4383_v14 = vpop.f32.mrf.mxu1 }
 0x854   : > { %v5033_v37 = vadd.f32 %v5032_v26, %v5002_v10  ;;  %4578 = vmatmul.bf16.gmra.mxu3 %v4438_v18  ;;  %v9239_v10 = vld [vmem:[#allocation25 + $0x20] sm:$0xff]  ;;  %v4776_v29 = vmax.f32 %v12610_v47, 0.0 }
 0x855   : > { %5322 = vmatpush.bf16.msra.mxu0 %v9239_v10  ;;  %v9236_v10 = vld [vmem:[#allocation25 + $0x8] sm:$0xff] }
 0x856   : > { %v5034_v16 = vadd.f32 %v5033_v37, %v5003_v32  ;;  %4720 = vmatmul.bf16.gmra.mxu2 %v4407_v9 }
 0x857   : > { %v4539_v13 = vpop.f32.mrf.mxu3 }
 0x858   : > { %v5035_v49 = vadd.f32 %v5034_v16, %v5004_v6  ;;  %v4677_v55 = vadd.f32 %v12557_v25, %v4539_v13  ;;  %v9238_v25 = vld [vmem:[#allocation25 + $0x18] sm:$0xff]  ;;  %v4856_v16 = vmul.f32 %v12494_v58, %v4776_v29 }
 0x859   : > { %v4681_v28 = vpop.f32.mrf.mxu2  ;;  %5323 = vmatpush.bf16.msra.mxu0 %v9238_v25 }
 0x85a   : > { %v5036_v17 = vadd.f32 %v5035_v49, %v5005_v60  ;;  %v12616_v26 = vadd.f32 %v12492_v50, %v4677_v55 }
 0x85b   : > { %v4385_v7 = vpop.f32.mrf.mxu1 }
 0x85c   : > { %v5037_v12 = vadd.f32 %v5036_v17, %v5006_v31  ;;  %v4439_v48 = vpack.c.bf16 %v4385_v7, %v4383_v14  ;;  %v4777_v24 = vmax.f32 %v12616_v26, 0.0  ;;  %v9237_v14 = vld [vmem:[#allocation25 + $0x10] sm:$0xff] }
 0x85d   : > { %5324 = vmatpush.bf16.msra.mxu0 %v9237_v14 }
 0x85e   : > { %v5038_v30 = vrot.slane %v5037_v12, 4  ;;  %v4857_v17 = vmul.f32 %v12509_v44, %v4777_v24 }
 0x85f   : > { %v4541_v45 = vpop.f32.mrf.mxu3 }
 0x860   : > { %v5039_v22 = vadd.f32 %v5038_v30, %v5037_v12  ;;  %v4679_v15 = vadd.f32 %v4678_v51, %v4541_v45  ;;  %v4775_v51 = vmax.f32 %v12613_v5, 0.0 }
 0x861   : > { %v4683_v19 = vpop.f32.mrf.mxu2  ;;  %5325 = vmatpush.bf16.msra.mxu0 %v9236_v10 }
 0x862   : > { %v5040_v61 = vrot.slane %v5039_v22, 2  ;;  %v12620_v36 = vadd.f32 %v12492_v50, %v4679_v15  ;;  %v4855_v31 = vmul.f32 %v12489_v39, %v4775_v51 }
 0x863   : > { %v4388_v52 = vpop.f32.mrf.mxu1 }
 0x864   : > { %v5041_v27 = vadd.f32 %v5040_v61, %v5039_v22  ;;  %4583 = vmatmul.bf16.gmra.mxu3 %v4439_v48  ;;  %v4778_v13 = vmax.f32 %v12620_v36, 0.0  ;;  %v4892_v45 = vadd.f32 %v4856_v16, %v4855_v31 }
 0x866   : > { %v5042_v53 = vrot.slane %v5041_v27, 1  ;;  %4725 = vmatmul.bf16.gmra.mxu2 %v4408_v59  ;;  %v4858_v22 = vmul.f32 %v12520_v56, %v4778_v13  ;;  %v4893_v61 = vadd.f32 %v4892_v45, %v4857_v17 }
 0x867   : > { %v4544_v41 = vpop.f32.mrf.mxu3 }
 0x868   : > { %v5043_v43 = vadd.f32 %v5042_v53, %v5041_v27  ;;  %v4682_v18 = vadd.f32 %v4681_v28, %v4544_v41  ;;  %v4894_v53 = vadd.f32 %v4893_v61, %v4858_v22 }
 0x869   : > { %v4686_v4 = vpop.f32.mrf.mxu2 }
 0x86a   : > { %v5083_v0 = vmul.f32 0.017857144, %v5043_v43  ;;  %v12625_v32 = vadd.f32 %v12492_v50, %v4682_v18 }
 0x86b   : > { %v4390_v54 = vpop.f32.mrf.mxu1 }
 0x86c   : > { %v5087_v1 = vadd.f32 1e-05, %v5083_v0  ;;  %v4440_v60 = vpack.c.bf16 %v4390_v54, %v4388_v52  ;;  %v4779_v12 = vmax.f32 %v12625_v32, 0.0  ;;  %v12663_v54 = vld [vmem:[%s14880_s3] ss:$0 sm:$0xff]  ;;  %s14894_s3 = sld [smem:[#allocation70_spill]] }
 0x86e   : > { %9601 = vrsqrt.f32 %v5087_v1  ;;  %v4859_v48 = vmul.f32 %v12527_v46, %v4779_v12  ;;  %vm5097_vm10 = vweird.f32 %v5087_v1 }
 0x86f   : > { %v4546_v9 = vpop.f32.mrf.mxu3 }
 0x870   : > { %v4684_v37 = vadd.f32 %v4683_v19, %v4546_v9  ;;  %v4895_v43 = vadd.f32 %v4894_v53, %v4859_v48 }
 0x871   : > { %v4688_v6 = vpop.f32.mrf.mxu2 }
 0x872   : > { %v12632_v49 = vadd.f32 %v12492_v50, %v4684_v37 }
 0x874   : > { %v9602_v28 = vpop.eup %9601  ;;  %4588 = vmatmul.bf16.gmra.mxu3 %v4440_v60  ;;  %v4780_v63 = vmax.f32 %v12632_v49, 0.0 }
 0x875   : > { %v5092_v30 = vmul.f32 %v9602_v28, %v5087_v1  ;;  %vm5098_vm9 = vweird.f32 %v9602_v28 }
 0x876   : > { %v4860_v11 = vmul.f32 %v12536_v57, %v4780_v63  ;;  %vm5099_vm11 = vmor %vm5097_vm10, %vm5098_vm9 }
 0x877   : > { %v5093_v7 = vmul.f32 %v9602_v28, %v5092_v30  ;;  %v4549_v19 = vpop.f32.mrf.mxu3  ;;  %v9235_v30 = vld [vmem:[#allocation25] sm:$0xff] }
 0x878   : > { %v4687_v62 = vadd.f32 %v4686_v4, %v4549_v19  ;;  %v4896_v52 = vadd.f32 %v4895_v43, %v4860_v11  ;;  %5326 = vmatpush.bf16.msra.mxu0 %v9235_v30 }
 0x879   : > { %v5094_v59 = vmul.f32 0.5, %v5093_v7  ;;  %v12648_v27 = vpop.f32.mrf.mxu2 }
 0x87a   : > { %v12654_v2 = vadd.f32 %v12492_v50, %v4687_v62 }
 0x87b   : > { %v5095_v41 = vsub.f32 1.5, %v5094_v59 }
 0x87c   : > { %v4781_v35 = vmax.f32 %v12654_v2, 0.0 }
 0x87d   : > { %v5096_v55 = vmul.f32 %v9602_v28, %v5095_v41 }
 0x87e   : > { %v4861_v4 = vmul.f32 %v12540_v23, %v4781_v35 }
 0x87f   : > { %v5100_v0 = vsel %vm5099_vm11, %v9602_v28, %v5096_v55  ;;  %v4551_v15 = vpop.f32.mrf.mxu3 }
 0x880   : > { %v5138_v18 = vmul.f32 %v5100_v0, %v12588_v21  ;;  %v4897_v25 = vadd.f32 %v4896_v52, %v4861_v4  ;;  %v4689_v9 = vadd.f32 %v4688_v6, %v4551_v15  ;;  %v5131_v37 = vmul.f32 %v5100_v0, %v12559_v42  ;;  %v12674_v6 = vld [vmem:[%s14881_s8] ss:$0 sm:$0xff]  ;;  %s14897_s8 = sld [smem:[#allocation76_spill]] }
 0x881   : > { %v12665_v16 = vpop.f32.mrf.mxu2  ;;  %v5132_v1 = vmul.f32 %v5100_v0, %v12563_v3  ;;  %v5133_v60 = vmul.f32 %v5100_v0, %v12565_v40  ;;  %v5134_v14 = vmul.f32 %v5100_v0, %v12567_v34  ;;  %v5135_v28 = vmul.f32 %v5100_v0, %v12569_v20 }
 0x882   : > { %v4750_v31 = vadd.f32 %v12492_v50, %v4689_v9  ;;  %v5167_v21 = vmul.f32 %v12663_v54, %v5131_v37  ;;  %v5136_v42 = vmul.f32 %v5100_v0, %v12577_v33  ;;  %v5137_v17 = vmul.f32 %v5100_v0, %v12583_v38 }
 0x883   : > { %v5168_v45 = vmul.f32 %v12663_v54, %v5132_v1  ;;  %v5169_v3 = vmul.f32 %v12663_v54, %v5133_v60  ;;  %v5170_v40 = vmul.f32 %v12663_v54, %v5134_v14  ;;  %v5171_v34 = vmul.f32 %v12663_v54, %v5135_v28 }
 0x884   : > { %v4782_v20 = vmax.f32 %v4750_v31, 0.0  ;;  %v5203_v22 = vadd.f32 %v12674_v6, %v5167_v21  ;;  %v5172_v7 = vmul.f32 %v12663_v54, %v5136_v42  ;;  %v5173_v19 = vmul.f32 %v12663_v54, %v5137_v17 }
 0x885   : > { %v5204_v33 = vadd.f32 %v12674_v6, %v5168_v45  ;;  %v5205_v38 = vadd.f32 %v12674_v6, %v5169_v3  ;;  %v5206_v61 = vadd.f32 %v12674_v6, %v5170_v40  ;;  %v5207_v48 = vadd.f32 %v12674_v6, %v5171_v34 }
 0x886   : > { %v4862_v62 = vmul.f32 %v12546_v8, %v4782_v20  ;;  %v5208_v59 = vadd.f32 %v12674_v6, %v5172_v7  ;;  %v5174_v53 = vmul.f32 %v12663_v54, %v5138_v18  ;;  %v12693_v11 = vadd.f32 %v12674_v6, %v5173_v19 }
 0x887   : > { %v4554_v41 = vpop.f32.mrf.mxu3  ;;  %v5235_v43 = vpack.c.bf16 %v5204_v33, %v5203_v22  ;;  %v5236_v55 = vpack.c.bf16 %v5206_v61, %v5205_v38 }
 0x888   : > { %v4898_v52 = vadd.f32 %v4897_v25, %v4862_v62  ;;  %v5237_v4 = vpack.c.bf16 %v5208_v59, %v5207_v48  ;;  %v12696_v0 = vadd.f32 %v12674_v6, %v5174_v53 }
 0x889   : > { %5327 = vmatmul.bf16.vlgmr.msra.gmra.mxu0 %v5235_v43  ;;  %v4696_v15 = vpop.f32.mrf.mxu2 }
 0x88a   : > { %v4899_v10 = vrot.slane %v4898_v52, 4  ;;  %v5238_v9 = vpack.c.bf16 %v12696_v0, %v12693_v11 }
 0x88c   : > { %v4900_v37 = vadd.f32 %v4899_v10, %v4898_v52 }
 0x88e   : > { %v4901_v1 = vrot.slane %v4900_v37, 2 }
 0x88f   : > { %v4556_v18 = vpop.f32.mrf.mxu3 }
 0x890   : > { %v4902_v60 = vadd.f32 %v4901_v1, %v4900_v37  ;;  %v4694_v37 = vadd.f32 %v12665_v16, %v4556_v18 }
 0x891   : > { %v4698_v14 = vpop.f32.mrf.mxu2 }
 0x892   : > { %v4903_v28 = vrot.slane %v4902_v60, 1 }
 0x894   : > { %v4904_v31 = vadd.f32 %v4903_v28, %v4902_v60  ;;  %v4692_v60 = vadd.f32 %v12648_v27, %v4554_v41 }
 0x896   : > { %v4932_v21 = vmul.f32 0.017857144, %v4904_v31 }
 0x897   : > { %v4559_v42 = vpop.f32.mrf.mxu3 }
 0x898   : > { %v12702_v25 = vsub.f32 %v4775_v51, %v4932_v21  ;;  %v12706_v17 = vsub.f32 %v4776_v29, %v4932_v21  ;;  %v12710_v30 = vsub.f32 %v4777_v24, %v4932_v21  ;;  %v12714_v45 = vsub.f32 %v4778_v13, %v4932_v21 }
 0x899   : > { %5332 = vmatmul.bf16.gmra.mxu0 %v5236_v55  ;;  %v4701_v3 = vpop.f32.mrf.mxu2  ;;  %v12718_v40 = vsub.f32 %v4779_v12, %v4932_v21  ;;  %v12728_v29 = vsub.f32 %v4780_v63, %v4932_v21  ;;  %v12736_v32 = vsub.f32 %v4781_v35, %v4932_v21  ;;  %v12741_v63 = vsub.f32 %v4782_v20, %v4932_v21 }
 0x89a   : > { %v4975_v5 = vmul.f32 %v12702_v25, %v12702_v25  ;;  %v4976_v47 = vmul.f32 %v12706_v17, %v12706_v17  ;;  %v4977_v26 = vmul.f32 %v12710_v30, %v12710_v30  ;;  %v4978_v36 = vmul.f32 %v12714_v45, %v12714_v45 }
 0x89b   : > { %v4979_v13 = vmul.f32 %v12718_v40, %v12718_v40  ;;  %v4980_v22 = vmul.f32 %v12728_v29, %v12728_v29  ;;  %v4981_v2 = vmul.f32 %v12736_v32, %v12736_v32  ;;  %v4982_v61 = vmul.f32 %v12741_v63, %v12741_v63 }
 0x89c   : > { %v5007_v51 = vmul.f32 %v4975_v5, %v12489_v39  ;;  %v5008_v24 = vmul.f32 %v4976_v47, %v12494_v58  ;;  %v5009_v12 = vmul.f32 %v4977_v26, %v12509_v44  ;;  %v5010_v7 = vmul.f32 %v4978_v36, %v12520_v56 }
 0x89d   : > { %v5011_v35 = vmul.f32 %v4979_v13, %v12527_v46  ;;  %v5012_v48 = vmul.f32 %v4980_v22, %v12536_v57  ;;  %v5013_v62 = vmul.f32 %v4981_v2, %v12540_v23  ;;  %v5014_v43 = vmul.f32 %v4982_v61, %v12546_v8 }
 0x89e   : > { %v5044_v34 = vadd.f32 %v5008_v24, %v5007_v51  ;;  %v4697_v31 = vadd.f32 %v4696_v15, %v4559_v42  ;;  %v12757_v21 = vadd.f32 %v12492_v50, %v4694_v37  ;;  %v12760_v36 = vadd.f32 %v12492_v50, %v4692_v60 }
 0x89f   : > { %v4561_v49 = vpop.f32.mrf.mxu3 }
 0x8a0   : > { %v5045_v19 = vadd.f32 %v5044_v34, %v5009_v12  ;;  %v4699_v26 = vadd.f32 %v4698_v14, %v4561_v49  ;;  %v12763_v24 = vadd.f32 %v12492_v50, %v4697_v31  ;;  %v4784_v18 = vmax.f32 %v12757_v21, 0.0 }
 0x8a1   : > { %v4703_v33 = vpop.f32.mrf.mxu2  ;;  %v4783_v42 = vmax.f32 %v12760_v36, 0.0 }
 0x8a2   : > { %v5046_v38 = vadd.f32 %v5045_v19, %v5010_v7  ;;  %v12767_v41 = vadd.f32 %v12492_v50, %v4699_v26  ;;  %v4785_v14 = vmax.f32 %v12763_v24, 0.0  ;;  %v4864_v34 = vmul.f32 %v12494_v58, %v4784_v18 }
 0x8a4   : > { %v5047_v20 = vadd.f32 %v5046_v38, %v5011_v35  ;;  %v4786_v22 = vmax.f32 %v12767_v41, 0.0  ;;  %v4865_v38 = vmul.f32 %v12509_v44, %v4785_v14 }
 0x8a6   : > { %v5048_v59 = vadd.f32 %v5047_v20, %v5012_v48 }
 0x8a7   : > { %v4564_v53 = vpop.f32.mrf.mxu3 }
 0x8a8   : > { %v5049_v55 = vadd.f32 %v5048_v59, %v5013_v62  ;;  %v4702_v16 = vadd.f32 %v4701_v3, %v4564_v53  ;;  %v4866_v62 = vmul.f32 %v12520_v56, %v4786_v22 }
 0x8a9   : > { %5337 = vmatmul.bf16.gmra.mxu0 %v5237_v4  ;;  %v4706_v52 = vpop.f32.mrf.mxu2 }
 0x8aa   : > { %v5050_v10 = vadd.f32 %v5049_v55, %v5014_v43  ;;  %v12772_v12 = vadd.f32 %v12492_v50, %v4702_v16 }
 0x8ac   : > { %v5051_v1 = vrot.slane %v5050_v10, 4  ;;  %v4787_v61 = vmax.f32 %v12772_v12, 0.0 }
 0x8ae   : > { %v5052_v28 = vadd.f32 %v5051_v1, %v5050_v10 }
 0x8af   : > { %v4566_v5 = vpop.f32.mrf.mxu3 }
 0x8b0   : > { %v5053_v47 = vrot.slane %v5052_v28, 2  ;;  %v4704_v15 = vadd.f32 %v4703_v33, %v4566_v5  ;;  %v4863_v33 = vmul.f32 %v12489_v39, %v4783_v42 }
 0x8b1   : > { %v4708_v51 = vpop.f32.mrf.mxu2 }
 0x8b2   : > { %v5054_v4 = vadd.f32 %v5053_v47, %v5052_v28  ;;  %v12779_v7 = vadd.f32 %v12492_v50, %v4704_v15  ;;  %v4905_v20 = vadd.f32 %v4864_v34, %v4863_v33 }
 0x8b4   : > { %v5055_v27 = vrot.slane %v5054_v4, 1  ;;  %v4788_v11 = vmax.f32 %v12779_v7, 0.0  ;;  %v4906_v0 = vadd.f32 %v4905_v20, %v4865_v38 }
 0x8b6   : > { %v5056_v13 = vadd.f32 %v5055_v27, %v5054_v4  ;;  %v4907_v43 = vadd.f32 %v4906_v0, %v4866_v62  ;;  %v4868_v55 = vmul.f32 %v12536_v57, %v4788_v11 }
 0x8b7   : > { %v4569_v3 = vpop.f32.mrf.mxu3 }
 0x8b8   : > { %v5084_v49 = vmul.f32 0.017857144, %v5056_v13  ;;  %v4707_v19 = vadd.f32 %v4706_v52, %v4569_v3 }
 0x8b9   : > { %5342 = vmatmul.bf16.gmra.mxu0 %v5238_v9  ;;  %v12787_v2 = vpop.f32.mrf.mxu2  ;;  %v4867_v9 = vmul.f32 %v12527_v46, %v4787_v61 }
 0x8ba   : > { %v5088_v35 = vadd.f32 1e-05, %v5084_v49  ;;  %v12794_v48 = vadd.f32 %v12492_v50, %v4707_v19 }
 0x8bb   : > { %v4908_v37 = vadd.f32 %v4907_v43, %v4867_v9 }
 0x8bc   : > { %9603 = vrsqrt.f32 %v5088_v35  ;;  %v4789_v59 = vmax.f32 %v12794_v48, 0.0  ;;  %vm5107_vm14 = vweird.f32 %v5088_v35 }
 0x8bd   : > { %v4909_v5 = vadd.f32 %v4908_v37, %v4868_v55 }
 0x8be   : > { %v4869_v1 = vmul.f32 %v12540_v23, %v4789_v59 }
 0x8bf   : > { %v4571_v53 = vpop.f32.mrf.mxu3 }
 0x8c0   : > { %v4709_v52 = vadd.f32 %v4708_v51, %v4571_v53  ;;  %v4910_v4 = vadd.f32 %v4909_v5, %v4869_v1 }
 0x8c1   : > { %v12813_v31 = vpop.f32.mrf.mxu2 }
 0x8c2   : > { %v9604_v10 = vpop.eup %9603  ;;  %v12811_v60 = vadd.f32 %v12492_v50, %v4709_v52 }
 0x8c3   : > { %v5102_v28 = vmul.f32 %v9604_v10, %v5088_v35  ;;  %vm5108_vm13 = vweird.f32 %v9604_v10 }
 0x8c4   : > { %v4790_v47 = vmax.f32 %v12811_v60, 0.0  ;;  %vm5109_vm15 = vmor %vm5107_vm14, %vm5108_vm13 }
 0x8c5   : > { %v5103_v26 = vmul.f32 %v9604_v10, %v5102_v28 }
 0x8c6   : > { %v4870_v51 = vmul.f32 %v12546_v8, %v4790_v47 }
 0x8c7   : > { %v5104_v16 = vmul.f32 0.5, %v5103_v26  ;;  %v12819_v27 = vpop.f32.mrf.mxu3 }
 0x8c8   : > { %v4911_v15 = vadd.f32 %v4910_v4, %v4870_v51 }
 0x8c9   : > { %v5105_v13 = vsub.f32 1.5, %v5104_v16  ;;  %v12821_v33 = vpop.f32.mrf.mxu2 }
 0x8ca   : > { %v4912_v34 = vrot.slane %v4911_v15, 4 }
 0x8cb   : > { %v5106_v3 = vmul.f32 %v9604_v10, %v5105_v13 }
 0x8cc   : > { %v4913_v49 = vadd.f32 %v4912_v34, %v4911_v15 }
 0x8cd   : > { %v5110_v19 = vsel %vm5109_vm15, %v9604_v10, %v5106_v3 }
 0x8ce   : > { %v4914_v38 = vrot.slane %v4913_v49, 2  ;;  %v5139_v20 = vmul.f32 %v5110_v19, %v12702_v25  ;;  %v5140_v0 = vmul.f32 %v5110_v19, %v12706_v17  ;;  %v5141_v9 = vmul.f32 %v5110_v19, %v12710_v30 }
 0x8cf   : > { %v12824_v62 = vpop.f32.mrf.mxu3  ;;  %v5142_v53 = vmul.f32 %v5110_v19, %v12714_v45  ;;  %v5143_v43 = vmul.f32 %v5110_v19, %v12718_v40  ;;  %v5144_v52 = vmul.f32 %v5110_v19, %v12728_v29  ;;  %v5146_v17 = vmul.f32 %v5110_v19, %v12741_v63 }
 0x8d0   : > { %v4915_v55 = vadd.f32 %v4914_v38, %v4913_v49  ;;  %v5175_v35 = vmul.f32 %v12663_v54, %v5139_v20  ;;  %v5176_v10 = vmul.f32 %v12663_v54, %v5140_v0  ;;  %v5177_v37 = vmul.f32 %v12663_v54, %v5141_v9 }
 0x8d1   : > { %v5178_v25 = vmul.f32 %v12663_v54, %v5142_v53  ;;  %v5179_v1 = vmul.f32 %v12663_v54, %v5143_v43  ;;  %v5180_v40 = vmul.f32 %v12663_v54, %v5144_v52  ;;  %v5145_v15 = vmul.f32 %v5110_v19, %v12736_v32  ;;  %v4718_v3 = vpop.f32.mrf.mxu2 }
 0x8d2   : > { %v4916_v30 = vrot.slane %v4915_v55, 1  ;;  %v5211_v45 = vadd.f32 %v12674_v6, %v5175_v35  ;;  %v5212_v28 = vadd.f32 %v12674_v6, %v5176_v10  ;;  %v5213_v5 = vadd.f32 %v12674_v6, %v5177_v37 }
 0x8d3   : > { %v5214_v29 = vadd.f32 %v12674_v6, %v5178_v25  ;;  %v12843_v26 = vadd.f32 %v12674_v6, %v5179_v1  ;;  %v12846_v51 = vadd.f32 %v12674_v6, %v5180_v40  ;;  %v5182_v38 = vmul.f32 %v12663_v54, %v5146_v17 }
 0x8d4   : > { %v4917_v4 = vadd.f32 %v4916_v30, %v4915_v55  ;;  %v5239_v16 = vpack.c.bf16 %v5212_v28, %v5211_v45  ;;  %v5181_v9 = vmul.f32 %v12663_v54, %v5145_v15 }
 0x8d5   : > { %v5240_v63 = vpack.c.bf16 %v5214_v29, %v5213_v5  ;;  %v5241_v34 = vpack.c.bf16 %v12846_v51, %v12843_v26 }
 0x8d6   : > { %v4933_v13 = vmul.f32 0.017857144, %v4917_v4  ;;  %5347 = vmatmul.bf16.gmra.mxu0 %v5239_v16  ;;  %v12898_v7 = vadd.f32 %v12674_v6, %v5181_v9  ;;  %v4714_v16 = vadd.f32 %v12813_v31, %v12824_v62 }
 0x8d7   : > { %v4579_v49 = vpop.f32.mrf.mxu3 }
 0x8d8   : > { %v12854_v20 = vsub.f32 %v4783_v42, %v4933_v13  ;;  %v12858_v0 = vsub.f32 %v4784_v18, %v4933_v13  ;;  %v12862_v32 = vsub.f32 %v4785_v14, %v4933_v13  ;;  %v12866_v19 = vsub.f32 %v4786_v22, %v4933_v13 }
 0x8d9   : > { %v12871_v53 = vsub.f32 %v4787_v61, %v4933_v13  ;;  %v12880_v18 = vadd.f32 %v12674_v6, %v5182_v38  ;;  %v12884_v41 = vsub.f32 %v4788_v11, %v4933_v13  ;;  %v12892_v22 = vsub.f32 %v4789_v59, %v4933_v13  ;;  %v4721_v37 = vpop.f32.mrf.mxu2 }
 0x8da   : > { %v4983_v36 = vmul.f32 %v12854_v20, %v12854_v20  ;;  %v4984_v21 = vmul.f32 %v12858_v0, %v12858_v0  ;;  %v4985_v24 = vmul.f32 %v12862_v32, %v12862_v32  ;;  %v4986_v42 = vmul.f32 %v12866_v19, %v12866_v19 }
 0x8db   : > { %v4987_v61 = vmul.f32 %v12871_v53, %v12871_v53  ;;  %v12902_v11 = vsub.f32 %v4790_v47, %v4933_v13  ;;  %v4988_v52 = vmul.f32 %v12884_v41, %v12884_v41  ;;  %v5242_v10 = vpack.c.bf16 %v12880_v18, %v12898_v7 }
 0x8dc   : > { %v5015_v14 = vmul.f32 %v4983_v36, %v12489_v39  ;;  %v5016_v12 = vmul.f32 %v4984_v21, %v12494_v58  ;;  %v5017_v43 = vmul.f32 %v4985_v24, %v12509_v44  ;;  %v5018_v48 = vmul.f32 %v4986_v42, %v12520_v56 }
 0x8dd   : > { %v4989_v25 = vmul.f32 %v12892_v22, %v12892_v22  ;;  %v5019_v1 = vmul.f32 %v4987_v61, %v12527_v46  ;;  %v4990_v60 = vmul.f32 %v12902_v11, %v12902_v11  ;;  %v5020_v47 = vmul.f32 %v4988_v52, %v12536_v57 }
 0x8de   : > { %v5057_v55 = vadd.f32 %v5016_v12, %v5015_v14  ;;  %v4712_v38 = vadd.f32 %v12787_v2, %v12819_v27  ;;  %v4717_v36 = vadd.f32 %v12821_v33, %v4579_v49  ;;  %v12923_v21 = vadd.f32 %v12492_v50, %v4714_v16 }
 0x8df   : > { %v4581_v35 = vpop.f32.mrf.mxu3  ;;  %v5021_v45 = vmul.f32 %v4989_v25, %v12540_v23  ;;  %v5022_v5 = vmul.f32 %v4990_v60, %v12546_v8 }
 0x8e0   : > { %v5058_v59 = vadd.f32 %v5057_v55, %v5017_v43  ;;  %v4719_v42 = vadd.f32 %v4718_v3, %v4581_v35  ;;  %v12926_v14 = vadd.f32 %v12492_v50, %v4712_v38  ;;  %v12929_v31 = vadd.f32 %v12492_v50, %v4717_v36 }
 0x8e1   : > { %v4723_v15 = vpop.f32.mrf.mxu2  ;;  %v4792_v61 = vmax.f32 %v12923_v21, 0.0 }
 0x8e2   : > { %v5059_v17 = vadd.f32 %v5058_v59, %v5018_v48  ;;  %v12933_v27 = vadd.f32 %v12492_v50, %v4719_v42  ;;  %v4791_v49 = vmax.f32 %v12926_v14, 0.0  ;;  %v4793_v3 = vmax.f32 %v12929_v31, 0.0 }
 0x8e3   : > { %v4872_v52 = vmul.f32 %v12494_v58, %v4792_v61 }
 0x8e4   : > { %v5060_v30 = vadd.f32 %v5059_v17, %v5019_v1  ;;  %v4871_v17 = vmul.f32 %v12489_v39, %v4791_v49 }
 0x8e6   : > { %v5061_v40 = vadd.f32 %v5060_v30, %v5020_v47  ;;  %5352 = vmatmul.bf16.gmra.mxu0 %v5240_v63  ;;  %v4873_v47 = vmul.f32 %v12509_v44, %v4793_v3 }
 0x8e7   : > { %v4584_v28 = vpop.f32.mrf.mxu3 }
 0x8e8   : > { %v5062_v29 = vadd.f32 %v5061_v40, %v5021_v45  ;;  %v4722_v62 = vadd.f32 %v4721_v37, %v4584_v28  ;;  %v4794_v37 = vmax.f32 %v12933_v27, 0.0 }
 0x8e9   : > { %v4726_v43 = vpop.f32.mrf.mxu2 }
 0x8ea   : > { %v5063_v4 = vadd.f32 %v5062_v29, %v5022_v5  ;;  %v12938_v35 = vadd.f32 %v12492_v50, %v4722_v62  ;;  %v4874_v30 = vmul.f32 %v12520_v56, %v4794_v37 }
 0x8ec   : > { %v5064_v13 = vrot.slane %v5063_v4, 4  ;;  %v4795_v26 = vmax.f32 %v12938_v35, 0.0 }
 0x8ee   : > { %v5065_v9 = vadd.f32 %v5064_v13, %v5063_v4  ;;  %v4875_v28 = vmul.f32 %v12527_v46, %v4795_v26 }
 0x8ef   : > { %v4586_v63 = vpop.f32.mrf.mxu3 }
 0x8f0   : > { %v5066_v24 = vrot.slane %v5065_v9, 2  ;;  %v4724_v33 = vadd.f32 %v4723_v15, %v4586_v63 }
 0x8f1   : > { %v4728_v29 = vpop.f32.mrf.mxu2 }
 0x8f2   : > { %v5067_v12 = vadd.f32 %v5066_v24, %v5065_v9  ;;  %v12948_v25 = vadd.f32 %v12492_v50, %v4724_v33 }
 0x8f4   : > { %v5068_v2 = vrot.slane %v5067_v12, 1  ;;  %v4796_v45 = vmax.f32 %v12948_v25, 0.0 }
 0x8f6   : > { %v5069_v55 = vadd.f32 %v5068_v2, %v5067_v12  ;;  %5357 = vmatmul.bf16.gmra.mxu0 %v5241_v34  ;;  %v4918_v34 = vadd.f32 %v4872_v52, %v4871_v17  ;;  %v4876_v15 = vmul.f32 %v12536_v57, %v4796_v45 }
 0x8f7   : > { %v4589_v48 = vpop.f32.mrf.mxu3 }
 0x8f8   : > { %v5085_v59 = vmul.f32 0.017857144, %v5069_v55  ;;  %v4727_v1 = vadd.f32 %v4726_v43, %v4589_v48  ;;  %v4919_v40 = vadd.f32 %v4918_v34, %v4873_v47 }
 0x8fa   : > { %v5089_v60 = vadd.f32 1e-05, %v5085_v59  ;;  %v12958_v51 = vadd.f32 %v12492_v50, %v4727_v1  ;;  %v4920_v16 = vadd.f32 %v4919_v40, %v4874_v30 }
 0x8fc   : > { %9605 = vrsqrt.f32 %v5089_v60  ;;  %v4797_v5 = vmax.f32 %v12958_v51, 0.0  ;;  %v4921_v9 = vadd.f32 %v4920_v16, %v4875_v28  ;;  %vm5117_vm1 = vweird.f32 %v5089_v60 }
 0x8fe   : > { %v4877_v36 = vmul.f32 %v12540_v23, %v4797_v5  ;;  %v4922_v42 = vadd.f32 %v4921_v9, %v4876_v15 }
 0x8ff   : > { %v4591_v4 = vpop.f32.mrf.mxu3 }
 0x900   : > { %v4729_v13 = vadd.f32 %v4728_v29, %v4591_v4  ;;  %v4923_v2 = vadd.f32 %v4922_v42, %v4877_v36 }
 0x902   : > { %v9606_v38 = vpop.eup %9605  ;;  %v12975_v63 = vadd.f32 %v12492_v50, %v4729_v13 }
 0x903   : > { %v5112_v24 = vmul.f32 %v9606_v38, %v5089_v60  ;;  %vm5118_vm0 = vweird.f32 %v9606_v38 }
 0x904   : > { %v4798_v12 = vmax.f32 %v12975_v63, 0.0  ;;  %vm5119_vm2 = vmor %vm5117_vm1, %vm5118_vm0 }
 0x905   : > { %v5113_v62 = vmul.f32 %v9606_v38, %v5112_v24 }
 0x906   : > { %v4878_v33 = vmul.f32 %v12546_v8, %v4798_v12  ;;  %v12981_v43 = vpop.f32.mrf.mxu0  ;;  %5362 = vmatmul.bf16.gmra.mxu0 %v5242_v10 }
 0x907   : > { %v5114_v55 = vmul.f32 0.5, %v5113_v62 }
 0x908   : > { %v4924_v52 = vadd.f32 %v4923_v2, %v4878_v33 }
 0x909   : > { %v5115_v50 = vsub.f32 1.5, %v5114_v55 }
 0x90a   : > { %v4925_v48 = vrot.slane %v4924_v52, 4 }
 0x90b   : > { %v5116_v59 = vmul.f32 %v9606_v38, %v5115_v50 }
 0x90c   : > { %v4926_v1 = vadd.f32 %v4925_v48, %v4924_v52 }
 0x90d   : > { %v5120_v17 = vsel %vm5119_vm2, %v9606_v38, %v5116_v59 }
 0x90e   : > { %v4927_v47 = vrot.slane %v4926_v1, 2  ;;  %v12986_v34 = vpop.f32.mrf.mxu0  ;;  %v5147_v30 = vmul.f32 %v5120_v17, %v12854_v20  ;;  %v5148_v40 = vmul.f32 %v5120_v17, %v12858_v0  ;;  %v5149_v28 = vmul.f32 %v5120_v17, %v12862_v32 }
 0x90f   : > { %v5150_v18 = vmul.f32 %v5120_v17, %v12866_v19  ;;  %v5151_v7 = vmul.f32 %v5120_v17, %v12871_v53  ;;  %v5152_v4 = vmul.f32 %v5120_v17, %v12884_v41  ;;  %v5154_v13 = vmul.f32 %v5120_v17, %v12902_v11 }
 0x910   : > { %v4928_v10 = vadd.f32 %v4927_v47, %v4926_v1  ;;  %v5183_v29 = vmul.f32 %v12663_v54, %v5147_v30  ;;  %v5184_v60 = vmul.f32 %v12663_v54, %v5148_v40  ;;  %v5185_v16 = vmul.f32 %v12663_v54, %v5149_v28 }
 0x911   : > { %v5186_v15 = vmul.f32 %v12663_v54, %v5150_v18  ;;  %v5187_v20 = vmul.f32 %v12663_v54, %v5151_v7  ;;  %v5188_v53 = vmul.f32 %v12663_v54, %v5152_v4  ;;  %v5153_v2 = vmul.f32 %v5120_v17, %v12892_v22 }
 0x912   : > { %v4929_v0 = vrot.slane %v4928_v10, 1  ;;  %v5219_v32 = vadd.f32 %v12674_v6, %v5183_v29  ;;  %v5220_v19 = vadd.f32 %v12674_v6, %v5184_v60  ;;  %v5221_v38 = vadd.f32 %v12674_v6, %v5185_v16 }
 0x913   : > { %v5222_v9 = vadd.f32 %v12674_v6, %v5186_v15  ;;  %v5223_v41 = vadd.f32 %v12674_v6, %v5187_v20  ;;  %v5224_v42 = vadd.f32 %v12674_v6, %v5188_v53  ;;  %v5190_v11 = vmul.f32 %v12663_v54, %v5154_v13 }
 0x914   : > { %v4930_v36 = vadd.f32 %v4929_v0, %v4928_v10  ;;  %v5243_v24 = vpack.c.bf16 %v5220_v19, %v5219_v32  ;;  %v5189_v1 = vmul.f32 %v12663_v54, %v5153_v2 }
 0x915   : > { %v5244_v62 = vpack.c.bf16 %v5222_v9, %v5221_v38  ;;  %v5245_v52 = vpack.c.bf16 %v5224_v42, %v5223_v41  ;;  %v13077_v42 = vld [vmem:[%s14882_s7] ss:$0 sm:$0xff]  ;;  %s1607_s7 = sand.u32 1, %s14897_s8  }
 0x916   : > { %v4934_v33 = vmul.f32 0.017857144, %v4930_v36  ;;  %v13008_v55 = vpop.f32.mrf.mxu0  ;;  %5367 = vmatmul.bf16.gmra.mxu0 %v5243_v24 }
 0x918   : > { %v13013_v50 = vsub.f32 %v4791_v49, %v4934_v33  ;;  %v13017_v48 = vsub.f32 %v4792_v61, %v4934_v33  ;;  %v13021_v59 = vsub.f32 %v4793_v3, %v4934_v33  ;;  %v13025_v22 = vsub.f32 %v4794_v37, %v4934_v33 }
 0x919   : > { %v13030_v17 = vsub.f32 %v4795_v26, %v4934_v33  ;;  %v13039_v61 = vadd.f32 %v12674_v6, %v5190_v11  ;;  %v13043_v27 = vsub.f32 %v4796_v45, %v4934_v33  ;;  %v13051_v37 = vsub.f32 %v4797_v5, %v4934_v33 }
 0x91a   : > { %v4991_v14 = vmul.f32 %v13013_v50, %v13013_v50  ;;  %v4992_v21 = vmul.f32 %v13017_v48, %v13017_v48  ;;  %v4993_v31 = vmul.f32 %v13021_v59, %v13021_v59  ;;  %v4994_v49 = vmul.f32 %v13025_v22, %v13025_v22 }
 0x91b   : > { %v4995_v26 = vmul.f32 %v13030_v17, %v13030_v17  ;;  %v13057_v45 = vadd.f32 %v12674_v6, %v5189_v1  ;;  %v13061_v40 = vsub.f32 %v4798_v12, %v4934_v33  ;;  %v4996_v28 = vmul.f32 %v13043_v27, %v13043_v27 }
 0x91c   : > { %v5023_v3 = vmul.f32 %v4991_v14, %v12489_v39  ;;  %v5024_v35 = vmul.f32 %v4992_v21, %v12494_v58  ;;  %v5025_v47 = vmul.f32 %v4993_v31, %v12509_v44  ;;  %v5026_v51 = vmul.f32 %v4994_v49, %v12520_v56 }
 0x91d   : > { %v5246_v18 = vpack.c.bf16 %v13039_v61, %v13057_v45  ;;  %v4997_v7 = vmul.f32 %v13051_v37, %v13051_v37  ;;  %v5027_v10 = vmul.f32 %v4995_v26, %v12527_v46  ;;  %v4998_v63 = vmul.f32 %v13061_v40, %v13061_v40 }
 0x91e   : > { %v5070_v30 = vadd.f32 %v5024_v35, %v5023_v3  ;;  %v5335_v25 = vpop.f32.mrf.mxu0  ;;  %v5028_v12 = vmul.f32 %v4996_v28, %v12536_v57  ;;  %v5331_v1 = vadd.f32 %v13077_v42, %v12986_v34  ;;  %v5329_v61 = vadd.f32 %v13077_v42, %v12981_v43 }
 0x91f   : > { %v5029_v4 = vmul.f32 %v4997_v7, %v12540_v23  ;;  %v5030_v20 = vmul.f32 %v4998_v63, %v12546_v8  ;;  %v5336_v14 = vadd.f32 %v13077_v42, %v5335_v25  ;;  %v5334_v49 = vadd.f32 %v13077_v42, %v13008_v55 }
 0x920   : > { %v5071_v5 = vadd.f32 %v5070_v30, %v5025_v47  ;;  %v5409_v26 = vmul.f32 %v5331_v1, %v12494_v58  ;;  %v5408_v43 = vmul.f32 %v5329_v61, %v12489_v39 }
 0x921   : > { %v5411_v34 = vmul.f32 %v5336_v14, %v12520_v56 }
 0x922   : > { %v5072_v29 = vadd.f32 %v5071_v5, %v5026_v51  ;;  %v5410_v51 = vmul.f32 %v5334_v49, %v12509_v44  ;;  %v5441_v7 = vpack.c.bf16 %v5409_v26, %v5409_v26 }
 0x924   : > { %v5073_v60 = vadd.f32 %v5072_v29, %v5027_v10  ;;  %v5443_v10 = vpack.c.bf16 %v5411_v34, %v5411_v34 }
 0x926   : > { %v5074_v16 = vadd.f32 %v5073_v60, %v5028_v12  ;;  %v5338_v15 = vpop.f32.mrf.mxu0  ;;  %5372 = vmatmul.bf16.gmra.mxu0 %v5244_v62 }
 0x927   : > { %v5339_v21 = vadd.f32 %v13077_v42, %v5338_v15  ;;  %v5442_v15 = vpack.c.bf16 %v5410_v51, %v5410_v51 }
 0x928   : > { %v5075_v0 = vadd.f32 %v5074_v16, %v5029_v4  ;;  %v5440_v4 = vpack.c.bf16 %v5408_v43, %v5408_v43  ;;  %v13122_v43 = vld [vmem:[#allocation11] sm:$0xff] }
 0x929   : > { %v5412_v47 = vmul.f32 %v5339_v21, %v12527_v46 }
 0x92a   : > { %v5076_v32 = vadd.f32 %v5075_v0, %v5030_v20 }
 0x92b   : > { %v5444_v63 = vpack.c.bf16 %v5412_v47, %v5412_v47 }
 0x92c   : > { %v5077_v19 = vrot.slane %v5076_v32, 4 }
 0x92e   : > { %v5078_v53 = vadd.f32 %v5077_v19, %v5076_v32  ;;  %v5340_v13 = vpop.f32.mrf.mxu0  ;;  %v5537_v32 = vunpack.c.l.b16 %v5441_v7  ;;  %v13126_v7 = vld [vmem:[#allocation11 + $0x8] sm:$0xff] }
 0x92f   : > { %v5341_v62 = vadd.f32 %v13077_v42, %v5340_v13  ;;  %v5540_v13 = vunpack.c.l.b16 %v5444_v63 }
 0x930   : > { %v5079_v38 = vrot.slane %v5078_v53, 2 }
 0x931   : > { %v5413_v3 = vmul.f32 %v5341_v62, %v12536_v57 }
 0x932   : > { %v5080_v9 = vadd.f32 %v5079_v38, %v5078_v53  ;;  %v5539_v53 = vunpack.c.l.b16 %v5443_v10  ;;  %v5536_v38 = vunpack.c.l.b16 %v5440_v4 }
 0x933   : > { %v5445_v55 = vpack.c.bf16 %v5413_v3, %v5413_v3 }
 0x934   : > { %v5081_v41 = vrot.slane %v5080_v9, 1 }
 0x935   : > { %v5541_v20 = vunpack.c.l.b16 %v5445_v55 }
 0x936   : > { %v5082_v36 = vadd.f32 %v5081_v41, %v5080_v9  ;;  %v5343_v24 = vpop.f32.mrf.mxu0  ;;  %5377 = vmatmul.bf16.gmra.mxu0 %v5245_v52  ;;  %v5538_v41 = vunpack.c.l.b16 %v5442_v15 }
 0x937   : > { %v5344_v33 = vadd.f32 %v13077_v42, %v5343_v24 }
 0x938   : > { %v5086_v2 = vmul.f32 0.017857144, %v5082_v36  ;;  %v5546_v36 = vpack.c.b16 %v5541_v20, %v5540_v13 }
 0x939   : > { %v5414_v31 = vmul.f32 %v5344_v33, %v12540_v23  ;;  %v5544_v33 = vpack.c.b16 %v5537_v32, %v5536_v38 }
 0x93a   : > { %v5090_v11 = vadd.f32 1e-05, %v5086_v2  ;;  %v5545_v2 = vpack.c.b16 %v5539_v53, %v5538_v41 }
 0x93b   : > { %v5446_v30 = vpack.c.bf16 %v5414_v31, %v5414_v31 }
 0x93c   : > { %9607 = vrsqrt.f32 %v5090_v11  ;;  %vm5127_vm4 = vweird.f32 %v5090_v11 }
 0x93d   : > { %v5542_v12 = vunpack.c.l.b16 %v5446_v30 }
 0x93e   : > { %v5345_v52 = vpop.f32.mrf.mxu0 }
 0x93f   : > { %v5346_v35 = vadd.f32 %v13077_v42, %v5345_v52 }
 0x941   : > { %v5415_v25 = vmul.f32 %v5346_v35, %v12546_v8 }
 0x942   : > { %v9608_v45 = vpop.eup %9607 }
 0x943   : > { %v5122_v28 = vmul.f32 %v9608_v45, %v5090_v11  ;;  %v5447_v5 = vpack.c.bf16 %v5415_v25, %v5415_v25  ;;  %vm5128_vm3 = vweird.f32 %v9608_v45 }
 0x944   : > { %vm5129_vm5 = vmor %vm5127_vm4, %vm5128_vm3 }
 0x945   : > { %v5123_v29 = vmul.f32 %v9608_v45, %v5122_v28  ;;  %v5543_v60 = vunpack.c.l.b16 %v5447_v5 }
 0x946   : > { %5382 = vmatmul.bf16.gmra.mxu0 %v5246_v18 }
 0x947   : > { %v5124_v16 = vmul.f32 0.5, %v5123_v29  ;;  %v5547_v0 = vpack.c.b16 %v5543_v60, %v5542_v12  ;;  %v13130_v29 = vld [vmem:[#allocation11 + $0x10] sm:$0xff]  ;;  %v13134_v60 = vld [vmem:[#allocation11 + $0x18] sm:$0xff] }
 0x949   : > { %v5125_v19 = vsub.f32 1.5, %v5124_v16  ;;  %5580 = vmatpush.bf16.msra.mxu1 %v5547_v0 }
 0x94b   : > { %v5126_v9 = vmul.f32 %v9608_v45, %v5125_v19 }
 0x94d   : > { %v5130_v24 = vsel %vm5129_vm5, %v9608_v45, %v5126_v9  ;;  %5581 = vmatpush.bf16.msra.mxu1 %v5546_v36 }
 0x94e   : > { %v5162_v62 = vmul.f32 %v5130_v24, %v13061_v40  ;;  %v5155_v18 = vmul.f32 %v5130_v24, %v13013_v50  ;;  %v5156_v1 = vmul.f32 %v5130_v24, %v13017_v48  ;;  %v5157_v14 = vmul.f32 %v5130_v24, %v13021_v59 }
 0x94f   : > { %v5158_v21 = vmul.f32 %v5130_v24, %v13025_v22  ;;  %v5159_v31 = vmul.f32 %v5130_v24, %v13030_v17  ;;  %v5160_v11 = vmul.f32 %v5130_v24, %v13043_v27  ;;  %v5161_v61 = vmul.f32 %v5130_v24, %v13051_v37 }
 0x950   : > { %v5191_v52 = vmul.f32 %v12663_v54, %v5155_v18  ;;  %v5192_v49 = vmul.f32 %v12663_v54, %v5156_v1  ;;  %v5193_v40 = vmul.f32 %v12663_v54, %v5157_v14  ;;  %v5198_v50 = vmul.f32 %v12663_v54, %v5162_v62 }
 0x951   : > { %5582 = vmatpush.bf16.msra.mxu1 %v5545_v2  ;;  %v5194_v48 = vmul.f32 %v12663_v54, %v5158_v21  ;;  %v5195_v59 = vmul.f32 %v12663_v54, %v5159_v31  ;;  %v5196_v22 = vmul.f32 %v12663_v54, %v5160_v11  ;;  %v5197_v17 = vmul.f32 %v12663_v54, %v5161_v61  ;;  %v13152_v11 = vld [vmem:[#allocation11 + $0x20] sm:$0xff] }
 0x952   : > { %v5227_v27 = vadd.f32 %v12674_v6, %v5191_v52  ;;  %v5228_v37 = vadd.f32 %v12674_v6, %v5192_v49  ;;  %v5229_v3 = vadd.f32 %v12674_v6, %v5193_v40  ;;  %v5234_v35 = vadd.f32 %v12674_v6, %v5198_v50 }
 0x953   : > { %v5230_v26 = vadd.f32 %v12674_v6, %v5194_v48  ;;  %v5231_v34 = vadd.f32 %v12674_v6, %v5195_v59  ;;  %v5232_v47 = vadd.f32 %v12674_v6, %v5196_v22  ;;  %v5233_v30 = vadd.f32 %v12674_v6, %v5197_v17  ;;  %v5348_v25 = vpop.f32.mrf.mxu0 }
 0x954   : > { %v5247_v45 = vpack.c.bf16 %v5228_v37, %v5227_v27  ;;  %v5349_v62 = vadd.f32 %v13077_v42, %v5348_v25 }
 0x955   : > { %5583 = vmatpush.bf16.msra.mxu1 %v5544_v33  ;;  %v5248_v54 = vpack.c.bf16 %v5230_v26, %v5229_v3  ;;  %v5249_v28 = vpack.c.bf16 %v5232_v47, %v5231_v34  ;;  %v5250_v51 = vpack.c.bf16 %v5234_v35, %v5233_v30 }
 0x956   : > { %5387 = vmatmul.bf16.gmra.mxu0 %v5247_v45  ;;  %v5416_v50 = vmul.f32 %v5349_v62, %v12489_v39  ;;  %v13158_v45 = vld [vmem:[#allocation11 + $0x28] sm:$0xff] }
 0x958   : > { %8926 = vmatmul.msk.bf16.vlgmr.msra.gmra.mxu1 %vm2649_vm12, %v13122_v43  ;;  %v5448_v37 = vpack.c.bf16 %v5416_v50, %v5416_v50 }
 0x95a   : > { %v5633_v47 = vunpack.c.l.b16 %v5448_v37 }
 0x95b   : > { %v5350_v55 = vpop.f32.mrf.mxu0 }
 0x95c   : > { %v5351_v36 = vadd.f32 %v13077_v42, %v5350_v55 }
 0x95e   : > { %v5417_v61 = vmul.f32 %v5351_v36, %v12494_v58 }
 0x960   : > { %v5449_v22 = vpack.c.bf16 %v5417_v61, %v5417_v61 }
 0x962   : > { %v5634_v26 = vunpack.c.l.b16 %v5449_v22 }
 0x963   : > { %v5353_v5 = vpop.f32.mrf.mxu0 }
 0x964   : > { %v5354_v13 = vadd.f32 %v13077_v42, %v5353_v5  ;;  %v5641_v30 = vpack.c.b16 %v5634_v26, %v5633_v47 }
 0x966   : > { %5392 = vmatmul.bf16.gmra.mxu0 %v5248_v54  ;;  %v5418_v18 = vmul.f32 %v5354_v13, %v12509_v44 }
 0x968   : > { %8927 = vmatmul.msk.bf16.gmra.mxu1 %vm2649_vm12, %v13126_v7  ;;  %v5450_v48 = vpack.c.bf16 %v5418_v18, %v5418_v18 }
 0x96a   : > { %v5635_v3 = vunpack.c.l.b16 %v5450_v48 }
 0x96b   : > { %v5355_v6 = vpop.f32.mrf.mxu0 }
 0x96c   : > { %v5356_v32 = vadd.f32 %v13077_v42, %v5355_v6  ;;  %v13166_v6 = vld [vmem:[#allocation11 + $0x38] sm:$0xff] }
 0x96e   : > { %v5419_v24 = vmul.f32 %v5356_v32, %v12520_v56 }
 0x970   : > { %v5451_v52 = vpack.c.bf16 %v5419_v24, %v5419_v24 }
 0x972   : > { %v5636_v17 = vunpack.c.l.b16 %v5451_v52 }
 0x973   : > { %v5358_v10 = vpop.f32.mrf.mxu0 }
 0x974   : > { %v5359_v15 = vadd.f32 %v13077_v42, %v5358_v10  ;;  %v5642_v34 = vpack.c.b16 %v5636_v17, %v5635_v3 }
 0x976   : > { %5397 = vmatmul.bf16.gmra.mxu0 %v5249_v28  ;;  %v5420_v38 = vmul.f32 %v5359_v15, %v12527_v46 }
 0x978   : > { %8928 = vmatmul.msk.bf16.gmra.mxu1 %vm2649_vm12, %v13130_v29  ;;  %v5452_v1 = vpack.c.bf16 %v5420_v38, %v5420_v38 }
 0x97a   : > { %v5637_v59 = vunpack.c.l.b16 %v5452_v1 }
 0x97b   : > { %v5360_v63 = vpop.f32.mrf.mxu0 }
 0x97c   : > { %v5361_v16 = vadd.f32 %v13077_v42, %v5360_v63 }
 0x97e   : > { %v5421_v19 = vmul.f32 %v5361_v16, %v12536_v57 }
 0x980   : > { %v5453_v2 = vpack.c.bf16 %v5421_v19, %v5421_v19 }
 0x982   : > { %v5638_v49 = vunpack.c.l.b16 %v5453_v2 }
 0x983   : > { %v5363_v12 = vpop.f32.mrf.mxu0 }
 0x984   : > { %v5364_v4 = vadd.f32 %v13077_v42, %v5363_v12  ;;  %v5643_v27 = vpack.c.b16 %v5638_v49, %v5637_v59 }
 0x986   : > { %5402 = vmatmul.bf16.gmra.mxu0 %v5250_v51  ;;  %v5422_v20 = vmul.f32 %v5364_v4, %v12540_v23  ;;  %v13162_v51 = vld [vmem:[#allocation11 + $0x30] sm:$0xff] }
 0x988   : > { %8929 = vmatmul.msk.bf16.gmra.mxu1 %vm2649_vm12, %v13134_v60  ;;  %v5454_v9 = vpack.c.bf16 %v5422_v20, %v5422_v20 }
 0x98a   : > { %v5639_v14 = vunpack.c.l.b16 %v5454_v9 }
 0x98b   : > { %v5365_v0 = vpop.f32.mrf.mxu0 }
 0x98c   : > { %v5366_v53 = vadd.f32 %v13077_v42, %v5365_v0 }
 0x98e   : > { %v5423_v41 = vmul.f32 %v5366_v53, %v12546_v8 }
 0x990   : > { %v5455_v33 = vpack.c.bf16 %v5423_v41, %v5423_v41 }
 0x992   : > { %v5640_v21 = vunpack.c.l.b16 %v5455_v33 }
 0x993   : > { %v5368_v31 = vpop.f32.mrf.mxu0 }
 0x994   : > { %v5644_v40 = vpack.c.b16 %v5640_v21, %v5639_v14  ;;  %v5369_v24 = vadd.f32 %v13077_v42, %v5368_v31 }
 0x996   : > { %5653 = vmatpush.bf16.msrb.mxu1 %v5644_v40  ;;  %v5424_v40 = vmul.f32 %v5369_v24, %v12489_v39 }
 0x998   : > { %8930 = vmatmul.msk.bf16.gmra.mxu1 %vm2649_vm12, %v13152_v11  ;;  %v5456_v17 = vpack.c.bf16 %v5424_v40, %v5424_v40 }
 0x99a   : > { %5654 = vmatpush.bf16.msrb.mxu1 %v5643_v27  ;;  %v5706_v47 = vunpack.c.l.b16 %v5456_v17 }
 0x99b   : > { %v5370_v35 = vpop.f32.mrf.mxu0 }
 0x99c   : > { %v5371_v38 = vadd.f32 %v13077_v42, %v5370_v35 }
 0x99e   : > { %5655 = vmatpush.bf16.msrb.mxu1 %v5642_v34  ;;  %v5425_v14 = vmul.f32 %v5371_v38, %v12494_v58  ;;  %v9263_v38 = vld [vmem:[%s14883_s2 + $0x20] sm:$0xff] }
 0x9a0   : > { %v5457_v31 = vpack.c.bf16 %v5425_v14, %v5425_v14  ;;  %v9262_v14 = vld [vmem:[%s14883_s2 + $0x18] sm:$0xff] }
 0x9a2   : > { %5656 = vmatpush.bf16.msrb.mxu1 %v5641_v30  ;;  %v5707_v3 = vunpack.c.l.b16 %v5457_v31 }
 0x9a3   : > { %v5373_v25 = vpop.f32.mrf.mxu0 }
 0x9a4   : > { %v5374_v32 = vadd.f32 %v13077_v42, %v5373_v25  ;;  %v5714_v30 = vpack.c.b16 %v5707_v3, %v5706_v47  ;;  %v9260_v47 = vld [vmem:[%s14883_s2 + $0x8] sm:$0xff] }
 0x9a6   : > { %v5426_v2 = vmul.f32 %v5374_v32, %v12509_v44 }
 0x9a8   : > { %8931 = vmatmul.msk.bf16.gmra.mxu1 %vm2649_vm12, %v13158_v45  ;;  %v5458_v50 = vpack.c.bf16 %v5426_v2, %v5426_v2 }
 0x9aa   : > { %v5708_v27 = vunpack.c.l.b16 %v5458_v50 }
 0x9ab   : > { %v5375_v54 = vpop.f32.mrf.mxu0 }
 0x9ac   : > { %v5376_v15 = vadd.f32 %v13077_v42, %v5375_v54 }
 0x9ae   : > { %v5427_v9 = vmul.f32 %v5376_v15, %v12520_v56  ;;  %v9266_v15 = vld [vmem:[%s14883_s2 + $0x38] sm:$0xff] }
 0x9af   : > { %5956 = vmatpush.bf16.msrb.mxu0 %v9266_v15 }
 0x9b0   : > { %v5459_v21 = vpack.c.bf16 %v5427_v9, %v5427_v9 }
 0x9b2   : > { %v5709_v59 = vunpack.c.l.b16 %v5459_v21 }
 0x9b3   : > { %v5378_v28 = vpop.f32.mrf.mxu0 }
 0x9b4   : > { %v5379_v12 = vadd.f32 %v13077_v42, %v5378_v28  ;;  %v5715_v26 = vpack.c.b16 %v5709_v59, %v5708_v27  ;;  %v9261_v59 = vld [vmem:[%s14883_s2 + $0x10] sm:$0xff] }
 0x9b6   : > { %v5428_v19 = vmul.f32 %v5379_v12, %v12527_v46 }
 0x9b8   : > { %8932 = vmatmul.msk.bf16.gmra.mxu1 %vm2649_vm12, %v13162_v51  ;;  %v5460_v33 = vpack.c.bf16 %v5428_v19, %v5428_v19  ;;  %v9264_v19 = vld [vmem:[%s14883_s2 + $0x28] sm:$0xff] }
 0x9ba   : > { %v5710_v48 = vunpack.c.l.b16 %v5460_v33 }
 0x9bb   : > { %v5380_v55 = vpop.f32.mrf.mxu0 }
 0x9bc   : > { %v5381_v63 = vadd.f32 %v13077_v42, %v5380_v55 }
 0x9be   : > { %v5429_v20 = vmul.f32 %v5381_v63, %v12536_v57 }
 0x9c0   : > { %v5461_v41 = vpack.c.bf16 %v5429_v20, %v5429_v20  ;;  %v9265_v20 = vld [vmem:[%s14883_s2 + $0x30] sm:$0xff] }
 0x9c1   : > { %5957 = vmatpush.bf16.msrb.mxu0 %v9265_v20 }
 0x9c2   : > { %v5711_v61 = vunpack.c.l.b16 %v5461_v41 }
 0x9c3   : > { %v5383_v5 = vpop.f32.mrf.mxu0 }
 0x9c4   : > { %v5384_v10 = vadd.f32 %v13077_v42, %v5383_v5  ;;  %v5716_v22 = vpack.c.b16 %v5711_v61, %v5710_v48 }
 0x9c5   : > { %5958 = vmatpush.bf16.msrb.mxu0 %v9264_v19 }
 0x9c6   : > { %v5430_v4 = vmul.f32 %v5384_v10, %v12540_v23 }
 0x9c8   : > { %8933 = vmatmul.msk.bf16.gmra.mxu1 %vm2649_vm12, %v13166_v6  ;;  %v5462_v53 = vpack.c.bf16 %v5430_v4, %v5430_v4 }
 0x9c9   : > { %5959 = vmatpush.bf16.msrb.mxu0 %v9263_v38  ;;  %v9256_v38 = vld [vmem:[#allocation26 + $0x28] sm:$0xff] }
 0x9ca   : > { %v5712_v62 = vunpack.c.l.b16 %v5462_v53 }
 0x9cb   : > { %v5385_v16 = vpop.f32.mrf.mxu0 }
 0x9cc   : > { %v5386_v0 = vadd.f32 %v13077_v42, %v5385_v16 }
 0x9cd   : > { %5960 = vmatpush.bf16.msrb.mxu0 %v9262_v14  ;;  %v9253_v14 = vld [vmem:[#allocation26 + $0x10] sm:$0xff] }
 0x9ce   : > { %v5431_v13 = vmul.f32 %v5386_v0, %v12546_v8 }
 0x9d0   : > { %v5463_v36 = vpack.c.bf16 %v5431_v13, %v5431_v13 }
 0x9d1   : > { %5961 = vmatpush.bf16.msrb.mxu0 %v9261_v59 }
 0x9d2   : > { %v5713_v18 = vunpack.c.l.b16 %v5463_v36 }
 0x9d3   : > { %v13184_v1 = vpop.f32.mrf.mxu0 }
 0x9d4   : > { %v5717_v52 = vpack.c.b16 %v5713_v18, %v5712_v62  ;;  %v5389_v31 = vadd.f32 %v13077_v42, %v13184_v1 }
 0x9d5   : > { %v13187_v49 = vpop.f32.mrf.mxu1  ;;  %5962 = vmatpush.bf16.msrb.mxu0 %v9260_v47 }
 0x9d6   : > { %5726 = vmatpush.bf16.msrb.mxu3 %v5717_v52 }
 0x9d8   : > { %8934 = vmatmul.msk.bf16.vlgmr.msrb.gmra.mxu1 %vm2649_vm12, %v13122_v43 }
 0x9da   : > { %5727 = vmatpush.bf16.msrb.mxu3 %v5716_v22 }
 0x9db   : > { %v5390_v37 = vpop.f32.mrf.mxu0 }
 0x9dc   : > { %v5391_v40 = vadd.f32 %v13077_v42, %v5390_v37 }
 0x9dd   : > { %v13192_v35 = vpop.f32.mrf.mxu1 }
 0x9de   : > { %v5844_v34 = vpack.c.bf16 %v13192_v35, %v13187_v49  ;;  %5728 = vmatpush.bf16.msrb.mxu3 %v5715_v26 }
 0x9e2   : > { %5729 = vmatpush.bf16.msrb.mxu3 %v5714_v30 }
 0x9e3   : > { %v5393_v25 = vpop.f32.mrf.mxu0 }
 0x9e4   : > { %v5394_v21 = vadd.f32 %v13077_v42, %v5393_v25 }
 0x9e5   : > { %v13196_v54 = vpop.f32.mrf.mxu1  ;;  %8942 = vmatmul.msk.bf16.vlgmr.msrb.gmra.mxu3 %vm2649_vm12, %v13122_v43 }
 0x9e6   : > { %v5434_v22 = vmul.f32 %v5394_v21, %v12509_v44  ;;  %v9258_v44 = vld [vmem:[#allocation26 + $0x38] sm:$0xff]  ;;  %v9252_v21 = vld [vmem:[#allocation26 + $0x8] sm:$0xff] }
 0x9e7   : > { %6093 = vmatpush.bf16.msra.mxu1 %v9258_v44 }
 0x9e8   : > { %8935 = vmatmul.msk.bf16.gmra.mxu1 %vm2649_vm12, %v13126_v7  ;;  %v5466_v1 = vpack.c.bf16 %v5434_v22, %v5434_v22 }
 0x9ea   : > { %v5781_v15 = vunpack.c.l.b16 %v5466_v1 }
 0x9eb   : > { %v5395_v28 = vpop.f32.mrf.mxu0 }
 0x9ec   : > { %v5396_v24 = vadd.f32 %v13077_v42, %v5395_v28 }
 0x9ed   : > { %v13202_v55 = vpop.f32.mrf.mxu1 }
 0x9ee   : > { %v5845_v5 = vpack.c.bf16 %v13202_v55, %v13196_v54 }
 0x9f3   : > { %v5398_v10 = vpop.f32.mrf.mxu0 }
 0x9f4   : > { %v5399_v9 = vadd.f32 %v13077_v42, %v5398_v10  ;;  %v9259_v10 = vld [vmem:[%s14883_s2] sm:$0xff] }
 0x9f5   : > { %v13206_v63 = vpop.f32.mrf.mxu1  ;;  %8943 = vmatmul.msk.bf16.gmra.mxu3 %vm2649_vm12, %v13126_v7  ;;  %5963 = vmatpush.bf16.msrb.mxu0 %v9259_v10 }
 0x9f6   : > { %v5436_v61 = vmul.f32 %v5399_v9, %v12527_v46 }
 0x9f8   : > { %8936 = vmatmul.msk.bf16.gmra.mxu1 %vm2649_vm12, %v13130_v29  ;;  %v5468_v17 = vpack.c.bf16 %v5436_v61, %v5436_v61 }
 0x9fa   : > { %v5783_v30 = vunpack.c.l.b16 %v5468_v17 }
 0x9fb   : > { %v5400_v12 = vpop.f32.mrf.mxu0 }
 0x9fc   : > { %v5401_v13 = vadd.f32 %v13077_v42, %v5400_v12 }
 0x9fd   : > { %v13212_v4 = vpop.f32.mrf.mxu1 }
 0x9fe   : > { %v5846_v16 = vpack.c.bf16 %v13212_v4, %v13206_v63  ;;  %v5437_v2 = vmul.f32 %v5401_v13, %v12536_v57  ;;  %v5435_v57 = vmul.f32 %v5396_v24, %v12520_v56  ;;  %v9254_v24 = vld [vmem:[#allocation26 + $0x18] sm:$0xff] }
 0xa00   : > { %v5469_v50 = vpack.c.bf16 %v5437_v2, %v5437_v2  ;;  %v5467_v3 = vpack.c.bf16 %v5435_v57, %v5435_v57 }
 0xa02   : > { %v5784_v26 = vunpack.c.l.b16 %v5469_v50  ;;  %v5782_v25 = vunpack.c.l.b16 %v5467_v3 }
 0xa03   : > { %v5403_v0 = vpop.f32.mrf.mxu0 }
 0xa04   : > { %v5404_v53 = vadd.f32 %v13077_v42, %v5403_v0  ;;  %v5789_v28 = vpack.c.b16 %v5784_v26, %v5783_v30 }
 0xa05   : > { %v13218_v32 = vpop.f32.mrf.mxu1  ;;  %8944 = vmatmul.msk.bf16.gmra.mxu3 %vm2649_vm12, %v13130_v29 }
 0xa06   : > { %v5438_v41 = vmul.f32 %v5404_v53, %v12540_v23  ;;  %v9257_v53 = vld [vmem:[#allocation26 + $0x30] sm:$0xff] }
 0xa07   : > { %6094 = vmatpush.bf16.msra.mxu1 %v9257_v53 }
 0xa08   : > { %8937 = vmatmul.msk.bf16.gmra.mxu1 %vm2649_vm12, %v13134_v60  ;;  %v5470_v23 = vpack.c.bf16 %v5438_v41, %v5438_v41 }
 0xa0a   : > { %v5785_v27 = vunpack.c.l.b16 %v5470_v23  ;;  %v9251_v23 = vld [vmem:[#allocation26] sm:$0xff] }
 0xa0b   : > { %v5405_v36 = vpop.f32.mrf.mxu0  ;;  %6095 = vmatpush.bf16.msra.mxu1 %v9256_v38 }
 0xa0c   : > { %v5406_v33 = vadd.f32 %v13077_v42, %v5405_v36  ;;  %v5432_v42 = vmul.f32 %v5389_v31, %v12489_v39  ;;  %v5788_v39 = vpack.c.b16 %v5782_v25, %v5781_v15  ;;  %v9255_v36 = vld [vmem:[#allocation26 + $0x20] sm:$0xff] }
 0xa0d   : > { %v13233_v62 = vpop.f32.mrf.mxu1 }
 0xa0e   : > { %v5847_v18 = vpack.c.bf16 %v13233_v62, %v13218_v32  ;;  %v5439_v52 = vmul.f32 %v5406_v33, %v12546_v8  ;;  %v5433_v8 = vmul.f32 %v5391_v40, %v12494_v58  ;;  %v5464_v12 = vpack.c.bf16 %v5432_v42, %v5432_v42 }
 0xa0f   : > { %6096 = vmatpush.bf16.msra.mxu1 %v9255_v36 }
 0xa10   : > { %v5471_v48 = vpack.c.bf16 %v5439_v52, %v5439_v52  ;;  %v5465_v58 = vpack.c.bf16 %v5433_v8, %v5433_v8  ;;  %v5779_v13 = vunpack.c.l.b16 %v5464_v12 }
 0xa12   : > { %v5786_v46 = vunpack.c.l.b16 %v5471_v48  ;;  %v5780_v20 = vunpack.c.l.b16 %v5465_v58 }
 0xa13   : > { %6097 = vmatpush.bf16.msra.mxu1 %v9254_v24 }
 0xa14   : > { %v5790_v37 = vpack.c.b16 %v5786_v46, %v5785_v27  ;;  %v5787_v9 = vpack.c.b16 %v5780_v20, %v5779_v13 }
 0xa15   : > { %v5605_v56 = vpop.f32.mrf.mxu1  ;;  %8945 = vmatmul.msk.bf16.gmra.mxu3 %vm2649_vm12, %v13134_v60 }
 0xa16   : > { %5799 = vmatpush.bf16.msrb.mxu2 %v5790_v37 }
 0xa17   : > { %6098 = vmatpush.bf16.msra.mxu1 %v9253_v14 }
 0xa18   : > { %8938 = vmatmul.msk.bf16.gmra.mxu1 %vm2649_vm12, %v13152_v11 }
 0xa1a   : > { %5800 = vmatpush.bf16.msrb.mxu2 %v5789_v28 }
 0xa1b   : > { %6099 = vmatpush.bf16.msra.mxu1 %v9252_v21 }
 0xa1d   : > { %v5607_v0 = vpop.f32.mrf.mxu1 }
 0xa1e   : > { %v5876_v19 = vpack.c.bf16 %v5607_v0, %v5605_v56  ;;  %5801 = vmatpush.bf16.msrb.mxu2 %v5788_v39 }
 0xa1f   : > { %6100 = vmatpush.bf16.msra.mxu1 %v9251_v23 }
 0xa20   : > { %5964 = vmatmul.bf16.vlgmr.msrb.gmra.mxu0 %v5876_v19 }
 0xa22   : > { %5802 = vmatpush.bf16.msrb.mxu2 %v5787_v9 }
 0xa25   : > { %v5610_v41 = vpop.f32.mrf.mxu1  ;;  %8946 = vmatmul.msk.bf16.gmra.mxu3 %vm2649_vm12, %v13152_v11  ;;  %8950 = vmatmul.msk.bf16.vlgmr.msrb.gmra.mxu2 %vm2649_vm12, %v13122_v43 }
 0xa28   : > { %8939 = vmatmul.msk.bf16.gmra.mxu1 %vm2649_vm12, %v13158_v45 }
 0xa2d   : > { %v5612_v2 = vpop.f32.mrf.mxu1 }
 0xa2e   : > { %v5877_v33 = vpack.c.bf16 %v5612_v2, %v5610_v41 }
 0xa30   : > { %5969 = vmatmul.bf16.gmra.mxu0 %v5877_v33 }
 0xa35   : > { %v5615_v61 = vpop.f32.mrf.mxu1  ;;  %8947 = vmatmul.msk.bf16.gmra.mxu3 %vm2649_vm12, %v13158_v45  ;;  %8951 = vmatmul.msk.bf16.gmra.mxu2 %vm2649_vm12, %v13126_v7 }
 0xa38   : > { %8940 = vmatmul.msk.bf16.gmra.mxu1 %vm2649_vm12, %v13162_v51 }
 0xa3d   : > { %v5617_v43 = vpop.f32.mrf.mxu1 }
 0xa3e   : > { %v5878_v52 = vpack.c.bf16 %v5617_v43, %v5615_v61 }
 0xa40   : > { %5974 = vmatmul.bf16.gmra.mxu0 %v5878_v52 }
 0xa45   : > { %v5620_v40 = vpop.f32.mrf.mxu1  ;;  %8948 = vmatmul.msk.bf16.gmra.mxu3 %vm2649_vm12, %v13162_v51  ;;  %8952 = vmatmul.msk.bf16.gmra.mxu2 %vm2649_vm12, %v13130_v29 }
 0xa48   : > { %8941 = vmatmul.msk.bf16.gmra.mxu1 %vm2649_vm12, %v13166_v6 }
 0xa4d   : > { %v5622_v57 = vpop.f32.mrf.mxu1 }
 0xa4e   : > { %v5879_v50 = vpack.c.bf16 %v5622_v57, %v5620_v40  ;;  %v13315_v57 = vpop.permute.xlu0 %6260 }
 0xa50   : > { %5979 = vmatmul.bf16.gmra.mxu0 %v5879_v50 }
 0xa55   : > { %v5658_v7 = vpop.f32.mrf.mxu1  ;;  %8949 = vmatmul.msk.bf16.gmra.mxu3 %vm2649_vm12, %v13166_v6  ;;  %8953 = vmatmul.msk.bf16.gmra.mxu2 %vm2649_vm12, %v13134_v60 }
 0xa58   : > { %6101 = vmatmul.bf16.vlgmr.msra.gmra.mxu1 %v5844_v34 }
 0xa5d   : > { %v5660_v48 = vpop.f32.mrf.mxu1 }
 0xa65   : > { %v5663_v31 = vpop.f32.mrf.mxu1  ;;  %8954 = vmatmul.msk.bf16.gmra.mxu2 %vm2649_vm12, %v13152_v11 }
 0xa68   : > { %6106 = vmatmul.bf16.gmra.mxu1 %v5845_v5  ;;  %v5731_v22 = vpop.f32.mrf.mxu3  ;;  %v5848_v5 = vpack.c.bf16 %v5660_v48, %v5658_v7  ;;  %v13318_v7 = vld [vmem:[%s14884_s14] ss:$0 sm:$0xff]  ;;  %s8475_s14 = sshll.u32 %s1607_s7, 5 }
 0xa6d   : > { %v5665_v29 = vpop.f32.mrf.mxu1 }
 0xa6e   : > { %v5849_v17 = vpack.c.bf16 %v5665_v29, %v5663_v31 }
 0xa70   : > { %v5733_v49 = vpop.f32.mrf.mxu3 }
 0xa71   : > { %v5852_v12 = vpack.c.bf16 %v5733_v49, %v5731_v22 }
 0xa75   : > { %v5668_v59 = vpop.f32.mrf.mxu1  ;;  %8955 = vmatmul.msk.bf16.gmra.mxu2 %vm2649_vm12, %v13158_v45 }
 0xa78   : > { %6111 = vmatmul.bf16.gmra.mxu1 %v5846_v16  ;;  %v5736_v11 = vpop.f32.mrf.mxu3 }
 0xa7d   : > { %v5670_v60 = vpop.f32.mrf.mxu1 }
 0xa7e   : > { %v5850_v46 = vpack.c.bf16 %v5670_v60, %v5668_v59  ;;  %v13323_v60 = vpop.permute.xlu1 %6265 }
 0xa80   : > { %v5738_v54 = vpop.f32.mrf.mxu3 }
 0xa81   : > { %v5853_v41 = vpack.c.bf16 %v5738_v54, %v5736_v11  ;;  %v13331_v54 = vpop.permute.xlu2 %6270 }
 0xa85   : > { %v5673_v35 = vpop.f32.mrf.mxu1  ;;  %8956 = vmatmul.msk.bf16.gmra.mxu2 %vm2649_vm12, %v13162_v51 }
 0xa88   : > { %6116 = vmatmul.bf16.gmra.mxu1 %v5847_v18  ;;  %v5741_v63 = vpop.f32.mrf.mxu3 }
 0xa8d   : > { %v5675_v34 = vpop.f32.mrf.mxu1 }
 0xa8e   : > { %v5851_v47 = vpack.c.bf16 %v5675_v34, %v5673_v35 }
 0xa90   : > { %v5743_v51 = vpop.f32.mrf.mxu3 }
 0xa91   : > { %v5854_v61 = vpack.c.bf16 %v5743_v51, %v5741_v63 }
 0xa95   : > { %v5678_v55 = vpop.f32.mrf.mxu1  ;;  %8957 = vmatmul.msk.bf16.gmra.mxu2 %vm2649_vm12, %v13166_v6 }
 0xa98   : > { %6121 = vmatmul.bf16.gmra.mxu1 %v5848_v5  ;;  %v13297_v62 = vpop.f32.mrf.mxu3 }
 0xa9d   : > { %v5680_v45 = vpop.f32.mrf.mxu1  ;;  %v5965_v1 = vpop.f32.mrf.mxu0 }
 0xa9e   : > { %v5880_v4 = vpack.c.bf16 %v5680_v45, %v5678_v55 }
 0xaa0   : > { %5984 = vmatmul.bf16.gmra.mxu0 %v5880_v4  ;;  %v13299_v8 = vpop.f32.mrf.mxu3 }
 0xaa5   : > { %v5683_v16 = vpop.f32.mrf.mxu1  ;;  %v5967_v28 = vpop.f32.mrf.mxu0 }
 0xaa8   : > { %6126 = vmatmul.bf16.gmra.mxu1 %v5849_v17  ;;  %v13301_v6 = vpop.f32.mrf.mxu2  ;;  %v5751_v56 = vpop.f32.mrf.mxu3 }
 0xaad   : > { %v5685_v27 = vpop.f32.mrf.mxu1  ;;  %v5970_v0 = vpop.f32.mrf.mxu0 }
 0xaae   : > { %v5881_v32 = vpack.c.bf16 %v5685_v27, %v5683_v16  ;;  %v13344_v27 = vpop.permute.xlu0 %6275 }
 0xab0   : > { %5989 = vmatmul.bf16.gmra.mxu0 %v5881_v32  ;;  %v13303_v42 = vpop.f32.mrf.mxu2  ;;  %v5753_v58 = vpop.f32.mrf.mxu3  ;;  %v5855_v32 = vpack.c.bf16 %v13299_v8, %v13297_v62 }
 0xab1   : > { %v5884_v19 = vpack.c.bf16 %v5753_v58, %v5751_v56  ;;  %v13363_v8 = vpop.permute.xlu1 %6280 }
 0xab5   : > { %v5688_v18 = vpop.f32.mrf.mxu1  ;;  %v5972_v9 = vpop.f32.mrf.mxu0 }
 0xab8   : > { %6131 = vmatmul.bf16.gmra.mxu1 %v5850_v46  ;;  %v13305_v25 = vpop.f32.mrf.mxu2  ;;  %v5756_v15 = vpop.f32.mrf.mxu3 }
 0xabd   : > { %v5690_v3 = vpop.f32.mrf.mxu1  ;;  %v5975_v14 = vpop.f32.mrf.mxu0 }
 0xabe   : > { %v5882_v26 = vpack.c.bf16 %v5690_v3, %v5688_v18 }
 0xac0   : > { %5994 = vmatmul.bf16.gmra.mxu0 %v5882_v26  ;;  %v13307_v20 = vpop.f32.mrf.mxu2  ;;  %v5758_v53 = vpop.f32.mrf.mxu3 }
 0xac1   : > { %v5885_v2 = vpack.c.bf16 %v5758_v53, %v5756_v15 }
 0xac5   : > { %v5693_v37 = vpop.f32.mrf.mxu1  ;;  %v5977_v52 = vpop.f32.mrf.mxu0 }
 0xac8   : > { %6136 = vmatmul.bf16.gmra.mxu1 %v5851_v47  ;;  %v13309_v13 = vpop.f32.mrf.mxu2  ;;  %v5761_v24 = vpop.f32.mrf.mxu3 }
 0xacd   : > { %v5695_v30 = vpop.f32.mrf.mxu1  ;;  %v5980_v4 = vpop.f32.mrf.mxu0 }
 0xace   : > { %v5883_v44 = vpack.c.bf16 %v5695_v30, %v5693_v37 }
 0xad0   : > { %5999 = vmatmul.bf16.gmra.mxu0 %v5883_v44  ;;  %v13311_v33 = vpop.f32.mrf.mxu2  ;;  %v5763_v23 = vpop.f32.mrf.mxu3 }
 0xad1   : > { %v5886_v22 = vpack.c.bf16 %v5763_v23, %v5761_v24  ;;  %v13372_v24 = vpop.permute.xlu0 %6290 }
 0xad5   : > { %v6102_v10 = vpop.f32.mrf.mxu1 }
 0xad6   : > { %v6103_v50 = vadd.f32 %v6102_v10, %v5965_v1  ;;  %v13367_v10 = vpop.permute.xlu2 %6285 }
 0xad8   : > { %6141 = vmatmul.bf16.gmra.mxu1 %v5852_v12  ;;  %v13313_v43 = vpop.f32.mrf.mxu2  ;;  %v13326_v49 = vadd.f32 %v13318_v7, %v6103_v50  ;;  %v5766_v34 = vpop.f32.mrf.mxu3 }
 0xada   : > { %v6218_v16 = vmax.f32 %v13326_v49, 0.0 }
 0xadc   : > { %v6298_v56 = vmul.f32 %v13315_v57, %v6218_v16 }
 0xadd   : > { %v6104_v39 = vpop.f32.mrf.mxu1 }
 0xade   : > { %v6105_v40 = vadd.f32 %v6104_v39, %v5967_v28 }
 0xae0   : > { %6004 = vmatmul.bf16.gmra.mxu0 %v5884_v19  ;;  %v13321_v29 = vadd.f32 %v13318_v7, %v6105_v40  ;;  %v13337_v63 = vpop.f32.mrf.mxu2  ;;  %v5768_v28 = vpop.f32.mrf.mxu3 }
 0xae1   : > { %v5982_v19 = vpop.f32.mrf.mxu0 }
 0xae2   : > { %v6219_v55 = vmax.f32 %v13321_v29, 0.0 }
 0xae4   : > { %v6299_v46 = vmul.f32 %v13323_v60, %v6219_v55 }
 0xae5   : > { %v6107_v38 = vpop.f32.mrf.mxu1 }
 0xae6   : > { %v6108_v48 = vadd.f32 %v6107_v38, %v5970_v0  ;;  %v6330_v30 = vadd.f32 %v6299_v46, %v6298_v56 }
 0xae8   : > { %6146 = vmatmul.bf16.gmra.mxu1 %v5853_v41  ;;  %v13329_v35 = vadd.f32 %v13318_v7, %v6108_v48  ;;  %v5824_v39 = vpop.f32.mrf.mxu2  ;;  %v5887_v41 = vpack.c.bf16 %v5768_v28, %v5766_v34 }
 0xaea   : > { %v6220_v17 = vmax.f32 %v13329_v35, 0.0 }
 0xaec   : > { %v6300_v47 = vmul.f32 %v13331_v54, %v6220_v17 }
 0xaed   : > { %v6109_v36 = vpop.f32.mrf.mxu1 }
 0xaee   : > { %v6110_v59 = vadd.f32 %v6109_v36, %v5972_v9  ;;  %v6331_v12 = vadd.f32 %v6330_v30, %v6300_v47 }
 0xaf0   : > { %6009 = vmatmul.bf16.gmra.mxu0 %v5885_v2  ;;  %v13335_v5 = vadd.f32 %v13318_v7, %v6110_v59  ;;  %v5826_v48 = vpop.f32.mrf.mxu2  ;;  %v5856_v59 = vpack.c.bf16 %v13303_v42, %v13301_v6  ;;  %v5857_v6 = vpack.c.bf16 %v13307_v20, %v13305_v25 }
 0xaf2   : > { %v6221_v3 = vmax.f32 %v13335_v5, 0.0 }
 0xaf4   : > { %v6301_v44 = vmul.f32 %v13344_v27, %v6221_v3 }
 0xaf5   : > { %v6112_v21 = vpop.f32.mrf.mxu1 }
 0xaf6   : > { %v6113_v11 = vadd.f32 %v6112_v21, %v5975_v14  ;;  %v6332_v38 = vadd.f32 %v6331_v12, %v6301_v44 }
 0xaf8   : > { %6151 = vmatmul.bf16.gmra.mxu1 %v5854_v61  ;;  %v13342_v51 = vadd.f32 %v13318_v7, %v6113_v11  ;;  %v5829_v5 = vpop.f32.mrf.mxu2 }
 0xafa   : > { %v6222_v1 = vmax.f32 %v13342_v51, 0.0 }
 0xafc   : > { %v6302_v15 = vmul.f32 %v13363_v8, %v6222_v1 }
 0xafd   : > { %v6114_v31 = vpop.f32.mrf.mxu1 }
 0xafe   : > { %v6115_v45 = vadd.f32 %v6114_v31, %v5977_v52  ;;  %v6333_v2 = vadd.f32 %v6332_v38, %v6302_v15  ;;  %v13376_v52 = vpop.permute.xlu1 %6295 }
 0xb00   : > { %6014 = vmatmul.bf16.gmra.mxu0 %v5886_v22  ;;  %v13353_v26 = vadd.f32 %v13318_v7, %v6115_v45 }
 0xb02   : > { %v6223_v58 = vmax.f32 %v13353_v26, 0.0 }
 0xb04   : > { %v6303_v9 = vmul.f32 %v13367_v10, %v6223_v58 }
 0xb05   : > { %v6117_v18 = vpop.f32.mrf.mxu1 }
 0xb06   : > { %v6118_v37 = vadd.f32 %v6117_v18, %v5980_v4  ;;  %v6334_v61 = vadd.f32 %v6333_v2, %v6303_v9 }
 0xb08   : > { %v13361_v62 = vadd.f32 %v13318_v7, %v6118_v37  ;;  %6156 = vmatmul.bf16.gmra.mxu1 %v5855_v32  ;;  %v5888_v32 = vpack.c.bf16 %v5826_v48, %v5824_v39  ;;  %v5831_v37 = vpop.f32.mrf.mxu2 }
 0xb0a   : > { %v6224_v0 = vmax.f32 %v13361_v62, 0.0 }
 0xb0c   : > { %v6304_v14 = vmul.f32 %v13372_v24, %v6224_v0 }
 0xb0d   : > { %v6119_v53 = vpop.f32.mrf.mxu1 }
 0xb0e   : > { %v6120_v36 = vadd.f32 %v6119_v53, %v5982_v19  ;;  %v6335_v40 = vadd.f32 %v6334_v61, %v6304_v14  ;;  %v5889_v19 = vpack.c.bf16 %v5831_v37, %v5829_v5 }
 0xb10   : > { %v6193_v21 = vadd.f32 %v13318_v7, %v6120_v36  ;;  %6019 = vmatmul.bf16.gmra.mxu0 %v5887_v41  ;;  %v5834_v39 = vpop.f32.mrf.mxu2 }
 0xb12   : > { %v6225_v23 = vmax.f32 %v6193_v21, 0.0 }
 0xb14   : > { %v6305_v50 = vmul.f32 %v13376_v52, %v6225_v23 }
 0xb15   : > { %v13379_v31 = vpop.f32.mrf.mxu1 }
 0xb16   : > { %v6336_v22 = vadd.f32 %v6335_v40, %v6305_v50 }
 0xb18   : > { %v6337_v49 = vrot.slane %v6336_v22, 4  ;;  %6161 = vmatmul.bf16.gmra.mxu1 %v5856_v59 }
 0xb1a   : > { %v6338_v11 = vadd.f32 %v6337_v49, %v6336_v22  ;;  %v5858_v22 = vpack.c.bf16 %v13311_v33, %v13309_v13 }
 0xb1c   : > { %v6339_v34 = vrot.slane %v6338_v11, 2 }
 0xb1d   : > { %v13383_v45 = vpop.f32.mrf.mxu0  ;;  %v13385_v4 = vpop.f32.mrf.mxu1 }
 0xb1e   : > { %v6340_v51 = vadd.f32 %v6339_v34, %v6338_v11  ;;  %v5836_v34 = vpop.f32.mrf.mxu2 }
 0xb20   : > { %v6341_v18 = vrot.slane %v6340_v51, 1  ;;  %6024 = vmatmul.bf16.gmra.mxu0 %v5888_v32 }
 0xb22   : > { %v6342_v46 = vadd.f32 %v6341_v18, %v6340_v51  ;;  %v9274_v18 = vld [vmem:[%s14885_s10 + $0x38] sm:$0xff]  ;;  %s14608_s10 = scalar_lea.vmem [#allocation28], %s8475_s14  ;;  %s8162_s14 = scalar_lea.sflag [#allocation4], %s1607_s7 }
 0xb23   : > { %6770 = vmatpush.bf16.msra.mxu3 %v9274_v18 }
 0xb24   : > { %v6382_v26 = vmul.f32 0.015625, %v6342_v46 }
 0xb25   : > { %v5987_v42 = vpop.f32.mrf.mxu0  ;;  %v6127_v56 = vpop.f32.mrf.mxu1 }
 0xb26   : > { %v13389_v47 = vsub.f32 %v6218_v16, %v6382_v26  ;;  %v13393_v62 = vsub.f32 %v6219_v55, %v6382_v26  ;;  %v13397_v30 = vsub.f32 %v6220_v17, %v6382_v26  ;;  %v13399_v44 = vsub.f32 %v6221_v3, %v6382_v26  ;;  %v5839_v33 = vpop.f32.mrf.mxu2 }
 0xb27   : > { %v13401_v28 = vsub.f32 %v6222_v1, %v6382_v26  ;;  %v13409_v29 = vsub.f32 %v6223_v58, %v6382_v26  ;;  %v13415_v17 = vsub.f32 %v6224_v0, %v6382_v26  ;;  %v13420_v38 = vsub.f32 %v6225_v23, %v6382_v26 }
 0xb28   : > { %v6418_v12 = vmul.f32 %v13389_v47, %v13389_v47  ;;  %v6419_v25 = vmul.f32 %v13393_v62, %v13393_v62  ;;  %v6420_v20 = vmul.f32 %v13397_v30, %v13397_v30  ;;  %6166 = vmatmul.bf16.gmra.mxu1 %v5857_v6  ;;  %v6421_v35 = vmul.f32 %v13399_v44, %v13399_v44 }
 0xb29   : > { %v6422_v3 = vmul.f32 %v13401_v28, %v13401_v28  ;;  %v6423_v9 = vmul.f32 %v13409_v29, %v13409_v29  ;;  %v6424_v0 = vmul.f32 %v13415_v17, %v13415_v17  ;;  %v6425_v21 = vmul.f32 %v13420_v38, %v13420_v38 }
 0xb2a   : > { %v6450_v55 = vmul.f32 %v6418_v12, %v13315_v57  ;;  %v6451_v16 = vmul.f32 %v6419_v25, %v13323_v60  ;;  %v6452_v1 = vmul.f32 %v6420_v20, %v13331_v54  ;;  %v6453_v41 = vmul.f32 %v6421_v35, %v13344_v27  ;;  %v9273_v12 = vld [vmem:[%s14886_s26 + $0x30] sm:$0xff]  ;;  %v9272_v35 = vld [vmem:[%s14886_s26 + $0x28] sm:$0xff] }
 0xb2b   : > { %v6454_v2 = vmul.f32 %v6422_v3, %v13363_v8  ;;  %v6455_v61 = vmul.f32 %v6423_v9, %v13367_v10  ;;  %v6456_v40 = vmul.f32 %v6424_v0, %v13372_v24  ;;  %v6457_v49 = vmul.f32 %v6425_v21, %v13376_v52  ;;  %6771 = vmatpush.bf16.msra.mxu3 %v9273_v12 }
 0xb2c   : > { %v6482_v15 = vadd.f32 %v6451_v16, %v6450_v55  ;;  %v5890_v6 = vpack.c.bf16 %v5836_v34, %v5834_v39  ;;  %v6125_v13 = vadd.f32 %v13385_v4, %v5987_v42  ;;  %v6123_v16 = vadd.f32 %v13379_v31, %v13383_v45  ;;  %v9271_v4 = vld [vmem:[%s14886_s26 + $0x20] sm:$0xff] }
 0xb2d   : > { %v5990_v53 = vpop.f32.mrf.mxu0  ;;  %v6129_v58 = vpop.f32.mrf.mxu1 }
 0xb2e   : > { %v6483_v36 = vadd.f32 %v6482_v15, %v6452_v1  ;;  %v6128_v3 = vadd.f32 %v6127_v56, %v5990_v53  ;;  %v13442_v1 = vadd.f32 %v13318_v7, %v6125_v13 }
 0xb2f   : > { %6772 = vmatpush.bf16.msra.mxu3 %v9272_v35 }
 0xb30   : > { %v6484_v14 = vadd.f32 %v6483_v36, %v6453_v41  ;;  %6029 = vmatmul.bf16.gmra.mxu0 %v5889_v19  ;;  %v5859_v19 = vpack.c.bf16 %v13337_v63, %v13313_v43  ;;  %v13448_v36 = vadd.f32 %v13318_v7, %v6123_v16  ;;  %v13451_v0 = vadd.f32 %v13318_v7, %v6128_v3  ;;  %v5841_v63 = vpop.f32.mrf.mxu2  ;;  %v9269_v16 = vld [vmem:[%s14886_s26 + $0x10] sm:$0xff] }
 0xb31   : > { %v6227_v45 = vmax.f32 %v13442_v1, 0.0 }
 0xb32   : > { %v6485_v23 = vadd.f32 %v6484_v14, %v6454_v2  ;;  %v6226_v53 = vmax.f32 %v13448_v36, 0.0 }
 0xb33   : > { %6773 = vmatpush.bf16.msra.mxu3 %v9271_v4  ;;  %v6307_v14 = vmul.f32 %v13323_v60, %v6227_v45 }
 0xb34   : > { %v6486_v50 = vadd.f32 %v6485_v23, %v6455_v61 }
 0xb35   : > { %v5992_v48 = vpop.f32.mrf.mxu0  ;;  %v6132_v59 = vpop.f32.mrf.mxu1 }
 0xb36   : > { %v6487_v11 = vadd.f32 %v6486_v50, %v6456_v40  ;;  %v6130_v41 = vadd.f32 %v6129_v58, %v5992_v48  ;;  %v6228_v58 = vmax.f32 %v13451_v0, 0.0  ;;  %v5891_v50 = vpack.c.bf16 %v5841_v63, %v5839_v33  ;;  %v13503_v63 = vld [vmem:[%s14887_s11] ss:$0 sm:$0xff]  ;;  %s14898_s11 = sld [smem:[#allocation74_spill]] }
 0xb38   : > { %v6488_v5 = vadd.f32 %v6487_v11, %v6457_v49  ;;  %6171 = vmatmul.bf16.gmra.mxu1 %v5858_v22  ;;  %v13455_v56 = vadd.f32 %v13318_v7, %v6130_v41  ;;  %v6306_v22 = vmul.f32 %v13315_v57, %v6226_v53  ;;  %v6308_v49 = vmul.f32 %v13331_v54, %v6228_v58 }
 0xb3a   : > { %v6489_v51 = vrot.slane %v6488_v5, 4  ;;  %v6229_v23 = vmax.f32 %v13455_v56, 0.0 }
 0xb3c   : > { %v6490_v32 = vadd.f32 %v6489_v51, %v6488_v5  ;;  %v6343_v51 = vadd.f32 %v6307_v14, %v6306_v22 }
 0xb3d   : > { %v5995_v46 = vpop.f32.mrf.mxu0  ;;  %v6134_v26 = vpop.f32.mrf.mxu1 }
 0xb3e   : > { %v6491_v37 = vrot.slane %v6490_v32, 2  ;;  %v6133_v31 = vadd.f32 %v6132_v59, %v5995_v46  ;;  %v9270_v46 = vld [vmem:[%s14886_s26 + $0x18] sm:$0xff] }
 0xb3f   : > { %6774 = vmatpush.bf16.msra.mxu3 %v9270_v46 }
 0xb40   : > { %v6492_v25 = vadd.f32 %v6491_v37, %v6490_v32  ;;  %6034 = vmatmul.bf16.gmra.mxu0 %v5890_v6  ;;  %v13460_v2 = vadd.f32 %v13318_v7, %v6133_v31  ;;  %v6309_v32 = vmul.f32 %v13344_v27, %v6229_v23  ;;  %v6344_v37 = vadd.f32 %v6343_v51, %v6308_v49  ;;  %v9268_v31 = vld [vmem:[%s14886_s26 + $0x8] sm:$0xff] }
 0xb42   : > { %v6493_v20 = vrot.slane %v6492_v25, 1  ;;  %v6230_v11 = vmax.f32 %v13460_v2, 0.0 }
 0xb43   : > { %6775 = vmatpush.bf16.msra.mxu3 %v9269_v16 }
 0xb44   : > { %v6494_v55 = vadd.f32 %v6493_v20, %v6492_v25  ;;  %v6310_v6 = vmul.f32 %v13363_v8, %v6230_v11  ;;  %v6345_v20 = vadd.f32 %v6344_v37, %v6309_v32 }
 0xb45   : > { %v5997_v15 = vpop.f32.mrf.mxu0  ;;  %v6137_v39 = vpop.f32.mrf.mxu1 }
 0xb46   : > { %v6534_v9 = vmul.f32 0.015625, %v6494_v55  ;;  %v6135_v43 = vadd.f32 %v6134_v26, %v5997_v15  ;;  %v6346_v15 = vadd.f32 %v6345_v20, %v6310_v6 }
 0xb47   : > { %6776 = vmatpush.bf16.msra.mxu3 %v9268_v31 }
 0xb48   : > { %v6538_v42 = vadd.f32 1e-05, %v6534_v9  ;;  %6176 = vmatmul.bf16.gmra.mxu1 %v5859_v19  ;;  %v13467_v40 = vadd.f32 %v13318_v7, %v6135_v43 }
 0xb4a   : > { %9609 = vrsqrt.f32 %v6538_v42  ;;  %v6231_v18 = vmax.f32 %v13467_v40, 0.0  ;;  %vm6548_vm6 = vweird.f32 %v6538_v42 }
 0xb4c   : > { %v6311_v35 = vmul.f32 %v13367_v10, %v6231_v18 }
 0xb4d   : > { %v6000_v21 = vpop.f32.mrf.mxu0  ;;  %v6139_v61 = vpop.f32.mrf.mxu1 }
 0xb4e   : > { %v6138_v48 = vadd.f32 %v6137_v39, %v6000_v21  ;;  %v6347_v41 = vadd.f32 %v6346_v15, %v6311_v35 }
 0xb50   : > { %v9610_v59 = vpop.eup %9609  ;;  %v13477_v34 = vadd.f32 %v13318_v7, %v6138_v48  ;;  %6039 = vmatmul.bf16.gmra.mxu0 %v5891_v50  ;;  %v13513_v48 = vld [vmem:[%s14888_s1] ss:$0 sm:$0xff]  ;;  %s14899_s1 = smov %s14898_s11 }
 0xb51   : > { %v6543_v5 = vmul.f32 %v9610_v59, %v6538_v42  ;;  %vm6549_vm12 = vweird.f32 %v9610_v59 }
 0xb52   : > { %v6232_v12 = vmax.f32 %v13477_v34, 0.0  ;;  %vm6550_vm7 = vmor %vm6548_vm6, %vm6549_vm12 }
 0xb53   : > { %v6544_v26 = vmul.f32 %v9610_v59, %v6543_v5 }
 0xb54   : > { %v6312_v39 = vmul.f32 %v13372_v24, %v6232_v12 }
 0xb55   : > { %v6545_v25 = vmul.f32 0.5, %v6544_v26  ;;  %v6002_v13 = vpop.f32.mrf.mxu0  ;;  %v13488_v33 = vpop.f32.mrf.mxu1 }
 0xb56   : > { %v6140_v55 = vadd.f32 %v6139_v61, %v6002_v13  ;;  %v6348_v14 = vadd.f32 %v6347_v41, %v6312_v39 }
 0xb57   : > { %v6546_v3 = vsub.f32 1.5, %v6545_v25 }
 0xb58   : > { %v13498_v19 = vadd.f32 %v13318_v7, %v6140_v55 }
 0xb59   : > { %v6547_v9 = vmul.f32 %v9610_v59, %v6546_v3 }
 0xb5a   : > { %v6233_v4 = vmax.f32 %v13498_v19, 0.0 }
 0xb5b   : > { %v6551_v43 = vsel %vm6550_vm7, %v9610_v59, %v6547_v9 }
 0xb5c   : > { %v6313_v21 = vmul.f32 %v13376_v52, %v6233_v4  ;;  %v6582_v61 = vmul.f32 %v6551_v43, %v13389_v47  ;;  %v6583_v50 = vmul.f32 %v6551_v43, %v13393_v62  ;;  %v6584_v59 = vmul.f32 %v6551_v43, %v13397_v30  ;;  %v9267_v47 = vld [vmem:[%s14886_s26] sm:$0xff] }
 0xb5d   : > { %v13510_v42 = vpop.f32.mrf.mxu0  ;;  %v13515_v22 = vpop.f32.mrf.mxu1  ;;  %v6585_v49 = vmul.f32 %v6551_v43, %v13399_v44  ;;  %v6586_v5 = vmul.f32 %v6551_v43, %v13401_v28  ;;  %v6587_v51 = vmul.f32 %v6551_v43, %v13409_v29  ;;  %v6589_v32 = vmul.f32 %v6551_v43, %v13420_v38  ;;  %6777 = vmatpush.bf16.msra.mxu3 %v9267_v47 }
 0xb5e   : > { %v6349_v46 = vadd.f32 %v6348_v14, %v6313_v21  ;;  %v6618_v62 = vmul.f32 %v13503_v63, %v6582_v61  ;;  %v6619_v26 = vmul.f32 %v13503_v63, %v6583_v50  ;;  %v6620_v37 = vmul.f32 %v13503_v63, %v6584_v59 }
 0xb5f   : > { %v6621_v6 = vmul.f32 %v13503_v63, %v6585_v49  ;;  %v6622_v30 = vmul.f32 %v13503_v63, %v6586_v5  ;;  %v6623_v44 = vmul.f32 %v13503_v63, %v6587_v51  ;;  %v6588_v3 = vmul.f32 %v6551_v43, %v13415_v17 }
 0xb60   : > { %v6350_v25 = vrot.slane %v6349_v46, 4  ;;  %v6654_v28 = vadd.f32 %v13513_v48, %v6618_v62  ;;  %v6655_v29 = vadd.f32 %v13513_v48, %v6619_v26  ;;  %v6656_v38 = vadd.f32 %v13513_v48, %v6620_v37 }
 0xb61   : > { %v6657_v13 = vadd.f32 %v13513_v48, %v6621_v6  ;;  %v13534_v20 = vadd.f32 %v13513_v48, %v6622_v30  ;;  %v6659_v35 = vadd.f32 %v13513_v48, %v6623_v44  ;;  %v6625_v9 = vmul.f32 %v13503_v63, %v6589_v32 }
 0xb62   : > { %v6351_v55 = vadd.f32 %v6350_v25, %v6349_v46  ;;  %v6686_v16 = vpack.c.bf16 %v6655_v29, %v6654_v28  ;;  %v6624_v31 = vmul.f32 %v13503_v63, %v6588_v3 }
 0xb63   : > { %v6687_v15 = vpack.c.bf16 %v6657_v13, %v6656_v38  ;;  %v6688_v39 = vpack.c.bf16 %v6659_v35, %v13534_v20  ;;  %v13542_v61 = vadd.f32 %v13513_v48, %v6625_v9 }
 0xb64   : > { %v6352_v41 = vrot.slane %v6351_v55, 2  ;;  %6778 = vmatmul.bf16.vlgmr.msra.gmra.mxu3 %v6686_v16  ;;  %v13545_v59 = vadd.f32 %v13513_v48, %v6624_v31  ;;  %v6143_v31 = vadd.f32 %v13488_v33, %v13510_v42 }
 0xb65   : > { %v6007_v14 = vpop.f32.mrf.mxu0  ;;  %v6147_v21 = vpop.f32.mrf.mxu1 }
 0xb66   : > { %v6353_v50 = vadd.f32 %v6352_v41, %v6351_v55  ;;  %v6689_v17 = vpack.c.bf16 %v13542_v61, %v13545_v59  ;;  %v6145_v9 = vadd.f32 %v13515_v22, %v6007_v14 }
 0xb68   : > { %v6354_v49 = vrot.slane %v6353_v50, 1 }
 0xb6a   : > { %v6355_v43 = vadd.f32 %v6354_v49, %v6353_v50 }
 0xb6c   : > { %v6383_v5 = vmul.f32 0.015625, %v6355_v43  ;;  %v13609_v43 = vadd.f32 %v13318_v7, %v6145_v9 }
 0xb6d   : > { %v6010_v51 = vpop.f32.mrf.mxu0  ;;  %v6149_v32 = vpop.f32.mrf.mxu1 }
 0xb6e   : > { %v13551_v46 = vsub.f32 %v6226_v53, %v6383_v5  ;;  %v13555_v47 = vsub.f32 %v6227_v45, %v6383_v5  ;;  %v13559_v62 = vsub.f32 %v6228_v58, %v6383_v5  ;;  %v13563_v26 = vsub.f32 %v6229_v23, %v6383_v5 }
 0xb6f   : > { %v13567_v37 = vsub.f32 %v6230_v11, %v6383_v5  ;;  %v13577_v0 = vsub.f32 %v6231_v18, %v6383_v5  ;;  %v13585_v2 = vsub.f32 %v6232_v12, %v6383_v5  ;;  %v13592_v30 = vsub.f32 %v6233_v4, %v6383_v5 }
 0xb70   : > { %v6426_v36 = vmul.f32 %v13551_v46, %v13551_v46  ;;  %v6427_v1 = vmul.f32 %v13555_v47, %v13555_v47  ;;  %v6428_v45 = vmul.f32 %v13559_v62, %v13559_v62  ;;  %v6429_v56 = vmul.f32 %v13563_v26, %v13563_v26 }
 0xb71   : > { %v6430_v23 = vmul.f32 %v13567_v37, %v13567_v37  ;;  %v6431_v44 = vmul.f32 %v13577_v0, %v13577_v0  ;;  %v6432_v25 = vmul.f32 %v13585_v2, %v13585_v2  ;;  %v6433_v38 = vmul.f32 %v13592_v30, %v13592_v30 }
 0xb72   : > { %v6458_v53 = vmul.f32 %v6426_v36, %v13315_v57  ;;  %v6459_v58 = vmul.f32 %v6427_v1, %v13323_v60  ;;  %v6460_v11 = vmul.f32 %v6428_v45, %v13331_v54  ;;  %v6461_v34 = vmul.f32 %v6429_v56, %v13344_v27 }
 0xb73   : > { %v6462_v28 = vmul.f32 %v6430_v23, %v13363_v8  ;;  %v6463_v13 = vmul.f32 %v6431_v44, %v13367_v10  ;;  %v6464_v4 = vmul.f32 %v6432_v25, %v13372_v24  ;;  %v6465_v16 = vmul.f32 %v6433_v38, %v13376_v52 }
 0xb74   : > { %v6495_v6 = vadd.f32 %v6459_v58, %v6458_v53  ;;  %6783 = vmatmul.bf16.gmra.mxu3 %v6687_v15  ;;  %v6148_v49 = vadd.f32 %v6147_v21, %v6010_v51  ;;  %v13612_v56 = vadd.f32 %v13318_v7, %v6143_v31  ;;  %v6235_v33 = vmax.f32 %v13609_v43, 0.0 }
 0xb75   : > { %v6012_v40 = vpop.f32.mrf.mxu0  ;;  %v6152_v18 = vpop.f32.mrf.mxu1 }
 0xb76   : > { %v6496_v12 = vadd.f32 %v6495_v6, %v6460_v11  ;;  %v6150_v45 = vadd.f32 %v6149_v32, %v6012_v40  ;;  %v13615_v22 = vadd.f32 %v13318_v7, %v6148_v49  ;;  %v6234_v51 = vmax.f32 %v13612_v56, 0.0 }
 0xb77   : > { %v6315_v11 = vmul.f32 %v13323_v60, %v6235_v33 }
 0xb78   : > { %v6497_v29 = vadd.f32 %v6496_v12, %v6461_v34  ;;  %v6236_v32 = vmax.f32 %v13615_v22, 0.0  ;;  %v6314_v25 = vmul.f32 %v13315_v57, %v6234_v51 }
 0xb7a   : > { %v6498_v19 = vadd.f32 %v6497_v29, %v6462_v28  ;;  %v6316_v29 = vmul.f32 %v13331_v54, %v6236_v32 }
 0xb7c   : > { %v6499_v20 = vadd.f32 %v6498_v19, %v6463_v13  ;;  %v6356_v19 = vadd.f32 %v6315_v11, %v6314_v25 }
 0xb7d   : > { %v6015_v35 = vpop.f32.mrf.mxu0  ;;  %v6154_v55 = vpop.f32.mrf.mxu1 }
 0xb7e   : > { %v6500_v3 = vadd.f32 %v6499_v20, %v6464_v4  ;;  %v6153_v14 = vadd.f32 %v6152_v18, %v6015_v35  ;;  %v6357_v35 = vadd.f32 %v6356_v19, %v6316_v29 }
 0xb80   : > { %v6501_v15 = vadd.f32 %v6500_v3, %v6465_v16  ;;  %v13624_v23 = vadd.f32 %v13318_v7, %v6153_v14 }
 0xb82   : > { %v6502_v41 = vrot.slane %v6501_v15, 4  ;;  %v6238_v38 = vmax.f32 %v13624_v23, 0.0 }
 0xb84   : > { %v6503_v50 = vadd.f32 %v6502_v41, %v6501_v15  ;;  %6788 = vmatmul.bf16.gmra.mxu3 %v6688_v39  ;;  %v13619_v39 = vadd.f32 %v13318_v7, %v6150_v45 }
 0xb85   : > { %v6017_v5 = vpop.f32.mrf.mxu0  ;;  %v6157_v36 = vpop.f32.mrf.mxu1 }
 0xb86   : > { %v6504_v1 = vrot.slane %v6503_v50, 2  ;;  %v6155_v21 = vadd.f32 %v6154_v55, %v6017_v5  ;;  %v6237_v44 = vmax.f32 %v13619_v39, 0.0  ;;  %v6318_v55 = vmul.f32 %v13363_v8, %v6238_v38 }
 0xb88   : > { %v6505_v53 = vadd.f32 %v6504_v1, %v6503_v50  ;;  %v13631_v34 = vadd.f32 %v13318_v7, %v6155_v21  ;;  %v6317_v4 = vmul.f32 %v13344_v27, %v6237_v44 }
 0xb8a   : > { %v6506_v42 = vrot.slane %v6505_v53, 1  ;;  %v6239_v20 = vmax.f32 %v13631_v34, 0.0  ;;  %v6358_v9 = vadd.f32 %v6357_v35, %v6317_v4 }
 0xb8c   : > { %v6507_v58 = vadd.f32 %v6506_v42, %v6505_v53  ;;  %v6319_v41 = vmul.f32 %v13367_v10, %v6239_v20  ;;  %v6359_v49 = vadd.f32 %v6358_v9, %v6318_v55 }
 0xb8d   : > { %v6020_v6 = vpop.f32.mrf.mxu0  ;;  %v6159_v40 = vpop.f32.mrf.mxu1 }
 0xb8e   : > { %v6535_v18 = vmul.f32 0.015625, %v6507_v58  ;;  %v6158_v12 = vadd.f32 %v6157_v36, %v6020_v6  ;;  %v6360_v59 = vadd.f32 %v6359_v49, %v6319_v41 }
 0xb90   : > { %v6539_v28 = vadd.f32 1e-05, %v6535_v18  ;;  %v13641_v13 = vadd.f32 %v13318_v7, %v6158_v12 }
 0xb92   : > { %9611 = vrsqrt.f32 %v6539_v28  ;;  %v6240_v16 = vmax.f32 %v13641_v13, 0.0  ;;  %vm6558_vm9 = vweird.f32 %v6539_v28 }
 0xb94   : > { %6793 = vmatmul.bf16.gmra.mxu3 %v6689_v17  ;;  %v6320_v5 = vmul.f32 %v13372_v24, %v6240_v16 }
 0xb95   : > { %v6022_v3 = vpop.f32.mrf.mxu0  ;;  %v13654_v15 = vpop.f32.mrf.mxu1 }
 0xb96   : > { %v6160_v31 = vadd.f32 %v6159_v40, %v6022_v3  ;;  %v6361_v45 = vadd.f32 %v6360_v59, %v6320_v5 }
 0xb98   : > { %v9612_v50 = vpop.eup %9611  ;;  %v13663_v36 = vadd.f32 %v13318_v7, %v6160_v31 }
 0xb99   : > { %v6553_v61 = vmul.f32 %v9612_v50, %v6539_v28  ;;  %vm6559_vm8 = vweird.f32 %v9612_v50 }
 0xb9a   : > { %v6241_v17 = vmax.f32 %v13663_v36, 0.0  ;;  %vm6560_vm10 = vmor %vm6558_vm9, %vm6559_vm8 }
 0xb9b   : > { %v6554_v1 = vmul.f32 %v9612_v50, %v6553_v61 }
 0xb9c   : > { %v6321_v53 = vmul.f32 %v13376_v52, %v6241_v17 }
 0xb9d   : > { %v6555_v14 = vmul.f32 0.5, %v6554_v1  ;;  %v13669_v42 = vpop.f32.mrf.mxu0  ;;  %v13671_v21 = vpop.f32.mrf.mxu1 }
 0xb9e   : > { %v6362_v58 = vadd.f32 %v6361_v45, %v6321_v53 }
 0xb9f   : > { %v6556_v11 = vsub.f32 1.5, %v6555_v14 }
 0xba0   : > { %v6363_v6 = vrot.slane %v6362_v58, 4 }
 0xba1   : > { %v6557_v40 = vmul.f32 %v9612_v50, %v6556_v11 }
 0xba2   : > { %v6364_v18 = vadd.f32 %v6363_v6, %v6362_v58 }
 0xba3   : > { %v6561_v12 = vsel %vm6560_vm10, %v9612_v50, %v6557_v40 }
 0xba4   : > { %v6365_v25 = vrot.slane %v6364_v18, 2  ;;  %v6590_v29 = vmul.f32 %v6561_v12, %v13551_v46  ;;  %v6591_v4 = vmul.f32 %v6561_v12, %v13555_v47  ;;  %v6592_v55 = vmul.f32 %v6561_v12, %v13559_v62 }
 0xba5   : > { %v13674_v19 = vpop.f32.mrf.mxu0  ;;  %v13677_v35 = vpop.f32.mrf.mxu1  ;;  %v6593_v3 = vmul.f32 %v6561_v12, %v13563_v26  ;;  %v6594_v9 = vmul.f32 %v6561_v12, %v13567_v37  ;;  %v6595_v31 = vmul.f32 %v6561_v12, %v13577_v0  ;;  %v6597_v5 = vmul.f32 %v6561_v12, %v13592_v30 }
 0xba6   : > { %v6366_v41 = vadd.f32 %v6365_v25, %v6364_v18  ;;  %v6626_v28 = vmul.f32 %v13503_v63, %v6590_v29  ;;  %v6627_v50 = vmul.f32 %v13503_v63, %v6591_v4  ;;  %v6628_v46 = vmul.f32 %v13503_v63, %v6592_v55 }
 0xba7   : > { %v6629_v49 = vmul.f32 %v13503_v63, %v6593_v3  ;;  %v6630_v47 = vmul.f32 %v13503_v63, %v6594_v9  ;;  %v6631_v37 = vmul.f32 %v13503_v63, %v6595_v31  ;;  %v6596_v58 = vmul.f32 %v6561_v12, %v13585_v2 }
 0xba8   : > { %v6367_v62 = vrot.slane %v6366_v41, 1  ;;  %v6662_v26 = vadd.f32 %v13513_v48, %v6626_v28  ;;  %v6663_v61 = vadd.f32 %v13513_v48, %v6627_v50  ;;  %v6664_v59 = vadd.f32 %v13513_v48, %v6628_v46 }
 0xba9   : > { %v6665_v0 = vadd.f32 %v13513_v48, %v6629_v49  ;;  %v13695_v1 = vadd.f32 %v13513_v48, %v6630_v47  ;;  %v13698_v53 = vadd.f32 %v13513_v48, %v6631_v37  ;;  %v6633_v25 = vmul.f32 %v13503_v63, %v6597_v5 }
 0xbaa   : > { %v6368_v45 = vadd.f32 %v6367_v62, %v6366_v41  ;;  %v6690_v14 = vpack.c.bf16 %v6663_v61, %v6662_v26  ;;  %v6632_v55 = vmul.f32 %v13503_v63, %v6596_v58 }
 0xbab   : > { %v6691_v30 = vpack.c.bf16 %v6665_v0, %v6664_v59  ;;  %v6692_v6 = vpack.c.bf16 %v13698_v53, %v13695_v1 }
 0xbac   : > { %v6384_v11 = vmul.f32 0.015625, %v6368_v45  ;;  %6798 = vmatmul.bf16.gmra.mxu3 %v6690_v14  ;;  %v13750_v34 = vadd.f32 %v13513_v48, %v6632_v55  ;;  %v6165_v14 = vadd.f32 %v13671_v21, %v13674_v19 }
 0xbad   : > { %v6030_v40 = vpop.f32.mrf.mxu0  ;;  %v6169_v18 = vpop.f32.mrf.mxu1 }
 0xbae   : > { %v13706_v29 = vsub.f32 %v6234_v51, %v6384_v11  ;;  %v13710_v4 = vsub.f32 %v6235_v33, %v6384_v11  ;;  %v13714_v2 = vsub.f32 %v6236_v32, %v6384_v11  ;;  %v13718_v12 = vsub.f32 %v6237_v44, %v6384_v11 }
 0xbaf   : > { %v13723_v3 = vsub.f32 %v6238_v38, %v6384_v11  ;;  %v13732_v33 = vadd.f32 %v13513_v48, %v6633_v25  ;;  %v13736_v39 = vsub.f32 %v6239_v20, %v6384_v11  ;;  %v13744_v44 = vsub.f32 %v6240_v16, %v6384_v11 }
 0xbb0   : > { %v6434_v56 = vmul.f32 %v13706_v29, %v13706_v29  ;;  %v6435_v43 = vmul.f32 %v13710_v4, %v13710_v4  ;;  %v6436_v22 = vmul.f32 %v13714_v2, %v13714_v2  ;;  %v6437_v51 = vmul.f32 %v13718_v12, %v13718_v12 }
 0xbb1   : > { %v6438_v38 = vmul.f32 %v13723_v3, %v13723_v3  ;;  %v13754_v20 = vsub.f32 %v6241_v17, %v6384_v11  ;;  %v6439_v31 = vmul.f32 %v13736_v39, %v13736_v39  ;;  %v6693_v50 = vpack.c.bf16 %v13732_v33, %v13750_v34 }
 0xbb2   : > { %v6466_v32 = vmul.f32 %v6434_v56, %v13315_v57  ;;  %v6467_v23 = vmul.f32 %v6435_v43, %v13323_v60  ;;  %v6468_v9 = vmul.f32 %v6436_v22, %v13331_v54  ;;  %v6469_v13 = vmul.f32 %v6437_v51, %v13344_v27 }
 0xbb3   : > { %v6440_v49 = vmul.f32 %v13744_v44, %v13744_v44  ;;  %v6470_v47 = vmul.f32 %v6438_v38, %v13363_v8  ;;  %v6441_v36 = vmul.f32 %v13754_v20, %v13754_v20  ;;  %v6471_v17 = vmul.f32 %v6439_v31, %v13367_v10 }
 0xbb4   : > { %v6508_v41 = vadd.f32 %v6467_v23, %v6466_v32  ;;  %v6163_v25 = vadd.f32 %v13654_v15, %v13669_v42  ;;  %v6168_v56 = vadd.f32 %v13677_v35, %v6030_v40  ;;  %v13775_v43 = vadd.f32 %v13318_v7, %v6165_v14 }
 0xbb5   : > { %v6032_v28 = vpop.f32.mrf.mxu0  ;;  %v6172_v46 = vpop.f32.mrf.mxu1  ;;  %v6472_v26 = vmul.f32 %v6440_v49, %v13372_v24  ;;  %v6473_v59 = vmul.f32 %v6441_v36, %v13376_v52 }
 0xbb6   : > { %v6509_v16 = vadd.f32 %v6508_v41, %v6468_v9  ;;  %v6170_v51 = vadd.f32 %v6169_v18, %v6032_v28  ;;  %v13778_v32 = vadd.f32 %v13318_v7, %v6163_v25  ;;  %v13781_v21 = vadd.f32 %v13318_v7, %v6168_v56 }
 0xbb7   : > { %v6243_v38 = vmax.f32 %v13775_v43, 0.0 }
 0xbb8   : > { %v6510_v5 = vadd.f32 %v6509_v16, %v6469_v13  ;;  %v13785_v42 = vadd.f32 %v13318_v7, %v6170_v51  ;;  %v6242_v40 = vmax.f32 %v13778_v32, 0.0  ;;  %v6244_v18 = vmax.f32 %v13781_v21, 0.0 }
 0xbb9   : > { %v6323_v31 = vmul.f32 %v13323_v60, %v6243_v38 }
 0xbba   : > { %v6511_v62 = vadd.f32 %v6510_v5, %v6470_v47  ;;  %v6322_v5 = vmul.f32 %v13315_v57, %v6242_v40 }
 0xbbc   : > { %v6512_v37 = vadd.f32 %v6511_v62, %v6471_v17  ;;  %6803 = vmatmul.bf16.gmra.mxu3 %v6691_v30  ;;  %v6324_v17 = vmul.f32 %v13331_v54, %v6244_v18 }
 0xbbd   : > { %v6035_v61 = vpop.f32.mrf.mxu0  ;;  %v6174_v58 = vpop.f32.mrf.mxu1 }
 0xbbe   : > { %v6513_v0 = vadd.f32 %v6512_v37, %v6472_v26  ;;  %v6173_v19 = vadd.f32 %v6172_v46, %v6035_v61  ;;  %v6245_v46 = vmax.f32 %v13785_v42, 0.0 }
 0xbc0   : > { %v6514_v45 = vadd.f32 %v6513_v0, %v6473_v59  ;;  %v13790_v28 = vadd.f32 %v13318_v7, %v6173_v19  ;;  %v6325_v62 = vmul.f32 %v13344_v27, %v6245_v46 }
 0xbc2   : > { %v6515_v11 = vrot.slane %v6514_v45, 4  ;;  %v6246_v1 = vmax.f32 %v13790_v28, 0.0 }
 0xbc4   : > { %v6516_v55 = vadd.f32 %v6515_v11, %v6514_v45  ;;  %v6326_v61 = vmul.f32 %v13363_v8, %v6246_v1 }
 0xbc5   : > { %v6037_v30 = vpop.f32.mrf.mxu0  ;;  %v6177_v9 = vpop.f32.mrf.mxu1 }
 0xbc6   : > { %v6517_v22 = vrot.slane %v6516_v55, 2  ;;  %v6175_v35 = vadd.f32 %v6174_v58, %v6037_v30 }
 0xbc8   : > { %v6518_v23 = vadd.f32 %v6517_v22, %v6516_v55  ;;  %v13800_v49 = vadd.f32 %v13318_v7, %v6175_v35 }
 0xbca   : > { %v6519_v15 = vrot.slane %v6518_v23, 1  ;;  %v6247_v26 = vmax.f32 %v13800_v49, 0.0 }
 0xbcc   : > { %v6520_v41 = vadd.f32 %v6519_v15, %v6518_v23  ;;  %6808 = vmatmul.bf16.gmra.mxu3 %v6692_v6  ;;  %v6369_v6 = vadd.f32 %v6323_v31, %v6322_v5  ;;  %v6327_v58 = vmul.f32 %v13367_v10, %v6247_v26 }
 0xbcd   : > { %v6040_v13 = vpop.f32.mrf.mxu0  ;;  %v6179_v45 = vpop.f32.mrf.mxu1 }
 0xbce   : > { %v6536_v16 = vmul.f32 0.015625, %v6520_v41  ;;  %v6178_v47 = vadd.f32 %v6177_v9, %v6040_v13  ;;  %v6370_v37 = vadd.f32 %v6369_v6, %v6324_v17 }
 0xbd0   : > { %v6540_v36 = vadd.f32 1e-05, %v6536_v16  ;;  %v13810_v53 = vadd.f32 %v13318_v7, %v6178_v47  ;;  %v6371_v14 = vadd.f32 %v6370_v37, %v6325_v62 }
 0xbd2   : > { %9613 = vrsqrt.f32 %v6540_v36  ;;  %v6248_v59 = vmax.f32 %v13810_v53, 0.0  ;;  %v6372_v55 = vadd.f32 %v6371_v14, %v6326_v61  ;;  %vm6568_vm13 = vweird.f32 %v6540_v36 }
 0xbd4   : > { %v6328_v56 = vmul.f32 %v13372_v24, %v6248_v59  ;;  %v6373_v51 = vadd.f32 %v6372_v55, %v6327_v58 }
 0xbd5   : > { %v6042_v0 = vpop.f32.mrf.mxu0 }
 0xbd6   : > { %v6180_v11 = vadd.f32 %v6179_v45, %v6042_v0  ;;  %v6374_v15 = vadd.f32 %v6373_v51, %v6328_v56 }
 0xbd8   : > { %v9614_v25 = vpop.eup %9613  ;;  %v13827_v30 = vadd.f32 %v13318_v7, %v6180_v11 }
 0xbd9   : > { %v6563_v22 = vmul.f32 %v9614_v25, %v6540_v36  ;;  %vm6569_vm11 = vweird.f32 %v9614_v25 }
 0xbda   : > { %v6249_v23 = vmax.f32 %v13827_v30, 0.0  ;;  %vm6570_vm14 = vmor %vm6568_vm13, %vm6569_vm11 }
 0xbdb   : > { %v6564_v19 = vmul.f32 %v9614_v25, %v6563_v22 }
 0xbdc   : > { %v6329_v35 = vmul.f32 %v13376_v52, %v6249_v23  ;;  %6813 = vmatmul.bf16.gmra.mxu3 %v6693_v50 }
 0xbdd   : > { %v6565_v9 = vmul.f32 0.5, %v6564_v19 }
 0xbde   : > { %v6375_v41 = vadd.f32 %v6374_v15, %v6329_v35 }
 0xbdf   : > { %v6566_v31 = vsub.f32 1.5, %v6565_v9 }
 0xbe0   : > { %v6376_v7 = vrot.slane %v6375_v41, 4 }
 0xbe1   : > { %v6567_v13 = vmul.f32 %v9614_v25, %v6566_v31 }
 0xbe2   : > { %v6377_v16 = vadd.f32 %v6376_v7, %v6375_v41 }
 0xbe3   : > { %v6571_v47 = vsel %vm6570_vm14, %v9614_v25, %v6567_v13  ;;  %vm8118_vm14 = vcmask 1041409  }
 0xbe4   : > { %v6605_v5 = vmul.f32 %v6571_v47, %v13754_v20  ;;  %v6378_v17 = vrot.slane %v6377_v16, 2  ;;  %v6598_v6 = vmul.f32 %v6571_v47, %v13706_v29  ;;  %v6599_v62 = vmul.f32 %v6571_v47, %v13710_v4 }
 0xbe5   : > { %v6600_v37 = vmul.f32 %v6571_v47, %v13714_v2  ;;  %v6601_v33 = vmul.f32 %v6571_v47, %v13718_v12  ;;  %v6602_v34 = vmul.f32 %v6571_v47, %v13723_v3  ;;  %v6603_v50 = vmul.f32 %v6571_v47, %v13736_v39 }
 0xbe6   : > { %v6379_v61 = vadd.f32 %v6378_v17, %v6377_v16  ;;  %v6634_v36 = vmul.f32 %v13503_v63, %v6598_v6  ;;  %v6635_v0 = vmul.f32 %v13503_v63, %v6599_v62  ;;  %v6604_v20 = vmul.f32 %v6571_v47, %v13744_v44 }
 0xbe7   : > { %v13846_v45 = vpop.f32.mrf.mxu3  ;;  %v6636_v29 = vmul.f32 %v13503_v63, %v6600_v37  ;;  %v6637_v4 = vmul.f32 %v13503_v63, %v6601_v33  ;;  %v6638_v2 = vmul.f32 %v13503_v63, %v6602_v34  ;;  %v6639_v12 = vmul.f32 %v13503_v63, %v6603_v50 }
 0xbe8   : > { %v6380_v3 = vrot.slane %v6379_v61, 1  ;;  %v6670_v39 = vadd.f32 %v13513_v48, %v6634_v36  ;;  %v6671_v14 = vadd.f32 %v13513_v48, %v6635_v0  ;;  %v6640_v19 = vmul.f32 %v13503_v63, %v6604_v20 }
 0xbe9   : > { %v6672_v58 = vadd.f32 %v13513_v48, %v6636_v29  ;;  %v6673_v11 = vadd.f32 %v13513_v48, %v6637_v4  ;;  %v6674_v44 = vadd.f32 %v13513_v48, %v6638_v2  ;;  %v6675_v25 = vadd.f32 %v13513_v48, %v6639_v12 }
 0xbea   : > { %v6381_v55 = vadd.f32 %v6380_v3, %v6379_v61  ;;  %v6694_v56 = vpack.c.bf16 %v6671_v14, %v6670_v39  ;;  %v6641_v15 = vmul.f32 %v13503_v63, %v6605_v5  ;;  %v13877_v16 = vadd.f32 %v13513_v48, %v6640_v19 }
 0xbeb   : > { %v6695_v22 = vpack.c.bf16 %v6673_v11, %v6672_v58  ;;  %v6696_v51 = vpack.c.bf16 %v6675_v25, %v6674_v44  ;;  %v13925_v11 = vld [vmem:[%s14889_s4] ss:$0 sm:$0xff]  ;;  %s9299_s4 = sshll.u32 %s10529_s0, 5  ;;  %s8174_s0 = sshll.u32 %s14608_s10, 4  ;;  %s8175_s0 = int_to_ptr.vmem [resolvable:$true] %s8174_s0 }
 0xbec   : > { %v6385_v35 = vmul.f32 0.015625, %v6381_v55  ;;  %6818 = vmatmul.bf16.gmra.mxu3 %v6694_v56  ;;  %v13880_v32 = vadd.f32 %v13513_v48, %v6641_v15  ;;  %v6780_v56 = vadd.f32 %v13925_v11, %v13846_v45 }
 0xbee   : > { %v13862_v9 = vsub.f32 %v6242_v40, %v6385_v35  ;;  %v13866_v41 = vsub.f32 %v6243_v38, %v6385_v35  ;;  %v13870_v31 = vsub.f32 %v6244_v18, %v6385_v35  ;;  %v13874_v7 = vsub.f32 %v6245_v46, %v6385_v35 }
 0xbef   : > { %v6781_v13 = vpop.f32.mrf.mxu3  ;;  %v13884_v43 = vsub.f32 %v6246_v1, %v6385_v35  ;;  %v13894_v40 = vsub.f32 %v6247_v26, %v6385_v35  ;;  %v13902_v1 = vsub.f32 %v6248_v59, %v6385_v35  ;;  %v6697_v49 = vpack.c.bf16 %v13880_v32, %v13877_v16 }
 0xbf0   : > { %v6442_v21 = vmul.f32 %v13862_v9, %v13862_v9  ;;  %v6443_v38 = vmul.f32 %v13866_v41, %v13866_v41  ;;  %v6444_v42 = vmul.f32 %v13870_v31, %v13870_v31  ;;  %v6445_v18 = vmul.f32 %v13874_v7, %v13874_v7 }
 0xbf1   : > { %v6446_v47 = vmul.f32 %v13884_v43, %v13884_v43  ;;  %v13911_v26 = vsub.f32 %v6249_v23, %v6385_v35  ;;  %v6447_v6 = vmul.f32 %v13894_v40, %v13894_v40  ;;  %v6448_v37 = vmul.f32 %v13902_v1, %v13902_v1 }
 0xbf2   : > { %v6474_v28 = vmul.f32 %v6442_v21, %v13315_v57  ;;  %v6475_v46 = vmul.f32 %v6443_v38, %v13323_v60  ;;  %v6476_v5 = vmul.f32 %v6444_v42, %v13331_v54  ;;  %v6477_v53 = vmul.f32 %v6445_v18, %v13344_v27 }
 0xbf3   : > { %v6478_v33 = vmul.f32 %v6446_v47, %v13363_v8  ;;  %v6449_v50 = vmul.f32 %v13911_v26, %v13911_v26  ;;  %v6479_v30 = vmul.f32 %v6447_v6, %v13367_v10  ;;  %v6480_v61 = vmul.f32 %v6448_v37, %v13372_v24 }
 0xbf4   : > { %v6521_v17 = vadd.f32 %v6475_v46, %v6474_v28  ;;  %v6782_v25 = vadd.f32 %v13925_v11, %v6781_v13  ;;  %v13936_v32 = vmul.f32 %v6780_v56, %v13315_v57 }
 0xbf5   : > { %v6481_v0 = vmul.f32 %v6449_v50, %v13376_v52 }
 0xbf6   : > { %v6522_v59 = vadd.f32 %v6521_v17, %v6476_v5  ;;  %v13932_v35 = vmul.f32 %v6782_v25, %v13323_v60  ;;  %v6891_v42 = vmul.f32 %v13936_v32, %v13315_v57 }
 0xbf7   : > { %v6784_v62 = vpop.f32.mrf.mxu3 }
 0xbf8   : > { %v6523_v34 = vadd.f32 %v6522_v59, %v6477_v53  ;;  %v6892_v45 = vmul.f32 %v13932_v35, %v13323_v60 }
 0xbfa   : > { %v6524_v23 = vadd.f32 %v6523_v34, %v6478_v33  ;;  %v6923_v6 = vadd.f32 %v6892_v45, %v6891_v42 }
 0xbfc   : > { %v6525_v36 = vadd.f32 %v6524_v23, %v6479_v30  ;;  %6823 = vmatmul.bf16.gmra.mxu3 %v6695_v22  ;;  %v6785_v22 = vadd.f32 %v13925_v11, %v6784_v62 }
 0xbfe   : > { %v6526_v20 = vadd.f32 %v6525_v36, %v6480_v61  ;;  %v13939_v13 = vmul.f32 %v6785_v22, %v13331_v54 }
 0xbff   : > { %v6786_v29 = vpop.f32.mrf.mxu3 }
 0xc00   : > { %v6527_v4 = vadd.f32 %v6526_v20, %v6481_v0  ;;  %v6787_v16 = vadd.f32 %v13925_v11, %v6786_v29  ;;  %v6893_v18 = vmul.f32 %v13939_v13, %v13331_v54 }
 0xc02   : > { %v6528_v2 = vrot.slane %v6527_v4, 4  ;;  %v13945_v21 = vmul.f32 %v6787_v16, %v13344_v27  ;;  %v6924_v37 = vadd.f32 %v6923_v6, %v6893_v18 }
 0xc04   : > { %v6529_v12 = vadd.f32 %v6528_v2, %v6527_v4  ;;  %v6894_v53 = vmul.f32 %v13945_v21, %v13344_v27 }
 0xc06   : > { %v6530_v3 = vrot.slane %v6529_v12, 2  ;;  %v6925_v30 = vadd.f32 %v6924_v37, %v6894_v53 }
 0xc07   : > { %v6789_v39 = vpop.f32.mrf.mxu3 }
 0xc08   : > { %v6531_v14 = vadd.f32 %v6530_v3, %v6529_v12 }
 0xc0a   : > { %v6532_v58 = vrot.slane %v6531_v14, 1 }
 0xc0c   : > { %v6533_v44 = vadd.f32 %v6532_v58, %v6531_v14  ;;  %6828 = vmatmul.bf16.gmra.mxu3 %v6696_v51  ;;  %v6790_v51 = vadd.f32 %v13925_v11, %v6789_v39 }
 0xc0e   : > { %v6537_v55 = vmul.f32 0.015625, %v6533_v44  ;;  %v13953_v28 = vmul.f32 %v6790_v51, %v13363_v8 }
 0xc0f   : > { %v6791_v19 = vpop.f32.mrf.mxu3 }
 0xc10   : > { %v6541_v15 = vadd.f32 1e-05, %v6537_v55  ;;  %v6792_v38 = vadd.f32 %v13925_v11, %v6791_v19  ;;  %v6895_v33 = vmul.f32 %v13953_v28, %v13363_v8 }
 0xc12   : > { %9615 = vrsqrt.f32 %v6541_v15  ;;  %v13959_v59 = vmul.f32 %v6792_v38, %v13367_v10  ;;  %v6926_v36 = vadd.f32 %v6925_v30, %v6895_v33  ;;  %vm6578_vm0 = vweird.f32 %v6541_v15 }
 0xc14   : > { %v6896_v23 = vmul.f32 %v13959_v59, %v13367_v10 }
 0xc16   : > { %v6927_v2 = vadd.f32 %v6926_v36, %v6896_v23 }
 0xc17   : > { %v6794_v46 = vpop.f32.mrf.mxu3 }
 0xc18   : > { %v9616_v47 = vpop.eup %9615  ;;  %v6795_v5 = vadd.f32 %v13925_v11, %v6794_v46 }
 0xc19   : > { %v6573_v17 = vmul.f32 %v9616_v47, %v6541_v15  ;;  %vm6579_vm15 = vweird.f32 %v9616_v47 }
 0xc1a   : > { %v13964_v34 = vmul.f32 %v6795_v5, %v13372_v24  ;;  %vm6580_vm1 = vmor %vm6578_vm0, %vm6579_vm15  ;;  %vm8120_vm15 = vcmask 1042434   ;;  %vm8122_vm0 = vcmask 1043459  }
 0xc1b   : > { %v6574_v62 = vmul.f32 %v9616_v47, %v6573_v17 }
 0xc1c   : > { %6833 = vmatmul.bf16.gmra.mxu3 %v6697_v49  ;;  %v6897_v0 = vmul.f32 %v13964_v34, %v13372_v24 }
 0xc1d   : > { %v6575_v50 = vmul.f32 0.5, %v6574_v62 }
 0xc1e   : > { %v6928_v39 = vadd.f32 %v6927_v2, %v6897_v0 }
 0xc1f   : > { %v6576_v61 = vsub.f32 1.5, %v6575_v50  ;;  %v6796_v20 = vpop.f32.mrf.mxu3 }
 0xc20   : > { %v6797_v29 = vadd.f32 %v13925_v11, %v6796_v20 }
 0xc21   : > { %v6577_v4 = vmul.f32 %v9616_v47, %v6576_v61 }
 0xc22   : > { %v6866_v12 = vmul.f32 %v6797_v29, %v13376_v52 }
 0xc23   : > { %v6581_v3 = vsel %vm6580_vm1, %v9616_v47, %v6577_v4  ;;  %vm8124_vm1 = vcmask 1044484  }
 0xc24   : > { %v6613_v14 = vmul.f32 %v6581_v3, %v13911_v26  ;;  %v6898_v49 = vmul.f32 %v6866_v12, %v13376_v52  ;;  %v6606_v58 = vmul.f32 %v6581_v3, %v13862_v9  ;;  %v6607_v44 = vmul.f32 %v6581_v3, %v13866_v41 }
 0xc25   : > { %v6608_v25 = vmul.f32 %v6581_v3, %v13870_v31  ;;  %v6609_v55 = vmul.f32 %v6581_v3, %v13874_v7  ;;  %v6610_v56 = vmul.f32 %v6581_v3, %v13884_v43  ;;  %v6611_v22 = vmul.f32 %v6581_v3, %v13894_v40 }
 0xc26   : > { %v6929_v19 = vadd.f32 %v6928_v39, %v6898_v49  ;;  %v6642_v15 = vmul.f32 %v13503_v63, %v6606_v58  ;;  %v6643_v16 = vmul.f32 %v13503_v63, %v6607_v44  ;;  %v6612_v26 = vmul.f32 %v6581_v3, %v13902_v1 }
 0xc27   : > { %v6644_v51 = vmul.f32 %v13503_v63, %v6608_v25  ;;  %v6645_v9 = vmul.f32 %v13503_v63, %v6609_v55  ;;  %v6646_v41 = vmul.f32 %v13503_v63, %v6610_v56  ;;  %v6647_v31 = vmul.f32 %v13503_v63, %v6611_v22 }
 0xc28   : > { %v6930_v7 = vrot.slane %v6929_v19, 4  ;;  %v6678_v43 = vadd.f32 %v13513_v48, %v6642_v15  ;;  %v6679_v40 = vadd.f32 %v13513_v48, %v6643_v16  ;;  %v6648_v45 = vmul.f32 %v13503_v63, %v6612_v26 }
 0xc29   : > { %v6680_v38 = vadd.f32 %v13513_v48, %v6644_v51  ;;  %v6681_v42 = vadd.f32 %v13513_v48, %v6645_v9  ;;  %v6682_v1 = vadd.f32 %v13513_v48, %v6646_v41  ;;  %v6683_v18 = vadd.f32 %v13513_v48, %v6647_v31 }
 0xc2a   : > { %v6931_v46 = vadd.f32 %v6930_v7, %v6929_v19  ;;  %v6698_v47 = vpack.c.bf16 %v6679_v40, %v6678_v43  ;;  %v6649_v5 = vmul.f32 %v13503_v63, %v6613_v14  ;;  %v13996_v17 = vadd.f32 %v13513_v48, %v6648_v45  ;;  %v9282_v45 = vld [vmem:[%s14890_s16 + $0x38] sm:$0xff] }
 0xc2b   : > { %v6699_v6 = vpack.c.bf16 %v6681_v42, %v6680_v38  ;;  %v6700_v53 = vpack.c.bf16 %v6683_v18, %v6682_v1  ;;  %7363 = vmatpush.bf16.msra.mxu2 %v9282_v45  ;;  %v9281_v42 = vld [vmem:[%s14890_s16 + $0x30] sm:$0xff] }
 0xc2c   : > { %v6932_v62 = vrot.slane %v6931_v46, 2  ;;  %v13999_v37 = vadd.f32 %v13513_v48, %v6649_v5  ;;  %6838 = vmatmul.bf16.gmra.mxu3 %v6698_v47  ;;  %v9280_v47 = vld [vmem:[%s14890_s16 + $0x28] sm:$0xff] }
 0xc2e   : > { %v6933_v33 = vadd.f32 %v6932_v62, %v6931_v46  ;;  %v6701_v50 = vpack.c.bf16 %v13999_v37, %v13996_v17 }
 0xc2f   : > { %v6799_v23 = vpop.f32.mrf.mxu3  ;;  %7364 = vmatpush.bf16.msra.mxu2 %v9281_v42  ;;  %v9276_v42 = vld [vmem:[%s14890_s16 + $0x8] sm:$0xff] }
 0xc30   : > { %v6934_v30 = vrot.slane %v6933_v33, 1 }
 0xc32   : > { %v6935_v61 = vadd.f32 %v6934_v30, %v6933_v33  ;;  %v6800_v33 = vadd.f32 %v13925_v11, %v6799_v23  ;;  %v9279_v30 = vld [vmem:[%s14890_s16 + $0x20] sm:$0xff] }
 0xc33   : > { %7365 = vmatpush.bf16.msra.mxu2 %v9280_v47  ;;  %v14107_v47 = vld [vmem:[%s14891_s13] ss:$0 sm:$0xff]  ;;  %s8173_s13 = scalar_lea.hbm %s14898_s11, %s9299_s4 }
 0xc34   : > { %v6975_v36 = vmul.f32 0.015625, %v6935_v61 }
 0xc36   : > { %v14004_v63 = vsub.f32 %v13936_v32, %v6975_v36  ;;  %v14007_v0 = vsub.f32 %v13932_v35, %v6975_v36  ;;  %v14010_v20 = vsub.f32 %v13939_v13, %v6975_v36  ;;  %v14013_v48 = vsub.f32 %v13945_v21, %v6975_v36 }
 0xc37   : > { %v14016_v29 = vsub.f32 %v13953_v28, %v6975_v36  ;;  %v6801_v35 = vpop.f32.mrf.mxu3  ;;  %v14025_v3 = vsub.f32 %v13959_v59, %v6975_v36  ;;  %v14032_v39 = vsub.f32 %v13964_v34, %v6975_v36  ;;  %v14037_v44 = vsub.f32 %v6866_v12, %v6975_v36  ;;  %7366 = vmatpush.bf16.msra.mxu2 %v9279_v30 }
 0xc38   : > { %v7011_v4 = vmul.f32 %v14004_v63, %v14004_v63  ;;  %v7012_v2 = vmul.f32 %v14007_v0, %v14007_v0  ;;  %v7013_v32 = vmul.f32 %v14010_v20, %v14010_v20  ;;  %v7014_v13 = vmul.f32 %v14013_v48, %v14013_v48 }
 0xc39   : > { %v7015_v14 = vmul.f32 %v14016_v29, %v14016_v29  ;;  %v7016_v59 = vmul.f32 %v14025_v3, %v14025_v3  ;;  %v7017_v34 = vmul.f32 %v14032_v39, %v14032_v39  ;;  %v7018_v15 = vmul.f32 %v14037_v44, %v14037_v44 }
 0xc3a   : > { %v7043_v21 = vmul.f32 %v7011_v4, %v13315_v57  ;;  %v7044_v28 = vmul.f32 %v7012_v2, %v13323_v60  ;;  %v7045_v49 = vmul.f32 %v7013_v32, %v13331_v54  ;;  %v7046_v25 = vmul.f32 %v7014_v13, %v13344_v27 }
 0xc3b   : > { %v7047_v56 = vmul.f32 %v7015_v14, %v13363_v8  ;;  %v7048_v12 = vmul.f32 %v7016_v59, %v13367_v10  ;;  %v7049_v26 = vmul.f32 %v7017_v34, %v13372_v24  ;;  %v7050_v9 = vmul.f32 %v7018_v15, %v13376_v52 }
 0xc3c   : > { %v7075_v58 = vadd.f32 %v7044_v28, %v7043_v21  ;;  %6843 = vmatmul.bf16.gmra.mxu3 %v6699_v6  ;;  %v6802_v6 = vadd.f32 %v13925_v11, %v6801_v35  ;;  %v14062_v32 = vmul.f32 %v6800_v33, %v13315_v57  ;;  %v9278_v35 = vld [vmem:[%s14890_s16 + $0x18] sm:$0xff] }
 0xc3d   : > { %7367 = vmatpush.bf16.msra.mxu2 %v9278_v35  ;;  %v9275_v35 = vld [vmem:[%s14890_s16] sm:$0xff] }
 0xc3e   : > { %v7076_v55 = vadd.f32 %v7075_v58, %v7045_v49  ;;  %v14058_v36 = vmul.f32 %v6802_v6, %v13323_v60  ;;  %v6899_v49 = vmul.f32 %v14062_v32, %v13315_v57 }
 0xc3f   : > { %v6804_v19 = vpop.f32.mrf.mxu3 }
 0xc40   : > { %v7077_v22 = vadd.f32 %v7076_v55, %v7046_v25  ;;  %v6805_v61 = vadd.f32 %v13925_v11, %v6804_v19  ;;  %v6900_v21 = vmul.f32 %v14058_v36, %v13323_v60 }
 0xc42   : > { %v7078_v16 = vadd.f32 %v7077_v22, %v7047_v56  ;;  %v14066_v13 = vmul.f32 %v6805_v61, %v13331_v54  ;;  %v6936_v55 = vadd.f32 %v6900_v21, %v6899_v49  ;;  %v14116_v61 = vld [vmem:[%s14892_s15] ss:$0 sm:$0xff]  ;;  %s8176_s15 = sshll.u32 %s8173_s13, 4  ;;  %s10125_s13 = scalar_lea.hbm %s14899_s1, 64  ;;  %s8177_s15 = int_to_ptr.hbm [resolvable:$true] %s8176_s15 }
 0xc43   : > { %s10119_s11 = sshra.s32 %s8177_s15, 4  ;;  %s10120_s11 = int_to_ptr.hbm [resolvable:$true] %s10119_s11 }
 0xc44   : > { %v7079_v51 = vadd.f32 %v7078_v16, %v7048_v12  ;;  %v6901_v58 = vmul.f32 %v14066_v13, %v13331_v54  ;;  %s10121_s4 = scalar_lea.hbm %s10120_s11, 32  ;;  %p10126_p13 = scmp.lt.s32.totalorder %s10120_s11, %s14899_s1 }
 0xc45   : > { %p10122_p9 = scmp.ne.s32.totalorder %s10120_s11, %s10121_s4  ;;  %p10127_p1 = scmp.lt.s32.totalorder %s10125_s13, %s10121_s4 }
 0xc46   : > { %v7080_v41 = vadd.f32 %v7079_v51, %v7049_v26  ;;  %v6937_v19 = vadd.f32 %v6936_v55, %v6901_v58 }
 0xc47   : > { %v6806_v7 = vpop.f32.mrf.mxu3  ;;  %p10123_p12 = pnand %p10122_p9, %p10546_p5  ;;  %p10128_p2 = por %p10127_p1, %p10126_p13 }
 0xc48   : > { %v7081_v31 = vadd.f32 %v7080_v41, %v7050_v9  ;;  %v6807_v2 = vadd.f32 %v13925_v11, %v6806_v7  ;;  %v9277_v9 = vld [vmem:[%s14890_s16 + $0x10] sm:$0xff] }
 0xc49   : > { %7368 = vmatpush.bf16.msra.mxu2 %v9277_v9  ;;  %p10124_p0 = pneg %p10123_p12 }
 0xc4a   : > { %v7082_v43 = vrot.slane %v7081_v31, 4  ;;  %v14072_v28 = vmul.f32 %v6807_v2, %v13344_v27 }
 0xc4b   : > { %p10129_p3 = pnand %p10128_p2, %p10124_p0 }
 0xc4c   : > { %v7083_v40 = vadd.f32 %v7082_v43, %v7081_v31  ;;  %6848 = vmatmul.bf16.gmra.mxu3 %v6700_v53  ;;  %v6902_v22 = vmul.f32 %v14072_v28, %v13344_v27 }
 0xc4d   : > { %7369 = vmatpush.bf16.msra.mxu2 %v9276_v42 }
 0xc4e   : > { %v7084_v38 = vrot.slane %v7083_v40, 2  ;;  %v6938_v26 = vadd.f32 %v6937_v19, %v6902_v22 }
 0xc4f   : > { %v6809_v18 = vpop.f32.mrf.mxu3 }
 0xc50   : > { %v7085_v1 = vadd.f32 %v7084_v38, %v7083_v40  ;;  %v6810_v23 = vadd.f32 %v13925_v11, %v6809_v18 }
 0xc51   : > { %7370 = vmatpush.bf16.msra.mxu2 %v9275_v35 }
 0xc52   : > { %v7086_v46 = vrot.slane %v7085_v1, 1  ;;  %v14083_v59 = vmul.f32 %v6810_v23, %v13363_v8 }
 0xc54   : > { %v7087_v5 = vadd.f32 %v7086_v46, %v7085_v1  ;;  %v6903_v15 = vmul.f32 %v14083_v59, %v13363_v8 }
 0xc56   : > { %v7127_v62 = vmul.f32 0.015625, %v7087_v5  ;;  %v6939_v31 = vadd.f32 %v6938_v26, %v6903_v15 }
 0xc57   : > { %v6811_v4 = vpop.f32.mrf.mxu3 }
 0xc58   : > { %v7131_v53 = vadd.f32 1e-05, %v7127_v62  ;;  %v6812_v14 = vadd.f32 %v13925_v11, %v6811_v4 }
 0xc5a   : > { %9617 = vrsqrt.f32 %v7131_v53  ;;  %v14088_v17 = vmul.f32 %v6812_v14, %v13367_v10  ;;  %vm7141_vm3 = vweird.f32 %v7131_v53 }
 0xc5c   : > { %6853 = vmatmul.bf16.gmra.mxu3 %v6701_v50  ;;  %v6904_v51 = vmul.f32 %v14088_v17, %v13367_v10 }
 0xc5e   : > { %v6940_v45 = vadd.f32 %v6939_v31, %v6904_v51 }
 0xc5f   : > { %v6814_v34 = vpop.f32.mrf.mxu3 }
 0xc60   : > { %v9618_v25 = vpop.eup %9617  ;;  %v6815_v37 = vadd.f32 %v13925_v11, %v6814_v34 }
 0xc61   : > { %v7136_v56 = vmul.f32 %v9618_v25, %v7131_v53  ;;  %vm7142_vm2 = vweird.f32 %v9618_v25 }
 0xc62   : > { %v14094_v12 = vmul.f32 %v6815_v37, %v13372_v24  ;;  %vm7143_vm4 = vmor %vm7141_vm3, %vm7142_vm2  ;;  %vm8126_vm2 = vcmask 1045509   ;;  %vm8128_vm3 = vcmask 1046534  }
 0xc63   : > { %v7137_v50 = vmul.f32 %v9618_v25, %v7136_v56 }
 0xc64   : > { %v6905_v7 = vmul.f32 %v14094_v12, %v13372_v24 }
 0xc65   : > { %v7138_v16 = vmul.f32 0.5, %v7137_v50 }
 0xc66   : > { %v6941_v18 = vadd.f32 %v6940_v45, %v6905_v7 }
 0xc67   : > { %v7139_v41 = vsub.f32 1.5, %v7138_v16  ;;  %v6816_v43 = vpop.f32.mrf.mxu3 }
 0xc68   : > { %v6817_v38 = vadd.f32 %v13925_v11, %v6816_v43 }
 0xc69   : > { %v7140_v40 = vmul.f32 %v9618_v25, %v7139_v41 }
 0xc6a   : > { %v14104_v46 = vmul.f32 %v6817_v38, %v13376_v52 }
 0xc6b   : > { %v7144_v1 = vsel %vm7143_vm4, %v9618_v25, %v7140_v40  ;;  %vm8130_vm4 = vcmask 1047559  }
 0xc6c   : > { %v7182_v5 = vmul.f32 %v7144_v1, %v14037_v44  ;;  %v7175_v6 = vmul.f32 %v7144_v1, %v14004_v63  ;;  %v7176_v62 = vmul.f32 %v7144_v1, %v14007_v0  ;;  %v7177_v33 = vmul.f32 %v7144_v1, %v14010_v20 }
 0xc6d   : > { %v6906_v30 = vmul.f32 %v14104_v46, %v13376_v52  ;;  %v7178_v53 = vmul.f32 %v7144_v1, %v14013_v48  ;;  %v7179_v4 = vmul.f32 %v7144_v1, %v14016_v29  ;;  %v7180_v2 = vmul.f32 %v7144_v1, %v14025_v3 }
 0xc6e   : > { %v7211_v44 = vmul.f32 %v14107_v47, %v7175_v6  ;;  %v7212_v63 = vmul.f32 %v14107_v47, %v7176_v62  ;;  %v7213_v0 = vmul.f32 %v14107_v47, %v7177_v33  ;;  %v7181_v20 = vmul.f32 %v7144_v1, %v14032_v39 }
 0xc6f   : > { %v6942_v23 = vadd.f32 %v6941_v18, %v6906_v30  ;;  %v7214_v21 = vmul.f32 %v14107_v47, %v7178_v53  ;;  %v7215_v14 = vmul.f32 %v14107_v47, %v7179_v4  ;;  %v7216_v48 = vmul.f32 %v14107_v47, %v7180_v2  ;;  %v14129_v49 = vpop.f32.mrf.mxu3 }
 0xc70   : > { %v7247_v29 = vadd.f32 %v14116_v61, %v7211_v44  ;;  %v7248_v3 = vadd.f32 %v14116_v61, %v7212_v63  ;;  %v7249_v58 = vadd.f32 %v14116_v61, %v7213_v0  ;;  %v7217_v25 = vmul.f32 %v14107_v47, %v7181_v20 }
 0xc71   : > { %v6943_v55 = vrot.slane %v6942_v23, 4  ;;  %v7250_v39 = vadd.f32 %v14116_v61, %v7214_v21  ;;  %v7251_v34 = vadd.f32 %v14116_v61, %v7215_v14  ;;  %v7252_v22 = vadd.f32 %v14116_v61, %v7216_v48 }
 0xc72   : > { %v7279_v56 = vpack.c.bf16 %v7248_v3, %v7247_v29  ;;  %v7218_v37 = vmul.f32 %v14107_v47, %v7182_v5  ;;  %v14140_v50 = vadd.f32 %v14116_v61, %v7217_v25 }
 0xc73   : > { %v6944_v19 = vadd.f32 %v6943_v55, %v6942_v23  ;;  %v7280_v15 = vpack.c.bf16 %v7250_v39, %v7249_v58  ;;  %v7281_v16 = vpack.c.bf16 %v7252_v22, %v7251_v34  ;;  %v6820_v22 = vadd.f32 %v13925_v11, %v14129_v49 }
 0xc74   : > { %7371 = vmatmul.bf16.vlgmr.msra.gmra.mxu2 %v7279_v56  ;;  %v14143_v26 = vadd.f32 %v14116_v61, %v7218_v37 }
 0xc75   : > { %v6945_v51 = vrot.slane %v6944_v19, 2 }
 0xc76   : > { %v7282_v9 = vpack.c.bf16 %v14143_v26, %v14140_v50 }
 0xc77   : > { %v6946_v41 = vadd.f32 %v6945_v51, %v6944_v19  ;;  %v6821_v31 = vpop.f32.mrf.mxu3 }
 0xc78   : > { %v6822_v56 = vadd.f32 %v13925_v11, %v6821_v31 }
 0xc79   : > { %v6947_v7 = vrot.slane %v6946_v41, 1 }
 0xc7b   : > { %v6948_v43 = vadd.f32 %v6947_v7, %v6946_v41  ;;  %v14200_v41 = vmul.f32 %v6822_v56, %v13323_v60 }
 0xc7d   : > { %v6976_v40 = vmul.f32 0.015625, %v6948_v43  ;;  %v14204_v43 = vmul.f32 %v6820_v22, %v13315_v57 }
 0xc7f   : > { %v14148_v45 = vsub.f32 %v14062_v32, %v6976_v40  ;;  %v14151_v38 = vsub.f32 %v14058_v36, %v6976_v40  ;;  %v14154_v42 = vsub.f32 %v14066_v13, %v6976_v40  ;;  %v14157_v1 = vsub.f32 %v14072_v28, %v6976_v40  ;;  %v6824_v18 = vpop.f32.mrf.mxu3 }
 0xc80   : > { %v14160_v5 = vsub.f32 %v14083_v59, %v6976_v40  ;;  %v14169_v62 = vsub.f32 %v14088_v17, %v6976_v40  ;;  %v14176_v33 = vsub.f32 %v14094_v12, %v6976_v40  ;;  %v14182_v17 = vsub.f32 %v14104_v46, %v6976_v40 }
 0xc81   : > { %v7019_v6 = vmul.f32 %v14148_v45, %v14148_v45  ;;  %v7020_v32 = vmul.f32 %v14151_v38, %v14151_v38  ;;  %v7021_v36 = vmul.f32 %v14154_v42, %v14154_v42  ;;  %v7022_v13 = vmul.f32 %v14157_v1, %v14157_v1 }
 0xc82   : > { %v7023_v30 = vmul.f32 %v14160_v5, %v14160_v5  ;;  %v7024_v2 = vmul.f32 %v14169_v62, %v14169_v62  ;;  %v7025_v12 = vmul.f32 %v14176_v33, %v14176_v33  ;;  %v7026_v23 = vmul.f32 %v14182_v17, %v14182_v17 }
 0xc83   : > { %v7051_v28 = vmul.f32 %v7019_v6, %v13315_v57  ;;  %v7052_v59 = vmul.f32 %v7020_v32, %v13323_v60  ;;  %v7053_v53 = vmul.f32 %v7021_v36, %v13331_v54  ;;  %v7054_v35 = vmul.f32 %v7022_v13, %v13344_v27 }
 0xc84   : > { %7376 = vmatmul.bf16.gmra.mxu2 %v7280_v15  ;;  %v7055_v0 = vmul.f32 %v7023_v30, %v13363_v8  ;;  %v7056_v21 = vmul.f32 %v7024_v2, %v13367_v10  ;;  %v7057_v14 = vmul.f32 %v7025_v12, %v13372_v24  ;;  %v7058_v29 = vmul.f32 %v7026_v23, %v13376_v52 }
 0xc85   : > { %v7088_v4 = vadd.f32 %v7052_v59, %v7051_v28  ;;  %v6825_v15 = vadd.f32 %v13925_v11, %v6824_v18  ;;  %v6908_v6 = vmul.f32 %v14200_v41, %v13323_v60  ;;  %v6907_v36 = vmul.f32 %v14204_v43, %v13315_v57 }
 0xc87   : > { %v7089_v44 = vadd.f32 %v7088_v4, %v7053_v53  ;;  %v6826_v63 = vpop.f32.mrf.mxu3  ;;  %v14207_v40 = vmul.f32 %v6825_v15, %v13331_v54  ;;  %v6949_v4 = vadd.f32 %v6908_v6, %v6907_v36 }
 0xc88   : > { %v6827_v7 = vadd.f32 %v13925_v11, %v6826_v63 }
 0xc89   : > { %v7090_v20 = vadd.f32 %v7089_v44, %v7054_v35  ;;  %v6909_v59 = vmul.f32 %v14207_v40, %v13331_v54 }
 0xc8a   : > { %v14213_v18 = vmul.f32 %v6827_v7, %v13344_v27 }
 0xc8b   : > { %v7091_v46 = vadd.f32 %v7090_v20, %v7055_v0  ;;  %v6950_v44 = vadd.f32 %v6949_v4, %v6909_v59 }
 0xc8c   : > { %v6910_v2 = vmul.f32 %v14213_v18, %v13344_v27 }
 0xc8d   : > { %v7092_v48 = vadd.f32 %v7091_v46, %v7056_v21 }
 0xc8e   : > { %v6951_v0 = vadd.f32 %v6950_v44, %v6910_v2 }
 0xc8f   : > { %v7093_v3 = vadd.f32 %v7092_v48, %v7057_v14  ;;  %v6829_v58 = vpop.f32.mrf.mxu3 }
 0xc90   : > { %v6830_v31 = vadd.f32 %v13925_v11, %v6829_v58 }
 0xc91   : > { %v7094_v25 = vadd.f32 %v7093_v3, %v7058_v29 }
 0xc92   : > { %v14221_v30 = vmul.f32 %v6830_v31, %v13363_v8 }
 0xc93   : > { %v7095_v55 = vrot.slane %v7094_v25, 4 }
 0xc94   : > { %7381 = vmatmul.bf16.gmra.mxu2 %v7281_v16  ;;  %v6911_v63 = vmul.f32 %v14221_v30, %v13363_v8 }
 0xc95   : > { %v7096_v39 = vadd.f32 %v7095_v55, %v7094_v25 }
 0xc96   : > { %v6952_v46 = vadd.f32 %v6951_v0, %v6911_v63 }
 0xc97   : > { %v7097_v34 = vrot.slane %v7096_v39, 2  ;;  %v6831_v37 = vpop.f32.mrf.mxu3 }
 0xc98   : > { %v6832_v32 = vadd.f32 %v13925_v11, %v6831_v37 }
 0xc99   : > { %v7098_v19 = vadd.f32 %v7097_v34, %v7096_v39 }
 0xc9a   : > { %v14227_v35 = vmul.f32 %v6832_v32, %v13367_v10 }
 0xc9b   : > { %v7099_v51 = vrot.slane %v7098_v19, 1 }
 0xc9c   : > { %v6912_v20 = vmul.f32 %v14227_v35, %v13367_v10 }
 0xc9d   : > { %v7100_v16 = vadd.f32 %v7099_v51, %v7098_v19 }
 0xc9f   : > { %v7128_v49 = vmul.f32 0.015625, %v7100_v16  ;;  %v6834_v13 = vpop.f32.mrf.mxu3 }
 0xca0   : > { %v6835_v53 = vadd.f32 %v13925_v11, %v6834_v13 }
 0xca1   : > { %v7132_v28 = vadd.f32 1e-05, %v7128_v49 }
 0xca2   : > { %v14235_v12 = vmul.f32 %v6835_v53, %v13372_v24 }
 0xca3   : > { %9619 = vrsqrt.f32 %v7132_v28  ;;  %vm7151_vm12 = vweird.f32 %v7132_v28 }
 0xca4   : > { %7386 = vmatmul.bf16.gmra.mxu2 %v7282_v9  ;;  %v6913_v14 = vmul.f32 %v14235_v12, %v13372_v24  ;;  %v6953_v9 = vadd.f32 %v6952_v46, %v6912_v20 }
 0xca6   : > { %v6954_v3 = vadd.f32 %v6953_v9, %v6913_v14 }
 0xca7   : > { %v6836_v23 = vpop.f32.mrf.mxu3 }
 0xca8   : > { %v6837_v50 = vadd.f32 %v13925_v11, %v6836_v23 }
 0xca9   : > { %v9620_v21 = vpop.eup %9619 }
 0xcaa   : > { %v7146_v26 = vmul.f32 %v9620_v21, %v7132_v28  ;;  %v14243_v48 = vmul.f32 %v6837_v50, %v13376_v52  ;;  %vm7152_vm5 = vweird.f32 %v9620_v21 }
 0xcab   : > { %vm7153_vm6 = vmor %vm7151_vm12, %vm7152_vm5 }
 0xcac   : > { %v7147_v29 = vmul.f32 %v9620_v21, %v7146_v26  ;;  %v6914_v58 = vmul.f32 %v14243_v48, %v13376_v52 }
 0xcae   : > { %v7148_v25 = vmul.f32 0.5, %v7147_v29  ;;  %v6955_v55 = vadd.f32 %v6954_v3, %v6914_v58 }
 0xcaf   : > { %v14247_v34 = vpop.f32.mrf.mxu3 }
 0xcb0   : > { %v7149_v39 = vsub.f32 1.5, %v7148_v25  ;;  %v6956_v56 = vrot.slane %v6955_v55, 4 }
 0xcb2   : > { %v7150_v22 = vmul.f32 %v9620_v21, %v7149_v39  ;;  %v6957_v37 = vadd.f32 %v6956_v56, %v6955_v55 }
 0xcb4   : > { %v7154_v19 = vsel %vm7153_vm6, %v9620_v21, %v7150_v22  ;;  %v6958_v51 = vrot.slane %v6957_v37, 2 }
 0xcb5   : > { %v7190_v15 = vmul.f32 %v7154_v19, %v14182_v17  ;;  %v7183_v7 = vmul.f32 %v7154_v19, %v14148_v45  ;;  %v7184_v16 = vmul.f32 %v7154_v19, %v14151_v38  ;;  %v7185_v31 = vmul.f32 %v7154_v19, %v14154_v42 }
 0xcb6   : > { %v7186_v49 = vmul.f32 %v7154_v19, %v14157_v1  ;;  %v7187_v6 = vmul.f32 %v7154_v19, %v14160_v5  ;;  %v6959_v32 = vadd.f32 %v6958_v51, %v6957_v37  ;;  %v7188_v13 = vmul.f32 %v7154_v19, %v14169_v62 }
 0xcb7   : > { %v7219_v36 = vmul.f32 %v14107_v47, %v7183_v7  ;;  %v7189_v28 = vmul.f32 %v7154_v19, %v14176_v33  ;;  %v14258_v59 = vpop.f32.mrf.mxu3  ;;  %v7220_v17 = vmul.f32 %v14107_v47, %v7184_v16  ;;  %v7221_v45 = vmul.f32 %v14107_v47, %v7185_v31 }
 0xcb8   : > { %v7222_v38 = vmul.f32 %v14107_v47, %v7186_v49  ;;  %v7223_v42 = vmul.f32 %v14107_v47, %v7187_v6  ;;  %v6960_v1 = vrot.slane %v6959_v32, 1  ;;  %v7224_v53 = vmul.f32 %v14107_v47, %v7188_v13 }
 0xcb9   : > { %v7255_v5 = vadd.f32 %v14116_v61, %v7219_v36  ;;  %v7256_v4 = vadd.f32 %v14116_v61, %v7220_v17  ;;  %v7257_v62 = vadd.f32 %v14116_v61, %v7221_v45  ;;  %v7225_v23 = vmul.f32 %v14107_v47, %v7189_v28 }
 0xcba   : > { %v7258_v33 = vadd.f32 %v14116_v61, %v7222_v38  ;;  %v14270_v2 = vadd.f32 %v14116_v61, %v7223_v42  ;;  %v6961_v44 = vadd.f32 %v6960_v1, %v6959_v32  ;;  %v14273_v63 = vadd.f32 %v14116_v61, %v7224_v53 }
 0xcbb   : > { %v7283_v0 = vpack.c.bf16 %v7256_v4, %v7255_v5  ;;  %v7226_v21 = vmul.f32 %v14107_v47, %v7190_v15  ;;  %v14292_v58 = vadd.f32 %v14116_v61, %v7225_v23  ;;  %v9290_v4 = vld [vmem:[%s14893_s28 + $0x38] sm:$0xff] }
 0xcbc   : > { %v7284_v20 = vpack.c.bf16 %v7258_v33, %v7257_v62  ;;  %v6977_v46 = vmul.f32 0.015625, %v6961_v44  ;;  %v7285_v14 = vpack.c.bf16 %v14273_v63, %v14270_v2  ;;  %v6842_v33 = vadd.f32 %v13925_v11, %v14258_v59  ;;  %7568 = vmatpush.bf16.msra.mxu0 %v9290_v4  ;;  %v9288_v4 = vld [vmem:[%s14893_s28 + $0x28] sm:$0xff] }
 0xcbd   : > { %7391 = vmatmul.bf16.gmra.mxu2 %v7283_v0  ;;  %v14295_v25 = vadd.f32 %v14116_v61, %v7226_v21  ;;  %v6840_v2 = vadd.f32 %v13925_v11, %v14247_v34 }
 0xcbe   : > { %v14280_v50 = vsub.f32 %v14204_v43, %v6977_v46  ;;  %v14283_v26 = vsub.f32 %v14200_v41, %v6977_v46  ;;  %v14286_v9 = vsub.f32 %v14207_v40, %v6977_v46  ;;  %v14289_v29 = vsub.f32 %v14213_v18, %v6977_v46 }
 0xcbf   : > { %v6844_v3 = vpop.f32.mrf.mxu3  ;;  %v14298_v55 = vsub.f32 %v14221_v30, %v6977_v46  ;;  %v14307_v18 = vsub.f32 %v14227_v35, %v6977_v46  ;;  %v14314_v22 = vsub.f32 %v14235_v12, %v6977_v46  ;;  %v7286_v35 = vpack.c.bf16 %v14295_v25, %v14292_v58 }
 0xcc0   : > { %v7027_v41 = vmul.f32 %v14280_v50, %v14280_v50  ;;  %v7028_v43 = vmul.f32 %v14283_v26, %v14283_v26  ;;  %v7029_v40 = vmul.f32 %v14286_v9, %v14286_v9  ;;  %v7030_v39 = vmul.f32 %v14289_v29, %v14289_v29 }
 0xcc1   : > { %v7031_v37 = vmul.f32 %v14298_v55, %v14298_v55  ;;  %v14322_v51 = vsub.f32 %v14243_v48, %v6977_v46  ;;  %v7032_v7 = vmul.f32 %v14307_v18, %v14307_v18  ;;  %v7033_v49 = vmul.f32 %v14314_v22, %v14314_v22 }
 0xcc2   : > { %v7059_v56 = vmul.f32 %v7027_v41, %v13315_v57  ;;  %v7060_v30 = vmul.f32 %v7028_v43, %v13323_v60  ;;  %v7061_v19 = vmul.f32 %v7029_v40, %v13331_v54  ;;  %v7062_v16 = vmul.f32 %v7030_v39, %v13344_v27 }
 0xcc3   : > { %v7063_v6 = vmul.f32 %v7031_v37, %v13363_v8  ;;  %v7034_v36 = vmul.f32 %v14322_v51, %v14322_v51  ;;  %v7064_v48 = vmul.f32 %v7032_v7, %v13367_v10  ;;  %v7065_v28 = vmul.f32 %v7033_v49, %v13372_v24 }
 0xcc4   : > { %v7101_v15 = vadd.f32 %v7060_v30, %v7059_v56  ;;  %v6845_v0 = vadd.f32 %v13925_v11, %v6844_v3  ;;  %v14342_v23 = vmul.f32 %v6842_v33, %v13323_v60  ;;  %v14346_v46 = vmul.f32 %v6840_v2, %v13315_v57 }
 0xcc5   : > { %v7066_v45 = vmul.f32 %v7034_v36, %v13376_v52 }
 0xcc6   : > { %v7102_v31 = vadd.f32 %v7101_v15, %v7061_v19  ;;  %v14349_v59 = vmul.f32 %v6845_v0, %v13331_v54  ;;  %v6916_v3 = vmul.f32 %v14342_v23, %v13323_v60  ;;  %v6915_v56 = vmul.f32 %v14346_v46, %v13315_v57 }
 0xcc7   : > { %v6846_v12 = vpop.f32.mrf.mxu3 }
 0xcc8   : > { %v7103_v32 = vadd.f32 %v7102_v31, %v7062_v16  ;;  %v6847_v21 = vadd.f32 %v13925_v11, %v6846_v12  ;;  %v6917_v19 = vmul.f32 %v14349_v59, %v13331_v54  ;;  %v6962_v7 = vadd.f32 %v6916_v3, %v6915_v56 }
 0xcca   : > { %v7104_v13 = vadd.f32 %v7103_v32, %v7063_v6  ;;  %v14355_v40 = vmul.f32 %v6847_v21, %v13344_v27  ;;  %v6963_v12 = vadd.f32 %v6962_v7, %v6917_v19 }
 0xccc   : > { %v7105_v17 = vadd.f32 %v7104_v13, %v7064_v48  ;;  %v6918_v16 = vmul.f32 %v14355_v40, %v13344_v27  ;;  %v9289_v13 = vld [vmem:[%s14893_s28 + $0x30] sm:$0xff] }
 0xccd   : > { %7396 = vmatmul.bf16.gmra.mxu2 %v7284_v20  ;;  %7569 = vmatpush.bf16.msra.mxu0 %v9289_v13 }
 0xcce   : > { %v7106_v38 = vadd.f32 %v7105_v17, %v7065_v28  ;;  %v6964_v32 = vadd.f32 %v6963_v12, %v6918_v16 }
 0xccf   : > { %v6849_v42 = vpop.f32.mrf.mxu3 }
 0xcd0   : > { %v7107_v1 = vadd.f32 %v7106_v38, %v7066_v45  ;;  %v6850_v43 = vadd.f32 %v13925_v11, %v6849_v42 }
 0xcd1   : > { %7570 = vmatpush.bf16.msra.mxu0 %v9288_v4 }
 0xcd2   : > { %v7108_v5 = vrot.slane %v7107_v1, 4 }
 0xcd4   : > { %v7109_v53 = vadd.f32 %v7108_v5, %v7107_v1 }
 0xcd6   : > { %v7110_v62 = vrot.slane %v7109_v53, 2 }
 0xcd7   : > { %v6851_v44 = vpop.f32.mrf.mxu3 }
 0xcd8   : > { %v7111_v63 = vadd.f32 %v7110_v62, %v7109_v53  ;;  %v6852_v39 = vadd.f32 %v13925_v11, %v6851_v44 }
 0xcda   : > { %v7112_v20 = vrot.slane %v7111_v63, 1  ;;  %v14369_v31 = vmul.f32 %v6852_v39, %v13367_v10 }
 0xcdc   : > { %v7113_v41 = vadd.f32 %v7112_v20, %v7111_v63  ;;  %v6920_v36 = vmul.f32 %v14369_v31, %v13367_v10  ;;  %v9287_v63 = vld [vmem:[%s14893_s28 + $0x20] sm:$0xff] }
 0xcdd   : > { %7401 = vmatmul.bf16.gmra.mxu2 %v7285_v14  ;;  %v14363_v14 = vmul.f32 %v6850_v43, %v13363_v8  ;;  %7571 = vmatpush.bf16.msra.mxu0 %v9287_v63  ;;  %v9286_v43 = vld [vmem:[%s14893_s28 + $0x18] sm:$0xff]  ;;  %v9283_v63 = vld [vmem:[%s14893_s28] sm:$0xff] }
 0xcde   : > { %v7129_v34 = vmul.f32 0.015625, %v7113_v41 }
 0xcdf   : > { %v6854_v30 = vpop.f32.mrf.mxu3  ;;  %v6919_v49 = vmul.f32 %v14363_v14, %v13363_v8 }
 0xce0   : > { %v7133_v37 = vadd.f32 1e-05, %v7129_v34  ;;  %v6855_v15 = vadd.f32 %v13925_v11, %v6854_v30 }
 0xce1   : > { %v6965_v17 = vadd.f32 %v6964_v32, %v6919_v49  ;;  %7572 = vmatpush.bf16.msra.mxu0 %v9286_v43 }
 0xce2   : > { %9621 = vrsqrt.f32 %v7133_v37  ;;  %v14374_v6 = vmul.f32 %v6855_v15, %v13372_v24  ;;  %vm7161_vm8 = vweird.f32 %v7133_v37 }
 0xce3   : > { %v6966_v1 = vadd.f32 %v6965_v17, %v6920_v36 }
 0xce4   : > { %v6921_v45 = vmul.f32 %v14374_v6, %v13372_v24 }
 0xce6   : > { %v6967_v62 = vadd.f32 %v6966_v1, %v6921_v45 }
 0xce7   : > { %v6856_v48 = vpop.f32.mrf.mxu3 }
 0xce8   : > { %v9622_v28 = vpop.eup %9621  ;;  %v6857_v38 = vadd.f32 %v13925_v11, %v6856_v48 }
 0xce9   : > { %v7156_v42 = vmul.f32 %v9622_v28, %v7133_v37  ;;  %vm7162_vm7 = vweird.f32 %v9622_v28 }
 0xcea   : > { %v14383_v5 = vmul.f32 %v6857_v38, %v13376_v52  ;;  %vm7163_vm9 = vmor %vm7161_vm8, %vm7162_vm7 }
 0xceb   : > { %v7157_v53 = vmul.f32 %v9622_v28, %v7156_v42 }
 0xcec   : > { %v6922_v33 = vmul.f32 %v14383_v5, %v13376_v52 }
 0xced   : > { %v7158_v2 = vmul.f32 0.5, %v7157_v53  ;;  %7406 = vmatmul.bf16.gmra.mxu2 %v7286_v35  ;;  %v14424_v53 = vld [vmem:[%s14894_s3] ss:$0 sm:$0xff] }
 0xcee   : > { %v6968_v11 = vadd.f32 %v6967_v62, %v6922_v33 }
 0xcef   : > { %v7159_v44 = vsub.f32 1.5, %v7158_v2 }
 0xcf0   : > { %v6969_v0 = vrot.slane %v6968_v11, 4 }
 0xcf1   : > { %v7160_v20 = vmul.f32 %v9622_v28, %v7159_v44 }
 0xcf2   : > { %v6970_v21 = vadd.f32 %v6969_v0, %v6968_v11 }
 0xcf3   : > { %v7164_v41 = vsel %vm7163_vm9, %v9622_v28, %v7160_v20  ;;  %v9284_v28 = vld [vmem:[%s14893_s28 + $0x8] sm:$0xff] }
 0xcf4   : > { %v6971_v34 = vrot.slane %v6970_v21, 2  ;;  %v7191_v3 = vmul.f32 %v7164_v41, %v14280_v50  ;;  %v7192_v58 = vmul.f32 %v7164_v41, %v14283_v26  ;;  %v7193_v25 = vmul.f32 %v7164_v41, %v14286_v9  ;;  %v9285_v50 = vld [vmem:[%s14893_s28 + $0x10] sm:$0xff] }
 0xcf5   : > { %v7194_v35 = vmul.f32 %v7164_v41, %v14289_v29  ;;  %v7195_v39 = vmul.f32 %v7164_v41, %v14298_v55  ;;  %v7196_v56 = vmul.f32 %v7164_v41, %v14307_v18  ;;  %v7198_v30 = vmul.f32 %v7164_v41, %v14322_v51  ;;  %7573 = vmatpush.bf16.msra.mxu0 %v9285_v50 }
 0xcf6   : > { %v6972_v37 = vadd.f32 %v6971_v34, %v6970_v21  ;;  %v7227_v15 = vmul.f32 %v14107_v47, %v7191_v3  ;;  %v7228_v7 = vmul.f32 %v14107_v47, %v7192_v58  ;;  %v7229_v26 = vmul.f32 %v14107_v47, %v7193_v25 }
 0xcf7   : > { %v7372_v19 = vpop.f32.mrf.mxu2  ;;  %v7230_v9 = vmul.f32 %v14107_v47, %v7194_v35  ;;  %v7231_v29 = vmul.f32 %v14107_v47, %v7195_v39  ;;  %v7197_v55 = vmul.f32 %v7164_v41, %v14314_v22  ;;  %v7232_v12 = vmul.f32 %v14107_v47, %v7196_v56 }
 0xcf8   : > { %v6973_v16 = vrot.slane %v6972_v37, 1  ;;  %v7263_v18 = vadd.f32 %v14116_v61, %v7227_v15  ;;  %v7264_v51 = vadd.f32 %v14116_v61, %v7228_v7  ;;  %v7265_v49 = vadd.f32 %v14116_v61, %v7229_v26 }
 0xcf9   : > { %v7266_v32 = vadd.f32 %v14116_v61, %v7230_v9  ;;  %v14413_v36 = vadd.f32 %v14116_v61, %v7231_v29  ;;  %v14416_v22 = vadd.f32 %v14116_v61, %v7232_v12  ;;  %v7233_v45 = vmul.f32 %v14107_v47, %v7197_v55  ;;  %7574 = vmatpush.bf16.msra.mxu0 %v9284_v28 }
 0xcfa   : > { %v6974_v48 = vadd.f32 %v6973_v16, %v6972_v37  ;;  %v7287_v13 = vpack.c.bf16 %v7264_v51, %v7263_v18  ;;  %v7234_v1 = vmul.f32 %v14107_v47, %v7198_v30  ;;  %v7373_v20 = vadd.f32 %v14424_v53, %v7372_v19 }
 0xcfb   : > { %v7288_v17 = vpack.c.bf16 %v7266_v32, %v7265_v49  ;;  %v7289_v42 = vpack.c.bf16 %v14416_v22, %v14413_v36  ;;  %v14443_v0 = vadd.f32 %v14116_v61, %v7233_v45 }
 0xcfc   : > { %v6978_v38 = vmul.f32 0.015625, %v6974_v48  ;;  %v7452_v56 = vmax.f32 %v7373_v20, 0.0 }
 0xcfd   : > { %7411 = vmatmul.bf16.gmra.mxu2 %v7287_v13  ;;  %7575 = vmatpush.bf16.msra.mxu0 %v9283_v63 }
 0xcfe   : > { %v14427_v4 = vsub.f32 %v14346_v46, %v6978_v38  ;;  %v14430_v62 = vsub.f32 %v14342_v23, %v6978_v38  ;;  %v14433_v33 = vsub.f32 %v14349_v59, %v6978_v38  ;;  %v14436_v2 = vsub.f32 %v14355_v40, %v6978_v38 }
 0xcff   : > { %v7374_v11 = vpop.f32.mrf.mxu2  ;;  %v14439_v44 = vsub.f32 %v14363_v14, %v6978_v38  ;;  %v14452_v40 = vadd.f32 %v14116_v61, %v7234_v1  ;;  %v14456_v14 = vsub.f32 %v14369_v31, %v6978_v38  ;;  %v14463_v34 = vsub.f32 %v14374_v6, %v6978_v38 }
 0xd00   : > { %v7035_v46 = vmul.f32 %v14427_v4, %v14427_v4  ;;  %v7036_v23 = vmul.f32 %v14430_v62, %v14430_v62  ;;  %v7037_v59 = vmul.f32 %v14433_v33, %v14433_v33  ;;  %v7038_v21 = vmul.f32 %v14436_v2, %v14436_v2 }
 0xd01   : > { %v7039_v3 = vmul.f32 %v14439_v44, %v14439_v44  ;;  %v7375_v35 = vadd.f32 %v14424_v53, %v7374_v11  ;;  %v7290_v31 = vpack.c.bf16 %v14452_v40, %v14443_v0  ;;  %v14472_v39 = vsub.f32 %v14383_v5, %v6978_v38 }
 0xd02   : > { %v7067_v41 = vmul.f32 %v7035_v46, %v13315_v57  ;;  %v7068_v43 = vmul.f32 %v7036_v23, %v13323_v60  ;;  %v7069_v58 = vmul.f32 %v7037_v59, %v13331_v54  ;;  %v7040_v30 = vmul.f32 %v14456_v14, %v14456_v14 }
 0xd03   : > { %v7070_v6 = vmul.f32 %v7038_v21, %v13344_v27  ;;  %v7453_v19 = vmax.f32 %v7375_v35, 0.0  ;;  %v7041_v7 = vmul.f32 %v14463_v34, %v14463_v34  ;;  %v7071_v50 = vmul.f32 %v7039_v3, %v13363_v8 }
 0xd04   : > { %v7114_v25 = vadd.f32 %v7068_v43, %v7067_v41  ;;  %v7042_v5 = vmul.f32 %v14472_v39, %v14472_v39  ;;  %v7072_v29 = vmul.f32 %v7040_v30, %v13367_v10 }
 0xd05   : > { %v7484_v9 = vpack.c.bf16 %v7453_v19, %v7452_v56  ;;  %v7073_v16 = vmul.f32 %v7041_v7, %v13372_v24 }
 0xd06   : > { %v7115_v37 = vadd.f32 %v7114_v25, %v7069_v58  ;;  %v7074_v51 = vmul.f32 %v7042_v5, %v13376_v52 }
 0xd07   : > { %v7377_v15 = vpop.f32.mrf.mxu2  ;;  %7576 = vmatmul.bf16.vlgmr.msra.gmra.mxu0 %v7484_v9 }
 0xd08   : > { %v7116_v26 = vadd.f32 %v7115_v37, %v7070_v6  ;;  %v7378_v13 = vadd.f32 %v14424_v53, %v7377_v15 }
 0xd0a   : > { %v7117_v55 = vadd.f32 %v7116_v26, %v7071_v50  ;;  %v7454_v1 = vmax.f32 %v7378_v13, 0.0 }
 0xd0c   : > { %v7118_v18 = vadd.f32 %v7117_v55, %v7072_v29 }
 0xd0d   : > { %7416 = vmatmul.bf16.gmra.mxu2 %v7288_v17 }
 0xd0e   : > { %v7119_v12 = vadd.f32 %v7118_v18, %v7073_v16 }
 0xd0f   : > { %v7379_v49 = vpop.f32.mrf.mxu2 }
 0xd10   : > { %v7380_v32 = vadd.f32 %v14424_v53, %v7379_v49  ;;  %v7120_v48 = vadd.f32 %v7119_v12, %v7074_v51 }
 0xd12   : > { %v7121_v28 = vrot.slane %v7120_v48, 4  ;;  %v7455_v45 = vmax.f32 %v7380_v32, 0.0 }
 0xd14   : > { %v7122_v38 = vadd.f32 %v7121_v28, %v7120_v48  ;;  %v7485_v63 = vpack.c.bf16 %v7455_v45, %v7454_v1 }
 0xd16   : > { %v7123_v11 = vrot.slane %v7122_v38, 2 }
 0xd17   : > { %v7382_v0 = vpop.f32.mrf.mxu2  ;;  %7581 = vmatmul.bf16.gmra.mxu0 %v7485_v63 }
 0xd18   : > { %v7124_v46 = vadd.f32 %v7123_v11, %v7122_v38  ;;  %v7383_v41 = vadd.f32 %v14424_v53, %v7382_v0 }
 0xd1a   : > { %v7125_v23 = vrot.slane %v7124_v46, 1  ;;  %v7456_v3 = vmax.f32 %v7383_v41, 0.0 }
 0xd1c   : > { %v7126_v17 = vadd.f32 %v7125_v23, %v7124_v46  ;;  %v9298_v46 = vld [vmem:[%s10496_s21 + $0x38] sm:$0xff] }
 0xd1d   : > { %7421 = vmatmul.bf16.gmra.mxu2 %v7289_v42  ;;  %7773 = vmatpush.bf16.msrb.mxu1 %v9298_v46 }
 0xd1e   : > { %v7130_v59 = vmul.f32 0.015625, %v7126_v17 }
 0xd1f   : > { %v7384_v40 = vpop.f32.mrf.mxu2 }
 0xd20   : > { %v7385_v20 = vadd.f32 %v14424_v53, %v7384_v40  ;;  %v7134_v21 = vadd.f32 1e-05, %v7130_v59 }
 0xd22   : > { %9623 = vrsqrt.f32 %v7134_v21  ;;  %v7457_v43 = vmax.f32 %v7385_v20, 0.0  ;;  %vm7171_vm11 = vweird.f32 %v7134_v21 }
 0xd24   : > { %v7486_v58 = vpack.c.bf16 %v7457_v43, %v7456_v3 }
 0xd27   : > { %v7387_v25 = vpop.f32.mrf.mxu2  ;;  %7586 = vmatmul.bf16.gmra.mxu0 %v7486_v58 }
 0xd28   : > { %v9624_v35 = vpop.eup %9623  ;;  %v7388_v36 = vadd.f32 %v14424_v53, %v7387_v25 }
 0xd29   : > { %v7166_v56 = vmul.f32 %v9624_v35, %v7134_v21  ;;  %vm7172_vm10 = vweird.f32 %v9624_v35 }
 0xd2a   : > { %v7458_v15 = vmax.f32 %v7388_v36, 0.0  ;;  %vm7173_vm13 = vmor %vm7171_vm11, %vm7172_vm10  ;;  %v9295_v36 = vld [vmem:[%s10496_s21 + $0x20] sm:$0xff] }
 0xd2b   : > { %v7167_v30 = vmul.f32 %v9624_v35, %v7166_v56  ;;  %v9297_v56 = vld [vmem:[%s10496_s21 + $0x30] sm:$0xff] }
 0xd2c   : > { %7774 = vmatpush.bf16.msrb.mxu1 %v9297_v56 }
 0xd2d   : > { %v7168_v6 = vmul.f32 0.5, %v7167_v30  ;;  %7426 = vmatmul.bf16.gmra.mxu2 %v7290_v31  ;;  %v9296_v30 = vld [vmem:[%s10496_s21 + $0x28] sm:$0xff] }
 0xd2f   : > { %v7389_v22 = vpop.f32.mrf.mxu2  ;;  %v7169_v42 = vsub.f32 1.5, %v7168_v6 }
 0xd30   : > { %v7390_v37 = vadd.f32 %v14424_v53, %v7389_v22  ;;  %7775 = vmatpush.bf16.msrb.mxu1 %v9296_v30 }
 0xd31   : > { %v7170_v19 = vmul.f32 %v9624_v35, %v7169_v42 }
 0xd32   : > { %v7459_v7 = vmax.f32 %v7390_v37, 0.0 }
 0xd33   : > { %v7174_v50 = vsel %vm7173_vm13, %v9624_v35, %v7170_v19  ;;  %v9294_v19 = vld [vmem:[%s10496_s21 + $0x18] sm:$0xff] }
 0xd34   : > { %v7487_v26 = vpack.c.bf16 %v7459_v7, %v7458_v15  ;;  %v7206_v9 = vmul.f32 %v7174_v50, %v14472_v39  ;;  %v7199_v5 = vmul.f32 %v7174_v50, %v14427_v4  ;;  %v7200_v29 = vmul.f32 %v7174_v50, %v14430_v62  ;;  %7776 = vmatpush.bf16.msrb.mxu1 %v9295_v36 }
 0xd35   : > { %v7201_v31 = vmul.f32 %v7174_v50, %v14433_v33  ;;  %v7202_v55 = vmul.f32 %v7174_v50, %v14436_v2  ;;  %v7203_v16 = vmul.f32 %v7174_v50, %v14439_v44  ;;  %v7204_v18 = vmul.f32 %v7174_v50, %v14456_v14 }
 0xd36   : > { %v7205_v51 = vmul.f32 %v7174_v50, %v14463_v34  ;;  %v7235_v12 = vmul.f32 %v14107_v47, %v7199_v5  ;;  %v7236_v49 = vmul.f32 %v14107_v47, %v7200_v29  ;;  %v7242_v4 = vmul.f32 %v14107_v47, %v7206_v9  ;;  %v9292_v5 = vld [vmem:[%s10496_s21 + $0x8] sm:$0xff]  ;;  %v9291_v29 = vld [vmem:[%s10496_s21] sm:$0xff] }
 0xd37   : > { %v7237_v39 = vmul.f32 %v14107_v47, %v7201_v31  ;;  %v7238_v62 = vmul.f32 %v14107_v47, %v7202_v55  ;;  %v7239_v33 = vmul.f32 %v14107_v47, %v7203_v16  ;;  %v7240_v2 = vmul.f32 %v14107_v47, %v7204_v18  ;;  %7591 = vmatmul.bf16.gmra.mxu0 %v7487_v26  ;;  %v9293_v26 = vld [vmem:[%s10496_s21 + $0x10] sm:$0xff] }
 0xd38   : > { %v7241_v44 = vmul.f32 %v14107_v47, %v7205_v51  ;;  %v7271_v14 = vadd.f32 %v14116_v61, %v7235_v12  ;;  %v7272_v34 = vadd.f32 %v14116_v61, %v7236_v49  ;;  %v7278_v48 = vadd.f32 %v14116_v61, %v7242_v4  ;;  %7777 = vmatpush.bf16.msrb.mxu1 %v9294_v19 }
 0xd39   : > { %v7273_v32 = vadd.f32 %v14116_v61, %v7237_v39  ;;  %v7274_v13 = vadd.f32 %v14116_v61, %v7238_v62  ;;  %v7275_v28 = vadd.f32 %v14116_v61, %v7239_v33  ;;  %v7276_v45 = vadd.f32 %v14116_v61, %v7240_v2  ;;  %v14537_v2 = vld [vmem:[%s14895_s6] ss:$0 sm:$0xff] }
 0xd3a   : > { %v7277_v38 = vadd.f32 %v14116_v61, %v7241_v44  ;;  %v7291_v1 = vpack.c.bf16 %v7272_v34, %v7271_v14 }
 0xd3b   : > { %v7292_v47 = vpack.c.bf16 %v7274_v13, %v7273_v32  ;;  %v7293_v11 = vpack.c.bf16 %v7276_v45, %v7275_v28 }
 0xd3c   : > { %v7294_v63 = vpack.c.bf16 %v7278_v48, %v7277_v38  ;;  %7778 = vmatpush.bf16.msrb.mxu1 %v9293_v26 }
 0xd3d   : > { %7431 = vmatmul.bf16.gmra.mxu2 %v7291_v1 }
 0xd40   : > { %v7392_v0 = vpop.f32.mrf.mxu2  ;;  %7779 = vmatpush.bf16.msrb.mxu1 %v9292_v5 }
 0xd41   : > { %v7393_v23 = vadd.f32 %v14424_v53, %v7392_v0 }
 0xd43   : > { %v7460_v40 = vmax.f32 %v7393_v23, 0.0 }
 0xd44   : > { %7780 = vmatpush.bf16.msrb.mxu1 %v9291_v29 }
 0xd48   : > { %v7394_v17 = vpop.f32.mrf.mxu2 }
 0xd49   : > { %v7395_v59 = vadd.f32 %v14424_v53, %v7394_v17 }
 0xd4b   : > { %v7461_v20 = vmax.f32 %v7395_v59, 0.0 }
 0xd4d   : > { %v7488_v21 = vpack.c.bf16 %v7461_v20, %v7460_v40  ;;  %7436 = vmatmul.bf16.gmra.mxu2 %v7292_v47 }
 0xd4f   : > { %7596 = vmatmul.bf16.gmra.mxu0 %v7488_v21 }
 0xd50   : > { %v7397_v61 = vpop.f32.mrf.mxu2 }
 0xd51   : > { %v7398_v41 = vadd.f32 %v14424_v53, %v7397_v61 }
 0xd53   : > { %v7462_v58 = vmax.f32 %v7398_v41, 0.0 }
 0xd58   : > { %v7399_v43 = vpop.f32.mrf.mxu2 }
 0xd59   : > { %v7400_v3 = vadd.f32 %v14424_v53, %v7399_v43 }
 0xd5b   : > { %v7463_v25 = vmax.f32 %v7400_v3, 0.0 }
 0xd5d   : > { %v7489_v35 = vpack.c.bf16 %v7463_v25, %v7462_v58  ;;  %7441 = vmatmul.bf16.gmra.mxu2 %v7293_v11 }
 0xd5f   : > { %7601 = vmatmul.bf16.gmra.mxu0 %v7489_v35 }
 0xd60   : > { %v7402_v6 = vpop.f32.mrf.mxu2 }
 0xd61   : > { %v7403_v22 = vadd.f32 %v14424_v53, %v7402_v6 }
 0xd63   : > { %v7464_v15 = vmax.f32 %v7403_v22, 0.0 }
 0xd68   : > { %v7404_v42 = vpop.f32.mrf.mxu2 }
 0xd69   : > { %v7405_v37 = vadd.f32 %v14424_v53, %v7404_v42 }
 0xd6b   : > { %v7465_v7 = vmax.f32 %v7405_v37, 0.0 }
 0xd6d   : > { %v7490_v50 = vpack.c.bf16 %v7465_v7, %v7464_v15  ;;  %7446 = vmatmul.bf16.gmra.mxu2 %v7294_v63 }
 0xd6f   : > { %7606 = vmatmul.bf16.gmra.mxu0 %v7490_v50 }
 0xd70   : > { %v7407_v9 = vpop.f32.mrf.mxu2 }
 0xd71   : > { %v7408_v31 = vadd.f32 %v14424_v53, %v7407_v9 }
 0xd73   : > { %v7466_v18 = vmax.f32 %v7408_v31, 0.0 }
 0xd78   : > { %v7409_v55 = vpop.f32.mrf.mxu2 }
 0xd79   : > { %v7410_v16 = vadd.f32 %v14424_v53, %v7409_v55 }
 0xd7b   : > { %v7467_v51 = vmax.f32 %v7410_v16, 0.0 }
 0xd7d   : > { %v7491_v12 = vpack.c.bf16 %v7467_v51, %v7466_v18 }
 0xd7f   : > { %7611 = vmatmul.bf16.gmra.mxu0 %v7491_v12 }
 0xd80   : > { %v7412_v49 = vpop.f32.mrf.mxu2 }
 0xd81   : > { %v7413_v39 = vadd.f32 %v14424_v53, %v7412_v49 }
 0xd83   : > { %v7468_v44 = vmax.f32 %v7413_v39, 0.0 }
 0xd84   : > { %v7577_v4 = vpop.f32.mrf.mxu0 }
 0xd85   : > { %v7578_v32 = vadd.f32 %v14537_v2, %v7577_v4 }
 0xd87   : > { %v7657_v45 = vmax.f32 %v7578_v32, 0.0 }
 0xd88   : > { %v7414_v62 = vpop.f32.mrf.mxu2 }
 0xd89   : > { %v7415_v33 = vadd.f32 %v14424_v53, %v7414_v62 }
 0xd8b   : > { %v7469_v14 = vmax.f32 %v7415_v33, 0.0 }
 0xd8c   : > { %v7579_v48 = vpop.f32.mrf.mxu0 }
 0xd8d   : > { %v7492_v34 = vpack.c.bf16 %v7469_v14, %v7468_v44  ;;  %v7580_v13 = vadd.f32 %v14537_v2, %v7579_v48 }
 0xd8f   : > { %7616 = vmatmul.bf16.gmra.mxu0 %v7492_v34  ;;  %v7658_v38 = vmax.f32 %v7580_v13, 0.0 }
 0xd90   : > { %v7417_v28 = vpop.f32.mrf.mxu2 }
 0xd91   : > { %v7689_v1 = vpack.c.bf16 %v7658_v38, %v7657_v45  ;;  %v7418_v47 = vadd.f32 %v14424_v53, %v7417_v28 }
 0xd93   : > { %7781 = vmatmul.bf16.vlgmr.msrb.gmra.mxu1 %v7689_v1  ;;  %v7470_v46 = vmax.f32 %v7418_v47, 0.0 }
 0xd94   : > { %v7582_v11 = vpop.f32.mrf.mxu0 }
 0xd95   : > { %v7583_v59 = vadd.f32 %v14537_v2, %v7582_v11 }
 0xd97   : > { %v7659_v61 = vmax.f32 %v7583_v59, 0.0 }
 0xd98   : > { %v7419_v63 = vpop.f32.mrf.mxu2 }
 0xd99   : > { %v7420_v0 = vadd.f32 %v14424_v53, %v7419_v63 }
 0xd9b   : > { %v7471_v23 = vmax.f32 %v7420_v0, 0.0 }
 0xd9c   : > { %v7584_v40 = vpop.f32.mrf.mxu0 }
 0xd9d   : > { %v7493_v17 = vpack.c.bf16 %v7471_v23, %v7470_v46  ;;  %v7585_v20 = vadd.f32 %v14537_v2, %v7584_v40 }
 0xd9f   : > { %7621 = vmatmul.bf16.gmra.mxu0 %v7493_v17  ;;  %v7660_v41 = vmax.f32 %v7585_v20, 0.0 }
 0xda0   : > { %v7422_v21 = vpop.f32.mrf.mxu2 }
 0xda1   : > { %v7690_v43 = vpack.c.bf16 %v7660_v41, %v7659_v61  ;;  %v7423_v3 = vadd.f32 %v14424_v53, %v7422_v21 }
 0xda3   : > { %7786 = vmatmul.bf16.gmra.mxu1 %v7690_v43  ;;  %v7472_v56 = vmax.f32 %v7423_v3, 0.0 }
 0xda4   : > { %v7587_v58 = vpop.f32.mrf.mxu0 }
 0xda5   : > { %v7588_v36 = vadd.f32 %v14537_v2, %v7587_v58 }
 0xda7   : > { %v7661_v19 = vmax.f32 %v7588_v36, 0.0 }
 0xda8   : > { %v7424_v25 = vpop.f32.mrf.mxu2 }
 0xda9   : > { %v7425_v35 = vadd.f32 %v14424_v53, %v7424_v25 }
 0xdab   : > { %v7473_v30 = vmax.f32 %v7425_v35, 0.0 }
 0xdac   : > { %v7589_v22 = vpop.f32.mrf.mxu0 }
 0xdad   : > { %v7494_v6 = vpack.c.bf16 %v7473_v30, %v7472_v56  ;;  %v7590_v42 = vadd.f32 %v14537_v2, %v7589_v22 }
 0xdaf   : > { %7626 = vmatmul.bf16.gmra.mxu0 %v7494_v6  ;;  %v7662_v15 = vmax.f32 %v7590_v42, 0.0 }
 0xdb0   : > { %v7427_v37 = vpop.f32.mrf.mxu2 }
 0xdb1   : > { %v7691_v7 = vpack.c.bf16 %v7662_v15, %v7661_v19  ;;  %v7428_v50 = vadd.f32 %v14424_v53, %v7427_v37 }
 0xdb3   : > { %7791 = vmatmul.bf16.gmra.mxu1 %v7691_v7  ;;  %v7474_v29 = vmax.f32 %v7428_v50, 0.0 }
 0xdb4   : > { %v7592_v26 = vpop.f32.mrf.mxu0 }
 0xdb5   : > { %v7593_v16 = vadd.f32 %v14537_v2, %v7592_v26 }
 0xdb7   : > { %v7663_v49 = vmax.f32 %v7593_v16, 0.0 }
 0xdb8   : > { %v7429_v9 = vpop.f32.mrf.mxu2 }
 0xdb9   : > { %v7430_v5 = vadd.f32 %v14424_v53, %v7429_v9 }
 0xdbb   : > { %v7475_v31 = vmax.f32 %v7430_v5, 0.0 }
 0xdbc   : > { %v7594_v18 = vpop.f32.mrf.mxu0 }
 0xdbd   : > { %v7495_v55 = vpack.c.bf16 %v7475_v31, %v7474_v29  ;;  %v7595_v51 = vadd.f32 %v14537_v2, %v7594_v18 }
 0xdbf   : > { %7631 = vmatmul.bf16.gmra.mxu0 %v7495_v55  ;;  %v7664_v39 = vmax.f32 %v7595_v51, 0.0 }
 0xdc0   : > { %v7432_v12 = vpop.f32.mrf.mxu2 }
 0xdc1   : > { %v7692_v4 = vpack.c.bf16 %v7664_v39, %v7663_v49  ;;  %v7433_v62 = vadd.f32 %v14424_v53, %v7432_v12 }
 0xdc3   : > { %7796 = vmatmul.bf16.gmra.mxu1 %v7692_v4  ;;  %v7476_v14 = vmax.f32 %v7433_v62, 0.0 }
 0xdc8   : > { %v7434_v33 = vpop.f32.mrf.mxu2 }
 0xdc9   : > { %v7435_v44 = vadd.f32 %v14424_v53, %v7434_v33 }
 0xdcb   : > { %v7477_v34 = vmax.f32 %v7435_v44, 0.0 }
 0xdcc   : > { %v7597_v32 = vpop.f32.mrf.mxu0 }
 0xdcd   : > { %v7496_v48 = vpack.c.bf16 %v7477_v34, %v7476_v14  ;;  %v7598_v28 = vadd.f32 %v14537_v2, %v7597_v32 }
 0xdcf   : > { %7636 = vmatmul.bf16.gmra.mxu0 %v7496_v48  ;;  %v7665_v1 = vmax.f32 %v7598_v28, 0.0 }
 0xdd0   : > { %v7437_v13 = vpop.f32.mrf.mxu2 }
 0xdd1   : > { %v7438_v47 = vadd.f32 %v14424_v53, %v7437_v13 }
 0xdd3   : > { %v7478_v23 = vmax.f32 %v7438_v47, 0.0 }
 0xdd4   : > { %v7599_v45 = vpop.f32.mrf.mxu0 }
 0xdd5   : > { %v7600_v38 = vadd.f32 %v14537_v2, %v7599_v45 }
 0xdd7   : > { %v7666_v11 = vmax.f32 %v7600_v38, 0.0 }
 0xdd8   : > { %v7439_v63 = vpop.f32.mrf.mxu2 }
 0xdd9   : > { %v7693_v0 = vpack.c.bf16 %v7666_v11, %v7665_v1  ;;  %v7440_v46 = vadd.f32 %v14424_v53, %v7439_v63 }
 0xddb   : > { %v7479_v17 = vmax.f32 %v7440_v46, 0.0  ;;  %7801 = vmatmul.bf16.gmra.mxu1 %v7693_v0 }
 0xddc   : > { %v7602_v59 = vpop.f32.mrf.mxu0 }
 0xddd   : > { %v7497_v40 = vpack.c.bf16 %v7479_v17, %v7478_v23  ;;  %v7603_v21 = vadd.f32 %v14537_v2, %v7602_v59 }
 0xddf   : > { %7641 = vmatmul.bf16.gmra.mxu0 %v7497_v40  ;;  %v7667_v43 = vmax.f32 %v7603_v21, 0.0 }
 0xde0   : > { %v7442_v20 = vpop.f32.mrf.mxu2 }
 0xde1   : > { %v7443_v3 = vadd.f32 %v14424_v53, %v7442_v20  ;;  %v14575_v20 = vld [vmem:[%s14896_s5] ss:$0 sm:$0xff] }
 0xde3   : > { %v7480_v30 = vmax.f32 %v7443_v3, 0.0 }
 0xde4   : > { %v7604_v61 = vpop.f32.mrf.mxu0 }
 0xde5   : > { %v7605_v41 = vadd.f32 %v14537_v2, %v7604_v61 }
 0xde7   : > { %v7668_v58 = vmax.f32 %v7605_v41, 0.0 }
 0xde8   : > { %v7444_v25 = vpop.f32.mrf.mxu2 }
 0xde9   : > { %v7694_v35 = vpack.c.bf16 %v7668_v58, %v7667_v43  ;;  %v7445_v56 = vadd.f32 %v14424_v53, %v7444_v25 }
 0xdeb   : > { %v7481_v6 = vmax.f32 %v7445_v56, 0.0  ;;  %7806 = vmatmul.bf16.gmra.mxu1 %v7694_v35 }
 0xdec   : > { %v7607_v36 = vpop.f32.mrf.mxu0 }
 0xded   : > { %v7498_v22 = vpack.c.bf16 %v7481_v6, %v7480_v30  ;;  %v7608_v37 = vadd.f32 %v14537_v2, %v7607_v36 }
 0xdef   : > { %7646 = vmatmul.bf16.gmra.mxu0 %v7498_v22  ;;  %v7669_v7 = vmax.f32 %v7608_v37, 0.0 }
 0xdf0   : > { %v7447_v42 = vpop.f32.mrf.mxu2 }
 0xdf1   : > { %v7448_v50 = vadd.f32 %v14424_v53, %v7447_v42 }
 0xdf3   : > { %v7482_v31 = vmax.f32 %v7448_v50, 0.0 }
 0xdf4   : > { %v7609_v19 = vpop.f32.mrf.mxu0 }
 0xdf5   : > { %v7610_v15 = vadd.f32 %v14537_v2, %v7609_v19 }
 0xdf7   : > { %v7670_v26 = vmax.f32 %v7610_v15, 0.0 }
 0xdf8   : > { %v7449_v9 = vpop.f32.mrf.mxu2 }
 0xdf9   : > { %v7695_v5 = vpack.c.bf16 %v7670_v26, %v7669_v7  ;;  %v7450_v29 = vadd.f32 %v14424_v53, %v7449_v9 }
 0xdfb   : > { %v7483_v55 = vmax.f32 %v7450_v29, 0.0  ;;  %7811 = vmatmul.bf16.gmra.mxu1 %v7695_v5 }
 0xdfc   : > { %v7612_v16 = vpop.f32.mrf.mxu0 }
 0xdfd   : > { %v7499_v18 = vpack.c.bf16 %v7483_v55, %v7482_v31  ;;  %v7613_v51 = vadd.f32 %v14537_v2, %v7612_v16 }
 0xdff   : > { %7651 = vmatmul.bf16.gmra.mxu0 %v7499_v18  ;;  %v7671_v39 = vmax.f32 %v7613_v51, 0.0 }
 0xe04   : > { %v7614_v12 = vpop.f32.mrf.mxu0 }
 0xe05   : > { %v7615_v49 = vadd.f32 %v14537_v2, %v7614_v12 }
 0xe07   : > { %v7672_v4 = vmax.f32 %v7615_v49, 0.0 }
 0xe09   : > { %v7696_v62 = vpack.c.bf16 %v7672_v4, %v7671_v39 }
 0xe0b   : > { %7816 = vmatmul.bf16.gmra.mxu1 %v7696_v62 }
 0xe0c   : > { %v7617_v33 = vpop.f32.mrf.mxu0 }
 0xe0d   : > { %v7618_v44 = vadd.f32 %v14537_v2, %v7617_v33 }
 0xe0f   : > { %v7673_v32 = vmax.f32 %v7618_v44, 0.0 }
 0xe10   : > { %v7782_v14 = vpop.f32.mrf.mxu1 }
 0xe11   : > { %v7783_v25 = vadd.f32 %v14575_v20, %v7782_v14 }
 0xe13   : > { %v7862_v42 = vmul.f32 %v7783_v25, %v13315_v57 }
 0xe14   : > { %v7619_v53 = vpop.f32.mrf.mxu0 }
 0xe15   : > { %v7620_v34 = vadd.f32 %v14537_v2, %v7619_v53  ;;  %v7894_v5 = vrot.slane %v7862_v42, 4 }
 0xe17   : > { %v7674_v48 = vmax.f32 %v7620_v34, 0.0  ;;  %v7895_v49 = vadd.f32 %v7894_v5, %v7862_v42 }
 0xe18   : > { %v7784_v28 = vpop.f32.mrf.mxu1 }
 0xe19   : > { %v7697_v13 = vpack.c.bf16 %v7674_v48, %v7673_v32  ;;  %v7785_v41 = vadd.f32 %v14575_v20, %v7784_v28  ;;  %v7896_v28 = vrot.slane %v7895_v49, 2 }
 0xe1b   : > { %7821 = vmatmul.bf16.gmra.mxu1 %v7697_v13  ;;  %v7863_v6 = vmul.f32 %v7785_v41, %v13323_v60 }
 0xe1c   : > { %v7622_v45 = vpop.f32.mrf.mxu0 }
 0xe1d   : > { %v7623_v38 = vadd.f32 %v14537_v2, %v7622_v45  ;;  %v7900_v50 = vrot.slane %v7863_v6, 4 }
 0xe1f   : > { %v7675_v63 = vmax.f32 %v7623_v38, 0.0  ;;  %v7901_v55 = vadd.f32 %v7900_v50, %v7863_v6 }
 0xe20   : > { %v7787_v1 = vpop.f32.mrf.mxu1 }
 0xe21   : > { %v7788_v43 = vadd.f32 %v14575_v20, %v7787_v1  ;;  %v7902_v14 = vrot.slane %v7901_v55, 2 }
 0xe23   : > { %v7864_v36 = vmul.f32 %v7788_v43, %v13331_v54 }
 0xe24   : > { %v7624_v47 = vpop.f32.mrf.mxu0 }
 0xe25   : > { %v7625_v11 = vadd.f32 %v14537_v2, %v7624_v47  ;;  %v7906_v9 = vrot.slane %v7864_v36, 4 }
 0xe27   : > { %v7676_v0 = vmax.f32 %v7625_v11, 0.0  ;;  %v7907_v18 = vadd.f32 %v7906_v9, %v7864_v36  ;;  %v7903_v11 = vadd.f32 %v7902_v14, %v7901_v55 }
 0xe28   : > { %v7789_v23 = vpop.f32.mrf.mxu1 }
 0xe29   : > { %v7698_v46 = vpack.c.bf16 %v7676_v0, %v7675_v63  ;;  %v7790_v35 = vadd.f32 %v14575_v20, %v7789_v23  ;;  %v7908_v32 = vrot.slane %v7907_v18, 2  ;;  %v7904_v43 = vrot.slane %v7903_v11, 1 }
 0xe2b   : > { %7826 = vmatmul.bf16.gmra.mxu1 %v7698_v46  ;;  %v7865_v37 = vmul.f32 %v7790_v35, %v13344_v27  ;;  %v7909_v46 = vadd.f32 %v7908_v32, %v7907_v18 }
 0xe2c   : > { %v7627_v17 = vpop.f32.mrf.mxu0 }
 0xe2d   : > { %v7628_v59 = vadd.f32 %v14537_v2, %v7627_v17  ;;  %v7912_v29 = vrot.slane %v7865_v37, 4  ;;  %v7897_v17 = vadd.f32 %v7896_v28, %v7895_v49  ;;  %v7910_v25 = vrot.slane %v7909_v46, 1 }
 0xe2f   : > { %v7677_v3 = vmax.f32 %v7628_v59, 0.0  ;;  %v7913_v39 = vadd.f32 %v7912_v29, %v7865_v37 }
 0xe30   : > { %v7792_v40 = vpop.f32.mrf.mxu1 }
 0xe31   : > { %v7793_v56 = vadd.f32 %v14575_v20, %v7792_v40  ;;  %v7914_v45 = vrot.slane %v7913_v39, 2 }
 0xe33   : > { %v7866_v7 = vmul.f32 %v7793_v56, %v13363_v8  ;;  %v7915_v59 = vadd.f32 %v7914_v45, %v7913_v39  ;;  %v7898_v56 = vrot.slane %v7897_v17, 1 }
 0xe34   : > { %v7629_v21 = vpop.f32.mrf.mxu0 }
 0xe35   : > { %v7630_v61 = vadd.f32 %v14537_v2, %v7629_v21  ;;  %v7918_v31 = vrot.slane %v7866_v7, 4  ;;  %v7899_v50 = vadd.f32 %v7898_v56, %v7897_v17 }
 0xe37   : > { %v7678_v58 = vmax.f32 %v7630_v61, 0.0  ;;  %v7919_v33 = vadd.f32 %v7918_v31, %v7866_v7 }
 0xe38   : > { %v7794_v22 = vpop.f32.mrf.mxu1 }
 0xe39   : > { %v7699_v30 = vpack.c.bf16 %v7678_v58, %v7677_v3  ;;  %v7795_v19 = vadd.f32 %v14575_v20, %v7794_v22  ;;  %v7920_v1 = vrot.slane %v7919_v33, 2  ;;  %v7905_v22 = vadd.f32 %v7904_v43, %v7903_v11 }
 0xe3b   : > { %7831 = vmatmul.bf16.gmra.mxu1 %v7699_v30  ;;  %v7867_v26 = vmul.f32 %v7795_v19, %v13367_v10  ;;  %v7921_v41 = vadd.f32 %v7920_v1, %v7919_v33  ;;  %v7916_v30 = vrot.slane %v7915_v59, 1  ;;  %v7911_v19 = vadd.f32 %v7910_v25, %v7909_v46 }
 0xe3c   : > { %v7632_v15 = vpop.f32.mrf.mxu0  ;;  %v8119_v55 = vsel %vm8118_vm14, %v7905_v22, %v7899_v50 }
 0xe3d   : > { %v7924_v16 = vrot.slane %v7867_v26, 4  ;;  %v7633_v51 = vadd.f32 %v14537_v2, %v7632_v15  ;;  %v7922_v36 = vrot.slane %v7921_v41, 1 }
 0xe3f   : > { %v7925_v53 = vadd.f32 %v7924_v16, %v7867_v26  ;;  %v7679_v48 = vmax.f32 %v7633_v51, 0.0  ;;  %v7917_v26 = vadd.f32 %v7916_v30, %v7915_v59  ;;  %v7923_v29 = vadd.f32 %v7922_v36, %v7921_v41 }
 0xe40   : > { %v7797_v12 = vpop.f32.mrf.mxu1  ;;  %v8121_v51 = vsel %vm8120_vm15, %v7911_v19, %v8119_v55 }
 0xe41   : > { %v7798_v4 = vadd.f32 %v14575_v20, %v7797_v12  ;;  %v7926_v63 = vrot.slane %v7925_v53, 2 }
 0xe43   : > { %v7868_v34 = vmul.f32 %v7798_v4, %v13372_v24  ;;  %v7927_v3 = vadd.f32 %v7926_v63, %v7925_v53  ;;  %v8123_v4 = vsel %vm8122_vm0, %v7917_v26, %v8121_v51 }
 0xe44   : > { %v7634_v62 = vpop.f32.mrf.mxu0 }
 0xe45   : > { %v7635_v44 = vadd.f32 %v14537_v2, %v7634_v62  ;;  %v7930_v38 = vrot.slane %v7868_v34, 4  ;;  %v7928_v42 = vrot.slane %v7927_v3, 1 }
 0xe47   : > { %v7680_v13 = vmax.f32 %v7635_v44, 0.0  ;;  %v7931_v0 = vadd.f32 %v7930_v38, %v7868_v34  ;;  %v7929_v16 = vadd.f32 %v7928_v42, %v7927_v3  ;;  %v8125_v44 = vsel %vm8124_vm1, %v7923_v29, %v8123_v4 }
 0xe48   : > { %v7799_v23 = vpop.f32.mrf.mxu1 }
 0xe49   : > { %v7700_v47 = vpack.c.bf16 %v7680_v13, %v7679_v48  ;;  %v7932_v40 = vrot.slane %v7931_v0, 2  ;;  %v7800_v21 = vadd.f32 %v14575_v20, %v7799_v23  ;;  %v8127_v53 = vsel %vm8126_vm2, %v7929_v16, %v8125_v44 }
 0xe4b   : > { %7836 = vmatmul.bf16.gmra.mxu1 %v7700_v47  ;;  %v7869_v58 = vmul.f32 %v7800_v21, %v13376_v52  ;;  %v7933_v35 = vadd.f32 %v7932_v40, %v7931_v0 }
 0xe4c   : > { %v7637_v61 = vpop.f32.mrf.mxu0 }
 0xe4d   : > { %v7936_v6 = vrot.slane %v7869_v58, 4  ;;  %v7934_v15 = vrot.slane %v7933_v35, 1  ;;  %v7638_v7 = vadd.f32 %v14537_v2, %v7637_v61 }
 0xe4f   : > { %v7937_v37 = vadd.f32 %v7936_v6, %v7869_v58  ;;  %v7935_v12 = vadd.f32 %v7934_v15, %v7933_v35  ;;  %v7681_v49 = vmax.f32 %v7638_v7, 0.0 }
 0xe51   : > { %v7938_v9 = vrot.slane %v7937_v37, 2  ;;  %v8129_v32 = vsel %vm8128_vm3, %v7935_v12, %v8127_v53 }
 0xe53   : > { %v7939_v18 = vadd.f32 %v7938_v9, %v7937_v37 }
 0xe54   : > { %v7639_v5 = vpop.f32.mrf.mxu0 }
 0xe55   : > { %v7640_v31 = vadd.f32 %v14537_v2, %v7639_v5  ;;  %v7940_v62 = vrot.slane %v7939_v18, 1 }
 0xe57   : > { %v7682_v39 = vmax.f32 %v7640_v31, 0.0  ;;  %v7941_v34 = vadd.f32 %v7940_v62, %v7939_v18 }
 0xe58   : > { %v7802_v33 = vpop.f32.mrf.mxu1 }
 0xe59   : > { %v7701_v14 = vpack.c.bf16 %v7682_v39, %v7681_v49  ;;  %v8131_v48 = vsel %vm8130_vm4, %v7941_v34, %v8129_v32  ;;  %v7803_v35 = vadd.f32 %v14575_v20, %v7802_v33 }
 0xe5a   : > { %8157 = vst [vmem:[%s14608_s10] sm:$0xff] %v8131_v48 }
 0xe5b   : > { %7841 = vmatmul.bf16.gmra.mxu1 %v7701_v14  ;;  %v7870_v42 = vmul.f32 %v7803_v35, %v13315_v57 }
 0xe5c   : > { %v7642_v13 = vpop.f32.mrf.mxu0 }
 0xe5d   : > { %v7643_v45 = vadd.f32 %v14537_v2, %v7642_v13  ;;  %v7942_v29 = vrot.slane %v7870_v42, 4 }
 0xe5f   : > { %v7683_v47 = vmax.f32 %v7643_v45, 0.0  ;;  %v7943_v62 = vadd.f32 %v7942_v29, %v7870_v42 }
 0xe60   : > { %v7804_v28 = vpop.f32.mrf.mxu1 }
 0xe61   : > { %v7805_v3 = vadd.f32 %v14575_v20, %v7804_v28 }
 0xe63   : > { %v7871_v6 = vmul.f32 %v7805_v3, %v13323_v60 }
 0xe64   : > { %v7644_v38 = vpop.f32.mrf.mxu0 }
 0xe65   : > { %v7645_v1 = vadd.f32 %v14537_v2, %v7644_v38  ;;  %v7948_v7 = vrot.slane %v7871_v6, 4 }
 0xe67   : > { %v7684_v11 = vmax.f32 %v7645_v1, 0.0  ;;  %v7949_v18 = vadd.f32 %v7948_v7, %v7871_v6 }
 0xe68   : > { %v7807_v63 = vpop.f32.mrf.mxu1 }
 0xe69   : > { %v7702_v0 = vpack.c.bf16 %v7684_v11, %v7683_v47  ;;  %v7808_v58 = vadd.f32 %v14575_v20, %v7807_v63  ;;  %v7950_v34 = vrot.slane %v7949_v18, 2 }
 0xe6b   : > { %7846 = vmatmul.bf16.gmra.mxu1 %v7702_v0  ;;  %v7872_v36 = vmul.f32 %v7808_v58, %v13331_v54  ;;  %v7951_v1 = vadd.f32 %v7950_v34, %v7949_v18 }
 0xe6c   : > { %v7647_v46 = vpop.f32.mrf.mxu0 }
 0xe6d   : > { %v7648_v17 = vadd.f32 %v14537_v2, %v7647_v46  ;;  %v7954_v9 = vrot.slane %v7872_v36, 4 }
 0xe6f   : > { %v7685_v21 = vmax.f32 %v7648_v17, 0.0  ;;  %v7955_v39 = vadd.f32 %v7954_v9, %v7872_v36 }
 0xe70   : > { %v7809_v23 = vpop.f32.mrf.mxu1 }
 0xe71   : > { %v7810_v56 = vadd.f32 %v14575_v20, %v7809_v23  ;;  %v7956_v13 = vrot.slane %v7955_v39, 2 }
 0xe73   : > { %v7873_v37 = vmul.f32 %v7810_v56, %v13344_v27  ;;  %v7957_v63 = vadd.f32 %v7956_v13, %v7955_v39 }
 0xe74   : > { %v7649_v59 = vpop.f32.mrf.mxu0 }
 0xe75   : > { %v7650_v40 = vadd.f32 %v14537_v2, %v7649_v59  ;;  %v7960_v31 = vrot.slane %v7873_v37, 4 }
 0xe77   : > { %v7686_v61 = vmax.f32 %v7650_v40, 0.0  ;;  %v7961_v33 = vadd.f32 %v7960_v31, %v7873_v37 }
 0xe78   : > { %v7812_v41 = vpop.f32.mrf.mxu1 }
 0xe79   : > { %v7703_v43 = vpack.c.bf16 %v7686_v61, %v7685_v21  ;;  %v7813_v30 = vadd.f32 %v14575_v20, %v7812_v41  ;;  %v7962_v28 = vrot.slane %v7961_v33, 2  ;;  %v7952_v21 = vrot.slane %v7951_v1, 1 }
 0xe7b   : > { %7851 = vmatmul.bf16.gmra.mxu1 %v7703_v43  ;;  %v7874_v15 = vmul.f32 %v7813_v30, %v13363_v8  ;;  %v7963_v23 = vadd.f32 %v7962_v28, %v7961_v33  ;;  %v7958_v43 = vrot.slane %v7957_v63, 1  ;;  %v7953_v30 = vadd.f32 %v7952_v21, %v7951_v1 }
 0xe7c   : > { %v7652_v25 = vpop.f32.mrf.mxu0 }
 0xe7d   : > { %v7653_v50 = vadd.f32 %v14537_v2, %v7652_v25  ;;  %v7966_v16 = vrot.slane %v7874_v15, 4  ;;  %v7964_v25 = vrot.slane %v7963_v23, 1 }
 0xe7f   : > { %v7687_v51 = vmax.f32 %v7653_v50, 0.0  ;;  %v7967_v53 = vadd.f32 %v7966_v16, %v7874_v15  ;;  %v7965_v15 = vadd.f32 %v7964_v25, %v7963_v23 }
 0xe80   : > { %v7814_v22 = vpop.f32.mrf.mxu1 }
 0xe81   : > { %v7815_v19 = vadd.f32 %v14575_v20, %v7814_v22  ;;  %v7968_v38 = vrot.slane %v7967_v53, 2  ;;  %v7959_v22 = vadd.f32 %v7958_v43, %v7957_v63 }
 0xe83   : > { %v7875_v26 = vmul.f32 %v7815_v19, %v13367_v10  ;;  %v7969_v40 = vadd.f32 %v7968_v38, %v7967_v53 }
 0xe84   : > { %v7654_v5 = vpop.f32.mrf.mxu0 }
 0xe85   : > { %v7655_v55 = vadd.f32 %v14537_v2, %v7654_v5  ;;  %v7972_v12 = vrot.slane %v7875_v26, 4  ;;  %v7944_v2 = vrot.slane %v7943_v62, 2  ;;  %v7970_v56 = vrot.slane %v7969_v40, 1 }
 0xe87   : > { %v7688_v49 = vmax.f32 %v7655_v55, 0.0  ;;  %v7973_v32 = vadd.f32 %v7972_v12, %v7875_v26  ;;  %v7945_v46 = vadd.f32 %v7944_v2, %v7943_v62  ;;  %v7971_v50 = vadd.f32 %v7970_v56, %v7969_v40 }
 0xe88   : > { %v7817_v4 = vpop.f32.mrf.mxu1 }
 0xe89   : > { %v7704_v44 = vpack.c.bf16 %v7688_v49, %v7687_v51  ;;  %v7818_v14 = vadd.f32 %v14575_v20, %v7817_v4  ;;  %v7974_v47 = vrot.slane %v7973_v32, 2  ;;  %v7946_v58 = vrot.slane %v7945_v46, 1 }
 0xe8b   : > { %v7876_v48 = vmul.f32 %v7818_v14, %v13372_v24  ;;  %7856 = vmatmul.bf16.gmra.mxu1 %v7704_v44  ;;  %v7975_v61 = vadd.f32 %v7974_v47, %v7973_v32  ;;  %v7947_v19 = vadd.f32 %v7946_v58, %v7945_v46 }
 0xe8d   : > { %v7978_v45 = vrot.slane %v7876_v48, 4  ;;  %v7976_v6 = vrot.slane %v7975_v61, 1  ;;  %v8132_v26 = vsel %vm8118_vm14, %v7953_v30, %v7947_v19 }
 0xe8e   : > { %v8133_v29 = vsel %vm8120_vm15, %v7959_v22, %v8132_v26 }
 0xe8f   : > { %v7979_v11 = vadd.f32 %v7978_v45, %v7876_v48  ;;  %v7977_v9 = vadd.f32 %v7976_v6, %v7975_v61  ;;  %v8134_v55 = vsel %vm8122_vm0, %v7965_v15, %v8133_v29 }
 0xe90   : > { %v7819_v0 = vpop.f32.mrf.mxu1  ;;  %v8135_v18 = vsel %vm8124_vm1, %v7971_v50, %v8134_v55 }
 0xe91   : > { %v7980_v17 = vrot.slane %v7979_v11, 2  ;;  %v7820_v59 = vadd.f32 %v14575_v20, %v7819_v0  ;;  %v8136_v51 = vsel %vm8126_vm2, %v7977_v9, %v8135_v18 }
 0xe93   : > { %v7877_v41 = vmul.f32 %v7820_v59, %v13376_v52  ;;  %v7981_v3 = vadd.f32 %v7980_v17, %v7979_v11 }
 0xe95   : > { %v7984_v35 = vrot.slane %v7877_v41, 4  ;;  %v7982_v42 = vrot.slane %v7981_v3, 1 }
 0xe97   : > { %v7985_v36 = vadd.f32 %v7984_v35, %v7877_v41  ;;  %v7983_v31 = vadd.f32 %v7982_v42, %v7981_v3 }
 0xe98   : > { %v7822_v37 = vpop.f32.mrf.mxu1 }
 0xe99   : > { %v7986_v7 = vrot.slane %v7985_v36, 2  ;;  %v8137_v49 = vsel %vm8128_vm3, %v7983_v31, %v8136_v51  ;;  %v7823_v34 = vadd.f32 %v14575_v20, %v7822_v37 }
 0xe9b   : > { %v7987_v5 = vadd.f32 %v7986_v7, %v7985_v36  ;;  %v7878_v45 = vmul.f32 %v7823_v34, %v13315_v57 }
 0xe9d   : > { %v7988_v16 = vrot.slane %v7987_v5, 1  ;;  %v7990_v46 = vrot.slane %v7878_v45, 4 }
 0xe9f   : > { %v7989_v12 = vadd.f32 %v7988_v16, %v7987_v5  ;;  %v7991_v41 = vadd.f32 %v7990_v46, %v7878_v45 }
 0xea0   : > { %v7824_v39 = vpop.f32.mrf.mxu1 }
 0xea1   : > { %v8138_v4 = vsel %vm8130_vm4, %v7989_v12, %v8137_v49  ;;  %v7825_v14 = vadd.f32 %v14575_v20, %v7824_v39  ;;  %v7992_v6 = vrot.slane %v7991_v41, 2 }
 0xea2   : > { %8158 = vst [vmem:[%s14608_s10 + $0x8] sm:$0xff] %v8138_v4 }
 0xea3   : > { %v7879_v13 = vmul.f32 %v7825_v14, %v13323_v60  ;;  %v7993_v26 = vadd.f32 %v7992_v6, %v7991_v41 }
 0xea5   : > { %v7996_v11 = vrot.slane %v7879_v13, 4  ;;  %v7994_v49 = vrot.slane %v7993_v26, 1 }
 0xea7   : > { %v7997_v59 = vadd.f32 %v7996_v11, %v7879_v13 }
 0xea8   : > { %v7827_v62 = vpop.f32.mrf.mxu1 }
 0xea9   : > { %v7828_v53 = vadd.f32 %v14575_v20, %v7827_v62  ;;  %v7998_v25 = vrot.slane %v7997_v59, 2 }
 0xeab   : > { %v7880_v2 = vmul.f32 %v7828_v53, %v13331_v54  ;;  %v7999_v37 = vadd.f32 %v7998_v25, %v7997_v59 }
 0xead   : > { %v8002_v0 = vrot.slane %v7880_v2, 4  ;;  %v8000_v55 = vrot.slane %v7999_v37, 1 }
 0xeaf   : > { %v8003_v21 = vadd.f32 %v8002_v0, %v7880_v2 }
 0xeb0   : > { %v7829_v33 = vpop.f32.mrf.mxu1 }
 0xeb1   : > { %v7830_v32 = vadd.f32 %v14575_v20, %v7829_v33  ;;  %v8004_v30 = vrot.slane %v8003_v21, 2  ;;  %v8001_v33 = vadd.f32 %v8000_v55, %v7999_v37 }
 0xeb3   : > { %v7881_v38 = vmul.f32 %v7830_v32, %v13344_v27  ;;  %v8005_v7 = vadd.f32 %v8004_v30, %v8003_v21 }
 0xeb5   : > { %v8008_v23 = vrot.slane %v7881_v38, 4  ;;  %v8006_v51 = vrot.slane %v8005_v7, 1 }
 0xeb7   : > { %v8009_v43 = vadd.f32 %v8008_v23, %v7881_v38  ;;  %v8007_v53 = vadd.f32 %v8006_v51, %v8005_v7 }
 0xeb8   : > { %v7832_v44 = vpop.f32.mrf.mxu1 }
 0xeb9   : > { %v7833_v48 = vadd.f32 %v14575_v20, %v7832_v44  ;;  %v8010_v36 = vrot.slane %v8009_v43, 2 }
 0xebb   : > { %v7882_v47 = vmul.f32 %v7833_v48, %v13363_v8  ;;  %v8011_v9 = vadd.f32 %v8010_v36, %v8009_v43  ;;  %v7995_v48 = vadd.f32 %v7994_v49, %v7993_v26 }
 0xebd   : > { %v8014_v17 = vrot.slane %v7882_v47, 4  ;;  %v8012_v39 = vrot.slane %v8011_v9, 1  ;;  %v8139_v45 = vsel %vm8118_vm14, %v8001_v33, %v7995_v48 }
 0xebf   : > { %v8015_v58 = vadd.f32 %v8014_v17, %v7882_v47  ;;  %v8013_v13 = vadd.f32 %v8012_v39, %v8011_v9  ;;  %v8140_v47 = vsel %vm8120_vm15, %v8007_v53, %v8139_v45 }
 0xec0   : > { %v7834_v28 = vpop.f32.mrf.mxu1 }
 0xec1   : > { %v7835_v1 = vadd.f32 %v14575_v20, %v7834_v28  ;;  %v8016_v42 = vrot.slane %v8015_v58, 2 }
 0xec3   : > { %v7883_v63 = vmul.f32 %v7835_v1, %v13367_v10  ;;  %v8017_v31 = vadd.f32 %v8016_v42, %v8015_v58 }
 0xec5   : > { %v8020_v40 = vrot.slane %v7883_v63, 4  ;;  %v8018_v62 = vrot.slane %v8017_v31, 1 }
 0xec7   : > { %v8021_v35 = vadd.f32 %v8020_v40, %v7883_v63  ;;  %v8019_v28 = vadd.f32 %v8018_v62, %v8017_v31  ;;  %v8141_v63 = vsel %vm8122_vm0, %v8013_v13, %v8140_v47 }
 0xec8   : > { %v7837_v61 = vpop.f32.mrf.mxu1 }
 0xec9   : > { %v7838_v3 = vadd.f32 %v14575_v20, %v7837_v61  ;;  %v8022_v19 = vrot.slane %v8021_v35, 2  ;;  %v8142_v46 = vsel %vm8124_vm1, %v8019_v28, %v8141_v63 }
 0xecb   : > { %v7884_v56 = vmul.f32 %v7838_v3, %v13372_v24  ;;  %v8023_v16 = vadd.f32 %v8022_v19, %v8021_v35 }
 0xecd   : > { %v8026_v22 = vrot.slane %v7884_v56, 4  ;;  %v8024_v44 = vrot.slane %v8023_v16, 1 }
 0xecf   : > { %v8027_v15 = vadd.f32 %v8026_v22, %v7884_v56  ;;  %v8025_v38 = vadd.f32 %v8024_v44, %v8023_v16 }
 0xed0   : > { %v7839_v50 = vpop.f32.mrf.mxu1 }
 0xed1   : > { %v8028_v5 = vrot.slane %v8027_v15, 2  ;;  %v7840_v29 = vadd.f32 %v14575_v20, %v7839_v50  ;;  %v8143_v23 = vsel %vm8126_vm2, %v8025_v38, %v8142_v46 }
 0xed3   : > { %v7885_v18 = vmul.f32 %v7840_v29, %v13376_v52  ;;  %v8029_v12 = vadd.f32 %v8028_v5, %v8027_v15 }
 0xed5   : > { %v8032_v4 = vrot.slane %v7885_v18, 4  ;;  %v8030_v34 = vrot.slane %v8029_v12, 1 }
 0xed7   : > { %v8033_v14 = vadd.f32 %v8032_v4, %v7885_v18  ;;  %v8031_v11 = vadd.f32 %v8030_v34, %v8029_v12 }
 0xed8   : > { %v7842_v32 = vpop.f32.mrf.mxu1 }
 0xed9   : > { %v8034_v2 = vrot.slane %v8033_v14, 2  ;;  %v8144_v59 = vsel %vm8128_vm3, %v8031_v11, %v8143_v23  ;;  %v7843_v25 = vadd.f32 %v14575_v20, %v7842_v32 }
 0xedb   : > { %v8035_v1 = vadd.f32 %v8034_v2, %v8033_v14  ;;  %v7886_v22 = vmul.f32 %v7843_v25, %v13315_v57 }
 0xedd   : > { %v8036_v0 = vrot.slane %v8035_v1, 1  ;;  %v8038_v26 = vrot.slane %v7886_v22, 4 }
 0xedf   : > { %v8037_v17 = vadd.f32 %v8036_v0, %v8035_v1  ;;  %v8039_v55 = vadd.f32 %v8038_v26, %v7886_v22 }
 0xee0   : > { %v7844_v40 = vpop.f32.mrf.mxu1 }
 0xee1   : > { %v8145_v21 = vsel %vm8130_vm4, %v8037_v17, %v8144_v59  ;;  %v7845_v3 = vadd.f32 %v14575_v20, %v7844_v40  ;;  %v8040_v49 = vrot.slane %v8039_v55, 2 }
 0xee2   : > { %8159 = vst [vmem:[%s14608_s10 + $0x10] sm:$0xff] %v8145_v21 }
 0xee3   : > { %v7887_v30 = vmul.f32 %v7845_v3, %v13323_v60  ;;  %v8041_v34 = vadd.f32 %v8040_v49, %v8039_v55 }
 0xee5   : > { %v8044_v15 = vrot.slane %v7887_v30, 4  ;;  %v8042_v47 = vrot.slane %v8041_v34, 1 }
 0xee7   : > { %v8045_v29 = vadd.f32 %v8044_v15, %v7887_v30 }
 0xee8   : > { %v7847_v61 = vpop.f32.mrf.mxu1 }
 0xee9   : > { %v7848_v58 = vadd.f32 %v14575_v20, %v7847_v61  ;;  %v8046_v18 = vrot.slane %v8045_v29, 2 }
 0xeeb   : > { %v7888_v6 = vmul.f32 %v7848_v58, %v13331_v54  ;;  %v8047_v62 = vadd.f32 %v8046_v18, %v8045_v29 }
 0xeed   : > { %v8050_v50 = vrot.slane %v7888_v6, 4  ;;  %v8048_v28 = vrot.slane %v8047_v62, 1 }
 0xeef   : > { %v8051_v31 = vadd.f32 %v8050_v50, %v7888_v6  ;;  %v8049_v46 = vadd.f32 %v8048_v28, %v8047_v62 }
 0xef0   : > { %v7849_v41 = vpop.f32.mrf.mxu1 }
 0xef1   : > { %v7850_v35 = vadd.f32 %v14575_v20, %v7849_v41  ;;  %v8052_v12 = vrot.slane %v8051_v31, 2 }
 0xef3   : > { %v7889_v42 = vmul.f32 %v7850_v35, %v13344_v27  ;;  %v8053_v14 = vadd.f32 %v8052_v12, %v8051_v31 }
 0xef5   : > { %v8056_v9 = vrot.slane %v7889_v42, 4  ;;  %v8054_v38 = vrot.slane %v8053_v14, 1 }
 0xef7   : > { %v8057_v16 = vadd.f32 %v8056_v9, %v7889_v42  ;;  %v8055_v59 = vadd.f32 %v8054_v38, %v8053_v14 }
 0xef8   : > { %v7852_v43 = vpop.f32.mrf.mxu1 }
 0xef9   : > { %v7853_v56 = vadd.f32 %v14575_v20, %v7852_v43 }
 0xefb   : > { %v7890_v19 = vmul.f32 %v7853_v56, %v13363_v8 }
 0xefd   : > { %v8062_v5 = vrot.slane %v7890_v19, 4 }
 0xeff   : > { %v8063_v27 = vadd.f32 %v8062_v5, %v7890_v19 }
 0xf00   : > { %v7854_v36 = vpop.f32.mrf.mxu1 }
 0xf01   : > { %v7855_v37 = vadd.f32 %v14575_v20, %v7854_v36  ;;  %v8064_v4 = vrot.slane %v8063_v27, 2 }
 0xf03   : > { %v7891_v7 = vmul.f32 %v7855_v37, %v13367_v10  ;;  %v8058_v10 = vrot.slane %v8057_v16, 2  ;;  %v8065_v2 = vadd.f32 %v8064_v4, %v8063_v27 }
 0xf05   : > { %v8068_v60 = vrot.slane %v7891_v7, 4  ;;  %v8059_v32 = vadd.f32 %v8058_v10, %v8057_v16  ;;  %v8066_v0 = vrot.slane %v8065_v2, 1 }
 0xf07   : > { %v8069_v51 = vadd.f32 %v8068_v60, %v7891_v7  ;;  %v8060_v11 = vrot.slane %v8059_v32, 1  ;;  %v8067_v41 = vadd.f32 %v8066_v0, %v8065_v2 }
 0xf08   : > { %v7857_v54 = vpop.f32.mrf.mxu1 }
 0xf09   : > { %v7858_v57 = vadd.f32 %v14575_v20, %v7857_v54  ;;  %v8070_v33 = vrot.slane %v8069_v51, 2  ;;  %v8061_v21 = vadd.f32 %v8060_v11, %v8059_v32 }
 0xf0b   : > { %v7892_v8 = vmul.f32 %v7858_v57, %v13372_v24  ;;  %v8071_v45 = vadd.f32 %v8070_v33, %v8069_v51 }
 0xf0d   : > { %v8074_v39 = vrot.slane %v7892_v8, 4  ;;  %v8072_v23 = vrot.slane %v8071_v45, 1 }
 0xf0f   : > { %v8075_v44 = vadd.f32 %v8074_v39, %v7892_v8  ;;  %v8073_v43 = vadd.f32 %v8072_v23, %v8071_v45 }
 0xf10   : > { %v7859_v53 = vpop.f32.mrf.mxu1 }
 0xf11   : > { %v8076_v48 = vrot.slane %v8075_v44, 2  ;;  %v7860_v13 = vadd.f32 %v14575_v20, %v7859_v53  ;;  %v8043_v20 = vadd.f32 %v8042_v47, %v8041_v34 }
 0xf13   : > { %v7893_v24 = vmul.f32 %v7860_v13, %v13376_v52  ;;  %v8077_v1 = vadd.f32 %v8076_v48, %v8075_v44  ;;  %v8146_v52 = vsel %vm8118_vm14, %v8049_v46, %v8043_v20 }
 0xf14   : > { %v8147_v58 = vsel %vm8120_vm15, %v8055_v59, %v8146_v52 }
 0xf15   : > { %v8080_v63 = vrot.slane %v7893_v24, 4  ;;  %v8078_v40 = vrot.slane %v8077_v1, 1  ;;  %v8148_v35 = vsel %vm8122_vm0, %v8061_v21, %v8147_v58 }
 0xf16   : > { %v8149_v30 = vsel %vm8124_vm1, %v8067_v41, %v8148_v35 }
 0xf17   : > { %v8081_v17 = vadd.f32 %v8080_v63, %v7893_v24  ;;  %v8079_v25 = vadd.f32 %v8078_v40, %v8077_v1  ;;  %v8150_v6 = vsel %vm8126_vm2, %v8073_v43, %v8149_v30 }
 0xf19   : > { %v8082_v61 = vrot.slane %v8081_v17, 2  ;;  %v8151_v22 = vsel %vm8128_vm3, %v8079_v25, %v8150_v6 }
 0xf1b   : > { %v8083_v3 = vadd.f32 %v8082_v61, %v8081_v17 }
 0xf1d   : > { %v8084_v56 = vrot.slane %v8083_v3, 1 }
 0xf1f   : > { %v8085_v36 = vadd.f32 %v8084_v56, %v8083_v3 }
 0xf21   : > { %v8152_v42 = vsel %vm8130_vm4, %v8085_v36, %v8151_v22 }
 0xf22   : > { %8160 = vst [vmem:[%s14608_s10 + $0x18] sm:$0xff] %v8152_v42 }
 0xf23   : > { %10132 = shalt.err (!%p10129_p3)
}
 0xf24   : > { %s10271_s2 = smov 128   ;;  %s10272_s5 = smov 8  }
 0xf25   : > { %9372 = dma.vmem_to_hbm [thread:$0]  (%p10546_p5), %s8175_s0, 512, %s8177_s15, %s8162_s14, %s10271_s2, %s10271_s2, %s10272_s5  }
 0xf26 PF: > { %s14901_s8 = sld [smem:[#allocation78_spill]] }
 0xf27   : > { %s14902_s7 = sld [smem:[#allocation75_spill]] }
 0xf2c   : > { %p9459_p4 = scmp.ge.s32.totalorder %s14901_s8, 2 }
 0xf2d   : > { %s8191_s6 = sand.u32 1, %s14902_s7  }
 0xf2e   : > { %p9424_p7 = pnand %p9459_p4, %p10550_p6  ;;  %s8192_s9 = scalar_lea.sflag [#allocation4], %s8191_s6 }
 0xf30   : > { %p9425_p8 = pneg %p9424_p7 }
 0xf32   : > { %10186 = dma.done.wait (%p9425_p8), %s8192_s9, 512  }
 0xf33   : > { %10188 = vsyncadd (%p9425_p8), %s8192_s9, 4294966784  ;;  %s14904_s15 = sld [smem:[#allocation79_spill]] }
 0xf34   : > { %s14905_s7 = sld [smem:[#allocation76_spill]] }
 0xf35   : > { %s14906_s10 = sld [smem:[#allocation77_spill]] }
 0xf36   : > { %s14907_s11 = sld [smem:[#allocation80_spill]] }
 0xf39   : > { %p110_p11 = scmp.ge.s32.totalorder %s14904_s15, 4  }
 0xf3b   :  { %112 = sbr.rel (!%p110_p11) target bundleno = 103 (0x67), region = 345 }
 0xf40   :  { %8198 = vsyncpa [#allocation3], 1 }
 0xf41   :  { %8200 = vsyncpa [#allocation3 + $0x1], 1 }
 0xf42   :  { %8201 = vsyncpa [#allocation6], 1 }
 0xf43   :  { %8202 = vsyncpa [#allocation9], 1 }
 0xf44   :  { %8203 = vsyncpa [#allocation12], 1 }
 0xf45   :  { %8204 = vsyncpa [#allocation15], 1 }
 0xf46   :  { %8205 = vsyncpa [#allocation18], 1 }
 0xf47   :  { %8206 = vsyncpa [#allocation21], 1 }
 0xf48   :  { %8207 = vsyncpa [#allocation24], 1 }
 0xf49   :  { %8208 = vsyncpa [#allocation27], 1 }
 0xf4a   :  { %8209 = vsyncpa [#allocation4], 1 }
 0xf4b   :  { %8211 = vsyncpa [#allocation4 + $0x1], 1 }

</bundles_post_ra>
